<compile_context>
chip_gen: v5e
topology: v5e:2x2
jax: 0.10.0
libtpu: 0.0.40
codegen_flags: <defaults>
</compile_context>

<pallas_src>
import functools

import jax
import jax.numpy as jnp
from jax.experimental import pallas as pl
from jax.experimental.pallas import tpu as pltpu


def _im2col_3x3(x_flat, H, W):
    """im2col for a 3x3 'same' conv on a row-major-flattened (H*W, C) activation.

    Returns (H*W, 9*C) with column order (ky, kx, cin), matching
    w.reshape(9*C, Cout) for HWIO weights.  Horizontal taps are flat shifts by
    +-1 with left/right-border masks; vertical taps are flat shifts by +-W
    (sublane aligned when W % 8 == 0) with zero rows supplying the halo.
    """
    HW, C = x_flat.shape
    dtype = x_flat.dtype
    x_ids = jax.lax.broadcasted_iota(jnp.int32, (HW, 1), 0) % W

    # horizontal (kx) taps: shift the flat buffer by -1/0/+1 and mask row edges.
    zpad = jnp.zeros((8, C), dtype)
    vp = jnp.concatenate([zpad, x_flat, zpad], axis=0)          # (HW + 16, C)
    cols = []
    for dx in (-1, 0, 1):
        piece = vp[8 + dx:8 + dx + HW, :]                       # (HW, C)
        if dx != 0:
            valid = (x_ids + dx >= 0) & (x_ids + dx < W)
            piece = jnp.where(valid, piece, 0.0)
        cols.append(piece)
    xw = jnp.concatenate(cols, axis=1)                          # (HW, 3C)

    # vertical (ky) taps: shift by whole rows (W-aligned); zero rows = top/bottom pad.
    zpad2 = jnp.zeros((W, 3 * C), dtype)
    vpw = jnp.concatenate([zpad2, xw, zpad2], axis=0)           # (HW + 2W, 3C)
    rows = [vpw[W + dy * W:W + dy * W + HW, :] for dy in (-1, 0, 1)]
    return jnp.concatenate(rows, axis=1)                        # (HW, 9C)


def _smenc_kernel(H, W,
                  corr_ref, flow_ref, fpat_ref,
                  wc1_ref, bc1_ref, wf1_ref, bf1_ref,
                  wf2_ref, bf2_ref, wcf_ref, bcf_ref,
                  out_ref):
    # corr_ref : (1, Cp, HW)   correlation features, channel-major (raw NCHW layout)
    # flow_ref : (1, HW, 2)    flow, pixel-major
    # fpat_ref : (1, HW, 98)   7x7 im2col patches of flow (column order ky,kx,cin)
    # w*_ref   : flattened HWIO weights (K*K*Cin, Cout); b*_ref: (1, Cout)
    # out_ref  : (1, 82, HW)   channel-major output (NCHW layout, lane-dense)
    f32 = jnp.float32
    HW = H * W

    # ---- convc1: 1x1 conv, one matmul, contracting over dim 0 of both operands
    # (keeps the big corr block in its native channel-major layout; no transpose).
    cor = jax.lax.dot_general(corr_ref[0], wc1_ref[...],
                              (((0,), (0,)), ((), ())),
                              preferred_element_type=f32)        # (HW, 96)
    cor = jnp.maximum(cor + bc1_ref[...], 0.0)

    # ---- convf1: 7x7 conv on flow as a single im2col GEMM (K = 98).
    flo = jnp.dot(fpat_ref[0], wf1_ref[...], preferred_element_type=f32)
    flo = jnp.maximum(flo + bf1_ref[...], 0.0)                   # (HW, 64)

    # ---- convf2: 3x3 conv, im2col built in-register (K = 576).
    p2 = _im2col_3x3(flo, H, W)
    flo = jnp.dot(p2, wf2_ref[...], preferred_element_type=f32)
    flo = jnp.maximum(flo + bf2_ref[...], 0.0)                   # (HW, 32)

    # ---- conv: 3x3 conv on cat([cor, flo], C) -> 80 channels (K = 1152).
    cor_flo = jnp.concatenate([cor, flo], axis=1)                # (HW, 128)
    p3 = _im2col_3x3(cor_flo, H, W)
    out = jnp.dot(p3, wcf_ref[...], preferred_element_type=f32)
    out = jnp.maximum(out + bcf_ref[...], 0.0)                   # (HW, 80)

    # ---- cat([out, flow], C) and emit channel-major (NCHW) lane-dense output.
    pad_c = 128 - (80 + 2)
    stacked = jnp.concatenate(
        [out, flow_ref[0], jnp.zeros((HW, pad_c), f32)], axis=1)  # (HW, 128)
    out_cm = stacked.T                                            # (128, HW), aligned transpose
    out_ref[0] = out_cm[:82, :]


def _flow_patches_7x7(flow_nchw):
    """Build (B, H*W, 98) im2col patches for the 7x7 pad-3 conv on 2-channel flow.

    Feature order is (ky, kx, cin), matching wf1.reshape(98, 64) for HWIO weights.
    """
    B, C, H, W = flow_nchw.shape
    p = 3
    fp = jnp.pad(flow_nchw, ((0, 0), (0, 0), (p, p), (p, p)))
    taps = []
    for ky in range(7):
        for kx in range(7):
            taps.append(fp[:, :, ky:ky + H, kx:kx + W])          # (B, 2, H, W)
    pat = jnp.stack(taps, axis=1)                                # (B, 49, 2, H, W)
    pat = pat.reshape(B, 49 * C, H * W)                          # (B, 98, HW)
    return jnp.transpose(pat, (0, 2, 1))                         # (B, HW, 98)


def small_motion_encoder(flow, corr, params):
    """SmallMotionEncoder forward.

    flow: (B, 2, H, W) f32; corr: (B, cor_planes, H, W) f32.
    params: HWIO conv weights + biases.  Returns (B, 82, H, W) f32.
    """
    B, _, H, W = flow.shape
    Cp = corr.shape[1]
    HW = H * W

    wc1 = params["wc1"].reshape(Cp, 96)
    bc1 = params["bc1"].reshape(1, 96)
    wf1 = params["wf1"].reshape(7 * 7 * 2, 64)
    bf1 = params["bf1"].reshape(1, 64)
    wf2 = params["wf2"].reshape(3 * 3 * 64, 32)
    bf2 = params["bf2"].reshape(1, 32)
    wcf = params["w"].reshape(3 * 3 * 128, 80)
    bcf = params["b"].reshape(1, 80)

    corr_cm = corr.reshape(B, Cp, HW)                            # free reshape (channel-major)
    flow_rm = jnp.transpose(flow.reshape(B, 2, HW), (0, 2, 1))   # (B, HW, 2), tiny
    fpat = _flow_patches_7x7(flow)                               # (B, HW, 98), tiny (2-ch input)

    kernel = functools.partial(_smenc_kernel, H, W)
    out = pl.pallas_call(
        kernel,
        out_shape=jax.ShapeDtypeStruct((B, 82, HW), jnp.float32),
        grid=(B,),
        in_specs=[
            pl.BlockSpec((1, Cp, HW), lambda b: (b, 0, 0)),
            pl.BlockSpec((1, HW, 2), lambda b: (b, 0, 0)),
            pl.BlockSpec((1, HW, 98), lambda b: (b, 0, 0)),
            pl.BlockSpec((Cp, 96), lambda b: (0, 0)),
            pl.BlockSpec((1, 96), lambda b: (0, 0)),
            pl.BlockSpec((98, 64), lambda b: (0, 0)),
            pl.BlockSpec((1, 64), lambda b: (0, 0)),
            pl.BlockSpec((576, 32), lambda b: (0, 0)),
            pl.BlockSpec((1, 32), lambda b: (0, 0)),
            pl.BlockSpec((1152, 80), lambda b: (0, 0)),
            pl.BlockSpec((1, 80), lambda b: (0, 0)),
        ],
        out_specs=pl.BlockSpec((1, 82, HW), lambda b: (b, 0, 0)),
        compiler_params=pltpu.CompilerParams(
            dimension_semantics=("parallel",)),
    )(corr_cm, flow_rm, fpat, wc1, bc1, wf1, bf1, wf2, bf2, wcf, bcf)

    # Output is already channel-major (NCHW) -> only a free reshape remains.
    return out.reshape(B, 82, H, W)


def reference_small_motion_encoder(flow, corr, params):
    """Pure-JAX reference (lax conv) for correctness checking."""
    prec = jax.lax.Precision.HIGHEST

    def conv(x, w, b, pad):
        y = jax.lax.conv_general_dilated(
            x, w, window_strides=(1, 1), padding=((pad, pad), (pad, pad)),
            dimension_numbers=("NCHW", "HWIO", "NCHW"), precision=prec)
        return y + b.reshape(1, -1, 1, 1)

    cor = jax.nn.relu(conv(corr, params["wc1"], params["bc1"], 0))
    flo = jax.nn.relu(conv(flow, params["wf1"], params["bf1"], 3))
    flo = jax.nn.relu(conv(flo, params["wf2"], params["bf2"], 1))
    cor_flo = jnp.concatenate([cor, flo], axis=1)
    out = jax.nn.relu(conv(cor_flo, params["w"], params["b"], 1))
    return jnp.concatenate([out, flow], axis=1)


if __name__ == "__main__":
    # Small, module-consistent shapes: corr_levels=1, corr_radius=1 -> cor_planes=9.
    corr_levels, corr_radius = 1, 1
    cor_planes = corr_levels * (2 * corr_radius + 1) ** 2        # 9
    B, H, W = 2, 16, 16

    key = jax.random.PRNGKey(0)
    ks = jax.random.split(key, 10)
    flow = jax.random.normal(ks[0], (B, 2, H, W), jnp.float32)
    corr = jax.random.normal(ks[1], (B, cor_planes, H, W), jnp.float32)

    # Weights in HWIO layout (synthetic deterministic init).
    params = {
        "wc1": jax.random.normal(ks[2], (1, 1, cor_planes, 96), jnp.float32) * 0.1,
        "bc1": jax.random.normal(ks[3], (96,), jnp.float32) * 0.1,
        "wf1": jax.random.normal(ks[4], (7, 7, 2, 64), jnp.float32) * 0.05,
        "bf1": jax.random.normal(ks[5], (64,), jnp.float32) * 0.05,
        "wf2": jax.random.normal(ks[6], (3, 3, 64, 32), jnp.float32) * 0.05,
        "bf2": jax.random.normal(ks[7], (32,), jnp.float32) * 0.05,
        "w":   jax.random.normal(ks[8], (3, 3, 128, 80), jnp.float32) * 0.05,
        "b":   jax.random.normal(ks[9], (80,), jnp.float32) * 0.05,
    }

    fwd = jax.jit(small_motion_encoder)
    out = fwd(flow, corr, params)
    jax.block_until_ready(out)

    ref = reference_small_motion_encoder(flow, corr, params)
    assert out.shape == (B, 82, H, W), out.shape
    max_err = float(jnp.max(jnp.abs(out - ref)))
    assert jnp.allclose(out, ref, atol=2e-3, rtol=2e-3), (
        f"mismatch vs reference, max abs err = {max_err}")

    print("KERNEL_OK")
</pallas_src>

<mosaic_0001>
module attributes {stable_mosaic.version = 11 : i64} {
  func.func @_smenc_kernel(%arg0: i32, %arg1: memref<1x9x256xf32, #tpu.memory_space<vmem>>, %arg2: memref<1x256x2xf32, #tpu.memory_space<vmem>>, %arg3: memref<1x256x98xf32, #tpu.memory_space<vmem>>, %arg4: memref<9x96xf32, #tpu.memory_space<vmem>>, %arg5: memref<1x96xf32, #tpu.memory_space<vmem>>, %arg6: memref<98x64xf32, #tpu.memory_space<vmem>>, %arg7: memref<1x64xf32, #tpu.memory_space<vmem>>, %arg8: memref<576x32xf32, #tpu.memory_space<vmem>>, %arg9: memref<1x32xf32, #tpu.memory_space<vmem>>, %arg10: memref<1152x80xf32, #tpu.memory_space<vmem>>, %arg11: memref<1x80xf32, #tpu.memory_space<vmem>>, %arg12: memref<1x82x256xf32, #tpu.memory_space<vmem>>) attributes {dimension_semantics = [#tpu.dimension_semantics<parallel>], iteration_bounds = array<i64: 2>, scalar_prefetch = 0 : i64, scratch_operands = 0 : i64, tpu.core_type = #tpu.core_type<tc>, window_params = [{transform_indices = @transform_0, window_bounds = array<i64: 1, 9, 256>}, {transform_indices = @transform_1, window_bounds = array<i64: 1, 256, 2>}, {transform_indices = @transform_2, window_bounds = array<i64: 1, 256, 98>}, {pipeline_mode = #tpu.pipeline_mode<synchronous>, transform_indices = @transform_3, window_bounds = array<i64: 9, 96>}, {pipeline_mode = #tpu.pipeline_mode<synchronous>, transform_indices = @transform_4, window_bounds = array<i64: 1, 96>}, {pipeline_mode = #tpu.pipeline_mode<synchronous>, transform_indices = @transform_5, window_bounds = array<i64: 98, 64>}, {pipeline_mode = #tpu.pipeline_mode<synchronous>, transform_indices = @transform_6, window_bounds = array<i64: 1, 64>}, {pipeline_mode = #tpu.pipeline_mode<synchronous>, transform_indices = @transform_7, window_bounds = array<i64: 576, 32>}, {pipeline_mode = #tpu.pipeline_mode<synchronous>, transform_indices = @transform_8, window_bounds = array<i64: 1, 32>}, {pipeline_mode = #tpu.pipeline_mode<synchronous>, transform_indices = @transform_9, window_bounds = array<i64: 1152, 80>}, {pipeline_mode = #tpu.pipeline_mode<synchronous>, transform_indices = @transform_10, window_bounds = array<i64: 1, 80>}, {transform_indices = @transform_11, window_bounds = array<i64: 1, 82, 256>}]} {
    %c0 = arith.constant 0 : index
    %c0_0 = arith.constant 0 : index
    %c0_1 = arith.constant 0 : index
    %0 = vector.load %arg1[%c0, %c0_0, %c0_1] : memref<1x9x256xf32, #tpu.memory_space<vmem>>, vector<1x9x256xf32>
    %1 = vector.shape_cast %0 : vector<1x9x256xf32> to vector<9x256xf32>
    %c0_2 = arith.constant 0 : index
    %c0_3 = arith.constant 0 : index
    %2 = vector.load %arg4[%c0_2, %c0_3] : memref<9x96xf32, #tpu.memory_space<vmem>>, vector<9x96xf32>
    %cst = arith.constant dense<0.000000e+00> : vector<256x96xf32>
    %3 = tpu.matmul %1, %2, %cst {dimension_numbers = #tpu.dot_dimension_numbers<[0], [0], [1], [1], [0, 1, 1, 1], [], []>} : vector<9x256xf32>, vector<9x96xf32>, vector<256x96xf32> -> vector<256x96xf32>
    %c0_4 = arith.constant 0 : index
    %c0_5 = arith.constant 0 : index
    %4 = vector.load %arg5[%c0_4, %c0_5] : memref<1x96xf32, #tpu.memory_space<vmem>>, vector<1x96xf32>
    %5 = vector.broadcast %4 : vector<1x96xf32> to vector<256x96xf32>
    %6 = arith.addf %3, %5 : vector<256x96xf32>
    %cst_6 = arith.constant 0.000000e+00 : f32
    %7 = vector.broadcast %cst_6 : f32 to vector<256x96xf32>
    %8 = arith.maximumf %6, %7 : vector<256x96xf32>
    %c0_7 = arith.constant 0 : index
    %c0_8 = arith.constant 0 : index
    %c0_9 = arith.constant 0 : index
    %9 = vector.load %arg3[%c0_7, %c0_8, %c0_9] : memref<1x256x98xf32, #tpu.memory_space<vmem>>, vector<1x256x98xf32>
    %10 = vector.shape_cast %9 : vector<1x256x98xf32> to vector<256x98xf32>
    %c0_10 = arith.constant 0 : index
    %c0_11 = arith.constant 0 : index
    %11 = vector.load %arg6[%c0_10, %c0_11] : memref<98x64xf32, #tpu.memory_space<vmem>>, vector<98x64xf32>
    %cst_12 = arith.constant dense<0.000000e+00> : vector<256x64xf32>
    %12 = tpu.matmul %10, %11, %cst_12 {dimension_numbers = #tpu.dot_dimension_numbers<[1], [0], [0], [1], [0, 0, 1, 1], [], []>} : vector<256x98xf32>, vector<98x64xf32>, vector<256x64xf32> -> vector<256x64xf32>
    %c0_13 = arith.constant 0 : index
    %c0_14 = arith.constant 0 : index
    %13 = vector.load %arg7[%c0_13, %c0_14] : memref<1x64xf32, #tpu.memory_space<vmem>>, vector<1x64xf32>
    %14 = vector.broadcast %13 : vector<1x64xf32> to vector<256x64xf32>
    %15 = arith.addf %12, %14 : vector<256x64xf32>
    %cst_15 = arith.constant 0.000000e+00 : f32
    %16 = vector.broadcast %cst_15 : f32 to vector<256x64xf32>
    %17 = arith.maximumf %15, %16 : vector<256x64xf32>
    %18 = tpu.iota {dimensions = array<i32: 0>} : vector<256x1xi32>
    %c16_i32 = arith.constant 16 : i32
    %c0_i32 = arith.constant 0 : i32
    %19 = arith.cmpi eq, %c16_i32, %c0_i32 : i32
    %c1_i32 = arith.constant 1 : i32
    %20 = arith.select %19, %c1_i32, %c16_i32 : i32
    %21 = vector.broadcast %20 : i32 to vector<256x1xi32>
    %22 = arith.remsi %18, %21 : vector<256x1xi32>
    %c0_i32_16 = arith.constant 0 : i32
    %23 = vector.broadcast %c0_i32_16 : i32 to vector<256x1xi32>
    %24 = arith.cmpi ne, %22, %23 : vector<256x1xi32>
    %c0_i32_17 = arith.constant 0 : i32
    %25 = vector.broadcast %c0_i32_17 : i32 to vector<256x1xi32>
    %26 = arith.cmpi slt, %22, %25 : vector<256x1xi32>
    %c0_i32_18 = arith.constant 0 : i32
    %27 = arith.cmpi slt, %20, %c0_i32_18 : i32
    %28 = vector.broadcast %27 : i1 to vector<256x1xi1>
    %29 = vector.broadcast %28 : vector<256x1xi1> to vector<256x1xi1>
    %30 = arith.xori %26, %29 : vector<256x1xi1>
    %31 = arith.andi %30, %24 : vector<256x1xi1>
    %32 = vector.broadcast %20 : i32 to vector<256x1xi32>
    %33 = arith.addi %22, %32 : vector<256x1xi32>
    %34 = arith.select %31, %33, %22 : vector<256x1xi1>, vector<256x1xi32>
    %cst_19 = arith.constant 0.000000e+00 : f32
    %35 = vector.broadcast %cst_19 : f32 to vector<8x64xf32>
    %36 = tpu.concatenate %35, %17, %35 in 0 : vector<8x64xf32>, vector<256x64xf32>, vector<8x64xf32> -> vector<272x64xf32>
    %37 = vector.extract_strided_slice %36 {offsets = [7, 0], sizes = [256, 64], strides = [1, 1]} : vector<272x64xf32> to vector<256x64xf32>
    %c-1_i32 = arith.constant -1 : i32
    %38 = vector.broadcast %c-1_i32 : i32 to vector<256x1xi32>
    %39 = arith.addi %34, %38 : vector<256x1xi32>
    %c0_i32_20 = arith.constant 0 : i32
    %40 = vector.broadcast %c0_i32_20 : i32 to vector<256x1xi32>
    %41 = arith.cmpi sge, %39, %40 : vector<256x1xi32>
    %c-1_i32_21 = arith.constant -1 : i32
    %42 = vector.broadcast %c-1_i32_21 : i32 to vector<256x1xi32>
    %43 = arith.addi %34, %42 : vector<256x1xi32>
    %c16_i32_22 = arith.constant 16 : i32
    %44 = vector.broadcast %c16_i32_22 : i32 to vector<256x1xi32>
    %45 = arith.cmpi slt, %43, %44 : vector<256x1xi32>
    %46 = arith.andi %41, %45 : vector<256x1xi1>
    %cst_23 = arith.constant 0.000000e+00 : f32
    %47 = vector.shape_cast %46 : vector<256x1xi1> to vector<256x1xi1>
    %48 = vector.broadcast %47 : vector<256x1xi1> to vector<256x64xi1>
    %49 = vector.broadcast %cst_23 : f32 to vector<256x64xf32>
    %50 = arith.select %48, %37, %49 : vector<256x64xi1>, vector<256x64xf32>
    %51 = vector.extract_strided_slice %36 {offsets = [8, 0], sizes = [256, 64], strides = [1, 1]} : vector<272x64xf32> to vector<256x64xf32>
    %52 = vector.extract_strided_slice %36 {offsets = [9, 0], sizes = [256, 64], strides = [1, 1]} : vector<272x64xf32> to vector<256x64xf32>
    %c1_i32_24 = arith.constant 1 : i32
    %53 = vector.broadcast %c1_i32_24 : i32 to vector<256x1xi32>
    %54 = arith.addi %34, %53 : vector<256x1xi32>
    %c0_i32_25 = arith.constant 0 : i32
    %55 = vector.broadcast %c0_i32_25 : i32 to vector<256x1xi32>
    %56 = arith.cmpi sge, %54, %55 : vector<256x1xi32>
    %c1_i32_26 = arith.constant 1 : i32
    %57 = vector.broadcast %c1_i32_26 : i32 to vector<256x1xi32>
    %58 = arith.addi %34, %57 : vector<256x1xi32>
    %c16_i32_27 = arith.constant 16 : i32
    %59 = vector.broadcast %c16_i32_27 : i32 to vector<256x1xi32>
    %60 = arith.cmpi slt, %58, %59 : vector<256x1xi32>
    %61 = arith.andi %56, %60 : vector<256x1xi1>
    %cst_28 = arith.constant 0.000000e+00 : f32
    %62 = vector.shape_cast %61 : vector<256x1xi1> to vector<256x1xi1>
    %63 = vector.broadcast %62 : vector<256x1xi1> to vector<256x64xi1>
    %64 = vector.broadcast %cst_28 : f32 to vector<256x64xf32>
    %65 = arith.select %63, %52, %64 : vector<256x64xi1>, vector<256x64xf32>
    %66 = tpu.concatenate %50, %51, %65 in 1 : vector<256x64xf32>, vector<256x64xf32>, vector<256x64xf32> -> vector<256x192xf32>
    %cst_29 = arith.constant 0.000000e+00 : f32
    %67 = vector.broadcast %cst_29 : f32 to vector<16x192xf32>
    %68 = tpu.concatenate %67, %66, %67 in 0 : vector<16x192xf32>, vector<256x192xf32>, vector<16x192xf32> -> vector<288x192xf32>
    %69 = vector.extract_strided_slice %68 {offsets = [0, 0], sizes = [256, 192], strides = [1, 1]} : vector<288x192xf32> to vector<256x192xf32>
    %70 = vector.extract_strided_slice %68 {offsets = [16, 0], sizes = [256, 192], strides = [1, 1]} : vector<288x192xf32> to vector<256x192xf32>
    %71 = vector.extract_strided_slice %68 {offsets = [32, 0], sizes = [256, 192], strides = [1, 1]} : vector<288x192xf32> to vector<256x192xf32>
    %72 = tpu.concatenate %69, %70, %71 in 1 : vector<256x192xf32>, vector<256x192xf32>, vector<256x192xf32> -> vector<256x576xf32>
    %c0_30 = arith.constant 0 : index
    %c0_31 = arith.constant 0 : index
    %73 = vector.load %arg8[%c0_30, %c0_31] : memref<576x32xf32, #tpu.memory_space<vmem>>, vector<576x32xf32>
    %cst_32 = arith.constant dense<0.000000e+00> : vector<256x32xf32>
    %74 = tpu.matmul %72, %73, %cst_32 {dimension_numbers = #tpu.dot_dimension_numbers<[1], [0], [0], [1], [0, 0, 1, 1], [], []>} : vector<256x576xf32>, vector<576x32xf32>, vector<256x32xf32> -> vector<256x32xf32>
    %c0_33 = arith.constant 0 : index
    %c0_34 = arith.constant 0 : index
    %75 = vector.load %arg9[%c0_33, %c0_34] : memref<1x32xf32, #tpu.memory_space<vmem>>, vector<1x32xf32>
    %76 = vector.broadcast %75 : vector<1x32xf32> to vector<256x32xf32>
    %77 = arith.addf %74, %76 : vector<256x32xf32>
    %cst_35 = arith.constant 0.000000e+00 : f32
    %78 = vector.broadcast %cst_35 : f32 to vector<256x32xf32>
    %79 = arith.maximumf %77, %78 : vector<256x32xf32>
    %80 = tpu.concatenate %8, %79 in 1 : vector<256x96xf32>, vector<256x32xf32> -> vector<256x128xf32>
    %81 = tpu.iota {dimensions = array<i32: 0>} : vector<256x1xi32>
    %c16_i32_36 = arith.constant 16 : i32
    %c0_i32_37 = arith.constant 0 : i32
    %82 = arith.cmpi eq, %c16_i32_36, %c0_i32_37 : i32
    %c1_i32_38 = arith.constant 1 : i32
    %83 = arith.select %82, %c1_i32_38, %c16_i32_36 : i32
    %84 = vector.broadcast %83 : i32 to vector<256x1xi32>
    %85 = arith.remsi %81, %84 : vector<256x1xi32>
    %c0_i32_39 = arith.constant 0 : i32
    %86 = vector.broadcast %c0_i32_39 : i32 to vector<256x1xi32>
    %87 = arith.cmpi ne, %85, %86 : vector<256x1xi32>
    %c0_i32_40 = arith.constant 0 : i32
    %88 = vector.broadcast %c0_i32_40 : i32 to vector<256x1xi32>
    %89 = arith.cmpi slt, %85, %88 : vector<256x1xi32>
    %c0_i32_41 = arith.constant 0 : i32
    %90 = arith.cmpi slt, %83, %c0_i32_41 : i32
    %91 = vector.broadcast %90 : i1 to vector<256x1xi1>
    %92 = vector.broadcast %91 : vector<256x1xi1> to vector<256x1xi1>
    %93 = arith.xori %89, %92 : vector<256x1xi1>
    %94 = arith.andi %93, %87 : vector<256x1xi1>
    %95 = vector.broadcast %83 : i32 to vector<256x1xi32>
    %96 = arith.addi %85, %95 : vector<256x1xi32>
    %97 = arith.select %94, %96, %85 : vector<256x1xi1>, vector<256x1xi32>
    %cst_42 = arith.constant 0.000000e+00 : f32
    %98 = vector.broadcast %cst_42 : f32 to vector<8x128xf32>
    %99 = tpu.concatenate %98, %80, %98 in 0 : vector<8x128xf32>, vector<256x128xf32>, vector<8x128xf32> -> vector<272x128xf32>
    %100 = vector.extract_strided_slice %99 {offsets = [7, 0], sizes = [256, 128], strides = [1, 1]} : vector<272x128xf32> to vector<256x128xf32>
    %c-1_i32_43 = arith.constant -1 : i32
    %101 = vector.broadcast %c-1_i32_43 : i32 to vector<256x1xi32>
    %102 = arith.addi %97, %101 : vector<256x1xi32>
    %c0_i32_44 = arith.constant 0 : i32
    %103 = vector.broadcast %c0_i32_44 : i32 to vector<256x1xi32>
    %104 = arith.cmpi sge, %102, %103 : vector<256x1xi32>
    %c-1_i32_45 = arith.constant -1 : i32
    %105 = vector.broadcast %c-1_i32_45 : i32 to vector<256x1xi32>
    %106 = arith.addi %97, %105 : vector<256x1xi32>
    %c16_i32_46 = arith.constant 16 : i32
    %107 = vector.broadcast %c16_i32_46 : i32 to vector<256x1xi32>
    %108 = arith.cmpi slt, %106, %107 : vector<256x1xi32>
    %109 = arith.andi %104, %108 : vector<256x1xi1>
    %cst_47 = arith.constant 0.000000e+00 : f32
    %110 = vector.shape_cast %109 : vector<256x1xi1> to vector<256x1xi1>
    %111 = vector.broadcast %110 : vector<256x1xi1> to vector<256x128xi1>
    %112 = vector.broadcast %cst_47 : f32 to vector<256x128xf32>
    %113 = arith.select %111, %100, %112 : vector<256x128xi1>, vector<256x128xf32>
    %114 = vector.extract_strided_slice %99 {offsets = [8, 0], sizes = [256, 128], strides = [1, 1]} : vector<272x128xf32> to vector<256x128xf32>
    %115 = vector.extract_strided_slice %99 {offsets = [9, 0], sizes = [256, 128], strides = [1, 1]} : vector<272x128xf32> to vector<256x128xf32>
    %c1_i32_48 = arith.constant 1 : i32
    %116 = vector.broadcast %c1_i32_48 : i32 to vector<256x1xi32>
    %117 = arith.addi %97, %116 : vector<256x1xi32>
    %c0_i32_49 = arith.constant 0 : i32
    %118 = vector.broadcast %c0_i32_49 : i32 to vector<256x1xi32>
    %119 = arith.cmpi sge, %117, %118 : vector<256x1xi32>
    %c1_i32_50 = arith.constant 1 : i32
    %120 = vector.broadcast %c1_i32_50 : i32 to vector<256x1xi32>
    %121 = arith.addi %97, %120 : vector<256x1xi32>
    %c16_i32_51 = arith.constant 16 : i32
    %122 = vector.broadcast %c16_i32_51 : i32 to vector<256x1xi32>
    %123 = arith.cmpi slt, %121, %122 : vector<256x1xi32>
    %124 = arith.andi %119, %123 : vector<256x1xi1>
    %cst_52 = arith.constant 0.000000e+00 : f32
    %125 = vector.shape_cast %124 : vector<256x1xi1> to vector<256x1xi1>
    %126 = vector.broadcast %125 : vector<256x1xi1> to vector<256x128xi1>
    %127 = vector.broadcast %cst_52 : f32 to vector<256x128xf32>
    %128 = arith.select %126, %115, %127 : vector<256x128xi1>, vector<256x128xf32>
    %129 = tpu.concatenate %113, %114, %128 in 1 : vector<256x128xf32>, vector<256x128xf32>, vector<256x128xf32> -> vector<256x384xf32>
    %cst_53 = arith.constant 0.000000e+00 : f32
    %130 = vector.broadcast %cst_53 : f32 to vector<16x384xf32>
    %131 = tpu.concatenate %130, %129, %130 in 0 : vector<16x384xf32>, vector<256x384xf32>, vector<16x384xf32> -> vector<288x384xf32>
    %132 = vector.extract_strided_slice %131 {offsets = [0, 0], sizes = [256, 384], strides = [1, 1]} : vector<288x384xf32> to vector<256x384xf32>
    %133 = vector.extract_strided_slice %131 {offsets = [16, 0], sizes = [256, 384], strides = [1, 1]} : vector<288x384xf32> to vector<256x384xf32>
    %134 = vector.extract_strided_slice %131 {offsets = [32, 0], sizes = [256, 384], strides = [1, 1]} : vector<288x384xf32> to vector<256x384xf32>
    %135 = tpu.concatenate %132, %133, %134 in 1 : vector<256x384xf32>, vector<256x384xf32>, vector<256x384xf32> -> vector<256x1152xf32>
    %c0_54 = arith.constant 0 : index
    %c0_55 = arith.constant 0 : index
    %136 = vector.load %arg10[%c0_54, %c0_55] : memref<1152x80xf32, #tpu.memory_space<vmem>>, vector<1152x80xf32>
    %cst_56 = arith.constant dense<0.000000e+00> : vector<256x80xf32>
    %137 = tpu.matmul %135, %136, %cst_56 {dimension_numbers = #tpu.dot_dimension_numbers<[1], [0], [0], [1], [0, 0, 1, 1], [], []>} : vector<256x1152xf32>, vector<1152x80xf32>, vector<256x80xf32> -> vector<256x80xf32>
    %c0_57 = arith.constant 0 : index
    %c0_58 = arith.constant 0 : index
    %138 = vector.load %arg11[%c0_57, %c0_58] : memref<1x80xf32, #tpu.memory_space<vmem>>, vector<1x80xf32>
    %139 = vector.broadcast %138 : vector<1x80xf32> to vector<256x80xf32>
    %140 = arith.addf %137, %139 : vector<256x80xf32>
    %cst_59 = arith.constant 0.000000e+00 : f32
    %141 = vector.broadcast %cst_59 : f32 to vector<256x80xf32>
    %142 = arith.maximumf %140, %141 : vector<256x80xf32>
    %c0_60 = arith.constant 0 : index
    %c0_61 = arith.constant 0 : index
    %c0_62 = arith.constant 0 : index
    %143 = vector.load %arg2[%c0_60, %c0_61, %c0_62] : memref<1x256x2xf32, #tpu.memory_space<vmem>>, vector<1x256x2xf32>
    %144 = vector.shape_cast %143 : vector<1x256x2xf32> to vector<256x2xf32>
    %cst_63 = arith.constant 0.000000e+00 : f32
    %145 = vector.broadcast %cst_63 : f32 to vector<256x46xf32>
    %146 = tpu.concatenate %142, %144, %145 in 1 : vector<256x80xf32>, vector<256x2xf32>, vector<256x46xf32> -> vector<256x128xf32>
    %147 = tpu.transpose %146, [1, 0] : vector<256x128xf32> -> vector<128x256xf32>
    %148 = vector.extract_strided_slice %147 {offsets = [0, 0], sizes = [82, 256], strides = [1, 1]} : vector<128x256xf32> to vector<82x256xf32>
    %c0_64 = arith.constant 0 : index
    %c0_65 = arith.constant 0 : index
    %c0_66 = arith.constant 0 : index
    %149 = vector.load %arg12[%c0_64, %c0_65, %c0_66] : memref<1x82x256xf32, #tpu.memory_space<vmem>>, vector<1x82x256xf32>
    %150 = vector.shape_cast %149 : vector<1x82x256xf32> to vector<82x256xf32>
    %151 = vector.shape_cast %148 : vector<82x256xf32> to vector<1x82x256xf32>
    tpu.vector_store %arg12[%c0_64, %c0_65, %c0_66], %151 {strides = array<i32>} : memref<1x82x256xf32, #tpu.memory_space<vmem>>, vector<1x82x256xf32>,
    return
  }
  func.func @transform_0(%arg0: i32) -> (i32, i32, i32) {
    %c0_i32 = arith.constant 0 : i32
    %c0_i32_0 = arith.constant 0 : i32
    %c0_i32_1 = arith.constant 0 : i32
    return %arg0, %c0_i32, %c0_i32_0 : i32, i32, i32
  }
  func.func @transform_1(%arg0: i32) -> (i32, i32, i32) {
    %c0_i32 = arith.constant 0 : i32
    %c0_i32_0 = arith.constant 0 : i32
    %c0_i32_1 = arith.constant 0 : i32
    return %arg0, %c0_i32, %c0_i32_0 : i32, i32, i32
  }
  func.func @transform_2(%arg0: i32) -> (i32, i32, i32) {
    %c0_i32 = arith.constant 0 : i32
    %c0_i32_0 = arith.constant 0 : i32
    %c0_i32_1 = arith.constant 0 : i32
    return %arg0, %c0_i32, %c0_i32_0 : i32, i32, i32
  }
  func.func @transform_3(%arg0: i32) -> (i32, i32) {
    %c0_i32 = arith.constant 0 : i32
    %c0_i32_0 = arith.constant 0 : i32
    %c0_i32_1 = arith.constant 0 : i32
    return %c0_i32, %c0_i32_0 : i32, i32
  }
  func.func @transform_4(%arg0: i32) -> (i32, i32) {
    %c0_i32 = arith.constant 0 : i32
    %c0_i32_0 = arith.constant 0 : i32
    %c0_i32_1 = arith.constant 0 : i32
    return %c0_i32, %c0_i32_0 : i32, i32
  }
  func.func @transform_5(%arg0: i32) -> (i32, i32) {
    %c0_i32 = arith.constant 0 : i32
    %c0_i32_0 = arith.constant 0 : i32
    %c0_i32_1 = arith.constant 0 : i32
    return %c0_i32, %c0_i32_0 : i32, i32
  }
  func.func @transform_6(%arg0: i32) -> (i32, i32) {
    %c0_i32 = arith.constant 0 : i32
    %c0_i32_0 = arith.constant 0 : i32
    %c0_i32_1 = arith.constant 0 : i32
    return %c0_i32, %c0_i32_0 : i32, i32
  }
  func.func @transform_7(%arg0: i32) -> (i32, i32) {
    %c0_i32 = arith.constant 0 : i32
    %c0_i32_0 = arith.constant 0 : i32
    %c0_i32_1 = arith.constant 0 : i32
    return %c0_i32, %c0_i32_0 : i32, i32
  }
  func.func @transform_8(%arg0: i32) -> (i32, i32) {
    %c0_i32 = arith.constant 0 : i32
    %c0_i32_0 = arith.constant 0 : i32
    %c0_i32_1 = arith.constant 0 : i32
    return %c0_i32, %c0_i32_0 : i32, i32
  }
  func.func @transform_9(%arg0: i32) -> (i32, i32) {
    %c0_i32 = arith.constant 0 : i32
    %c0_i32_0 = arith.constant 0 : i32
    %c0_i32_1 = arith.constant 0 : i32
    return %c0_i32, %c0_i32_0 : i32, i32
  }
  func.func @transform_10(%arg0: i32) -> (i32, i32) {
    %c0_i32 = arith.constant 0 : i32
    %c0_i32_0 = arith.constant 0 : i32
    %c0_i32_1 = arith.constant 0 : i32
    return %c0_i32, %c0_i32_0 : i32, i32
  }
  func.func @transform_11(%arg0: i32) -> (i32, i32, i32) {
    %c0_i32 = arith.constant 0 : i32
    %c0_i32_0 = arith.constant 0 : i32
    %c0_i32_1 = arith.constant 0 : i32
    return %arg0, %c0_i32, %c0_i32_0 : i32, i32, i32
  }
}

</mosaic_0001>

<bundles_post_ra>
// kernel: small_motion_encoder.1
= control target key start
LH: loop header
LB: loop body
LE: loop exit
PB: predicated region body
PF: predicated region fallthrough
CT: control target
= control target key end

     0   :  { %s5819_s17 = smov 0   ;;  %s9884_s0 = inlined_call_operand.vmem [shape: f32[2,9,256], index: 0, kind: input, shape index: {}]   ;;  %s9885_s1 = inlined_call_operand.vmem [shape: f32[2,256,2], index: 1, kind: input, shape index: {}]   ;;  %s9886_s2 = inlined_call_operand.vmem [shape: f32[2,256,98], index: 2, kind: input, shape index: {}]   ;;  %s9887_s3 = inlined_call_operand.vmem [shape: f32[9,96], index: 3, kind: input, shape index: {}]   ;;  %s9888_s4 = inlined_call_operand.vmem [shape: f32[1,96], index: 4, kind: input, shape index: {}]   ;;  %s9889_s5 = inlined_call_operand.vmem [shape: f32[98,64], index: 5, kind: input, shape index: {}]   ;;  %s9890_s6 = inlined_call_operand.vmem [shape: f32[1,64], index: 6, kind: input, shape index: {}]   ;;  %s9891_s7 = inlined_call_operand.vmem [shape: f32[576,32], index: 7, kind: input, shape index: {}]   ;;  %s9892_s8 = inlined_call_operand.vmem [shape: f32[1,32], index: 8, kind: input, shape index: {}]   ;;  %s9893_s9 = inlined_call_operand.vmem [shape: f32[1152,80], index: 9, kind: input, shape index: {}]   ;;  %s9894_s10 = inlined_call_operand.vmem [shape: f32[1,80], index: 10, kind: input, shape index: {}]   ;;  %s9895_s11 = inlined_call_operand.vmem [shape: f32[2,82,256], index: 11, kind: output, shape index: {}]  }
   0x1 LB: > { %s5356_s18 = sadd.s32 4294967295, %s5753_s17   ;;  %p5360_p0 = scmp.ge.s32.totalorder %s5753_s17, 1  ;;  %s5753_s17 = sphi %s5819_s17, %s21_s17  }
   0x2   : > { %p357_p1 = scmp.lt.s32.totalorder %s5753_s17, 3 }
   0x4   : > { %p358_p2 = pnand %p5360_p0, %p357_p1 }
   0x6   : > { %361 = sbr.rel (%p358_p2) target bundleno = 1971 (0x7b3), region = 64 }
   0xb   : > { %v791_v0 = vld [vmem:[%s9889_s5 + $0x60] sm:$0x3]  ;;  %vm893_vm0 = vcmask 1041408   ;;  %v790_v1 = vld [vmem:[%s9889_s5 + $0x58] sm:$0xff]  ;;  %p407_p3 = scmp.lt.s32.totalorder %s5356_s18, 1  ;;  %v789_v2 = vld [vmem:[%s9889_s5 + $0x50] sm:$0xff] }
   0xc   : > { %5401 = vmatpush.msk.msra.mxu1 %vm893_vm0, %v791_v0  ;;  %v788_v3 = vld [vmem:[%s9889_s5 + $0x48] sm:$0xff]  ;;  %v787_v4 = vld [vmem:[%s9889_s5 + $0x40] sm:$0xff]  ;;  %v786_v6 = vld [vmem:[%s9889_s5 + $0x38] sm:$0xff]  ;;  %vm796_vm1 = vcmask 801792   ;;  %s5755_s22 = smov 64   ;;  %vm2005_vm2 = vcmask 1046528  }
   0xd   : > { %s10751_s18 = smov (!%p407_p3, %s5356_s18), 1  ;;  %v785_v7 = vld [vmem:[%s9889_s5 + $0x30] sm:$0xff]  ;;  %v784_v8 = vld [vmem:[%s9889_s5 + $0x28] sm:$0xff]  ;;  %v783_v10 = vld [vmem:[%s9889_s5 + $0x20] sm:$0xff]  ;;  %vm598_vm3 = vcmask 1040384   ;;  %vm501_vm4 = vcmask 72704  }
   0xe   : > { %901 = vmatpush.msra.mxu1 %v790_v1  ;;  %s5562_s27 = sshll.u32 %s10751_s18, 5  ;;  %v782_v11 = vld [vmem:[%s9889_s5 + $0x18] sm:$0xff]  ;;  %s5563_s26 = sshll.u32 %s10751_s18, 8  ;;  %v781_v12 = vld [vmem:[%s9889_s5 + $0x10] sm:$0xff]  ;;  %v780_v13 = vld [vmem:[%s9889_s5 + $0x8] sm:$0xff]  ;;  %vm2231_vm6 = vcmask 523264  }
   0xf   : > { %s5845_s30 = scalar_lea.vmem %s9884_s0, %s5562_s27  ;;  %s5876_s13 = scalar_lea.vmem %s9886_s2, %s5563_s26  ;;  %v779_v14 = vld [vmem:[%s9889_s5] sm:$0xff]  ;;  %vm5434_vm15 = vmneg %vm2231_vm6 }
  0x10   : > { %902 = vmatpush.msra.mxu1 %v789_v2  ;;  %v427_v5 = vld [vmem:[%s5845_s30] sm:$0xff]  ;;  %v429_v9 = vld [vmem:[%s5845_s30 + $0x10] sm:$0x1]  ;;  %v748_v16 = vld [vmem:[%s5876_s13 + $0x8] sm:$0xff]  ;;  %s5757_s14 = smov 96   ;;  %s9198_s20 = scalar_lea.vmem %s9885_s1, %s5563_s26 }
  0x11   : > { %437 = vxpose.xlu1.b32.start [1/2] (short) %v427_v5, 128  ;;  %v747_v15 = vld [vmem:[%s5876_s13] sm:$0xff]  ;;  %v749_v17 = vld [vmem:[%s5876_s13 + $0x10] sm:$0xff]  ;;  %v750_v18 = vld [vmem:[%s5876_s13 + $0x18] sm:$0xff]  ;;  %s5758_s21 = smov 80  }
  0x12   : > { %903 = vmatpush.msra.mxu1 %v788_v3  ;;  %v751_v19 = vld [vmem:[%s5876_s13 + $0x20] sm:$0xff]  ;;  %v752_v20 = vld [vmem:[%s5876_s13 + $0x28] sm:$0xff]  ;;  %v753_v21 = vld [vmem:[%s5876_s13 + $0x30] sm:$0xff] }
  0x13   : > { %v754_v22 = vld [vmem:[%s5876_s13 + $0x38] sm:$0xff]  ;;  %v755_v23 = vld [vmem:[%s5876_s13 + $0x40] sm:$0xff]  ;;  %v756_v24 = vld [vmem:[%s5876_s13 + $0x48] sm:$0xff] }
  0x14   : > { %904 = vmatpush.msra.mxu1 %v787_v4  ;;  %v757_v25 = vld [vmem:[%s5876_s13 + $0x50] sm:$0xff]  ;;  %v758_v26 = vld [vmem:[%s5876_s13 + $0x58] sm:$0xff]  ;;  %v759_v27 = vld [vmem:[%s5876_s13 + $0x60] sm:$0xff] }
  0x15   : > { %v760_v28 = vld [vmem:[%s5876_s13 + $0x68] sm:$0xff]  ;;  %v761_v29 = vld [vmem:[%s5876_s13 + $0x70] sm:$0xff]  ;;  %v762_v30 = vld [vmem:[%s5876_s13 + $0x78] sm:$0xff] }
  0x16   : > { %905 = vmatpush.msra.mxu1 %v786_v6  ;;  %v5919_v31 = vld [vmem:[%s9890_s6] ss:$0 sm:$0xff]  ;;  %v764_v37 = vld [vmem:[%s5876_s13 + $0x88] sm:$0xff]  ;;  %v765_v47 = vld [vmem:[%s5876_s13 + $0x90] sm:$0xff] }
  0x17   : > { %v763_v33 = vld [vmem:[%s5876_s13 + $0x80] sm:$0xff]  ;;  %v766_v55 = vld [vmem:[%s5876_s13 + $0x98] sm:$0xff] }
  0x18   : > { %906 = vmatpush.msra.mxu1 %v785_v7  ;;  %v767_v0 = vld [vmem:[%s5876_s13 + $0xa0] sm:$0xff] }
  0x19   : > { %438 = vxpose.xlu1.b32.end [2/2] (short) %v429_v9, 128  ;;  %v768_v9 = vld [vmem:[%s5876_s13 + $0xa8] sm:$0xff] }
  0x1a   : > { %907 = vmatpush.msra.mxu1 %v784_v8 }
  0x1c   : > { %908 = vmatpush.msra.mxu1 %v783_v10 }
  0x1e   : > { %909 = vmatpush.msra.mxu1 %v782_v11  ;;  %v2599_v11 = vld [vmem:[%s9891_s7 + $0x78] sm:$0xff] }
  0x1f   : > { %2722 = vmatpush.msra.mxu2 %v2599_v11  ;;  %v2645_v11 = vld [vmem:[%s9891_s7 + $0x1e8] sm:$0xff] }
  0x20   : > { %910 = vmatpush.msra.mxu1 %v781_v12 }
  0x22   : > { %911 = vmatpush.msra.mxu1 %v780_v13 }
  0x24   : > { %912 = vmatpush.msra.mxu1 %v779_v14  ;;  %v2598_v14 = vld [vmem:[%s9891_s7 + $0x70] sm:$0xff] }
  0x25   : > { %5402 = vmatmul.msk.f32.vlgmr.msra.gmra.mxu1 %vm796_vm1, %v747_v15  ;;  %2723 = vmatpush.msra.mxu2 %v2598_v14 }
  0x2d   : > { %5403 = vmatmul.msk.f32.gmra.mxu1 %vm796_vm1, %v748_v16 }
  0x35   : > { %5404 = vmatmul.msk.f32.gmra.mxu1 %vm796_vm1, %v749_v17 }
  0x3d   : > { %5405 = vmatmul.msk.f32.gmra.mxu1 %vm796_vm1, %v750_v18  ;;  %v2597_v18 = vld [vmem:[%s9891_s7 + $0x68] sm:$0xff] }
  0x3e   : > { %2724 = vmatpush.msra.mxu2 %v2597_v18  ;;  %v9896_v18 = vmov 0.0  }
  0x45   : > { %5406 = vmatmul.msk.f32.gmra.mxu1 %vm796_vm1, %v751_v19  ;;  %v2596_v19 = vld [vmem:[%s9891_s7 + $0x60] sm:$0xff] }
  0x46   : > { %2725 = vmatpush.msra.mxu2 %v2596_v19  ;;  %v2644_v19 = vld [vmem:[%s9891_s7 + $0x1e0] sm:$0xff] }
  0x4d   : > { %5407 = vmatmul.msk.f32.gmra.mxu1 %vm796_vm1, %v752_v20 }
  0x55   : > { %5408 = vmatmul.msk.f32.gmra.mxu1 %vm796_vm1, %v753_v21 }
  0x5d   : > { %5409 = vmatmul.msk.f32.gmra.mxu1 %vm796_vm1, %v754_v22 }
  0x65   : > { %5410 = vmatmul.msk.f32.gmra.mxu1 %vm796_vm1, %v755_v23  ;;  %v769_v23 = vld [vmem:[%s5876_s13 + $0xb0] sm:$0xff] }
  0x6d   : > { %5411 = vmatmul.msk.f32.gmra.mxu1 %vm796_vm1, %v756_v24 }
  0x75   : > { %5412 = vmatmul.msk.f32.gmra.mxu1 %vm796_vm1, %v757_v25  ;;  %v2595_v25 = vld [vmem:[%s9891_s7 + $0x58] sm:$0xff] }
  0x76   : > { %2726 = vmatpush.msra.mxu2 %v2595_v25 }
  0x7d   : > { %5413 = vmatmul.msk.f32.gmra.mxu1 %vm796_vm1, %v758_v26 }
  0x85   : > { %5414 = vmatmul.msk.f32.gmra.mxu1 %vm796_vm1, %v759_v27  ;;  %v2594_v27 = vld [vmem:[%s9891_s7 + $0x50] sm:$0xff] }
  0x86   : > { %2727 = vmatpush.msra.mxu2 %v2594_v27  ;;  %v2642_v27 = vld [vmem:[%s9891_s7 + $0x1d0] sm:$0xff] }
  0x8d   : > { %5415 = vmatmul.msk.f32.gmra.mxu1 %vm796_vm1, %v760_v28 }
  0x95   : > { %5416 = vmatmul.msk.f32.gmra.mxu1 %vm796_vm1, %v761_v29 }
  0x9d   : > { %5417 = vmatmul.msk.f32.gmra.mxu1 %vm796_vm1, %v762_v30 }
  0xa2   : > { %v914_v32 = vpop.f32.mrf.mxu1 }
  0xa3   : > { %v915_v34 = vadd.f32 %v5919_v31, %v914_v32  ;;  %v2593_v32 = vld [vmem:[%s9891_s7 + $0x48] sm:$0xff] }
  0xa4   : > { %2728 = vmatpush.msra.mxu2 %v2593_v32 }
  0xa5   : > { %v5923_v35 = vmax.f32 %v915_v34, 0.0  ;;  %5418 = vmatmul.msk.f32.gmra.mxu1 %vm796_vm1, %v763_v33  ;;  %v2592_v33 = vld [vmem:[%s9891_s7 + $0x40] sm:$0xff] }
  0xa6   : > { %2729 = vmatpush.msra.mxu2 %v2592_v33 }
  0xa7   : > { %2135 = vrot.lane.b32.xlu0 %v5923_v35, %s5755_s22  ;;  %v1685_v40 = vrot.slane %v5923_v35, 7  ;;  %v2006_v41 = vrot.slane %v5923_v35, 1 }
  0xaa   : > { %v917_v36 = vpop.f32.mrf.mxu1 }
  0xab   : > { %v918_v38 = vadd.f32 %v5919_v31, %v917_v36 }
  0xad   : > { %v1011_v39 = vmax.f32 %v918_v38, 0.0  ;;  %5419 = vmatmul.msk.f32.gmra.mxu1 %vm796_vm1, %v764_v37  ;;  %v770_v38 = vld [vmem:[%s5876_s13 + $0xb8] sm:$0xff] }
  0xaf   : > { %v1687_v42 = vrot.slane %v1011_v39, 7  ;;  %v2007_v43 = vrot.slane %v1011_v39, 1  ;;  %2137 = vrot.lane.b32.xlu0 %v1011_v39, %s5755_s22 }
  0xb1   : > { %v5937_v44 = vsel %vm598_vm3, %v1685_v40, %v1687_v42  ;;  %v5940_v45 = vsel %vm2005_vm2, %v2006_v41, %v2007_v43  ;;  %v2591_v41 = vld [vmem:[%s9891_s7 + $0x38] sm:$0xff] }
  0xb2   : > { %v920_v46 = vpop.f32.mrf.mxu1  ;;  %2730 = vmatpush.msra.mxu2 %v2591_v41 }
  0xb3   : > { %v921_v48 = vadd.f32 %v5919_v31, %v920_v46 }
  0xb5   : > { %v1012_v49 = vmax.f32 %v921_v48, 0.0  ;;  %5420 = vmatmul.msk.f32.gmra.mxu1 %vm796_vm1, %v765_v47  ;;  %v5963_v2 = vpop.trf.xlu1 }
  0xb7   : > { %v1689_v50 = vrot.slane %v1012_v49, 7  ;;  %v2009_v51 = vrot.slane %v1012_v49, 1 }
  0xb9   : > { %v5946_v52 = vsel %vm598_vm3, %v1687_v42, %v1689_v50  ;;  %v5949_v53 = vsel %vm2005_vm2, %v2007_v43, %v2009_v51  ;;  %v2590_v43 = vld [vmem:[%s9891_s7 + $0x30] sm:$0xff] }
  0xba   : > { %v923_v54 = vpop.f32.mrf.mxu1  ;;  %2731 = vmatpush.msra.mxu2 %v2590_v43 }
  0xbb   : > { %v924_v56 = vadd.f32 %v5919_v31, %v923_v54 }
  0xbd   : > { %v1013_v57 = vmax.f32 %v924_v56, 0.0  ;;  %5421 = vmatmul.msk.f32.gmra.mxu1 %vm796_vm1, %v766_v55  ;;  %v5978_v13 = vpop.trf.xlu1 }
  0xbf   : > { %v1691_v58 = vrot.slane %v1013_v57, 7  ;;  %v2011_v59 = vrot.slane %v1013_v57, 1  ;;  %v5594_v60 = vpack.i.bf16 %v1013_v57, %v1012_v49  ;;  %v2589_v49 = vld [vmem:[%s9891_s7 + $0x28] sm:$0xff]  ;;  %v771_v57 = vld [vmem:[%s5876_s13 + $0xc0] sm:$0xff] }
  0xc0   : > { %2732 = vmatpush.msra.mxu2 %v2589_v49 }
  0xc1   : > { %5595 = vrot.lane.b32.xlu2 %v5594_v60, %s5755_s22  ;;  %v5956_v61 = vsel %vm598_vm3, %v1689_v50, %v1691_v58  ;;  %v5959_v62 = vsel %vm2005_vm2, %v2009_v51, %v2011_v59  ;;  %v2588_v51 = vld [vmem:[%s9891_s7 + $0x20] sm:$0xff] }
  0xc2   : > { %v926_v63 = vpop.f32.mrf.mxu1  ;;  %2733 = vmatpush.msra.mxu2 %v2588_v51 }
  0xc3   : > { %v927_v1 = vadd.f32 %v5919_v31, %v926_v63  ;;  %v432_v63 = vld [vmem:[%s9887_s3 + $0x8] sm:$0x1] }
  0xc4   : > { %5368 = vmatpush.msk.msra.mxu0 %vm598_vm3, %v432_v63 }
  0xc5   : > { %v1014_v3 = vmax.f32 %v927_v1, 0.0  ;;  %5422 = vmatmul.msk.f32.gmra.mxu1 %vm796_vm1, %v767_v0  ;;  %v6005_v30 = vpop.trf.xlu1  ;;  %v2586_v0 = vld [vmem:[%s9891_s7 + $0x10] sm:$0xff]  ;;  %v2647_v1 = vld [vmem:[%s9891_s7 + $0x1f8] sm:$0xff] }
  0xc6   : > { %3061 = vmatpush.msrb.mxu1 %v2647_v1 }
  0xc7   : > { %v1693_v4 = vrot.slane %v1014_v3, 7  ;;  %v2013_v5 = vrot.slane %v1014_v3, 1 }
  0xc9   : > { %v5967_v6 = vsel %vm598_vm3, %v1691_v58, %v1693_v4  ;;  %v5970_v7 = vsel %vm2005_vm2, %v2011_v59, %v2013_v5  ;;  %v2587_v59 = vld [vmem:[%s9891_s7 + $0x18] sm:$0xff] }
  0xca   : > { %v929_v8 = vpop.f32.mrf.mxu1  ;;  %2734 = vmatpush.msra.mxu2 %v2587_v59  ;;  %v2636_v59 = vld [vmem:[%s9891_s7 + $0x1a0] sm:$0xff] }
  0xcb   : > { %v930_v10 = vadd.f32 %v5919_v31, %v929_v8  ;;  %v2585_v8 = vld [vmem:[%s9891_s7 + $0x8] sm:$0xff] }
  0xcc   : > { %2735 = vmatpush.msra.mxu2 %v2586_v0 }
  0xcd   : > { %v1015_v12 = vmax.f32 %v930_v10, 0.0  ;;  %5423 = vmatmul.msk.f32.gmra.mxu1 %vm796_vm1, %v768_v9  ;;  %v6032_v50 = vpop.trf.xlu1  ;;  %v2646_v9 = vld [vmem:[%s9891_s7 + $0x1f0] sm:$0xff]  ;;  %v2584_v10 = vld [vmem:[%s9891_s7] sm:$0xff] }
  0xce   : > { %2736 = vmatpush.msra.mxu2 %v2585_v8  ;;  %3062 = vmatpush.msrb.mxu1 %v2646_v9 }
  0xcf   : > { %v1695_v15 = vrot.slane %v1015_v12, 7  ;;  %v2015_v16 = vrot.slane %v1015_v12, 1  ;;  %v5599_v17 = vpack.i.bf16 %v1015_v12, %v1014_v3 }
  0xd0   : > { %2737 = vmatpush.msra.mxu2 %v2584_v10  ;;  %3063 = vmatpush.msrb.mxu1 %v2645_v11  ;;  %v775_v11 = vld [vmem:[%s5876_s13 + $0xe0] sm:$0xff] }
  0xd1   : > { %5600 = vrot.lane.b32.xlu2 %v5599_v17, %s5755_s22  ;;  %v5991_v20 = vsel %vm598_vm3, %v1693_v4, %v1695_v15  ;;  %v5994_v21 = vsel %vm2005_vm2, %v2013_v5, %v2015_v16  ;;  %v431_v5 = vld [vmem:[%s9887_s3] sm:$0xff]  ;;  %2738 = vmatmul.f32.vlgmr.msra.gmra.mxu2 %v9896_v18 }
  0xd2   : > { %v932_v22 = vpop.f32.mrf.mxu1  ;;  %617 = vmatpush.msra.mxu0 %v431_v5  ;;  %3064 = vmatpush.msrb.mxu1 %v2644_v19  ;;  %v2633_v5 = vld [vmem:[%s9891_s7 + $0x188] sm:$0xff] }
  0xd3   : > { %v933_v24 = vadd.f32 %v5919_v31, %v932_v22  ;;  %5369 = vmatmul.msk.f32.vlgmr.msra.gmra.mxu0 %vm501_vm4, %v5963_v2 }
  0xd5   : > { %v1016_v26 = vmax.f32 %v933_v24, 0.0  ;;  %5424 = vmatmul.msk.f32.gmra.mxu1 %vm796_vm1, %v769_v23  ;;  %v6084_v2 = vpop.trf.xlu1  ;;  %v2643_v23 = vld [vmem:[%s9891_s7 + $0x1d8] sm:$0xff] }
  0xd6   : > { %3065 = vmatpush.msrb.mxu1 %v2643_v23 }
  0xd7   : > { %v1697_v28 = vrot.slane %v1016_v26, 7  ;;  %v2017_v29 = vrot.slane %v1016_v26, 1 }
  0xd8   : > { %3066 = vmatpush.msrb.mxu1 %v2642_v27  ;;  %v776_v27 = vld [vmem:[%s5876_s13 + $0xe8] sm:$0xff] }
  0xd9   : > { %v6014_v34 = vsel %vm598_vm3, %v1695_v15, %v1697_v28  ;;  %v6017_v36 = vsel %vm2005_vm2, %v2015_v16, %v2017_v29  ;;  %v772_v16 = vld [vmem:[%s5876_s13 + $0xc8] sm:$0xff]  ;;  %2741 = vmatmul.f32.gmra.mxu2 %v9896_v18 }
  0xda   : > { %v935_v37 = vpop.f32.mrf.mxu1 }
  0xdb   : > { %v936_v39 = vadd.f32 %v5919_v31, %v935_v37  ;;  %5370 = vmatmul.msk.f32.gmra.mxu0 %vm501_vm4, %v5978_v13  ;;  %v773_v37 = vld [vmem:[%s5876_s13 + $0xd0] sm:$0xff]  ;;  %v2640_v13 = vld [vmem:[%s9891_s7 + $0x1c0] sm:$0xff] }
  0xdd   : > { %v1017_v42 = vmax.f32 %v936_v39, 0.0  ;;  %5425 = vmatmul.msk.f32.gmra.mxu1 %vm796_vm1, %v770_v38  ;;  %v458_v41 = vpop.trf.xlu1 }
  0xdf   : > { %v1699_v46 = vrot.slane %v1017_v42, 7  ;;  %v2019_v47 = vrot.slane %v1017_v42, 1  ;;  %v5604_v48 = vpack.i.bf16 %v1017_v42, %v1016_v26  ;;  %v2639_v42 = vld [vmem:[%s9891_s7 + $0x1b8] sm:$0xff] }
  0xe1   : > { %5605 = vrot.lane.b32.xlu0 %v5604_v48, %s5755_s22  ;;  %v6038_v54 = vsel %vm598_vm3, %v1697_v28, %v1699_v46  ;;  %v6041_v55 = vsel %vm2005_vm2, %v2017_v29, %v2019_v47  ;;  %v2641_v28 = vld [vmem:[%s9891_s7 + $0x1c8] sm:$0xff] }
  0xe2   : > { %v938_v56 = vpop.f32.mrf.mxu1  ;;  %3067 = vmatpush.msrb.mxu1 %v2641_v28  ;;  %v2637_v48 = vld [vmem:[%s9891_s7 + $0x1a8] sm:$0xff] }
  0xe3   : > { %v939_v58 = vadd.f32 %v5919_v31, %v938_v56  ;;  %5371 = vmatmul.msk.f32.gmra.mxu0 %vm501_vm4, %v6005_v30 }
  0xe4   : > { %3068 = vmatpush.msrb.mxu1 %v2640_v13 }
  0xe5   : > { %v1018_v60 = vmax.f32 %v939_v58, 0.0  ;;  %5426 = vmatmul.msk.f32.gmra.mxu1 %vm796_vm1, %v771_v57  ;;  %v774_v57 = vld [vmem:[%s5876_s13 + $0xd8] sm:$0xff] }
  0xe6   : > { %3069 = vmatpush.msrb.mxu1 %v2639_v42 }
  0xe7   : > { %v1701_v3 = vrot.slane %v1018_v60, 7  ;;  %v2021_v4 = vrot.slane %v1018_v60, 1 }
  0xe9   : > { %v6077_v12 = vsel %vm598_vm3, %v1699_v46, %v1701_v3  ;;  %v6080_v14 = vsel %vm2005_vm2, %v2019_v47, %v2021_v4  ;;  %v2638_v47 = vld [vmem:[%s9891_s7 + $0x1b0] sm:$0xff] }
  0xea   : > { %v941_v15 = vpop.f32.mrf.mxu1  ;;  %3070 = vmatpush.msrb.mxu1 %v2638_v47  ;;  %v777_v47 = vld [vmem:[%s5876_s13 + $0xf0] sm:$0xff] }
  0xeb   : > { %v942_v17 = vadd.f32 %v5919_v31, %v941_v15  ;;  %5372 = vmatmul.msk.f32.gmra.mxu0 %vm501_vm4, %v6032_v50  ;;  %v2632_v50 = vld [vmem:[%s9891_s7 + $0x180] sm:$0xff] }
  0xec   : > { %3071 = vmatpush.msrb.mxu1 %v2637_v48 }
  0xed   : > { %v1019_v22 = vmax.f32 %v942_v17, 0.0  ;;  %5427 = vmatmul.msk.f32.gmra.mxu1 %vm796_vm1, %v772_v16  ;;  %v1042_v17 = vlaneseq }
  0xee   : > { %3072 = vmatpush.msrb.mxu1 %v2636_v59 }
  0xef   : > { %v1703_v24 = vrot.slane %v1019_v22, 7  ;;  %v2023_v25 = vrot.slane %v1019_v22, 1  ;;  %v5609_v26 = vpack.i.bf16 %v1019_v22, %v1018_v60  ;;  %v2635_v60 = vld [vmem:[%s9891_s7 + $0x198] sm:$0xff]  ;;  %v6172_v28 = vshrl.u32 %v1042_v17, 7 }
  0xf0   : > { %3073 = vmatpush.msrb.mxu1 %v2635_v60 }
  0xf1   : > { %5610 = vrot.lane.b32.xlu1 %v5609_v26, %s5755_s22  ;;  %v6104_v29 = vsel %vm598_vm3, %v1701_v3, %v1703_v24  ;;  %v6107_v32 = vsel %vm2005_vm2, %v2021_v4, %v2023_v25  ;;  %v459_v3 = vpop.trf.xlu1  ;;  %v2634_v4 = vld [vmem:[%s9891_s7 + $0x190] sm:$0xff]  ;;  %v1045_v59 = vadd.s32 16, %v6172_v28 }
  0xf2   : > { %v944_v33 = vpop.f32.mrf.mxu1  ;;  %3074 = vmatpush.msrb.mxu1 %v2634_v4 }
  0xf3   : > { %v945_v38 = vadd.f32 %v5919_v31, %v944_v33  ;;  %5373 = vmatmul.msk.f32.gmra.mxu0 %vm501_vm4, %v6084_v2 }
  0xf4   : > { %3075 = vmatpush.msrb.mxu1 %v2633_v5 }
  0xf5   : > { %v1020_v39 = vmax.f32 %v945_v38, 0.0  ;;  %5428 = vmatmul.msk.f32.gmra.mxu1 %vm796_vm1, %v773_v37  ;;  %v1079_v38 = vand.u32 15, %v6172_v28 }
  0xf6   : > { %3076 = vmatpush.msrb.mxu1 %v2632_v50 }
  0xf7   : > { %v1705_v43 = vrot.slane %v1020_v39, 7  ;;  %v2025_v46 = vrot.slane %v1020_v39, 1  ;;  %v6186_v48 = vadd.s32 4294967295, %v1079_v38 }
  0xf9   : > { %v6128_v49 = vsel %vm598_vm3, %v1703_v24, %v1705_v43  ;;  %v6131_v51 = vsel %vm2005_vm2, %v2023_v25, %v2025_v46  ;;  %v460_v23 = vpop.trf.xlu1  ;;  %10104 = vst [vmem:[#allocation2_spill] sm:$0xff] %v6186_v48  ;;  %vm1491_vm5 = vcmp.ge.s32.totalorder %v6186_v48, 0 }
  0xfa   : > { %v947_v56 = vpop.f32.mrf.mxu1 }
  0xfb   : > { %v948_v58 = vadd.f32 %v5919_v31, %v947_v56  ;;  %5374 = vmatmul.msk.f32.gmra.mxu0 %vm501_vm4, %v458_v41  ;;  %v6189_v56 = vrot.slane %v9896_v18, 7 }
  0xfd   : > { %v1021_v30 = vmax.f32 %v948_v58, 0.0  ;;  %5429 = vmatmul.msk.f32.gmra.mxu1 %vm796_vm1, %v774_v57  ;;  %10105 = vst [vmem:[#allocation3_spill] sm:$0xff] %v6189_v56 }
  0xff   : > { %v1707_v63 = vrot.slane %v1021_v30, 7  ;;  %v2027_v0 = vrot.slane %v1021_v30, 1  ;;  %v5614_v1 = vpack.i.bf16 %v1021_v30, %v1020_v39  ;;  %v1686_v30 = vsel %vm598_vm3, %v6189_v56, %v1685_v40  ;;  %v778_v40 = vld [vmem:[%s5876_s13 + $0xf8] sm:$0xff] }
 0x100   : > { %v1781_v4 = vsel %vm1491_vm5, %v1686_v30, 0.0 }
 0x101   : > { %5615 = vrot.lane.b32.xlu2 %v5614_v1, %s5755_s22  ;;  %v6152_v8 = vsel %vm598_vm3, %v1705_v43, %v1707_v63  ;;  %v6155_v9 = vsel %vm2005_vm2, %v2025_v46, %v2027_v0  ;;  %v461_v58 = vpop.trf.xlu1 }
 0x102   : > { %v950_v10 = vpop.f32.mrf.mxu1 }
 0x103   : > { %v951_v15 = vadd.f32 %v5919_v31, %v950_v10  ;;  %5375 = vmatmul.msk.f32.gmra.mxu0 %vm501_vm4, %v459_v3 }
 0x105   : > { %v1022_v16 = vmax.f32 %v951_v15, 0.0  ;;  %5430 = vmatmul.msk.f32.gmra.mxu1 %vm796_vm1, %v775_v11 }
 0x107   : > { %v1709_v19 = vrot.slane %v1022_v16, 7  ;;  %v2029_v22 = vrot.slane %v1022_v16, 1 }
 0x109   : > { %v6166_v24 = vsel %vm598_vm3, %v1707_v63, %v1709_v19  ;;  %v6169_v25 = vsel %vm2005_vm2, %v2027_v0, %v2029_v22  ;;  %v1093_v0 = vand.u32 15, %v1045_v59  ;;  %v462_v3 = vpop.trf.xlu1 }
 0x10a   : > { %v953_v26 = vpop.f32.mrf.mxu1 }
 0x10b   : > { %v954_v33 = vadd.f32 %v5919_v31, %v953_v26  ;;  %v6212_v50 = vadd.s32 4294967295, %v1093_v0  ;;  %5376 = vmatmul.msk.f32.gmra.mxu0 %vm501_vm4, %v460_v23 }
 0x10d   : > { %v1023_v37 = vmax.f32 %v954_v33, 0.0  ;;  %5431 = vmatmul.msk.f32.gmra.mxu1 %vm796_vm1, %v776_v27  ;;  %10106 = vst [vmem:[#allocation4_spill] sm:$0xff] %v6212_v50  ;;  %vm1493_vm7 = vcmp.ge.s32.totalorder %v6212_v50, 0 }
 0x10f   : > { %v1711_v13 = vrot.slane %v1023_v37, 7  ;;  %v2031_v2 = vrot.slane %v1023_v37, 1  ;;  %v5619_v39 = vpack.i.bf16 %v1023_v37, %v1022_v16 }
 0x111   : > { %5620 = vrot.lane.b32.xlu0 %v5619_v39, %s5755_s22  ;;  %v6180_v42 = vsel %vm598_vm3, %v1709_v19, %v1711_v13  ;;  %v6183_v43 = vsel %vm2005_vm2, %v2029_v22, %v2031_v2 }
 0x112   : > { %v956_v46 = vpop.f32.mrf.mxu1 }
 0x113   : > { %v957_v57 = vadd.f32 %v5919_v31, %v956_v46  ;;  %v1783_v46 = vsel %vm1493_vm7, %v5946_v52, 0.0  ;;  %5377 = vmatmul.msk.f32.gmra.mxu0 %vm501_vm4, %v461_v58 }
 0x115   : > { %v1024_v41 = vmax.f32 %v957_v57, 0.0  ;;  %5432 = vmatmul.msk.f32.gmra.mxu1 %vm796_vm1, %v777_v47  ;;  %v1047_v47 = vadd.s32 32, %v6172_v28 }
 0x117   : > { %v1713_v60 = vrot.slane %v1024_v41, 7  ;;  %v2033_v63 = vrot.slane %v1024_v41, 1 }
 0x119   : > { %v2136_v1 = vpop.permute.xlu0 %2135  ;;  %v6203_v5 = vsel %vm598_vm3, %v1711_v13, %v1713_v60  ;;  %v6206_v10 = vsel %vm2005_vm2, %v2031_v2, %v2033_v63 }
 0x11a   : > { %v959_v35 = vpop.f32.mrf.mxu1  ;;  %v2232_v11 = vsel %vm2231_vm6, %v1781_v4, %v2136_v1 }
 0x11b   : > { %v960_v15 = vadd.f32 %v5919_v31, %v959_v35  ;;  %2328 = vrot.lane.b32.xlu0 %v2232_v11, %s5755_s22  ;;  %2744 = vmatmul.f32.gmra.mxu2 %v2232_v11  ;;  %v5596_v17 = vpop.permute.xlu2 %5595 }
 0x11c   : > { %v5597_v27 = vunpack.i.l.bf16 %v5596_v17  ;;  %v5598_v30 = vunpack.i.h.bf16 %v5596_v17  ;;  %5378 = vmatmul.msk.f32.gmra.mxu0 %vm501_vm4, %v462_v3 }
 0x11d   : > { %v1025_v16 = vmax.f32 %v960_v15, 0.0  ;;  %5433 = vmatmul.msk.f32.gmra.mxu1 %vm796_vm1, %v778_v40 }
 0x11e   : > { %v6232_v23 = vsel %vm2231_vm6, %v1783_v46, %v5597_v27  ;;  %v2235_v4 = vsel %vm2231_vm6, %v5956_v61, %v5598_v30 }
 0x11f   : > { %v1715_v19 = vrot.slane %v1025_v16, 7  ;;  %v2035_v22 = vrot.slane %v1025_v16, 1  ;;  %v5624_v26 = vpack.i.bf16 %v1025_v16, %v1024_v41 }
 0x121   : > { %5625 = vrot.lane.b32.xlu2 %v5624_v26, %s5755_s22  ;;  %v2138_v33 = vpop.permute.xlu0 %2137  ;;  %v6219_v37 = vsel %vm598_vm3, %v1713_v60, %v1715_v19  ;;  %v6222_v38 = vsel %vm2005_vm2, %v2033_v63, %v2035_v22  ;;  %v1107_v60 = vand.u32 15, %v1047_v47 }
 0x122   : > { %v962_v13 = vpop.f32.mrf.mxu1  ;;  %v2233_v2 = vsel %vm2231_vm6, %v5937_v44, %v2138_v33  ;;  %v463_v44 = vpop.trf.xlu1 }
 0x123   : > { %v963_v39 = vadd.f32 %v5919_v31, %v962_v13  ;;  %2332 = vrot.lane.b32.xlu0 %v2233_v2, %s5755_s22  ;;  %2747 = vmatmul.f32.gmra.mxu2 %v2233_v2  ;;  %v6247_v35 = vadd.s32 4294967295, %v1107_v60 }
 0x124   : > { %5379 = vmatmul.msk.f32.gmra.mxu0 %vm501_vm4, %v463_v44 }
 0x125   : > { %v1026_v57 = vmax.f32 %v963_v39, 0.0  ;;  %3077 = vmatmul.f32.vlgmr.msrb.gmra.mxu1 %v6232_v23  ;;  %10107 = vst [vmem:[#allocation5_spill] sm:$0xff] %v6247_v35  ;;  %vm1495_vm8 = vcmp.ge.s32.totalorder %v6247_v35, 0 }
 0x126   : > { %v1785_v33 = vsel %vm1495_vm8, %v5967_v6, 0.0 }
 0x127   : > { %v1717_v59 = vrot.slane %v1026_v57, 7  ;;  %v2037_v41 = vrot.slane %v1026_v57, 1 }
 0x129   : > { %v6238_v63 = vsel %vm598_vm3, %v1715_v19, %v1717_v59  ;;  %v6241_v52 = vsel %vm2005_vm2, %v2035_v22, %v2037_v41 }
 0x12a   : > { %v965_v0 = vpop.f32.mrf.mxu1  ;;  %v464_v19 = vpop.trf.xlu1 }
 0x12b   : > { %v966_v1 = vadd.f32 %v5919_v31, %v965_v0  ;;  %2750 = vmatmul.f32.gmra.mxu2 %v6232_v23  ;;  %v5601_v40 = vpop.permute.xlu2 %5600 }
 0x12c   : > { %v5602_v17 = vunpack.i.l.bf16 %v5601_v40  ;;  %v5603_v46 = vunpack.i.h.bf16 %v5601_v40  ;;  %5380 = vmatmul.msk.f32.gmra.mxu0 %vm501_vm4, %v464_v19 }
 0x12d   : > { %v1027_v11 = vmax.f32 %v966_v1, 0.0  ;;  %3080 = vmatmul.f32.gmra.mxu1 %v2235_v4 }
 0x12e   : > { %v2236_v13 = vsel %vm2231_vm6, %v1785_v33, %v5602_v17  ;;  %v2237_v30 = vsel %vm2231_vm6, %v5991_v20, %v5603_v46  ;;  %v428_v20 = vld [vmem:[%s5845_s30 + $0x8] sm:$0xff] }
 0x12f   : > { %v1719_v58 = vrot.slane %v1027_v11, 7  ;;  %v2039_v15 = vrot.slane %v1027_v11, 1  ;;  %v5629_v16 = vpack.i.bf16 %v1027_v11, %v1026_v57 }
 0x131   : > { %5630 = vrot.lane.b32.xlu0 %v5629_v16, %s5755_s22  ;;  %v6253_v22 = vsel %vm598_vm3, %v1717_v59, %v1719_v58  ;;  %v6256_v61 = vsel %vm2005_vm2, %v2037_v41, %v2039_v15  ;;  %v1049_v16 = vadd.s32 48, %v6172_v28 }
 0x132   : > { %v968_v26 = vpop.f32.mrf.mxu1  ;;  %v465_v41 = vpop.trf.xlu1 }
 0x133   : > { %v969_v27 = vadd.f32 %v5919_v31, %v968_v26  ;;  %2753 = vmatmul.f32.gmra.mxu2 %v2235_v4 }
 0x134   : > { %5381 = vmatmul.msk.f32.gmra.mxu0 %vm501_vm4, %v465_v41 }
 0x135   : > { %v1028_v2 = vmax.f32 %v969_v27, 0.0  ;;  %3083 = vmatmul.f32.gmra.mxu1 %v2236_v13 }
 0x137   : > { %v1721_v39 = vrot.slane %v1028_v2, 7  ;;  %v2041_v3 = vrot.slane %v1028_v2, 1 }
 0x139   : > { %2340 = vrot.lane.b32.xlu0 %v2235_v4, %s5755_s22  ;;  %v6266_v47 = vsel %vm598_vm3, %v1719_v58, %v1721_v39  ;;  %v6269_v57 = vsel %vm2005_vm2, %v2039_v15, %v2041_v3 }
 0x13a   : > { %v971_v59 = vpop.f32.mrf.mxu1  ;;  %v466_v15 = vpop.trf.xlu1 }
 0x13b   : > { %v972_v6 = vadd.f32 %v5919_v31, %v971_v59  ;;  %2756 = vmatmul.f32.gmra.mxu2 %v2236_v13 }
 0x13c   : > { %5382 = vmatmul.msk.f32.gmra.mxu0 %vm501_vm4, %v466_v15 }
 0x13d   : > { %v1029_v60 = vmax.f32 %v972_v6, 0.0  ;;  %3086 = vmatmul.f32.gmra.mxu1 %v2237_v30 }
 0x13f   : > { %v1723_v0 = vrot.slane %v1029_v60, 7  ;;  %v2043_v1 = vrot.slane %v1029_v60, 1 }
 0x141   : > { %2171 = vrot.lane.b32.xlu0 %v1028_v2, %s5755_s22  ;;  %v6277_v44 = vsel %vm598_vm3, %v1721_v39, %v1723_v0  ;;  %v6280_v4 = vsel %vm2005_vm2, %v2041_v3, %v2043_v1  ;;  %v1121_v2 = vand.u32 15, %v1049_v16  ;;  %v430_v3 = vld [vmem:[%s5845_s30 + $0x18] sm:$0x1]  ;;  %v2613_v16 = vld [vmem:[%s9891_s7 + $0xe8] sm:$0xff] }
 0x142   : > { %v974_v11 = vpop.f32.mrf.mxu1  ;;  %v467_v41 = vpop.trf.xlu1 }
 0x143   : > { %v975_v40 = vadd.f32 %v5919_v31, %v974_v11  ;;  %2759 = vmatmul.f32.gmra.mxu2 %v2237_v30  ;;  %v6301_v59 = vadd.s32 4294967295, %v1121_v2 }
 0x144   : > { %5383 = vmatmul.msk.f32.gmra.mxu0 %vm501_vm4, %v467_v41  ;;  %v2607_v41 = vld [vmem:[%s9891_s7 + $0xb8] sm:$0xff] }
 0x145   : > { %v6284_v58 = vmax.f32 %v975_v40, 0.0  ;;  %10108 = vst [vmem:[#allocation6_spill] sm:$0xff] %v6301_v59  ;;  %vm1497_vm9 = vcmp.ge.s32.totalorder %v6301_v59, 0  ;;  %v2609_v59 = vld [vmem:[%s9891_s7 + $0xc8] sm:$0xff] }
 0x147   : > { %v1725_v17 = vrot.slane %v6284_v58, 7  ;;  %469 = vxpose.xlu2.b32.start [1/2] (short) %v428_v20, 128  ;;  %v2045_v19 = vrot.slane %v6284_v58, 1 }
 0x149   : > { %2344 = vrot.lane.b32.xlu0 %v2236_v13, %s5755_s22  ;;  %v6292_v26 = vsel %vm598_vm3, %v1723_v0, %v1725_v17  ;;  %v6295_v27 = vsel %vm2005_vm2, %v2043_v1, %v2045_v19  ;;  %v2615_v13 = vld [vmem:[%s9891_s7 + $0xf8] sm:$0xff]  ;;  %v2614_v0 = vld [vmem:[%s9891_s7 + $0xf0] sm:$0xff] }
 0x14a   : > { %v977_v33 = vpop.f32.mrf.mxu1  ;;  %2835 = vmatpush.msra.mxu3 %v2615_v13  ;;  %v2611_v13 = vld [vmem:[%s9891_s7 + $0xd8] sm:$0xff] }
 0x14b   : > { %v978_v39 = vadd.f32 %v5919_v31, %v977_v33 }
 0x14c   : > { %2836 = vmatpush.msra.mxu3 %v2614_v0 }
 0x14d   : > { %v6299_v46 = vmax.f32 %v978_v39, 0.0  ;;  %v1787_v39 = vsel %vm1497_vm9, %v6014_v34, 0.0  ;;  %v468_v34 = vpop.trf.xlu1 }
 0x14e   : > { %2837 = vmatpush.msra.mxu3 %v2613_v16  ;;  %5384 = vmatmul.msk.f32.gmra.mxu0 %vm501_vm4, %v468_v34 }
 0x14f   : > { %v1727_v6 = vrot.slane %v6299_v46, 7  ;;  %470 = vxpose.xlu2.b32.end [2/2] (short) %v430_v3, 128  ;;  %v2047_v1 = vrot.slane %v6299_v46, 1  ;;  %v1051_v3 = vadd.s32 64, %v6172_v28 }
 0x151   : > { %2173 = vrot.lane.b32.xlu0 %v1029_v60, %s5755_s22  ;;  %v6313_v11 = vsel %vm598_vm3, %v1725_v17, %v1727_v6  ;;  %v6316_v40 = vsel %vm2005_vm2, %v2045_v19, %v2047_v1  ;;  %v2612_v17 = vld [vmem:[%s9891_s7 + $0xe0] sm:$0xff]  ;;  %v1135_v18 = vand.u32 15, %v1051_v3  ;;  %v2605_v3 = vld [vmem:[%s9891_s7 + $0xa8] sm:$0xff] }
 0x152   : > { %v980_v20 = vpop.f32.mrf.mxu1  ;;  %2838 = vmatpush.msra.mxu3 %v2612_v17 }
 0x153   : > { %v981_v33 = vadd.f32 %v5919_v31, %v980_v20  ;;  %v5606_v2 = vpop.permute.xlu0 %5605  ;;  %v2610_v20 = vld [vmem:[%s9891_s7 + $0xd0] sm:$0xff] }
 0x154   : > { %v5607_v60 = vunpack.i.l.bf16 %v5606_v2  ;;  %2839 = vmatpush.msra.mxu3 %v2611_v13  ;;  %v5608_v17 = vunpack.i.h.bf16 %v5606_v2 }
 0x155   : > { %v6327_v19 = vmax.f32 %v981_v33, 0.0 }
 0x156   : > { %v2238_v15 = vsel %vm2231_vm6, %v1787_v39, %v5607_v60  ;;  %2840 = vmatpush.msra.mxu3 %v2610_v20 }
 0x157   : > { %v1729_v0 = vrot.slane %v6327_v19, 7  ;;  %2762 = vmatmul.f32.gmra.mxu2 %v2238_v15  ;;  %3089 = vmatmul.f32.gmra.mxu1 %v2238_v15  ;;  %v2049_v16 = vrot.slane %v6327_v19, 1 }
 0x158   : > { %2841 = vmatpush.msra.mxu3 %v2609_v59  ;;  %v2655_v59 = vld [vmem:[%s9891_s7 + $0x238] sm:$0xff] }
 0x159   : > { %2348 = vrot.lane.b32.xlu0 %v2237_v30, %s5755_s22  ;;  %v6344_v33 = vsel %vm598_vm3, %v1727_v6, %v1729_v0  ;;  %v6347_v60 = vsel %vm2005_vm2, %v2047_v1, %v2049_v16  ;;  %v2608_v30 = vld [vmem:[%s9891_s7 + $0xc0] sm:$0xff]  ;;  %v6359_v6 = vsel %vm2231_vm6, %v6038_v54, %v5608_v17  ;;  %v6361_v1 = vadd.s32 4294967295, %v1135_v18  ;;  %v2631_v54 = vld [vmem:[%s9891_s7 + $0x178] sm:$0xff]  ;;  %3182 = vmatpush.msrb.mxu2 %v2655_v59  ;;  %v2606_v18 = vld [vmem:[%s9891_s7 + $0xb0] sm:$0xff] }
 0x15a   : > { %v983_v39 = vpop.f32.mrf.mxu1  ;;  %2842 = vmatpush.msra.mxu3 %v2608_v30  ;;  %2948 = vmatpush.msrb.mxu0 %v2631_v54 }
 0x15b   : > { %v984_v13 = vadd.f32 %v5919_v31, %v983_v39  ;;  %10109 = vst [vmem:[#allocation7_spill] sm:$0xff] %v6361_v1  ;;  %vm1499_vm10 = vcmp.ge.s32.totalorder %v6361_v1, 0  ;;  %v2601_v1 = vld [vmem:[%s9891_s7 + $0x88] sm:$0xff] }
 0x15c   : > { %2843 = vmatpush.msra.mxu3 %v2607_v41  ;;  %v1053_v41 = vadd.s32 80, %v6172_v28 }
 0x15d   : > { %v6366_v2 = vmax.f32 %v984_v13, 0.0  ;;  %v1789_v13 = vsel %vm1499_vm10, %v6077_v12, 0.0  ;;  %v2603_v12 = vld [vmem:[%s9891_s7 + $0x98] sm:$0xff] }
 0x15e   : > { %2844 = vmatpush.msra.mxu3 %v2606_v18  ;;  %v2602_v18 = vld [vmem:[%s9891_s7 + $0x90] sm:$0xff] }
 0x15f   : > { %2765 = vmatmul.f32.gmra.mxu2 %v6359_v6  ;;  %3092 = vmatmul.f32.gmra.mxu1 %v6359_v6  ;;  %v1731_v20 = vrot.slane %v6366_v2, 7  ;;  %v2051_v34 = vrot.slane %v6366_v2, 1 }
 0x160   : > { %2845 = vmatpush.msra.mxu3 %v2605_v3 }
 0x161   : > { %2175 = vrot.lane.b32.xlu0 %v6284_v58, %s5755_s22  ;;  %v2604_v58 = vld [vmem:[%s9891_s7 + $0xa0] sm:$0xff]  ;;  %v6404_v59 = vsel %vm598_vm3, %v1729_v0, %v1731_v20  ;;  %v6407_v54 = vsel %vm2005_vm2, %v2049_v16, %v2051_v34 }
 0x162   : > { %2846 = vmatpush.msra.mxu3 %v2604_v58  ;;  %v2600_v16 = vld [vmem:[%s9891_s7 + $0x80] sm:$0xff] }
 0x163   : > { %v5611_v17 = vpop.permute.xlu1 %5610 }
 0x164   : > { %v5612_v39 = vunpack.i.l.bf16 %v5611_v17  ;;  %v5613_v3 = vunpack.i.h.bf16 %v5611_v17  ;;  %2847 = vmatpush.msra.mxu3 %v2603_v12  ;;  %v5616_v17 = vpop.permute.xlu2 %5615 }
 0x166   : > { %v6395_v30 = vsel %vm2231_vm6, %v1789_v13, %v5612_v39  ;;  %v1149_v39 = vand.u32 15, %v1053_v41  ;;  %v986_v13 = vpop.f32.mrf.mxu1  ;;  %2848 = vmatpush.msra.mxu3 %v2602_v18 }
 0x167   : > { %2768 = vmatmul.f32.gmra.mxu2 %v6395_v30  ;;  %3095 = vmatmul.f32.gmra.mxu1 %v6395_v30  ;;  %v987_v0 = vadd.f32 %v5919_v31, %v986_v13  ;;  %v2630_v31 = vld [vmem:[%s9891_s7 + $0x170] sm:$0xff] }
 0x168   : > { %v6424_v58 = vadd.s32 4294967295, %v1149_v39  ;;  %2849 = vmatpush.msra.mxu3 %v2601_v1  ;;  %2949 = vmatpush.msrb.mxu0 %v2630_v31  ;;  %v1055_v39 = vadd.s32 96, %v6172_v28  ;;  %v1057_v31 = vadd.s32 112, %v6172_v28 }
 0x169   : > { %2352 = vrot.lane.b32.xlu0 %v2238_v15, %s5755_s22  ;;  %v6422_v15 = vsel %vm2231_vm6, %v6104_v29, %v5613_v3  ;;  %v6431_v41 = vmax.f32 %v987_v0, 0.0  ;;  %v5617_v29 = vunpack.i.l.bf16 %v5616_v17  ;;  %v5618_v0 = vunpack.i.h.bf16 %v5616_v17 }
 0x16a   : > { %10110 = vst [vmem:[#allocation8_spill] sm:$0xff] %v6424_v58  ;;  %2850 = vmatpush.msra.mxu3 %v2600_v16  ;;  %vm9943_vm11 = vcmp.ge.s32.totalorder %v6424_v58, 0  ;;  %v1163_v16 = vand.u32 15, %v1055_v39 }
 0x16b   : > { %v9905_v1 = vrot.slane %v6431_v41, 7  ;;  %v9904_v12 = vrot.slane %v6431_v41, 1  ;;  %v1791_v18 = vsel %vm9943_vm11, %v6128_v49, 0.0 }
 0x16c   : > { %v6442_v3 = vsel %vm2231_vm6, %v1791_v18, %v5617_v29  ;;  %v6463_v18 = vsel %vm2231_vm6, %v6152_v8, %v5618_v0  ;;  %v6465_v58 = vadd.s32 4294967295, %v1163_v16 }
 0x16d   : > { %v6451_v13 = vsel %vm598_vm3, %v1731_v20, %v9905_v1  ;;  %v6456_v49 = vsel %vm2005_vm2, %v2051_v34, %v9904_v12  ;;  %v2654_v20 = vld [vmem:[%s9891_s7 + $0x230] sm:$0xff]  ;;  %v1177_v34 = vand.u32 15, %v1057_v31  ;;  %v6557_v1 = vld [vmem:[%s9890_s6] ss:$0 sm:$0xff] }
 0x16e   : > { %10111 = vst [vmem:[#allocation9_spill] sm:$0xff] %v6465_v58  ;;  %3183 = vmatpush.msrb.mxu2 %v2654_v20  ;;  %vm9940_vm12 = vcmp.ge.s32.totalorder %v6465_v58, 0 }
 0x16f   : > { %2771 = vmatmul.f32.gmra.mxu2 %v6422_v15  ;;  %3098 = vmatmul.f32.gmra.mxu1 %v6422_v15  ;;  %v6480_v0 = vadd.s32 4294967295, %v1177_v34  ;;  %v1793_v31 = vsel %vm9940_vm12, %v6166_v24, 0.0 }
 0x171   : > { %2177 = vrot.lane.b32.xlu0 %v6299_v46, %s5755_s22  ;;  %v1044_v46 = vadd.s32 8, %v6172_v28  ;;  %10113 = vst [vmem:[#allocation11_spill] sm:$0xff] %v6480_v0  ;;  %vm9932_vm14 = vcmp.ge.s32.totalorder %v6480_v0, 0 }
 0x173   : > { %v1086_v29 = vand.u32 15, %v1044_v46 }
 0x175   : > { %v6475_v17 = vadd.s32 1, %v1086_v29 }
 0x177   : > { %2774 = vmatmul.f32.gmra.mxu2 %v6442_v3  ;;  %3101 = vmatmul.f32.gmra.mxu1 %v6442_v3  ;;  %10112 = vst [vmem:[#allocation10_spill] sm:$0xff] %v6475_v17  ;;  %vm1878_vm13 = vcmp.lt.s32.totalorder %v6475_v17, 16 }
 0x179   : > { %2356 = vrot.lane.b32.xlu0 %v6359_v6, %s5755_s22  ;;  %v2629_v6 = vld [vmem:[%s9891_s7 + $0x168] sm:$0xff] }
 0x17a   : > { %2950 = vmatpush.msrb.mxu0 %v2629_v6  ;;  %v6495_v6 = vsel %vm1878_vm13, %v5949_v53, 0.0  ;;  %v2628_v53 = vld [vmem:[%s9891_s7 + $0x160] sm:$0xff] }
 0x17b   : > { %v5626_v16 = vpop.permute.xlu2 %5625 }
 0x17c   : > { %v5627_v34 = vunpack.i.l.bf16 %v5626_v16  ;;  %2951 = vmatpush.msrb.mxu0 %v2628_v53 }
 0x17f   : > { %2777 = vmatmul.f32.gmra.mxu2 %v6463_v18  ;;  %3104 = vmatmul.f32.gmra.mxu1 %v6463_v18 }
 0x181   : > { %2179 = vrot.lane.b32.xlu0 %v6327_v19, %s5755_s22 }
 0x183   : > { %v5621_v8 = vpop.permute.xlu0 %5620 }
 0x184   : > { %v5623_v39 = vunpack.i.h.bf16 %v5621_v8  ;;  %v5622_v46 = vunpack.i.l.bf16 %v5621_v8 }
 0x186   : > { %v2244_v29 = vsel %vm2231_vm6, %v1793_v31, %v5622_v46  ;;  %v6489_v20 = vsel %vm2231_vm6, %v6180_v42, %v5623_v39  ;;  %v1795_v42 = vsel %vm9932_vm14, %v6203_v5, 0.0  ;;  %v989_v46 = vpop.f32.mrf.mxu1  ;;  %v1059_v31 = vadd.s32 128, %v6172_v28 }
 0x187   : > { %2780 = vmatmul.f32.gmra.mxu2 %v2244_v29  ;;  %3107 = vmatmul.f32.gmra.mxu1 %v2244_v29  ;;  %v5634_v19 = vpack.i.bf16 %v2244_v29, %v5940_v45  ;;  %v2246_v8 = vsel %vm2231_vm6, %v1795_v42, %v5627_v34  ;;  %v2653_v42 = vld [vmem:[%s9891_s7 + $0x228] sm:$0xff] }
 0x188   : > { %v1191_v34 = vand.u32 15, %v1059_v31  ;;  %3184 = vmatpush.msrb.mxu2 %v2653_v42  ;;  %v1061_v31 = vadd.s32 144, %v6172_v28 }
 0x189   : > { %5635 = vrot.lane.b32.xlu1 %v5634_v19, %s5755_s22  ;;  %2360 = vrot.lane.b32.xlu0 %v6395_v30, %s5755_s22  ;;  %v5644_v30 = vpack.i.bf16 %v2246_v8, %v5959_v62  ;;  %v5628_v19 = vunpack.i.h.bf16 %v5626_v16 }
 0x18a   : > { %v1205_v42 = vand.u32 15, %v1061_v31  ;;  %v2626_v31 = vld [vmem:[%s9891_s7 + $0x150] sm:$0xff] }
 0x18b   : > { %v6534_v53 = vsel %vm2231_vm6, %v6219_v37, %v5628_v19 }
 0x18d   : > { %v6511_v39 = vpop.permute.xlu0 %2328 }
 0x18e   : > { %5435 = vmatmul.msk.f32.vlgmr.msra.gmra.mxu3 %vm5434_vm15, %v6511_v39  ;;  %v992_v29 = vpop.f32.mrf.mxu1 }
 0x18f   : > { %2783 = vmatmul.f32.gmra.mxu2 %v6489_v20  ;;  %3110 = vmatmul.f32.gmra.mxu1 %v6489_v20 }
 0x191   : > { %5645 = vrot.lane.b32.xlu1 %v5644_v30, %s5755_s22  ;;  %2181 = vrot.lane.b32.xlu0 %v6366_v2, %s5755_s22  ;;  %v2627_v2 = vld [vmem:[%s9891_s7 + $0x158] sm:$0xff] }
 0x192   : > { %2952 = vmatpush.msrb.mxu0 %v2627_v2  ;;  %v6552_v2 = vpop.f32.mrf.mxu2 }
 0x194   : > { %2953 = vmatpush.msrb.mxu0 %v2626_v31 }
 0x195   : > { %v6520_v5 = vpop.permute.xlu0 %2332 }
 0x196   : > { %5437 = vmatmul.msk.f32.gmra.mxu3 %vm5434_vm15, %v6520_v5 }
 0x197   : > { %2786 = vmatmul.f32.gmra.mxu2 %v2246_v8  ;;  %3113 = vmatmul.f32.gmra.mxu1 %v2246_v8  ;;  %v6536_v8 = vadd.s32 4294967295, %v1191_v34 }
 0x199   : > { %2364 = vrot.lane.b32.xlu0 %v6422_v15, %s5755_s22  ;;  %10114 = vst [vmem:[#allocation12_spill] sm:$0xff] %v6536_v8  ;;  %v995_v15 = vpop.f32.mrf.mxu1  ;;  %vm9931_vm0 = vcmp.ge.s32.totalorder %v6536_v8, 0 }
 0x19a   : > { %v1797_v37 = vsel %vm9931_vm0, %v6238_v63, 0.0  ;;  %v990_v63 = vadd.f32 %v6557_v1, %v989_v46  ;;  %v993_v46 = vadd.f32 %v6557_v1, %v992_v29  ;;  %v996_v29 = vadd.f32 %v6557_v1, %v995_v15 }
 0x19c   : > { %v6586_v24 = vmax.f32 %v993_v46, 0.0  ;;  %v2625_v46 = vld [vmem:[%s9891_s7 + $0x148] sm:$0xff] }
 0x19d   : > { %2954 = vmatpush.msrb.mxu0 %v2625_v46 }
 0x19e   : > { %10116 = vst [vmem:[#allocation14_spill] sm:$0xff] %v6586_v24 }
 0x19f   : > { %2789 = vmatmul.f32.gmra.mxu2 %v6534_v53  ;;  %3116 = vmatmul.f32.gmra.mxu1 %v6534_v53 }
 0x1a1   : > { %2183 = vrot.lane.b32.xlu0 %v6431_v41, %s5755_s22 }
 0x1a3   : > { %v5631_v16 = vpop.permute.xlu0 %5630 }
 0x1a4   : > { %v5632_v30 = vunpack.i.l.bf16 %v5631_v16  ;;  %v5633_v12 = vunpack.i.h.bf16 %v5631_v16  ;;  %v6571_v16 = vmax.f32 %v990_v63, 0.0 }
 0x1a6   : > { %v2248_v19 = vsel %vm2231_vm6, %v1797_v37, %v5632_v30  ;;  %v998_v37 = vpop.f32.mrf.mxu1 }
 0x1a7   : > { %2792 = vmatmul.f32.gmra.mxu2 %v2248_v19  ;;  %3119 = vmatmul.f32.gmra.mxu1 %v2248_v19  ;;  %v5654_v34 = vpack.i.bf16 %v2248_v19, %v5994_v21  ;;  %v6565_v19 = vadd.s32 4294967295, %v1205_v42  ;;  %v999_v15 = vadd.f32 %v6557_v1, %v998_v37 }
 0x1a9   : > { %5655 = vrot.lane.b32.xlu1 %v5654_v34, %s5755_s22  ;;  %2368 = vrot.lane.b32.xlu0 %v6442_v3, %s5755_s22  ;;  %10115 = vst [vmem:[#allocation13_spill] sm:$0xff] %v6565_v19  ;;  %v6569_v3 = vsel %vm2231_vm6, %v6253_v22, %v5633_v12  ;;  %vm9928_vm1 = vcmp.ge.s32.totalorder %v6565_v19, 0  ;;  %v6582_v22 = vpop.f32.mrf.mxu2  ;;  %v6615_v46 = vmax.f32 %v999_v15, 0.0 }
 0x1aa   : > { %v1799_v34 = vsel %vm9928_vm1, %v6266_v47, 0.0 }
 0x1ab   : > { %v6560_v30 = vpop.permute.xlu0 %2340  ;;  %10120 = vst [vmem:[#allocation18_spill] sm:$0xff] %v6615_v46 }
 0x1ae   : > { %v1001_v31 = vpop.f32.mrf.mxu1 }
 0x1af   : > { %2795 = vmatmul.f32.gmra.mxu2 %v6569_v3  ;;  %3122 = vmatmul.f32.gmra.mxu1 %v6569_v3 }
 0x1b1   : > { %2185 = vrot.lane.b32.xlu0 %v6571_v16, %s5755_s22 }
 0x1b3   : > { %v2172_v42 = vpop.permute.xlu0 %2171 }
 0x1b4   : > { %v2250_v12 = vsel %vm2231_vm6, %v1799_v34, %v2172_v42  ;;  %v2652_v34 = vld [vmem:[%s9891_s7 + $0x220] sm:$0xff]  ;;  %v6600_v42 = vpop.f32.mrf.mxu2 }
 0x1b5   : > { %v5664_v63 = vpack.i.bf16 %v2250_v12, %v6041_v55  ;;  %3185 = vmatpush.msrb.mxu2 %v2652_v34  ;;  %10117 = vst [vmem:[#allocation15_spill] sm:$0xff] %v6600_v42  ;;  %v1063_v34 = vadd.s32 160, %v6172_v28 }
 0x1b6   : > { %v1004_v19 = vpop.f32.mrf.mxu1 }
 0x1b7   : > { %5665 = vrot.lane.b32.xlu1 %v5664_v63, %s5755_s22  ;;  %2798 = vmatmul.f32.gmra.mxu2 %v2250_v12  ;;  %v6604_v63 = vpop.f32.mrf.mxu0  ;;  %v1005_v8 = vadd.f32 %v6557_v1, %v1004_v19  ;;  %v1219_v19 = vand.u32 15, %v1063_v34 }
 0x1b8   : > { %3125 = vmatmul.f32.gmra.mxu1 %v2250_v12  ;;  %v6602_v12 = vmax.f32 %v996_v29, 0.0  ;;  %10119 = vst [vmem:[#allocation17_spill] sm:$0xff] %v6604_v63  ;;  %v1002_v29 = vadd.f32 %v6557_v1, %v1001_v31 }
 0x1b9   : > { %2187 = vrot.lane.b32.xlu0 %v6586_v24, %s5755_s22  ;;  %v6620_v37 = vmax.f32 %v1005_v8, 0.0  ;;  %v2624_v8 = vld [vmem:[%s9891_s7 + $0x140] sm:$0xff]  ;;  %v6637_v17 = vadd.s32 4294967295, %v1219_v19 }
 0x1ba   : > { %10118 = vst [vmem:[#allocation16_spill] sm:$0xff] %v6602_v12  ;;  %v6624_v50 = vmax.f32 %v1002_v29, 0.0  ;;  %2955 = vmatpush.msrb.mxu0 %v2624_v8 }
 0x1bb   : > { %v6592_v47 = vpop.permute.xlu0 %2344  ;;  %10124 = vst [vmem:[#allocation22_spill] sm:$0xff] %v6637_v17  ;;  %vm9927_vm15 = vcmp.ge.s32.totalorder %v6637_v17, 0 }
 0x1bc   : > { %v6622_v35 = vpop.f32.mrf.mxu2  ;;  %10122 = vst [vmem:[#allocation20_spill] sm:$0xff] %v6624_v50  ;;  %v9924_v31 = vrot.slane %v6624_v50, 7  ;;  %v1801_v19 = vsel %vm9927_vm15, %v6292_v26, 0.0  ;;  %v2651_v26 = vld [vmem:[%s9891_s7 + $0x218] sm:$0xff] }
 0x1bd   : > { %10121 = vst [vmem:[#allocation19_spill] sm:$0xff] %v6622_v35  ;;  %3186 = vmatpush.msrb.mxu2 %v2651_v26 }
 0x1c1   : > { %2189 = vrot.lane.b32.xlu0 %v6602_v12, %s5755_s22 }
 0x1c3   : > { %v2174_v0 = vpop.permute.xlu0 %2173 }
 0x1c4   : > { %v6612_v58 = vsel %vm2231_vm6, %v6277_v44, %v2174_v0  ;;  %v9923_v44 = vrot.slane %v6620_v37, 7  ;;  %v6629_v0 = vpop.f32.mrf.mxu0  ;;  %v6649_v29 = vpop.f32.mrf.mxu2 }
 0x1c5   : > { %2801 = vmatmul.f32.gmra.mxu2 %v6612_v58  ;;  %3128 = vmatmul.f32.gmra.mxu1 %v6612_v58  ;;  %10123 = vst [vmem:[#allocation21_spill] sm:$0xff] %v6629_v0 }
 0x1c6   : > { %v6644_v34 = vsel %vm598_vm3, %v9924_v31, %v9923_v44  ;;  %10125 = vst [vmem:[#allocation23_spill] sm:$0xff] %v6649_v29  ;;  %v1046_v31 = vadd.s32 24, %v6172_v28 }
 0x1c8   : > { %v1100_v0 = vand.u32 15, %v1046_v31  ;;  %v10130_v31 = vpack.i.bf16 %v6489_v20, %v6495_v6 }
 0x1c9   : > { %2191 = vrot.lane.b32.xlu0 %v6615_v46, %s5755_s22 }
 0x1cb   : > { %v6632_v15 = vpop.permute.xlu0 %2348 }
 0x1cc   : > { %v6654_v8 = vpop.f32.mrf.mxu0  ;;  %v6667_v17 = vpop.f32.mrf.mxu2 }
 0x1cd   : > { %10126 = vst [vmem:[#allocation24_spill] sm:$0xff] %v6654_v8 }
 0x1ce   : > { %10127 = vst [vmem:[#allocation25_spill] sm:$0xff] %v6667_v17 }
 0x1d1   : > { %2193 = vrot.lane.b32.xlu0 %v6624_v50, %s5755_s22 }
 0x1d3   : > { %v2176_v48 = vpop.permute.xlu0 %2175 }
 0x1d4   : > { %v2252_v56 = vsel %vm2231_vm6, %v1801_v19, %v2176_v48  ;;  %v2623_v48 = vld [vmem:[%s9891_s7 + $0x138] sm:$0xff] }
 0x1d5   : > { %2804 = vmatmul.f32.gmra.mxu2 %v2252_v56  ;;  %3131 = vmatmul.f32.gmra.mxu1 %v2252_v56  ;;  %v5674_v44 = vpack.i.bf16 %v2252_v56, %v6107_v32  ;;  %v6672_v56 = vpop.f32.mrf.mxu0 }
 0x1d6   : > { %2956 = vmatpush.msrb.mxu0 %v2623_v48  ;;  %10128 = vst [vmem:[#allocation26_spill] sm:$0xff] %v6672_v56  ;;  %v6686_v56 = vpop.f32.mrf.mxu2 }
 0x1d7   : > { %5675 = vrot.lane.b32.xlu1 %v5674_v44, %s5755_s22  ;;  %v6674_v44 = vadd.s32 1, %v1100_v0  ;;  %v1065_v0 = vadd.s32 176, %v6172_v28  ;;  %10131 = vst [vmem:[#allocation28_spill] sm:$0xff] %v6686_v56 }
 0x1d9   : > { %2372 = vrot.lane.b32.xlu0 %v6463_v18, %s5755_s22  ;;  %10129 = vst [vmem:[#allocation27_spill] sm:$0xff] %v6674_v44  ;;  %v1048_v18 = vadd.s32 40, %v6172_v28  ;;  %vm1880_vm15 = vcmp.lt.s32.totalorder %v6674_v44, 16  ;;  %v1052_v44 = vadd.s32 72, %v6172_v28 }
 0x1db   : > { %v6662_v63 = vpop.permute.xlu0 %2352  ;;  %v1114_v8 = vand.u32 15, %v1048_v18  ;;  %v1050_v18 = vadd.s32 56, %v6172_v28 }
 0x1dd   : > { %v6698_v17 = vpop.f32.mrf.mxu0 }
 0x1de   : > { %10133 = vst [vmem:[#allocation30_spill] sm:$0xff] %v6698_v17 }
 0x1e0   : > { %v485_v19 = vpop.trf.xlu2 }
 0x1e1   : > { %5385 = vmatmul.msk.f32.gmra.mxu0 %vm501_vm4, %v485_v19  ;;  %5640 = vrot.lane.b32.xlu0 %v10130_v31, %s5755_s22  ;;  %v6691_v19 = vsel %vm1880_vm15, %v5970_v7, 0.0  ;;  %v6695_v31 = vadd.s32 1, %v1114_v8  ;;  %v1128_v7 = vand.u32 15, %v1050_v18  ;;  %v6720_v18 = vpop.f32.mrf.mxu2 }
 0x1e2   : > { %v5649_v20 = vpack.i.bf16 %v6534_v53, %v6691_v19  ;;  %v2622_v53 = vld [vmem:[%s9891_s7 + $0x130] sm:$0xff]  ;;  %10136 = vst [vmem:[#allocation33_spill] sm:$0xff] %v6720_v18 }
 0x1e3   : > { %v2178_v26 = vpop.permute.xlu0 %2177  ;;  %10132 = vst [vmem:[#allocation29_spill] sm:$0xff] %v6695_v31  ;;  %vm1882_vm1 = vcmp.lt.s32.totalorder %v6695_v31, 16  ;;  %2957 = vmatpush.msrb.mxu0 %v2622_v53 }
 0x1e4   : > { %v2253_v48 = vsel %vm2231_vm6, %v6313_v11, %v2178_v26  ;;  %v1233_v26 = vand.u32 15, %v1065_v0  ;;  %v6713_v0 = vsel %vm1882_vm1, %v6017_v36, 0.0 }
 0x1e5   : > { %2807 = vmatmul.f32.gmra.mxu2 %v2253_v48  ;;  %3134 = vmatmul.f32.gmra.mxu1 %v2253_v48 }
 0x1e6   : > { %v6708_v8 = vadd.s32 4294967295, %v1233_v26  ;;  %v6725_v26 = vpop.f32.mrf.mxu0 }
 0x1e7   : > { %10137 = vst [vmem:[#allocation34_spill] sm:$0xff] %v6725_v26 }
 0x1e8   : > { %v486_v11 = vpop.trf.xlu2  ;;  %10134 = vst [vmem:[#allocation31_spill] sm:$0xff] %v6708_v8  ;;  %vm9937_vm0 = vcmp.ge.s32.totalorder %v6708_v8, 0 }
 0x1e9   : > { %5386 = vmatmul.msk.f32.gmra.mxu0 %vm501_vm4, %v486_v11  ;;  %5650 = vrot.lane.b32.xlu0 %v5649_v20, %s5755_s22  ;;  %v5659_v20 = vpack.i.bf16 %v6569_v3, %v6713_v0  ;;  %v6717_v11 = vadd.s32 1, %v1128_v7  ;;  %v1803_v3 = vsel %vm9937_vm0, %v6344_v33, 0.0  ;;  %v1142_v7 = vand.u32 15, %v1052_v44  ;;  %v6744_v8 = vpop.f32.mrf.mxu2 }
 0x1ea   : > { %v1054_v44 = vadd.s32 88, %v6172_v28  ;;  %10139 = vst [vmem:[#allocation36_spill] sm:$0xff] %v6744_v8 }
 0x1eb   : > { %v6702_v56 = vpop.permute.xlu0 %2356  ;;  %10135 = vst [vmem:[#allocation32_spill] sm:$0xff] %v6717_v11  ;;  %vm1884_vm14 = vcmp.lt.s32.totalorder %v6717_v11, 16  ;;  %v6741_v33 = vadd.s32 1, %v1142_v7  ;;  %v2621_v7 = vld [vmem:[%s9891_s7 + $0x128] sm:$0xff] }
 0x1ec   : > { %2958 = vmatpush.msrb.mxu0 %v2621_v7 }
 0x1ed   : > { %10138 = vst [vmem:[#allocation35_spill] sm:$0xff] %v6741_v33  ;;  %vm10012_vm0 = vcmp.lt.s32.totalorder %v6741_v33, 16 }
 0x1f0   : > { %v487_v17 = vpop.trf.xlu2 }
 0x1f1   : > { %5387 = vmatmul.msk.f32.gmra.mxu0 %vm501_vm4, %v487_v17  ;;  %5660 = vrot.lane.b32.xlu0 %v5659_v20, %s5755_s22  ;;  %v6736_v17 = vsel %vm1884_vm14, %v6080_v14, 0.0  ;;  %v1156_v14 = vand.u32 15, %v1054_v44 }
 0x1f2   : > { %v5669_v20 = vpack.i.bf16 %v6612_v58, %v6736_v17  ;;  %v2650_v58 = vld [vmem:[%s9891_s7 + $0x210] sm:$0xff] }
 0x1f3   : > { %v2180_v36 = vpop.permute.xlu0 %2179  ;;  %3187 = vmatpush.msrb.mxu2 %v2650_v58  ;;  %v6765_v44 = vadd.s32 1, %v1156_v14  ;;  %v6770_v58 = vpop.f32.mrf.mxu2 }
 0x1f4   : > { %v2254_v53 = vsel %vm2231_vm6, %v1803_v3, %v2180_v36  ;;  %10142 = vst [vmem:[#allocation39_spill] sm:$0xff] %v6770_v58  ;;  %v1737_v58 = vrot.slane %v6586_v24, 7 }
 0x1f5   : > { %2810 = vmatmul.f32.gmra.mxu2 %v2254_v53  ;;  %3137 = vmatmul.f32.gmra.mxu1 %v2254_v53  ;;  %v5684_v31 = vpack.i.bf16 %v2254_v53, %v6155_v9  ;;  %v6762_v53 = vsel %vm10012_vm0, %v6131_v51, 0.0  ;;  %10141 = vst [vmem:[#allocation38_spill] sm:$0xff] %v6765_v44  ;;  %vm9946_vm12 = vcmp.lt.s32.totalorder %v6765_v44, 16 }
 0x1f7   : > { %5685 = vrot.lane.b32.xlu1 %v5684_v31, %s5755_s22  ;;  %v6754_v31 = vpop.f32.mrf.mxu0 }
 0x1f8   : > { %v488_v36 = vpop.trf.xlu2  ;;  %10140 = vst [vmem:[#allocation37_spill] sm:$0xff] %v6754_v31 }
 0x1f9   : > { %5388 = vmatmul.msk.f32.gmra.mxu0 %vm501_vm4, %v488_v36  ;;  %5670 = vrot.lane.b32.xlu0 %v5669_v20, %s5755_s22  ;;  %v5679_v20 = vpack.i.bf16 %v2253_v48, %v6762_v53  ;;  %v1056_v36 = vadd.s32 104, %v6172_v28  ;;  %v1067_v48 = vadd.s32 192, %v6172_v28 }
 0x1fb   : > { %v6748_v3 = vpop.permute.xlu0 %2360  ;;  %v1170_v7 = vand.u32 15, %v1056_v36  ;;  %v1247_v36 = vand.u32 15, %v1067_v48 }
 0x1fd   : > { %v6784_v33 = vadd.s32 1, %v1170_v7  ;;  %v6796_v44 = vadd.s32 4294967295, %v1247_v36 }
 0x1ff   : > { %v6776_v14 = vpop.f32.mrf.mxu0  ;;  %10144 = vst [vmem:[#allocation41_spill] sm:$0xff] %v6784_v33  ;;  %vm9955_vm11 = vcmp.lt.s32.totalorder %v6784_v33, 16 }
 0x200   : > { %v489_v11 = vpop.trf.xlu2  ;;  %10143 = vst [vmem:[#allocation40_spill] sm:$0xff] %v6776_v14  ;;  %v6801_v7 = vsel %vm9955_vm11, %v6206_v10, 0.0 }
 0x201   : > { %5389 = vmatmul.msk.f32.gmra.mxu0 %vm501_vm4, %v489_v11  ;;  %5680 = vrot.lane.b32.xlu0 %v5679_v20, %s5755_s22  ;;  %v6781_v11 = vsel %vm9946_vm12, %v6169_v25, 0.0  ;;  %v6794_v25 = vpop.f32.mrf.mxu2  ;;  %10146 = vst [vmem:[#allocation43_spill] sm:$0xff] %v6796_v44  ;;  %vm9951_vm12 = vcmp.ge.s32.totalorder %v6796_v44, 0 }
 0x202   : > { %10145 = vst [vmem:[#allocation42_spill] sm:$0xff] %v6794_v25  ;;  %v1805_v36 = vsel %vm9951_vm12, %v6451_v13, 0.0  ;;  %v2649_v13 = vld [vmem:[%s9891_s7 + $0x208] sm:$0xff] }
 0x203   : > { %v2182_v31 = vpop.permute.xlu0 %2181  ;;  %3188 = vmatpush.msrb.mxu2 %v2649_v13 }
 0x204   : > { %v2255_v51 = vsel %vm2231_vm6, %v6404_v59, %v2182_v31  ;;  %v2620_v31 = vld [vmem:[%s9891_s7 + $0x120] sm:$0xff] }
 0x205   : > { %2813 = vmatmul.f32.gmra.mxu2 %v2255_v51  ;;  %3140 = vmatmul.f32.gmra.mxu1 %v2255_v51  ;;  %v5689_v20 = vpack.i.bf16 %v2255_v51, %v6781_v11 }
 0x206   : > { %2959 = vmatpush.msrb.mxu0 %v2620_v31 }
 0x207   : > { %v6805_v51 = vpop.f32.mrf.mxu0 }
 0x208   : > { %v490_v26 = vpop.trf.xlu2  ;;  %10147 = vst [vmem:[#allocation44_spill] sm:$0xff] %v6805_v51 }
 0x209   : > { %5390 = vmatmul.msk.f32.gmra.mxu0 %vm501_vm4, %v490_v26  ;;  %5690 = vrot.lane.b32.xlu0 %v5689_v20, %s5755_s22  ;;  %v5699_v26 = vpack.i.bf16 %v6620_v37, %v6801_v7  ;;  %v6815_v33 = vpop.f32.mrf.mxu2 }
 0x20a   : > { %10148 = vst [vmem:[#allocation45_spill] sm:$0xff] %v6815_v33  ;;  %v10151_v33 = vrot.slane %v6431_v41, 7 }
 0x20b   : > { %v6788_v59 = vpop.permute.xlu0 %2364 }
 0x210   : > { %v491_v48 = vpop.trf.xlu2 }
 0x211   : > { %5391 = vmatmul.msk.f32.gmra.mxu0 %vm501_vm4, %v491_v48  ;;  %5700 = vrot.lane.b32.xlu0 %v5699_v26, %s5755_s22  ;;  %v6819_v48 = vpop.f32.mrf.mxu0 }
 0x212   : > { %10149 = vst [vmem:[#allocation46_spill] sm:$0xff] %v6819_v48 }
 0x213   : > { %v2184_v20 = vpop.permute.xlu0 %2183 }
 0x214   : > { %v2256_v10 = vsel %vm2231_vm6, %v1805_v36, %v2184_v20  ;;  %v2619_v20 = vld [vmem:[%s9891_s7 + $0x118] sm:$0xff]  ;;  %v1069_v36 = vadd.s32 208, %v6172_v28 }
 0x215   : > { %2816 = vmatmul.f32.gmra.mxu2 %v2256_v10  ;;  %3143 = vmatmul.f32.gmra.mxu1 %v2256_v10  ;;  %v5694_v31 = vpack.i.bf16 %v2256_v10, %v6183_v43  ;;  %v1007_v10 = vpop.f32.mrf.mxu1 }
 0x216   : > { %2960 = vmatpush.msrb.mxu0 %v2619_v20  ;;  %v1261_v48 = vand.u32 15, %v1069_v36  ;;  %v1058_v36 = vadd.s32 120, %v6172_v28 }
 0x217   : > { %5695 = vrot.lane.b32.xlu1 %v5694_v31, %s5755_s22  ;;  %v1735_v31 = vrot.slane %v6571_v16, 7 }
 0x218   : > { %v492_v51 = vpop.trf.xlu2  ;;  %v6841_v20 = vadd.s32 4294967295, %v1261_v48 }
 0x219   : > { %5392 = vmatmul.msk.f32.gmra.mxu0 %vm501_vm4, %v492_v51  ;;  %v6831_v51 = vpop.f32.mrf.mxu2  ;;  %v1736_v25 = vsel %vm598_vm3, %v10151_v33, %v1735_v31  ;;  %v6838_v8 = vpop.f32.mrf.mxu0 }
 0x21a   : > { %10150 = vst [vmem:[#allocation47_spill] sm:$0xff] %v6831_v51  ;;  %vm9954_vm12 = vcmp.ge.s32.totalorder %v6841_v20, 0 }
 0x21b   : > { %v6821_v26 = vpop.permute.xlu0 %2368  ;;  %10152 = vst [vmem:[#allocation48_spill] sm:$0xff] %v6838_v8 }
 0x21c   : > { %10153 = vst [vmem:[#allocation49_spill] sm:$0xff] %v6841_v20  ;;  %v1739_v20 = vrot.slane %v6602_v12, 7 }
 0x21d   : > { %v6846_v18 = vpop.f32.mrf.mxu1 }
 0x220   : > { %v493_v44 = vpop.trf.xlu2 }
 0x221   : > { %5393 = vmatmul.msk.f32.gmra.mxu0 %vm501_vm4, %v493_v44  ;;  %v1008_v44 = vadd.f32 %v6557_v1, %v1007_v10  ;;  %v6854_v48 = vpop.f32.mrf.mxu2 }
 0x222   : > { %10154 = vst [vmem:[#allocation50_spill] sm:$0xff] %v6854_v48 }
 0x223   : > { %v2186_v14 = vpop.permute.xlu0 %2185 }
 0x224   : > { %v2257_v13 = vsel %vm2231_vm6, %v1736_v25, %v2186_v14  ;;  %v1738_v14 = vsel %vm598_vm3, %v1735_v31, %v1737_v58  ;;  %v1184_v25 = vand.u32 15, %v1058_v36  ;;  %v1071_v36 = vadd.s32 224, %v6172_v28 }
 0x225   : > { %2819 = vmatmul.f32.gmra.mxu2 %v2257_v13  ;;  %3146 = vmatmul.f32.gmra.mxu1 %v2257_v13  ;;  %v5704_v51 = vpack.i.bf16 %v6222_v38, %v2257_v13  ;;  %v6856_v13 = vmax.f32 %v1008_v44, 0.0  ;;  %v1807_v10 = vsel %vm9954_vm12, %v1738_v14, 0.0  ;;  %v6871_v14 = vpop.f32.mrf.mxu0  ;;  %v6875_v29 = vpop.f32.mrf.mxu1 }
 0x226   : > { %10156 = vst [vmem:[#allocation52_spill] sm:$0xff] %v6871_v14  ;;  %v1275_v48 = vand.u32 15, %v1071_v36 }
 0x227   : > { %5705 = vrot.lane.b32.xlu1 %v5704_v51, %s5755_s22  ;;  %v2648_v51 = vld [vmem:[%s9891_s7 + $0x200] sm:$0xff] }
 0x228   : > { %2336 = vrot.lane.b32.xlu2 %v6232_v23, %s5755_s22  ;;  %v494_v33 = vpop.trf.xlu2  ;;  %v2618_v23 = vld [vmem:[%s9891_s7 + $0x110] sm:$0xff]  ;;  %3189 = vmatpush.msrb.mxu2 %v2648_v51  ;;  %v6889_v36 = vadd.s32 4294967295, %v1275_v48 }
 0x229   : > { %5394 = vmatmul.msk.f32.gmra.mxu0 %vm501_vm4, %v494_v33  ;;  %v6869_v33 = vadd.s32 1, %v1184_v25  ;;  %v1741_v25 = vrot.slane %v6615_v46, 7 }
 0x22a   : > { %2961 = vmatpush.msrb.mxu0 %v2618_v23  ;;  %v6881_v23 = vpop.f32.mrf.mxu2  ;;  %10158 = vst [vmem:[#allocation54_spill] sm:$0xff] %v6889_v36  ;;  %vm9958_vm11 = vcmp.ge.s32.totalorder %v6889_v36, 0 }
 0x22b   : > { %v2188_v1 = vpop.permute.xlu0 %2187  ;;  %10155 = vst [vmem:[#allocation51_spill] sm:$0xff] %v6869_v33  ;;  %vm1892_vm12 = vcmp.lt.s32.totalorder %v6869_v33, 16 }
 0x22c   : > { %v2258_v31 = vsel %vm2231_vm6, %v1807_v10, %v2188_v1  ;;  %v1740_v10 = vsel %vm598_vm3, %v1737_v58, %v1739_v20  ;;  %10157 = vst [vmem:[#allocation53_spill] sm:$0xff] %v6881_v23 }
 0x22d   : > { %2822 = vmatmul.f32.gmra.mxu2 %v2258_v31  ;;  %3149 = vmatmul.f32.gmra.mxu1 %v2258_v31  ;;  %v5709_v44 = vpack.i.bf16 %v2258_v31, %v6856_v13  ;;  %v6887_v31 = vsel %vm1892_vm12, %v6241_v52, 0.0  ;;  %v6894_v58 = vpop.f32.mrf.mxu0  ;;  %v6899_v48 = vpop.f32.mrf.mxu1 }
 0x22e   : > { %10159 = vst [vmem:[#allocation55_spill] sm:$0xff] %v6894_v58 }
 0x22f   : > { %5710 = vrot.lane.b32.xlu0 %v5709_v44, %s5755_s22  ;;  %v1060_v44 = vadd.s32 136, %v6172_v28  ;;  %10160 = vst [vmem:[#allocation56_spill] sm:$0xff] %v6899_v48 }
 0x230   : > { %v495_v8 = vpop.trf.xlu2 }
 0x231   : > { %5395 = vmatmul.msk.f32.gmra.mxu0 %vm501_vm4, %v495_v8  ;;  %v1198_v52 = vand.u32 15, %v1060_v44 }
 0x233   : > { %v2190_v1 = vpop.permute.xlu0 %2189 }
 0x234   : > { %v2259_v51 = vsel %vm2231_vm6, %v1740_v10, %v2190_v1  ;;  %v1742_v1 = vsel %vm598_vm3, %v1739_v20, %v1741_v25  ;;  %v6908_v20 = vadd.s32 1, %v1198_v52  ;;  %v10164_v52 = vrot.slane %v6624_v50, 7 }
 0x235   : > { %2825 = vmatmul.f32.gmra.mxu2 %v2259_v51  ;;  %3152 = vmatmul.f32.gmra.mxu1 %v2259_v51  ;;  %v5714_v8 = vpack.i.bf16 %v2259_v51, %v6887_v31  ;;  %v1809_v51 = vsel %vm9958_vm11, %v1742_v1, 0.0  ;;  %v2616_v1 = vld [vmem:[%s9891_s7 + $0x100] sm:$0xff]  ;;  %v6929_v36 = vpop.f32.mrf.mxu1 }
 0x236   : > { %10161 = vst [vmem:[#allocation57_spill] sm:$0xff] %v6908_v20  ;;  %vm10051_vm11 = vcmp.lt.s32.totalorder %v6908_v20, 16 }
 0x237   : > { %5715 = vrot.lane.b32.xlu1 %v5714_v8, %s5755_s22  ;;  %v2617_v8 = vld [vmem:[%s9891_s7 + $0x108] sm:$0xff]  ;;  %10165 = vst [vmem:[#allocation60_spill] sm:$0xff] %v6929_v36 }
 0x238   : > { %v496_v14 = vpop.trf.xlu2  ;;  %2962 = vmatpush.msrb.mxu0 %v2617_v8 }
 0x239   : > { %5396 = vmatmul.msk.f32.gmra.mxu0 %vm501_vm4, %v496_v14  ;;  %v6910_v14 = vpop.f32.mrf.mxu2 }
 0x23a   : > { %10162 = vst [vmem:[#allocation58_spill] sm:$0xff] %v6910_v14  ;;  %2963 = vmatpush.msrb.mxu0 %v2616_v1 }
 0x23b   : > { %v2192_v10 = vpop.permute.xlu0 %2191 }
 0x23c   : > { %v2260_v33 = vsel %vm2231_vm6, %v1809_v51, %v2192_v10  ;;  %v6918_v10 = vpop.f32.mrf.mxu0  ;;  %v1744_v51 = vsel %vm598_vm3, %v1741_v25, %v10164_v52 }
 0x23d   : > { %2828 = vmatmul.f32.gmra.mxu2 %v2260_v33  ;;  %3155 = vmatmul.f32.gmra.mxu1 %v2260_v33  ;;  %v5719_v58 = vpack.i.bf16 %v2260_v33, %v6256_v61  ;;  %10163 = vst [vmem:[#allocation59_spill] sm:$0xff] %v6918_v10 }
 0x23f   : > { %5720 = vrot.lane.b32.xlu0 %v5719_v58, %s5755_s22  ;;  %v6927_v58 = vsel %vm10051_vm11, %v6269_v57, 0.0 }
 0x240   : > { %v497_v44 = vpop.trf.xlu2 }
 0x241   : > { %5397 = vmatmul.msk.f32.gmra.mxu0 %vm501_vm4, %v497_v44  ;;  %v6933_v1 = vpop.f32.mrf.mxu2 }
 0x242   : > { %10166 = vst [vmem:[#allocation61_spill] sm:$0xff] %v6933_v1 }
 0x243   : > { %v2194_v33 = vpop.permute.xlu0 %2193 }
 0x244   : > { %v2261_v8 = vsel %vm2231_vm6, %v1744_v51, %v2194_v33  ;;  %v6938_v33 = vpop.f32.mrf.mxu0 }
 0x245   : > { %2831 = vmatmul.f32.gmra.mxu2 %v2261_v8  ;;  %3158 = vmatmul.f32.gmra.mxu1 %v2261_v8  ;;  %v5724_v44 = vpack.i.bf16 %v2261_v8, %v6927_v58  ;;  %10167 = vst [vmem:[#allocation62_spill] sm:$0xff] %v6938_v33 }
 0x247   : > { %5725 = vrot.lane.b32.xlu1 %v5724_v44, %s5755_s22  ;;  %v6955_v44 = vpop.permute.xlu1 %5635 }
 0x248   : > { %v498_v10 = vpop.trf.xlu2 }
 0x249   : > { %5398 = vmatmul.msk.f32.gmra.mxu0 %vm501_vm4, %v498_v10  ;;  %v6945_v52 = vpop.f32.mrf.mxu2 }
 0x24a   : > { %10168 = vst [vmem:[#allocation63_spill] sm:$0xff] %v6945_v52 }
 0x24b   : > { %v6936_v25 = vpop.permute.xlu0 %2372 }
 0x24c   : > { %v6951_v10 = vpop.f32.mrf.mxu0 }
 0x24d   : > { %5438 = vmatmul.msk.f32.vlgmr.msrb.gmra.mxu2 %vm2231_vm6, %v5959_v62  ;;  %10169 = vst [vmem:[#allocation64_spill] sm:$0xff] %v6951_v10 }
 0x24f   : > { %2410 = vrot.lane.b32.xlu1 %v6316_v40, %s5755_s22 }
 0x250   : > { %v499_v57 = vpop.trf.xlu2 }
 0x251   : > { %5399 = vmatmul.msk.f32.gmra.mxu0 %vm501_vm4, %v499_v57  ;;  %v5637_v57 = vunpack.i.l.bf16 %v6955_v44  ;;  %v6961_v33 = vpop.f32.mrf.mxu2 }
 0x252   : > { %10170 = vst [vmem:[#allocation65_spill] sm:$0xff] %v6961_v33 }
 0x253   : > { %v6947_v51 = vpop.permute.xlu0 %5640  ;;  %v2456_v10 = vsel %vm2231_vm6, %v6511_v39, %v5637_v57 }
 0x254   : > { %v5642_v14 = vunpack.i.l.bf16 %v6947_v51 }
 0x255   : > { %5439 = vmatmul.msk.f32.gmra.mxu2 %vm2231_vm6, %v6691_v19 }
 0x256   : > { %v2457_v33 = vsel %vm2231_vm6, %v6520_v5, %v5642_v14 }
 0x257   : > { %2418 = vrot.lane.b32.xlu1 %v6407_v54, %s5755_s22 }
 0x258   : > { %v500_v8 = vpop.trf.xlu2 }
 0x259   : > { %5400 = vmatmul.msk.f32.gmra.mxu0 %vm501_vm4, %v500_v8  ;;  %v6974_v8 = vpop.f32.mrf.mxu2 }
 0x25a   : > { %10172 = vst [vmem:[#allocation67_spill] sm:$0xff] %v6974_v8 }
 0x25b   : > { %v6958_v20 = vpop.permute.xlu0 %5650 }
 0x25d   : > { %5440 = vmatmul.msk.f32.gmra.mxu2 %vm2231_vm6, %v5994_v21 }
 0x25e   : > { %v6965_v52 = vpop.f32.mrf.mxu0 }
 0x25f   : > { %10171 = vst [vmem:[#allocation66_spill] sm:$0xff] %v6965_v52 }
 0x261   : > { %2964 = vmatmul.f32.vlgmr.msrb.gmra.mxu0 %v2456_v10  ;;  %v6986_v10 = vpop.f32.mrf.mxu2 }
 0x262   : > { %10175 = vst [vmem:[#allocation70_spill] sm:$0xff] %v6986_v10 }
 0x263   : > { %v6969_v1 = vpop.permute.xlu0 %5660 }
 0x265   : > { %5441 = vmatmul.msk.f32.gmra.mxu2 %vm2231_vm6, %v6713_v0 }
 0x266   : > { %v6976_v23 = vpop.f32.mrf.mxu0 }
 0x267   : > { %10173 = vst [vmem:[#allocation68_spill] sm:$0xff] %v6976_v23  ;;  %v1073_v23 = vadd.s32 240, %v6172_v28 }
 0x269   : > { %2967 = vmatmul.f32.gmra.mxu0 %v2457_v33  ;;  %v6995_v5 = vpop.f32.mrf.mxu2  ;;  %v1289_v14 = vand.u32 15, %v1073_v23 }
 0x26a   : > { %10177 = vst [vmem:[#allocation72_spill] sm:$0xff] %v6995_v5  ;;  %v1064_v5 = vadd.s32 168, %v6172_v28 }
 0x26b   : > { %v6980_v52 = vpop.permute.xlu0 %5670  ;;  %v7006_v36 = vadd.s32 4294967295, %v1289_v14 }
 0x26c   : > { %v1226_v42 = vand.u32 15, %v1064_v5 }
 0x26d   : > { %5442 = vmatmul.msk.f32.gmra.mxu2 %vm2231_vm6, %v6041_v55  ;;  %10180 = vst [vmem:[#allocation75_spill] sm:$0xff] %v7006_v36  ;;  %vm9969_vm4 = vcmp.ge.s32.totalorder %v7006_v36, 0 }
 0x26e   : > { %v6984_v39 = vpop.f32.mrf.mxu0 }
 0x26f   : > { %10174 = vst [vmem:[#allocation69_spill] sm:$0xff] %v6984_v39  ;;  %v7002_v39 = vpop.permute.xlu1 %5645 }
 0x270   : > { %v5647_v23 = vunpack.i.l.bf16 %v7002_v39 }
 0x271   : > { %v7012_v35 = vpop.f32.mrf.mxu2 }
 0x272   : > { %10181 = vst [vmem:[#allocation76_spill] sm:$0xff] %v7012_v35  ;;  %v1811_v35 = vsel %vm9969_vm4, %v6644_v34, 0.0  ;;  %v7041_v34 = vadd.s32 1, %v1226_v42 }
 0x273   : > { %v6988_v57 = vpop.permute.xlu0 %5680 }
 0x274   : > { %10183 = vst [vmem:[#allocation78_spill] sm:$0xff] %v7041_v34  ;;  %vm9973_vm4 = vcmp.lt.s32.totalorder %v7041_v34, 16 }
 0x275   : > { %5443 = vmatmul.msk.f32.gmra.mxu2 %vm2231_vm6, %v6736_v17 }
 0x276   : > { %v6992_v8 = vpop.f32.mrf.mxu0 }
 0x277   : > { %10176 = vst [vmem:[#allocation71_spill] sm:$0xff] %v6992_v8  ;;  %v7048_v5 = vpop.permute.xlu1 %5655 }
 0x278   : > { %v5657_v42 = vunpack.i.l.bf16 %v7048_v5 }
 0x27b   : > { %v6997_v33 = vpop.permute.xlu0 %5690 }
 0x27c   : > { %10178 = vst [vmem:[#allocation73_spill] sm:$0xff] %v6997_v33  ;;  %v5692_v50 = vunpack.i.l.bf16 %v6997_v33 }
 0x27d   : > { %5444 = vmatmul.msk.f32.gmra.mxu2 %vm2231_vm6, %v6107_v32 }
 0x27e   : > { %v7004_v10 = vpop.f32.mrf.mxu0  ;;  %v7010_v8 = vsel %vm2231_vm6, %v6936_v25, %v5692_v50 }
 0x27f   : > { %10179 = vst [vmem:[#allocation74_spill] sm:$0xff] %v7004_v10  ;;  %v9970_v10 = vunpack.i.h.bf16 %v6947_v51 }
 0x282   : > { %v2337_v33 = vpop.permute.xlu2 %2336 }
 0x283   : > { %v5701_v46 = vpop.permute.xlu0 %5700  ;;  %v2554_v48 = vsel %vm2231_vm6, %v5940_v45, %v2337_v33  ;;  %v2458_v14 = vsel %vm2231_vm6, %v2337_v33, %v5647_v23 }
 0x284   : > { %v5703_v12 = vunpack.i.h.bf16 %v5701_v46  ;;  %v5702_v50 = vunpack.i.l.bf16 %v5701_v46  ;;  %2857 = vmatmul.f32.gmra.mxu3 %v2554_v48  ;;  %2970 = vmatmul.f32.gmra.mxu0 %v2458_v14  ;;  %v7034_v46 = vpop.f32.mrf.mxu1  ;;  %v5652_v48 = vunpack.i.l.bf16 %v6958_v20  ;;  %v7038_v14 = vpop.f32.mrf.mxu2 }
 0x285   : > { %5445 = vmatmul.msk.f32.gmra.mxu2 %vm2231_vm6, %v6762_v53 }
 0x286   : > { %v7026_v24 = vpop.f32.mrf.mxu0  ;;  %v2262_v45 = vsel %vm2231_vm6, %v1811_v35, %v5703_v12  ;;  %v7032_v33 = vsel %vm2231_vm6, %v9970_v10, %v5702_v50  ;;  %v2555_v35 = vsel %vm2231_vm6, %v6495_v6, %v6560_v30  ;;  %v2459_v12 = vsel %vm2231_vm6, %v6560_v30, %v5652_v48  ;;  %v3783_v30 = vld [vmem:[%s9893_s9 + $0x78] sm:$0xff] }
 0x287   : > { %10182 = vst [vmem:[#allocation77_spill] sm:$0xff] %v7026_v24  ;;  %v5729_v23 = vpack.i.bf16 %v2262_v45, %v6280_v4  ;;  %3161 = vmatmul.f32.gmra.mxu1 %v2262_v45  ;;  %v7061_v6 = vsel %vm9973_vm4, %v6347_v60, 0.0  ;;  %v2556_v48 = vsel %vm2231_vm6, %v5959_v62, %v6592_v47  ;;  %3916 = vmatpush.msrb.mxu3 %v3783_v30  ;;  %v1062_v60 = vadd.s32 152, %v6172_v28 }
 0x288   : > { %v2557_v62 = vsel %vm2231_vm6, %v6691_v19, %v6632_v15 }
 0x289   : > { %5730 = vrot.lane.b32.xlu2 %v5729_v23, %s5755_s22  ;;  %v2460_v23 = vsel %vm2231_vm6, %v6592_v47, %v5657_v42  ;;  %v1212_v36 = vand.u32 15, %v1062_v60  ;;  %v7086_v42 = vpop.permute.xlu1 %5665 }
 0x28a   : > { %v5667_v60 = vunpack.i.l.bf16 %v7086_v42 }
 0x28b   : > { %v7090_v30 = vadd.s32 1, %v1212_v36  ;;  %v3782_v36 = vld [vmem:[%s9893_s9 + $0x70] sm:$0xff] }
 0x28c   : > { %2860 = vmatmul.f32.gmra.mxu3 %v2555_v35  ;;  %2973 = vmatmul.f32.gmra.mxu0 %v2459_v12  ;;  %v7056_v45 = vpop.f32.mrf.mxu2  ;;  %v5662_v12 = vunpack.i.l.bf16 %v6969_v1  ;;  %v7098_v19 = vpop.f32.mrf.mxu1 }
 0x28d   : > { %5446 = vmatmul.msk.f32.gmra.mxu2 %vm2231_vm6, %v6155_v9  ;;  %10186 = vst [vmem:[#allocation81_spill] sm:$0xff] %v7090_v30  ;;  %vm9976_vm4 = vcmp.lt.s32.totalorder %v7090_v30, 16  ;;  %3917 = vmatpush.msrb.mxu3 %v3782_v36 }
 0x28e   : > { %v7053_v50 = vpop.f32.mrf.mxu0  ;;  %v2461_v47 = vsel %vm2231_vm6, %v6632_v15, %v5662_v12 }
 0x28f   : > { %10184 = vst [vmem:[#allocation79_spill] sm:$0xff] %v7053_v50  ;;  %v7118_v50 = vsel %vm9976_vm4, %v6295_v27, 0.0  ;;  %v2559_v27 = vsel %vm2231_vm6, %v6713_v0, %v6702_v56  ;;  %v3781_v0 = vld [vmem:[%s9893_s9 + $0x68] sm:$0xff] }
 0x290   : > { %3918 = vmatpush.msrb.mxu3 %v3781_v0 }
 0x291   : > { %2414 = vrot.lane.b32.xlu2 %v7061_v6, %s5755_s22 }
 0x294   : > { %2863 = vmatmul.f32.gmra.mxu3 %v2556_v48  ;;  %2976 = vmatmul.f32.gmra.mxu0 %v2460_v23  ;;  %v7079_v10 = vpop.f32.mrf.mxu2  ;;  %v1747_v23 = vrot.slane %v6856_v13, 7 }
 0x295   : > { %5447 = vmatmul.msk.f32.gmra.mxu2 %vm2231_vm6, %v6781_v11 }
 0x296   : > { %v7076_v35 = vpop.f32.mrf.mxu0 }
 0x297   : > { %10185 = vst [vmem:[#allocation80_spill] sm:$0xff] %v7076_v35 }
 0x29c   : > { %2866 = vmatmul.f32.gmra.mxu3 %v2557_v62  ;;  %2979 = vmatmul.f32.gmra.mxu0 %v2461_v47  ;;  %v7096_v35 = vpop.f32.mrf.mxu2  ;;  %v2558_v62 = vsel %vm2231_vm6, %v5994_v21, %v6662_v63  ;;  %v2462_v47 = vsel %vm2231_vm6, %v6662_v63, %v5667_v60  ;;  %v5672_v63 = vunpack.i.l.bf16 %v6980_v52  ;;  %v10190_v60 = vmov 0.0  }
 0x29d   : > { %5448 = vmatmul.msk.f32.gmra.mxu2 %vm2231_vm6, %v6183_v43  ;;  %10188 = vst [vmem:[#allocation83_spill] sm:$0xff] %v7096_v35 }
 0x29e   : > { %v7092_v48 = vpop.f32.mrf.mxu0 }
 0x29f   : > { %10187 = vst [vmem:[#allocation82_spill] sm:$0xff] %v7092_v48  ;;  %v10189_v48 = vrot.slane %v6620_v37, 7 }
 0x2a1   : > { %v7100_v15 = vpop.permute.xlu0 %5710  ;;  %v1748_v34 = vsel %vm598_vm3, %v10189_v48, %v1747_v23  ;;  %v7130_v23 = vpop.f32.mrf.mxu1 }
 0x2a2   : > { %v5712_v12 = vunpack.i.l.bf16 %v7100_v15 }
 0x2a4   : > { %2869 = vmatmul.f32.gmra.mxu3 %v2558_v62  ;;  %2982 = vmatmul.f32.gmra.mxu0 %v2462_v47  ;;  %v2263_v24 = vsel %vm2231_vm6, %v1748_v34, %v5712_v12  ;;  %v7137_v34 = vpop.permute.xlu1 %5675 }
 0x2a5   : > { %v5734_v35 = vpack.i.bf16 %v2263_v24, %v7118_v50  ;;  %3164 = vmatmul.f32.gmra.mxu1 %v2263_v24  ;;  %5449 = vmatmul.msk.f32.gmra.mxu2 %vm2231_vm6, %v6801_v7  ;;  %v2463_v24 = vsel %vm2231_vm6, %v6702_v56, %v5672_v63  ;;  %v5677_v12 = vunpack.i.l.bf16 %v7137_v34  ;;  %v2560_v56 = vsel %vm2231_vm6, %v6041_v55, %v6748_v3 }
 0x2a6   : > { %v7124_v21 = vpop.f32.mrf.mxu0  ;;  %v2561_v55 = vsel %vm2231_vm6, %v6736_v17, %v6788_v59  ;;  %v2562_v17 = vsel %vm2231_vm6, %v6107_v32, %v6821_v26 }
 0x2a7   : > { %5735 = vrot.lane.b32.xlu0 %v5734_v35, %s5755_s22  ;;  %v2464_v62 = vsel %vm2231_vm6, %v6748_v3, %v5677_v12 }
 0x2a8   : > { %v7128_v48 = vpop.f32.mrf.mxu2 }
 0x2a9   : > { %v7155_v47 = vpop.f32.mrf.mxu1 }
 0x2ac   : > { %2872 = vmatmul.f32.gmra.mxu3 %v2559_v27  ;;  %2985 = vmatmul.f32.gmra.mxu0 %v2463_v24  ;;  %v5682_v27 = vunpack.i.l.bf16 %v6988_v57  ;;  %v7170_v12 = vpop.permute.xlu1 %5685 }
 0x2ad   : > { %5450 = vmatmul.msk.f32.gmra.mxu2 %vm2231_vm6, %v6222_v38  ;;  %3167 = vmatmul.f32.gmra.mxu1 %v10190_v60 }
 0x2ae   : > { %v7142_v35 = vpop.f32.mrf.mxu0  ;;  %v2465_v3 = vsel %vm2231_vm6, %v6788_v59, %v5682_v27 }
 0x2b0   : > { %v7145_v36 = vpop.f32.mrf.mxu2 }
 0x2b4   : > { %2875 = vmatmul.f32.gmra.mxu3 %v2560_v56  ;;  %2988 = vmatmul.f32.gmra.mxu0 %v2464_v62  ;;  %v5687_v56 = vunpack.i.l.bf16 %v7170_v12  ;;  %v3780_v62 = vld [vmem:[%s9893_s9 + $0x60] sm:$0xff] }
 0x2b5   : > { %5451 = vmatmul.msk.f32.gmra.mxu2 %vm2231_vm6, %v6887_v31  ;;  %3170 = vmatmul.f32.gmra.mxu1 %v10190_v60 }
 0x2b6   : > { %v7160_v63 = vpop.f32.mrf.mxu0  ;;  %3919 = vmatpush.msrb.mxu3 %v3780_v62  ;;  %v2466_v59 = vsel %vm2231_vm6, %v6821_v26, %v5687_v56  ;;  %v7194_v62 = vpop.permute.xlu1 %5695  ;;  %v5638_v26 = vunpack.i.h.bf16 %v6955_v44 }
 0x2b7   : > { %10191 = vst [vmem:[#allocation84_spill] sm:$0xff] %v7160_v63  ;;  %v5697_v56 = vunpack.i.l.bf16 %v7194_v62 }
 0x2b8   : > { %v7163_v24 = vpop.f32.mrf.mxu2 }
 0x2bc   : > { %2878 = vmatmul.f32.gmra.mxu3 %v2561_v55  ;;  %2991 = vmatmul.f32.gmra.mxu0 %v2465_v3  ;;  %v2563_v3 = vsel %vm2231_vm6, %v6762_v53, %v6936_v25  ;;  %v3779_v53 = vld [vmem:[%s9893_s9 + $0x58] sm:$0xff]  ;;  %v2564_v25 = vsel %vm2231_vm6, %v6155_v9, %v5638_v26  ;;  %v10196_v9 = vunpack.i.h.bf16 %v6947_v51 }
 0x2bd   : > { %5452 = vmatmul.msk.f32.gmra.mxu2 %vm2231_vm6, %v6256_v61  ;;  %3920 = vmatpush.msrb.mxu3 %v3779_v53 }
 0x2be   : > { %v7174_v0 = vpop.f32.mrf.mxu0 }
 0x2bf   : > { %10192 = vst [vmem:[#allocation85_spill] sm:$0xff] %v7174_v0 }
 0x2c0   : > { %v7185_v27 = vpop.f32.mrf.mxu2 }
 0x2c4   : > { %2881 = vmatmul.f32.gmra.mxu3 %v2562_v17  ;;  %2994 = vmatmul.f32.gmra.mxu0 %v2466_v59  ;;  %v2852_v59 = vpop.f32.mrf.mxu3 }
 0x2c5   : > { %5453 = vmatmul.msk.f32.gmra.mxu2 %vm2231_vm6, %v6927_v58 }
 0x2c6   : > { %v7189_v55 = vpop.f32.mrf.mxu0 }
 0x2c7   : > { %10193 = vst [vmem:[#allocation86_spill] sm:$0xff] %v7189_v55  ;;  %v5648_v55 = vunpack.i.h.bf16 %v7002_v39 }
 0x2c8   : > { %v7203_v17 = vpop.f32.mrf.mxu2 }
 0x2cc   : > { %2884 = vmatmul.f32.gmra.mxu3 %v2563_v3  ;;  %2997 = vmatmul.f32.gmra.mxu0 %v7010_v8  ;;  %v2468_v8 = vsel %vm2231_vm6, %v5638_v26, %v5697_v56  ;;  %v7218_v3 = vld [vmem:[%s9892_s8] ss:$0 sm:$0xff]  ;;  %v2565_v26 = vsel %vm2231_vm6, %v6781_v11, %v10196_v9  ;;  %v7226_v56 = vpop.permute.xlu1 %5705  ;;  %v3778_v11 = vld [vmem:[%s9893_s9 + $0x50] sm:$0xff]  ;;  %v2855_v9 = vpop.f32.mrf.mxu3 }
 0x2cd   : > { %5454 = vmatmul.msk.f32.gmra.mxu2 %vm2231_vm6, %v6280_v4  ;;  %v2740_v53 = vadd.f32 %v7218_v3, %v6552_v2  ;;  %v5708_v2 = vunpack.i.h.bf16 %v7226_v56  ;;  %3921 = vmatpush.msrb.mxu3 %v3778_v11 }
 0x2ce   : > { %v7199_v32 = vpop.f32.mrf.mxu0 }
 0x2cf   : > { %10194 = vst [vmem:[#allocation87_spill] sm:$0xff] %v7199_v32  ;;  %v2470_v39 = vsel %vm2231_vm6, %v5648_v55, %v5708_v2 }
 0x2d0   : > { %v3191_v32 = vpop.f32.mrf.mxu2 }
 0x2d4   : > { %2887 = vmatmul.f32.gmra.mxu3 %v2564_v25  ;;  %3000 = vmatmul.f32.gmra.mxu0 %v2468_v8  ;;  %v2853_v25 = vadd.f32 %v2852_v59, %v2740_v53  ;;  %v2743_v59 = vadd.f32 %v7218_v3, %v6582_v22 }
 0x2d5   : > { %5455 = vmatmul.msk.f32.gmra.mxu2 %vm2231_vm6, %v7118_v50 }
 0x2d6   : > { %v7213_v44 = vpop.f32.mrf.mxu0 }
 0x2d7   : > { %10195 = vst [vmem:[#allocation88_spill] sm:$0xff] %v7213_v44  ;;  %v1066_v44 = vadd.s32 184, %v6172_v28 }
 0x2d8   : > { %v3194_v53 = vpop.f32.mrf.mxu2 }
 0x2dc   : > { %2890 = vmatmul.f32.gmra.mxu3 %v2565_v26  ;;  %3003 = vmatmul.f32.gmra.mxu0 %v7032_v33  ;;  %v1240_v33 = vand.u32 15, %v1066_v44  ;;  %v2566_v26 = vsel %vm2231_vm6, %v6183_v43, %v5648_v55 }
 0x2dd   : > { %5456 = vmatmul.msk.f32.gmra.mxu2 %vm2231_vm6, %v6316_v40 }
 0x2de   : > { %v2965_v8 = vpop.f32.mrf.mxu0  ;;  %v7250_v43 = vadd.s32 1, %v1240_v33 }
 0x2df   : > { %v2966_v51 = vadd.f32 %v2965_v8, %v2853_v25  ;;  %v7243_v25 = vpop.permute.xlu1 %5715 }
 0x2e0   : > { %v5717_v22 = vunpack.i.l.bf16 %v7243_v25  ;;  %10197 = vst [vmem:[#allocation89_spill] sm:$0xff] %v7250_v43  ;;  %vm9977_vm4 = vcmp.lt.s32.totalorder %v7250_v43, 16 }
 0x2e1   : > { %v3079_v0 = vadd.f32 %v6846_v18, %v2966_v51  ;;  %v2856_v18 = vadd.f32 %v2855_v9, %v2743_v59  ;;  %v5653_v51 = vunpack.i.h.bf16 %v6958_v20  ;;  %v7259_v20 = vpop.f32.mrf.mxu2  ;;  %v2055_v59 = vrot.slane %v6571_v16, 1 }
 0x2e2   : > { %v10198_v16 = vrot.slane %v6431_v41, 1  ;;  %v10199_v41 = vld [vmem:[#allocation14_spill] sm:$0xff] }
 0x2e3   : > { %v3192_v63 = vadd.f32 %v3191_v32, %v3079_v0  ;;  %v2567_v55 = vsel %vm2231_vm6, %v6801_v7, %v5653_v51  ;;  %v2471_v32 = vsel %vm2231_vm6, %v5653_v51, %v5717_v22  ;;  %v5658_v7 = vunpack.i.h.bf16 %v7048_v5 }
 0x2e4   : > { %2893 = vmatmul.f32.gmra.mxu3 %v2566_v26  ;;  %3006 = vmatmul.f32.gmra.mxu0 %v2470_v39  ;;  %v1068_v5 = vadd.s32 200, %v6172_v28 }
 0x2e5   : > { %5457 = vmatmul.msk.f32.gmra.mxu2 %vm2231_vm6, %v7061_v6  ;;  %v3287_v44 = vmax.f32 %v3192_v63, 0.0  ;;  %v7257_v63 = vpop.permute.xlu0 %5720 }
 0x2e6   : > { %v2968_v8 = vpop.f32.mrf.mxu0  ;;  %v5722_v33 = vunpack.i.l.bf16 %v7257_v63  ;;  %v1254_v51 = vand.u32 15, %v1068_v5  ;;  %v9980_v5 = vunpack.i.h.bf16 %v6980_v52 }
 0x2e7   : > { %v2969_v11 = vadd.f32 %v2968_v8, %v2856_v18  ;;  %3351 = vrot.lane.b32.xlu0 %v3287_v44, %s5757_s14  ;;  %v7277_v39 = vpop.permute.xlu1 %5725  ;;  %v5663_v18 = vunpack.i.h.bf16 %v6969_v1 }
 0x2e8   : > { %v2472_v26 = vsel %vm2231_vm6, %v5658_v7, %v5722_v33  ;;  %v5727_v44 = vunpack.i.l.bf16 %v7277_v39  ;;  %v7304_v1 = vadd.s32 1, %v1254_v51 }
 0x2e9   : > { %v3082_v0 = vadd.f32 %v6875_v29, %v2969_v11  ;;  %v7266_v29 = vsel %vm9977_vm4, %v6456_v49, 0.0  ;;  %v3777_v49 = vld [vmem:[%s9893_s9 + $0x48] sm:$0xff]  ;;  %v7292_v8 = vpop.f32.mrf.mxu2  ;;  %v2569_v22 = vsel %vm2231_vm6, %v6887_v31, %v5663_v18 }
 0x2ea   : > { %3922 = vmatpush.msrb.mxu3 %v3777_v49  ;;  %v2473_v11 = vsel %vm2231_vm6, %v5663_v18, %v5727_v44  ;;  %10200 = vst [vmem:[#allocation14_spill] sm:$0xff] %v7304_v1  ;;  %vm9978_vm4 = vcmp.lt.s32.totalorder %v7304_v1, 16  ;;  %v10201_v49 = vld [vmem:[#allocation15_spill] sm:$0xff]  ;;  %v10202_v18 = vld [vmem:[#allocation16_spill] sm:$0xff] }
 0x2eb   : > { %v3195_v2 = vadd.f32 %v3194_v53, %v3082_v0  ;;  %v2568_v53 = vsel %vm2231_vm6, %v6222_v38, %v5658_v7  ;;  %v7288_v38 = vsel %vm2005_vm2, %v10198_v16, %v2055_v59  ;;  %v7299_v0 = vpop.permute.xlu2 %5730  ;;  %v2059_v44 = vrot.slane %v10202_v18, 1 }
 0x2ec   : > { %2896 = vmatmul.f32.gmra.mxu3 %v2567_v55  ;;  %3009 = vmatmul.f32.gmra.mxu0 %v2471_v32  ;;  %v2057_v55 = vrot.slane %v10199_v41, 1  ;;  %v5668_v32 = vunpack.i.h.bf16 %v7086_v42  ;;  %v3776_v42 = vld [vmem:[%s9893_s9 + $0x40] sm:$0xff] }
 0x2ed   : > { %5458 = vmatmul.msk.f32.gmra.mxu2 %vm2231_vm6, %v6407_v54  ;;  %v3288_v9 = vmax.f32 %v3195_v2, 0.0  ;;  %v5732_v2 = vunpack.i.l.bf16 %v7299_v0  ;;  %3923 = vmatpush.msrb.mxu3 %v3776_v42  ;;  %v10204_v42 = vld [vmem:[#allocation18_spill] sm:$0xff] }
 0x2ee   : > { %v2058_v7 = vsel %vm2005_vm2, %v2055_v59, %v2057_v55  ;;  %v2570_v33 = vsel %vm2231_vm6, %v6256_v61, %v5668_v32  ;;  %v1070_v59 = vadd.s32 216, %v6172_v28  ;;  %v2746_v61 = vadd.f32 %v7218_v3, %v10201_v49 }
 0x2ef   : > { %3353 = vrot.lane.b32.xlu2 %v3288_v9, %s5757_s14  ;;  %2422 = vrot.lane.b32.xlu0 %v7266_v29, %s5755_s22  ;;  %v2061_v49 = vrot.slane %v10204_v42, 1  ;;  %v3813_v42 = vld [vmem:[%s9893_s9 + $0x168] sm:$0xff] }
 0x2f1   : > { %v7308_v9 = vpop.f32.mrf.mxu2 }
 0x2f4   : > { %2899 = vmatmul.f32.gmra.mxu3 %v2568_v53  ;;  %3012 = vmatmul.f32.gmra.mxu0 %v2472_v26  ;;  %v2474_v53 = vsel %vm2231_vm6, %v5668_v32, %v5732_v2  ;;  %v7317_v26 = vsel %vm9978_vm4, %v2058_v7, 0.0  ;;  %v2571_v2 = vsel %vm2231_vm6, %v6927_v58, %v9980_v5  ;;  %v10203_v7 = vld [vmem:[#allocation56_spill] sm:$0xff]  ;;  %v9979_v58 = vunpack.i.h.bf16 %v7137_v34 }
 0x2f5   : > { %5459 = vmatmul.msk.f32.gmra.mxu2 %vm2231_vm6, %v7266_v29 }
 0x2f7   : > { %2426 = vrot.lane.b32.xlu2 %v7288_v38, %s5755_s22 }
 0x2f9   : > { %v7329_v32 = vpop.f32.mrf.mxu2 }
 0x2fc   : > { %2902 = vmatmul.f32.gmra.mxu3 %v2569_v22  ;;  %3015 = vmatmul.f32.gmra.mxu0 %v2473_v11  ;;  %v1268_v11 = vand.u32 15, %v1070_v59 }
 0x2fd   : > { %5460 = vmatmul.msk.f32.gmra.mxu2 %vm2231_vm6, %v7288_v38 }
 0x2fe   : > { %v7342_v59 = vadd.s32 1, %v1268_v11  ;;  %v2062_v11 = vsel %vm2005_vm2, %v2059_v44, %v2061_v49 }
 0x300   : > { %10205 = vst [vmem:[#allocation15_spill] sm:$0xff] %v7342_v59  ;;  %vm9983_vm4 = vcmp.lt.s32.totalorder %v7342_v59, 16 }
 0x301   : > { %v2971_v31 = vpop.f32.mrf.mxu0 }
 0x304   : > { %2905 = vmatmul.f32.gmra.mxu3 %v2570_v33  ;;  %3018 = vmatmul.f32.gmra.mxu0 %v2474_v53  ;;  %v7337_v53 = vsel %vm2005_vm2, %v2057_v55, %v2059_v44  ;;  %v3815_v55 = vld [vmem:[%s9893_s9 + $0x178] sm:$0xff]  ;;  %v7367_v44 = vsel %vm9983_vm4, %v2062_v11, 0.0  ;;  %v5683_v11 = vunpack.i.h.bf16 %v6988_v57  ;;  %v3802_v57 = vld [vmem:[%s9893_s9 + $0x110] sm:$0xff] }
 0x305   : > { %5461 = vmatmul.msk.f32.gmra.mxu2 %vm2231_vm6, %v7317_v26  ;;  %4142 = vmatpush.msra.mxu1 %v3815_v55  ;;  %v10208_v55 = vld [vmem:[#allocation23_spill] sm:$0xff] }
 0x307   : > { %v2858_v16 = vpop.f32.mrf.mxu3 }
 0x308   : > { %v2859_v51 = vadd.f32 %v2858_v16, %v2746_v61 }
 0x309   : > { %v2974_v22 = vpop.f32.mrf.mxu0 }
 0x30a   : > { %v2972_v41 = vadd.f32 %v2971_v31, %v2859_v51  ;;  %v10206_v31 = vld [vmem:[#allocation19_spill] sm:$0xff] }
 0x30b   : > { %v2749_v61 = vadd.f32 %v7218_v3, %v10206_v31  ;;  %v10207_v31 = vld [vmem:[#allocation60_spill] sm:$0xff] }
 0x30c   : > { %v3085_v33 = vadd.f32 %v10203_v7, %v2972_v41  ;;  %2908 = vmatmul.f32.gmra.mxu3 %v2571_v2  ;;  %v3814_v7 = vld [vmem:[%s9893_s9 + $0x170] sm:$0xff] }
 0x30d   : > { %5462 = vmatmul.msk.f32.gmra.mxu2 %vm2231_vm6, %v7337_v53  ;;  %4143 = vmatpush.msra.mxu1 %v3814_v7 }
 0x30e   : > { %v3198_v16 = vadd.f32 %v7259_v20, %v3085_v33  ;;  %v2572_v33 = vsel %vm2231_vm6, %v6280_v4, %v9979_v58  ;;  %v1072_v4 = vadd.s32 232, %v6172_v28 }
 0x30f   : > { %v2861_v18 = vpop.f32.mrf.mxu3  ;;  %4144 = vmatpush.msra.mxu1 %v3813_v42 }
 0x310   : > { %v2862_v51 = vadd.f32 %v2861_v18, %v2749_v61  ;;  %v3289_v41 = vmax.f32 %v3198_v16, 0.0  ;;  %v7372_v16 = vpop.f32.mrf.mxu2  ;;  %v3812_v18 = vld [vmem:[%s9893_s9 + $0x160] sm:$0xff]  ;;  %v1282_v59 = vand.u32 15, %v1072_v4  ;;  %v3809_v4 = vld [vmem:[%s9893_s9 + $0x148] sm:$0xff] }
 0x311   : > { %v2977_v2 = vpop.f32.mrf.mxu0  ;;  %4145 = vmatpush.msra.mxu1 %v3812_v18 }
 0x312   : > { %v2975_v20 = vadd.f32 %v2974_v22, %v2862_v51  ;;  %3355 = vrot.lane.b32.xlu1 %v3289_v41, %s5757_s14  ;;  %v3775_v22 = vld [vmem:[%s9893_s9 + $0x38] sm:$0xff]  ;;  %v2752_v51 = vadd.f32 %v7218_v3, %v10208_v55  ;;  %v2573_v55 = vsel %vm2231_vm6, %v7118_v50, %v5683_v11  ;;  %v7414_v50 = vadd.s32 1, %v1282_v59 }
 0x313   : > { %3924 = vmatpush.msrb.mxu3 %v3775_v22  ;;  %v3831_v59 = vld [vmem:[%s9893_s9 + $0x1f8] sm:$0xff] }
 0x314   : > { %v3088_v61 = vadd.f32 %v10207_v31, %v2975_v20  ;;  %2911 = vmatmul.f32.gmra.mxu3 %v2572_v33  ;;  %v3811_v20 = vld [vmem:[%s9893_s9 + $0x158] sm:$0xff]  ;;  %v10209_v33 = vld [vmem:[#allocation20_spill] sm:$0xff]  ;;  %10211 = vst [vmem:[#allocation16_spill] sm:$0xff] %v7414_v50  ;;  %4255 = vmatpush.msra.mxu2 %v3831_v59  ;;  %vm9984_vm4 = vcmp.lt.s32.totalorder %v7414_v50, 16  ;;  %v3805_v59 = vld [vmem:[%s9893_s9 + $0x128] sm:$0xff] }
 0x315   : > { %5463 = vmatmul.msk.f32.gmra.mxu2 %vm2231_vm6, %v7367_v44  ;;  %v2063_v42 = vrot.slane %v10209_v33, 1  ;;  %4146 = vmatpush.msra.mxu1 %v3811_v20  ;;  %v2065_v20 = vrot.slane %v6620_v37, 1  ;;  %v10212_v33 = vld [vmem:[#allocation25_spill] sm:$0xff]  ;;  %v3825_v37 = vld [vmem:[%s9893_s9 + $0x1c8] sm:$0xff] }
 0x316   : > { %v3201_v41 = vadd.f32 %v7292_v8, %v3088_v61  ;;  %v3810_v8 = vld [vmem:[%s9893_s9 + $0x150] sm:$0xff] }
 0x317   : > { %v2864_v7 = vpop.f32.mrf.mxu3  ;;  %4147 = vmatpush.msra.mxu1 %v3810_v8 }
 0x318   : > { %v2865_v31 = vadd.f32 %v2864_v7, %v2752_v51  ;;  %v3290_v22 = vmax.f32 %v3201_v41, 0.0  ;;  %v7409_v7 = vsel %vm2005_vm2, %v2061_v49, %v2063_v42  ;;  %v5688_v49 = vunpack.i.h.bf16 %v7170_v12  ;;  %v3773_v12 = vld [vmem:[%s9893_s9 + $0x28] sm:$0xff] }
 0x319   : > { %v7388_v58 = vpop.permute.xlu0 %5735  ;;  %v2980_v5 = vpop.f32.mrf.mxu0  ;;  %4148 = vmatpush.msra.mxu1 %v3809_v4  ;;  %v2066_v4 = vsel %vm2005_vm2, %v2063_v42, %v2065_v20  ;;  %v3806_v42 = vld [vmem:[%s9893_s9 + $0x130] sm:$0xff] }
 0x31a   : > { %v2978_v61 = vadd.f32 %v2977_v2, %v2865_v31  ;;  %v5737_v18 = vunpack.i.l.bf16 %v7388_v58  ;;  %2430 = vrot.lane.b32.xlu1 %v7317_v26, %s5755_s22  ;;  %3357 = vrot.lane.b32.xlu0 %v3290_v22, %s5757_s14  ;;  %v10210_v2 = vunpack.i.h.bf16 %v6980_v52  ;;  %v2755_v52 = vadd.f32 %v7218_v3, %v10212_v33  ;;  %v7423_v22 = vpop.f32.mrf.mxu2 }
 0x31c   : > { %v3091_v51 = vadd.f32 %v7034_v46, %v2978_v61  ;;  %2914 = vmatmul.f32.gmra.mxu3 %v2573_v55  ;;  %v2475_v41 = vsel %vm2231_vm6, %v10210_v2, %v5737_v18  ;;  %v3808_v46 = vld [vmem:[%s9893_s9 + $0x140] sm:$0xff]  ;;  %v3807_v55 = vld [vmem:[%s9893_s9 + $0x138] sm:$0xff]  ;;  %v2411_v2 = vpop.permute.xlu1 %2410 }
 0x31d   : > { %3021 = vmatmul.f32.gmra.mxu0 %v2475_v41  ;;  %5464 = vmatmul.msk.f32.gmra.mxu2 %vm2231_vm6, %v7409_v7 }
 0x31e   : > { %v3204_v31 = vadd.f32 %v7308_v9, %v3091_v51  ;;  %4149 = vmatpush.msra.mxu1 %v3808_v46  ;;  %v3830_v51 = vld [vmem:[%s9893_s9 + $0x1f0] sm:$0xff]  ;;  %v2574_v46 = vsel %vm2231_vm6, %v6316_v40, %v5688_v49  ;;  %v3799_v40 = vld [vmem:[%s9893_s9 + $0xf8] sm:$0xff] }
 0x31f   : > { %v2867_v8 = vpop.f32.mrf.mxu3  ;;  %4256 = vmatpush.msra.mxu2 %v3830_v51  ;;  %4029 = vmatpush.msra.mxu0 %v3799_v40 }
 0x320   : > { %v2868_v61 = vadd.f32 %v2867_v8, %v2755_v52  ;;  %v3291_v18 = vmax.f32 %v3204_v31, 0.0  ;;  %4150 = vmatpush.msra.mxu1 %v3807_v55  ;;  %v7454_v31 = vsel %vm9984_vm4, %v2066_v4, 0.0  ;;  %v3774_v8 = vld [vmem:[%s9893_s9 + $0x30] sm:$0xff]  ;;  %v10215_v4 = vld [vmem:[#allocation73_spill] sm:$0xff] }
 0x321   : > { %v2983_v9 = vpop.f32.mrf.mxu0  ;;  %v5693_v51 = vunpack.i.h.bf16 %v10215_v4  ;;  %3925 = vmatpush.msrb.mxu3 %v3774_v8  ;;  %v7487_v8 = vpop.f32.mrf.mxu1 }
 0x322   : > { %v2981_v41 = vadd.f32 %v2980_v5, %v2868_v61  ;;  %3359 = vrot.lane.b32.xlu2 %v3291_v18, %s5757_s14  ;;  %2434 = vrot.lane.b32.xlu0 %v7337_v53, %s5755_s22  ;;  %v10213_v5 = vunpack.i.h.bf16 %v7137_v34  ;;  %v1074_v34 = vadd.s32 248, %v6172_v28  ;;  %v10214_v61 = vld [vmem:[#allocation28_spill] sm:$0xff]  ;;  %v2067_v28 = vrot.slane %v6856_v13, 1 }
 0x323   : > { %v2758_v18 = vadd.f32 %v7218_v3, %v10214_v61  ;;  %4151 = vmatpush.msra.mxu1 %v3806_v42  ;;  %v3827_v42 = vld [vmem:[%s9893_s9 + $0x1d8] sm:$0xff]  ;;  %3926 = vmatpush.msrb.mxu3 %v3773_v12 }
 0x324   : > { %v3094_v33 = vadd.f32 %v7098_v19, %v2981_v41  ;;  %2917 = vmatmul.f32.gmra.mxu3 %v2574_v46  ;;  %v2476_v52 = vsel %vm2231_vm6, %v10213_v5, %v2411_v2  ;;  %v3829_v19 = vld [vmem:[%s9893_s9 + $0x1e8] sm:$0xff]  ;;  %v3828_v2 = vld [vmem:[%s9893_s9 + $0x1e0] sm:$0xff]  ;;  %v2415_v46 = vpop.permute.xlu2 %2414  ;;  %v1296_v61 = vand.u32 15, %v1074_v34 }
 0x325   : > { %3024 = vmatmul.f32.gmra.mxu0 %v2476_v52  ;;  %5465 = vmatmul.msk.f32.gmra.mxu2 %vm2231_vm6, %v7454_v31 }
 0x326   : > { %v3207_v55 = vadd.f32 %v7329_v32, %v3094_v33  ;;  %4257 = vmatpush.msra.mxu2 %v3829_v19  ;;  %4152 = vmatpush.msra.mxu1 %v3805_v59  ;;  %v3804_v32 = vld [vmem:[%s9893_s9 + $0x120] sm:$0xff]  ;;  %v7485_v33 = vpop.f32.mrf.mxu2  ;;  %v2575_v19 = vsel %vm2231_vm6, %v7061_v6, %v5693_v51  ;;  %v3803_v59 = vld [vmem:[%s9893_s9 + $0x118] sm:$0xff]  ;;  %v7509_v6 = vsel %vm2005_vm2, %v2065_v20, %v2067_v28 }
 0x327   : > { %v2870_v41 = vpop.f32.mrf.mxu3 }
 0x328   : > { %v2871_v5 = vadd.f32 %v2870_v41, %v2758_v18  ;;  %v3292_v52 = vmax.f32 %v3207_v55, 0.0  ;;  %4258 = vmatpush.msra.mxu2 %v3828_v2  ;;  %4153 = vmatpush.msra.mxu1 %v3804_v32  ;;  %v2477_v18 = vsel %vm2231_vm6, %v5683_v11, %v2415_v46  ;;  %v7513_v55 = vadd.s32 1, %v1296_v61  ;;  %v3801_v32 = vld [vmem:[%s9893_s9 + $0x108] sm:$0xff]  ;;  %v2419_v61 = vpop.permute.xlu1 %2418 }
 0x329   : > { %v2986_v40 = vpop.f32.mrf.mxu0  ;;  %v7516_v2 = vrot.slane %v10190_v60, 1  ;;  %v5698_v41 = vunpack.i.h.bf16 %v7194_v62 }
 0x32a   : > { %v2984_v13 = vadd.f32 %v2983_v9, %v2871_v5  ;;  %3361 = vrot.lane.b32.xlu1 %v3292_v52, %s5757_s14  ;;  %2438 = vrot.lane.b32.xlu2 %v7367_v44, %s5755_s22  ;;  %v3826_v9 = vld [vmem:[%s9893_s9 + $0x1d0] sm:$0xff]  ;;  %10216 = vst [vmem:[#allocation56_spill] sm:$0xff] %v7513_v55  ;;  %vm9985_vm4 = vcmp.lt.s32.totalorder %v7513_v55, 16 }
 0x32b   : > { %4259 = vmatpush.msra.mxu2 %v3827_v42  ;;  %10217 = vst [vmem:[#allocation18_spill] sm:$0xff] %v7516_v2  ;;  %4154 = vmatpush.msra.mxu1 %v3803_v59  ;;  %v3824_v42 = vld [vmem:[%s9893_s9 + $0x1c0] sm:$0xff] }
 0x32c   : > { %v3097_v34 = vadd.f32 %v7130_v23, %v2984_v13  ;;  %2920 = vmatmul.f32.gmra.mxu3 %v2575_v19  ;;  %v10218_v23 = vld [vmem:[#allocation33_spill] sm:$0xff] }
 0x32d   : > { %3027 = vmatmul.f32.gmra.mxu0 %v2477_v18  ;;  %5466 = vmatmul.msk.f32.gmra.mxu2 %vm2231_vm6, %v7509_v6  ;;  %v2761_v11 = vadd.f32 %v7218_v3, %v10218_v23 }
 0x32e   : > { %v3210_v20 = vadd.f32 %v7372_v16, %v3097_v34  ;;  %4260 = vmatpush.msra.mxu2 %v3826_v9  ;;  %4155 = vmatpush.msra.mxu1 %v3802_v57  ;;  %v2070_v16 = vsel %vm2005_vm2, %v2067_v28, %v7516_v2  ;;  %v7540_v59 = vpop.f32.mrf.mxu2  ;;  %v2576_v9 = vsel %vm2231_vm6, %v6407_v54, %v5698_v41  ;;  %v3800_v34 = vld [vmem:[%s9893_s9 + $0x100] sm:$0xff]  ;;  %v3823_v28 = vld [vmem:[%s9893_s9 + $0x1b8] sm:$0xff] }
 0x32f   : > { %v2873_v46 = vpop.f32.mrf.mxu3  ;;  %v2478_v57 = vsel %vm2231_vm6, %v5688_v49, %v2419_v61  ;;  %v7558_v54 = vsel %vm9985_vm4, %v2070_v16, 0.0  ;;  %v10219_v49 = vld [vmem:[#allocation36_spill] sm:$0xff]  ;;  %v3820_v16 = vld [vmem:[%s9893_s9 + $0x1a0] sm:$0xff]  ;;  %vm3447_vm4 = vcmask 785408  }
 0x330   : > { %v2874_v5 = vadd.f32 %v2873_v46, %v2761_v11  ;;  %v3293_v52 = vmax.f32 %v3210_v20, 0.0  ;;  %4261 = vmatpush.msra.mxu2 %v3825_v37  ;;  %4156 = vmatpush.msra.mxu1 %v3801_v32  ;;  %v3798_v37 = vld [vmem:[%s9893_s9 + $0xf0] sm:$0xff]  ;;  %v2764_v23 = vadd.f32 %v7218_v3, %v10219_v49  ;;  %v5707_v20 = vunpack.i.l.bf16 %v7226_v56  ;;  %v3821_v32 = vld [vmem:[%s9893_s9 + $0x1a8] sm:$0xff] }
 0x331   : > { %v2989_v13 = vpop.f32.mrf.mxu0  ;;  %4030 = vmatpush.msra.mxu0 %v3798_v37 }
 0x332   : > { %v2987_v19 = vadd.f32 %v2986_v40, %v2874_v5  ;;  %2442 = vrot.lane.b32.xlu1 %v7409_v7, %s5755_s22  ;;  %3363 = vrot.lane.b32.xlu0 %v3293_v52, %s5757_s14  ;;  %v3105_v40 = vpop.f32.mrf.mxu1 }
 0x333   : > { %4262 = vmatpush.msra.mxu2 %v3824_v42  ;;  %4157 = vmatpush.msra.mxu1 %v3800_v34  ;;  %v10220_v34 = vld [vmem:[#allocation39_spill] sm:$0xff] }
 0x334   : > { %v3100_v18 = vadd.f32 %v7155_v47, %v2987_v19  ;;  %2923 = vmatmul.f32.gmra.mxu3 %v2576_v9  ;;  %v3822_v47 = vld [vmem:[%s9893_s9 + $0x1b0] sm:$0xff]  ;;  %4158 = vmatmul.f32.vlgmr.msra.gmra.mxu1 %v10190_v60 }
 0x335   : > { %3030 = vmatmul.f32.gmra.mxu0 %v2478_v57  ;;  %5467 = vmatmul.msk.f32.gmra.mxu2 %vm2231_vm6, %v7558_v54  ;;  %v5713_v57 = vunpack.i.h.bf16 %v7100_v15  ;;  %v7813_v15 = vld [vmem:[%s9892_s8] ss:$0 sm:$0xff] }
 0x336   : > { %v3213_v11 = vadd.f32 %v7423_v22, %v3100_v18  ;;  %4263 = vmatpush.msra.mxu2 %v3823_v28  ;;  %v2577_v22 = vsel %vm2231_vm6, %v7266_v29, %v5707_v20  ;;  %v3221_v9 = vpop.f32.mrf.mxu2  ;;  %v2767_v28 = vadd.f32 %v7218_v3, %v10220_v34 }
 0x337   : > { %v2876_v46 = vpop.f32.mrf.mxu3 }
 0x338   : > { %v2877_v5 = vadd.f32 %v2876_v46, %v2764_v23  ;;  %v3294_v52 = vmax.f32 %v3213_v11, 0.0  ;;  %4264 = vmatpush.msra.mxu2 %v3822_v47  ;;  %v3817_v23 = vld [vmem:[%s9893_s9 + $0x188] sm:$0xff]  ;;  %v3816_v46 = vld [vmem:[%s9893_s9 + $0x180] sm:$0xff] }
 0x339   : > { %v2992_v42 = vpop.f32.mrf.mxu0 }
 0x33a   : > { %v2990_v61 = vadd.f32 %v2989_v13, %v2877_v5  ;;  %3365 = vrot.lane.b32.xlu2 %v3294_v52, %s5757_s14  ;;  %2446 = vrot.lane.b32.xlu0 %v7454_v31, %s5755_s22  ;;  %v3819_v13 = vld [vmem:[%s9893_s9 + $0x198] sm:$0xff]  ;;  %v3108_v18 = vpop.f32.mrf.mxu1  ;;  %v3797_v52 = vld [vmem:[%s9893_s9 + $0xe8] sm:$0xff] }
 0x33b   : > { %4265 = vmatpush.msra.mxu2 %v3821_v32  ;;  %v3772_v32 = vld [vmem:[%s9893_s9 + $0x20] sm:$0xff]  ;;  %4031 = vmatpush.msra.mxu0 %v3797_v52 }
 0x33c   : > { %v3103_v19 = vadd.f32 %v7487_v8, %v2990_v61  ;;  %2926 = vmatmul.f32.gmra.mxu3 %v2577_v22  ;;  %4161 = vmatmul.f32.gmra.mxu1 %v10190_v60  ;;  %v3818_v8 = vld [vmem:[%s9893_s9 + $0x190] sm:$0xff] }
 0x33d   : > { %3280 = vmatmul.f32.gmra.mxu2 %v10190_v60  ;;  %3927 = vmatpush.msrb.mxu3 %v3772_v32  ;;  %v10223_v32 = vld [vmem:[#allocation21_spill] sm:$0xff] }
 0x33e   : > { %v3216_v29 = vadd.f32 %v7485_v33, %v3103_v19  ;;  %4266 = vmatpush.msra.mxu2 %v3820_v16  ;;  %v2578_v33 = vsel %vm2231_vm6, %v7288_v38, %v5713_v57  ;;  %v3224_v22 = vpop.f32.mrf.mxu2 }
 0x33f   : > { %v2879_v37 = vpop.f32.mrf.mxu3 }
 0x340   : > { %v2880_v47 = vadd.f32 %v2879_v37, %v2767_v28  ;;  %v3295_v12 = vmax.f32 %v3216_v29, 0.0  ;;  %4267 = vmatpush.msra.mxu2 %v3819_v13 }
 0x341   : > { %v2995_v49 = vpop.f32.mrf.mxu0 }
 0x342   : > { %v2993_v11 = vadd.f32 %v2992_v42, %v2880_v47  ;;  %3367 = vrot.lane.b32.xlu1 %v3295_v12, %s5757_s14  ;;  %4268 = vmatpush.msra.mxu2 %v3818_v8  ;;  %v10221_v42 = vld [vmem:[#allocation42_spill] sm:$0xff]  ;;  %v3111_v19 = vpop.f32.mrf.mxu1  ;;  %v10222_v47 = vld [vmem:[#allocation45_spill] sm:$0xff] }
 0x343   : > { %v2770_v38 = vadd.f32 %v7218_v3, %v10221_v42  ;;  %v2773_v12 = vadd.f32 %v7218_v3, %v10222_v47  ;;  %v10225_v47 = vld [vmem:[#allocation47_spill] sm:$0xff] }
 0x344   : > { %v3106_v5 = vadd.f32 %v3105_v40, %v2993_v11  ;;  %2929 = vmatmul.f32.gmra.mxu3 %v2578_v33  ;;  %4269 = vmatpush.msra.mxu2 %v3817_v23  ;;  %v5718_v40 = vunpack.i.h.bf16 %v7243_v25  ;;  %v3770_v33 = vld [vmem:[%s9893_s9 + $0x10] sm:$0xff] }
 0x345   : > { %3283 = vmatmul.f32.gmra.mxu2 %v10190_v60 }
 0x346   : > { %v3219_v61 = vadd.f32 %v7540_v59, %v3106_v5  ;;  %4270 = vmatpush.msra.mxu2 %v3816_v46  ;;  %v2579_v37 = vsel %vm2231_vm6, %v7317_v26, %v5718_v40  ;;  %v3771_v59 = vld [vmem:[%s9893_s9 + $0x18] sm:$0xff]  ;;  %v7641_v26 = vld [vmem:[%s9888_s4] ss:$0 sm:$0xff]  ;;  %v3227_v5 = vpop.f32.mrf.mxu2 }
 0x347   : > { %v2882_v16 = vpop.f32.mrf.mxu3  ;;  %3928 = vmatpush.msrb.mxu3 %v3771_v59  ;;  %v623_v42 = vadd.f32 %v7641_v26, %v10223_v32 }
 0x348   : > { %v2883_v13 = vadd.f32 %v2882_v16, %v2770_v38  ;;  %v3296_v34 = vmax.f32 %v3219_v61, 0.0 }
 0x349   : > { %v2998_v28 = vpop.f32.mrf.mxu0  ;;  %3929 = vmatpush.msrb.mxu3 %v3770_v33  ;;  %v716_v59 = vmax.f32 %v623_v42, 0.0 }
 0x34a   : > { %v2996_v29 = vadd.f32 %v2995_v49, %v2883_v13  ;;  %3369 = vrot.lane.b32.xlu2 %v3296_v34, %s5757_s14  ;;  %v5723_v49 = vunpack.i.h.bf16 %v7257_v63  ;;  %v3114_v38 = vpop.f32.mrf.mxu1  ;;  %v3768_v13 = vld [vmem:[%s9893_s9] sm:$0xff]  ;;  %v10224_v34 = vld [vmem:[#allocation17_spill] sm:$0xff] }
 0x34c   : > { %v3109_v8 = vadd.f32 %v3108_v18, %v2996_v29  ;;  %2932 = vmatmul.f32.gmra.mxu3 %v2579_v37  ;;  %v2580_v16 = vsel %vm2231_vm6, %v7337_v53, %v5723_v49  ;;  %v620_v29 = vadd.f32 %v7641_v26, %v10224_v34  ;;  %v2776_v53 = vadd.f32 %v7218_v3, %v10225_v47  ;;  %v10228_v47 = vld [vmem:[#allocation50_spill] sm:$0xff] }
 0x34e   : > { %v3222_v23 = vadd.f32 %v3221_v9, %v3109_v8  ;;  %v3769_v9 = vld [vmem:[%s9893_s9 + $0x8] sm:$0xff]  ;;  %v3354_v8 = vpop.permute.xlu2 %3353  ;;  %v715_v33 = vmax.f32 %v620_v29, 0.0  ;;  %v3230_v42 = vpop.f32.mrf.mxu2 }
 0x34f   : > { %v2885_v11 = vpop.f32.mrf.mxu3  ;;  %3930 = vmatpush.msrb.mxu3 %v3769_v9 }
 0x350   : > { %v2886_v18 = vadd.f32 %v2885_v11, %v2773_v12  ;;  %v3297_v46 = vmax.f32 %v3222_v23, 0.0  ;;  %v9988_v23 = vunpack.i.h.bf16 %v7277_v39 }
 0x351   : > { %v3001_v52 = vpop.f32.mrf.mxu0  ;;  %3931 = vmatpush.msrb.mxu3 %v3768_v13 }
 0x352   : > { %v2999_v61 = vadd.f32 %v2998_v28, %v2886_v18  ;;  %3371 = vrot.lane.b32.xlu0 %v3297_v46, %s5757_s14  ;;  %v3796_v28 = vld [vmem:[%s9893_s9 + $0xe0] sm:$0xff]  ;;  %v2581_v29 = vsel %vm2231_vm6, %v7367_v44, %v9988_v23 }
 0x353   : > { %4032 = vmatpush.msra.mxu0 %v3796_v28 }
 0x354   : > { %v3112_v37 = vadd.f32 %v3111_v19, %v2999_v61  ;;  %2935 = vmatmul.f32.gmra.mxu3 %v2580_v16  ;;  %v7665_v19 = vsel %vm3447_vm4, %v716_v59, %v3354_v8  ;;  %v10227_v8 = vld [vmem:[#allocation3_spill] sm:$0xff] }
 0x356   : > { %v3225_v12 = vadd.f32 %v3224_v22, %v3112_v37  ;;  %v3641_v22 = vrot.slane %v7665_v19, 1  ;;  %v3117_v37 = vpop.f32.mrf.mxu1 }
 0x357   : > { %v2888_v11 = vpop.f32.mrf.mxu3 }
 0x358   : > { %v2889_v18 = vadd.f32 %v2888_v11, %v2776_v53  ;;  %v3298_v46 = vmax.f32 %v3225_v12, 0.0  ;;  %v2779_v53 = vadd.f32 %v7218_v3, %v10228_v47 }
 0x359   : > { %v3004_v9 = vpop.f32.mrf.mxu0  ;;  %v3352_v32 = vpop.permute.xlu0 %3351 }
 0x35a   : > { %v3002_v61 = vadd.f32 %v3001_v52, %v2889_v18  ;;  %v7668_v16 = vsel %vm3447_vm4, %v715_v33, %v3352_v32  ;;  %3373 = vrot.lane.b32.xlu1 %v3298_v46, %s5757_s14 }
 0x35b   : > { %v3512_v13 = vrot.slane %v7668_v16, 7  ;;  %v3640_v34 = vrot.slane %v7668_v16, 1 }
 0x35c   : > { %v3115_v28 = vadd.f32 %v3114_v38, %v3002_v61  ;;  %2938 = vmatmul.f32.gmra.mxu3 %v2581_v29  ;;  %v9987_v38 = vunpack.i.h.bf16 %v7299_v0  ;;  %v3514_v29 = vrot.slane %v7665_v19, 7 }
 0x35d   : > { %v7681_v52 = vsel %vm2005_vm2, %v3640_v34, %v3641_v22  ;;  %v7685_v59 = vsel %vm598_vm3, %v10227_v8, %v3512_v13  ;;  %v3233_v8 = vpop.f32.mrf.mxu2 }
 0x35e   : > { %10226 = vst [vmem:[#allocation19_spill] sm:$0xff] %v7681_v52  ;;  %4164 = vmatmul.f32.gmra.mxu1 %v7681_v52  ;;  %5498 = vmatmul.msk.f32.vlgmr.msra.gmra.mxu2 %vm1491_vm5, %v7685_v59  ;;  %v3228_v44 = vadd.f32 %v3227_v5, %v3115_v28  ;;  %v2582_v5 = vsel %vm2231_vm6, %v7409_v7, %v9987_v38  ;;  %v10251_v38 = vld [vmem:[#allocation37_spill] sm:$0xff] }
 0x35f   : > { %v2891_v11 = vpop.f32.mrf.mxu3  ;;  %v7709_v4 = vsel %vm598_vm3, %v3512_v13, %v3514_v29  ;;  %v10315_v52 = vld [vmem:[#allocation13_spill] sm:$0xff] }
 0x360   : > { %v2892_v33 = vadd.f32 %v2891_v11, %v2779_v53  ;;  %v3299_v18 = vmax.f32 %v3228_v44, 0.0  ;;  %v3120_v53 = vpop.f32.mrf.mxu1  ;;  %v2427_v44 = vpop.permute.xlu2 %2426 }
 0x361   : > { %v3007_v46 = vpop.f32.mrf.mxu0  ;;  %v2423_v32 = vpop.permute.xlu0 %2422  ;;  %v2480_v13 = vsel %vm2231_vm6, %v5698_v41, %v2427_v44  ;;  %v3794_v41 = vld [vmem:[%s9893_s9 + $0xd0] sm:$0xff] }
 0x362   : > { %v3005_v61 = vadd.f32 %v3004_v9, %v2892_v33  ;;  %3375 = vrot.lane.b32.xlu2 %v3299_v18, %s5757_s14  ;;  %v2479_v34 = vsel %vm2231_vm6, %v5693_v51, %v2423_v32  ;;  %v3795_v9 = vld [vmem:[%s9893_s9 + $0xd8] sm:$0xff] }
 0x363   : > { %3033 = vmatmul.f32.gmra.mxu0 %v2479_v34  ;;  %v10230_v51 = vld [vmem:[#allocation53_spill] sm:$0xff] }
 0x364   : > { %v3118_v28 = vadd.f32 %v3117_v37, %v3005_v61  ;;  %2941 = vmatmul.f32.gmra.mxu3 %v2582_v5  ;;  %4033 = vmatpush.msra.mxu0 %v3795_v9  ;;  %v2782_v47 = vadd.f32 %v7218_v3, %v10230_v51  ;;  %v9986_v37 = vunpack.i.h.bf16 %v7388_v58  ;;  %v10231_v5 = vld [vmem:[#allocation58_spill] sm:$0xff] }
 0x366   : > { %4274 = vmatmul.f32.gmra.mxu2 %v7709_v4  ;;  %v3231_v7 = vadd.f32 %v3230_v42, %v3118_v28  ;;  %v2583_v42 = vsel %vm2231_vm6, %v7454_v31, %v9986_v37  ;;  %v2785_v28 = vadd.f32 %v7218_v3, %v10231_v5  ;;  %4034 = vmatpush.msra.mxu0 %v3794_v41  ;;  %v10250_v37 = vld [vmem:[#allocation70_spill] sm:$0xff] }
 0x367   : > { %v2894_v11 = vpop.f32.mrf.mxu3 }
 0x368   : > { %v2895_v33 = vadd.f32 %v2894_v11, %v2782_v47  ;;  %v3300_v18 = vmax.f32 %v3231_v7, 0.0  ;;  %v3123_v62 = vpop.f32.mrf.mxu1  ;;  %v10232_v11 = vld [vmem:[#allocation61_spill] sm:$0xff] }
 0x369   : > { %v3010_v61 = vpop.f32.mrf.mxu0 }
 0x36a   : > { %v3008_v32 = vadd.f32 %v3007_v46, %v2895_v33  ;;  %3377 = vrot.lane.b32.xlu0 %v3300_v18, %s5757_s14  ;;  %v3236_v46 = vpop.f32.mrf.mxu2 }
 0x36b   : > { %3036 = vmatmul.f32.gmra.mxu0 %v2480_v13 }
 0x36c   : > { %v3121_v34 = vadd.f32 %v3120_v53, %v3008_v32  ;;  %2944 = vmatmul.f32.gmra.mxu3 %v2583_v42 }
 0x36e   : > { %v3234_v9 = vadd.f32 %v3233_v8, %v3121_v34  ;;  %v2788_v8 = vadd.f32 %v7218_v3, %v10232_v11 }
 0x36f   : > { %v2897_v51 = vpop.f32.mrf.mxu3 }
 0x370   : > { %v2898_v47 = vadd.f32 %v2897_v51, %v2785_v28  ;;  %v3301_v7 = vmax.f32 %v3234_v9, 0.0  ;;  %v3126_v5 = vpop.f32.mrf.mxu1  ;;  %v10233_v28 = vld [vmem:[#allocation63_spill] sm:$0xff] }
 0x371   : > { %v3013_v53 = vpop.f32.mrf.mxu0  ;;  %v2791_v9 = vadd.f32 %v7218_v3, %v10233_v28 }
 0x372   : > { %v3011_v44 = vadd.f32 %v3010_v61, %v2898_v47  ;;  %3379 = vrot.lane.b32.xlu1 %v3301_v7, %s5757_s14  ;;  %v3239_v42 = vpop.f32.mrf.mxu2  ;;  %v10234_v47 = vld [vmem:[#allocation24_spill] sm:$0xff] }
 0x373   : > { %v626_v7 = vadd.f32 %v7641_v26, %v10234_v47 }
 0x374   : > { %v3124_v31 = vadd.f32 %v3123_v62, %v3011_v44  ;;  %3932 = vmatmul.f32.vlgmr.msrb.gmra.mxu3 %v10190_v60 }
 0x376   : > { %v3237_v33 = vadd.f32 %v3236_v46, %v3124_v31 }
 0x377   : > { %v2900_v18 = vpop.f32.mrf.mxu3 }
 0x378   : > { %v2901_v32 = vadd.f32 %v2900_v18, %v2788_v8  ;;  %v3302_v13 = vmax.f32 %v3237_v33, 0.0  ;;  %v3129_v11 = vpop.f32.mrf.mxu1 }
 0x379   : > { %v3016_v62 = vpop.f32.mrf.mxu0 }
 0x37a   : > { %v3014_v34 = vadd.f32 %v3013_v53, %v2901_v32  ;;  %3381 = vrot.lane.b32.xlu2 %v3302_v13, %s5757_s14  ;;  %v717_v53 = vmax.f32 %v626_v7, 0.0  ;;  %v3242_v8 = vpop.f32.mrf.mxu2  ;;  %v3793_v13 = vld [vmem:[%s9893_s9 + $0xc8] sm:$0xff] }
 0x37b   : > { %4035 = vmatpush.msra.mxu0 %v3793_v13 }
 0x37c   : > { %v3127_v61 = vadd.f32 %v3126_v5, %v3014_v34  ;;  %3935 = vmatmul.f32.gmra.mxu3 %v10190_v60 }
 0x37e   : > { %v3240_v51 = vadd.f32 %v3239_v42, %v3127_v61  ;;  %v10236_v42 = vld [vmem:[#allocation65_spill] sm:$0xff] }
 0x37f   : > { %v2903_v46 = vpop.f32.mrf.mxu3  ;;  %v2794_v34 = vadd.f32 %v7218_v3, %v10236_v42 }
 0x380   : > { %v2904_v41 = vadd.f32 %v2903_v46, %v2791_v9  ;;  %v3303_v44 = vmax.f32 %v3240_v51, 0.0  ;;  %v10237_v9 = vld [vmem:[#allocation26_spill] sm:$0xff]  ;;  %v10293_v46 = vld [vmem:[#allocation64_spill] sm:$0xff] }
 0x381   : > { %v629_v12 = vadd.f32 %v7641_v26, %v10237_v9 }
 0x382   : > { %v3017_v31 = vadd.f32 %v3016_v62, %v2904_v41  ;;  %3383 = vrot.lane.b32.xlu0 %v3303_v44, %s5757_s14  ;;  %v3019_v62 = vpop.f32.mrf.mxu0 }
 0x384   : > { %v3130_v33 = vadd.f32 %v3129_v11, %v3017_v31  ;;  %v3356_v18 = vpop.permute.xlu1 %3355  ;;  %5468 = vmatmul.msk.f32.gmra.mxu3 %vm1491_vm5, %v7685_v59  ;;  %v3132_v31 = vpop.f32.mrf.mxu1 }
 0x385   : > { %v7743_v32 = vsel %vm3447_vm4, %v717_v53, %v3356_v18  ;;  %v3245_v18 = vpop.f32.mrf.mxu2 }
 0x386   : > { %10235 = vst [vmem:[#allocation60_spill] sm:$0xff] %v7743_v32  ;;  %v3643_v5 = vrot.slane %v7743_v32, 1  ;;  %v3516_v61 = vrot.slane %v7743_v32, 7  ;;  %v3243_v28 = vadd.f32 %v3242_v8, %v3130_v33  ;;  %v10241_v8 = vld [vmem:[#allocation30_spill] sm:$0xff] }
 0x387   : > { %v2906_v59 = vpop.f32.mrf.mxu3  ;;  %v632_v33 = vadd.f32 %v7641_v26, %v10241_v8 }
 0x388   : > { %v2907_v51 = vadd.f32 %v2906_v59, %v2794_v34  ;;  %v7757_v47 = vsel %vm2005_vm2, %v3641_v22, %v3643_v5  ;;  %v7762_v3 = vsel %vm598_vm3, %v3514_v29, %v3516_v61  ;;  %v3304_v7 = vmax.f32 %v3243_v28, 0.0 }
 0x389   : > { %10238 = vst [vmem:[#allocation23_spill] sm:$0xff] %v7757_v47  ;;  %5483 = vmatmul.msk.f32.gmra.mxu1 %vm1878_vm13, %v7757_v47  ;;  %5499 = vmatmul.msk.f32.gmra.mxu2 %vm1493_vm7, %v7762_v3  ;;  %v718_v22 = vmax.f32 %v629_v12, 0.0  ;;  %v665_v47 = vadd.f32 %v7641_v26, %v10293_v46 }
 0x38a   : > { %v3020_v44 = vadd.f32 %v3019_v62, %v2907_v51  ;;  %3385 = vrot.lane.b32.xlu1 %v3304_v7, %s5757_s14  ;;  %v719_v62 = vmax.f32 %v632_v33, 0.0 }
 0x38c   : > { %v3133_v53 = vadd.f32 %v3132_v31, %v3020_v44  ;;  %v2431_v11 = vpop.permute.xlu1 %2430  ;;  %3941 = vmatmul.f32.gmra.mxu3 %v7709_v4  ;;  %v3358_v29 = vpop.permute.xlu0 %3357  ;;  %v3847_v44 = vld [vmem:[%s9893_s9 + $0x278] sm:$0xff] }
 0x38d   : > { %v7775_v13 = vsel %vm3447_vm4, %v718_v22, %v3358_v29  ;;  %v2481_v42 = vsel %vm2231_vm6, %v5707_v20, %v2431_v11  ;;  %v3360_v4 = vpop.permute.xlu2 %3359  ;;  %4368 = vmatpush.msra.mxu3 %v3847_v44  ;;  %v3248_v33 = vpop.f32.mrf.mxu2 }
 0x38e   : > { %3039 = vmatmul.f32.gmra.mxu0 %v2481_v42  ;;  %v3645_v34 = vrot.slane %v7775_v13, 1  ;;  %v3518_v28 = vrot.slane %v7775_v13, 7  ;;  %v3246_v9 = vadd.f32 %v3245_v18, %v3133_v53  ;;  %v7792_v56 = vsel %vm3447_vm4, %v719_v62, %v3360_v4  ;;  %v10244_v53 = vld [vmem:[#allocation34_spill] sm:$0xff]  ;;  %v3135_v44 = vpop.f32.mrf.mxu1 }
 0x38f   : > { %v2909_v12 = vpop.f32.mrf.mxu3  ;;  %v3647_v22 = vrot.slane %v7792_v56, 1  ;;  %v3520_v31 = vrot.slane %v7792_v56, 7  ;;  %v635_v11 = vadd.f32 %v7641_v26, %v10244_v53 }
 0x390   : > { %v7783_v59 = vsel %vm2005_vm2, %v3643_v5, %v3645_v34  ;;  %v7786_v51 = vsel %vm598_vm3, %v3516_v61, %v3518_v28  ;;  %v3305_v7 = vmax.f32 %v3246_v9, 0.0  ;;  %v3792_v61 = vld [vmem:[%s9893_s9 + $0xc0] sm:$0xff] }
 0x391   : > { %10242 = vst [vmem:[#allocation20_spill] sm:$0xff] %v7783_v59  ;;  %4170 = vmatmul.f32.gmra.mxu1 %v7783_v59  ;;  %4280 = vmatmul.f32.gmra.mxu2 %v7786_v51  ;;  %v7818_v18 = vsel %vm2005_vm2, %v3645_v34, %v3647_v22  ;;  %v7821_v42 = vsel %vm598_vm3, %v3518_v28, %v3520_v31 }
 0x392   : > { %10243 = vst [vmem:[#allocation25_spill] sm:$0xff] %v7786_v51  ;;  %3387 = vrot.lane.b32.xlu2 %v3305_v7, %s5757_s14  ;;  %4036 = vmatpush.msra.mxu0 %v3792_v61  ;;  %v10317_v7 = vld [vmem:[#allocation71_spill] sm:$0xff] }
 0x393   : > { %10246 = vst [vmem:[#allocation28_spill] sm:$0xff] %v7818_v18 }
 0x394   : > { %5469 = vmatmul.msk.f32.gmra.mxu3 %vm1493_vm7, %v7762_v3  ;;  %v2435_v20 = vpop.permute.xlu0 %2434  ;;  %10247 = vst [vmem:[#allocation73_spill] sm:$0xff] %v7821_v42 }
 0x395   : > { %v2482_v5 = vsel %vm2231_vm6, %v5713_v57, %v2435_v20  ;;  %v10245_v57 = vld [vmem:[#allocation67_spill] sm:$0xff]  ;;  %v2439_v62 = vpop.permute.xlu2 %2438 }
 0x396   : > { %3042 = vmatmul.f32.gmra.mxu0 %v2482_v5  ;;  %v2797_v29 = vadd.f32 %v7813_v15, %v10245_v57  ;;  %v720_v5 = vmax.f32 %v635_v11, 0.0  ;;  %v2800_v11 = vadd.f32 %v7813_v15, %v10250_v37  ;;  %v3791_v37 = vld [vmem:[%s9893_s9 + $0xb8] sm:$0xff] }
 0x397   : > { %v2912_v8 = vpop.f32.mrf.mxu3  ;;  %4037 = vmatpush.msra.mxu0 %v3791_v37 }
 0x398   : > { %v2910_v9 = vadd.f32 %v2909_v12, %v2797_v29  ;;  %v2483_v12 = vsel %vm2231_vm6, %v5718_v40, %v2439_v62  ;;  %v2913_v40 = vadd.f32 %v2912_v8, %v2800_v11  ;;  %v3138_v8 = vpop.f32.mrf.mxu1 }
 0x399   : > { %5484 = vmatmul.msk.f32.gmra.mxu1 %vm1880_vm15, %v7818_v18  ;;  %5500 = vmatmul.msk.f32.gmra.mxu2 %vm1495_vm8, %v7821_v42 }
 0x39a   : > { %v3022_v20 = vpop.f32.mrf.mxu0 }
 0x39b   : > { %v3023_v61 = vadd.f32 %v3022_v20, %v2910_v9 }
 0x39c   : > { %v3362_v53 = vpop.permute.xlu1 %3361  ;;  %3947 = vmatmul.f32.gmra.mxu3 %v7786_v51 }
 0x39d   : > { %v3136_v34 = vadd.f32 %v3135_v44, %v3023_v61  ;;  %v7831_v28 = vsel %vm3447_vm4, %v720_v5, %v3362_v53  ;;  %v638_v61 = vadd.f32 %v7641_v26, %v10251_v38  ;;  %v3251_v44 = vpop.f32.mrf.mxu2  ;;  %v3846_v38 = vld [vmem:[%s9893_s9 + $0x270] sm:$0xff]  ;;  %v3366_v63 = vpop.permute.xlu2 %3365 }
 0x39e   : > { %3045 = vmatmul.f32.gmra.mxu0 %v2483_v12  ;;  %v3649_v57 = vrot.slane %v7831_v28, 1  ;;  %v3522_v29 = vrot.slane %v7831_v28, 7  ;;  %4369 = vmatpush.msra.mxu3 %v3846_v38 }
 0x39f   : > { %v2915_v9 = vpop.f32.mrf.mxu3  ;;  %v3249_v20 = vadd.f32 %v3248_v33, %v3136_v34 }
 0x3a0   : > { %v7843_v5 = vsel %vm2005_vm2, %v3647_v22, %v3649_v57  ;;  %v7846_v25 = vsel %vm598_vm3, %v3520_v31, %v3522_v29  ;;  %v721_v31 = vmax.f32 %v638_v61, 0.0  ;;  %v10255_v61 = vld [vmem:[#allocation72_spill] sm:$0xff] }
 0x3a1   : > { %10252 = vst [vmem:[#allocation33_spill] sm:$0xff] %v7843_v5  ;;  %4176 = vmatmul.f32.gmra.mxu1 %v7843_v5  ;;  %4286 = vmatmul.f32.gmra.mxu2 %v7846_v25  ;;  %v3306_v62 = vmax.f32 %v3249_v20, 0.0  ;;  %v10254_v20 = vld [vmem:[#allocation40_spill] sm:$0xff] }
 0x3a2   : > { %10253 = vst [vmem:[#allocation36_spill] sm:$0xff] %v7846_v25  ;;  %v3025_v53 = vpop.f32.mrf.mxu0 }
 0x3a3   : > { %v3026_v22 = vadd.f32 %v3025_v53, %v2913_v40  ;;  %3389 = vrot.lane.b32.xlu0 %v3306_v62, %s5757_s14  ;;  %v641_v40 = vadd.f32 %v7641_v26, %v10254_v20  ;;  %v2803_v53 = vadd.f32 %v7813_v15, %v10255_v61  ;;  %v10260_v61 = vld [vmem:[#allocation44_spill] sm:$0xff] }
 0x3a4   : > { %v2443_v33 = vpop.permute.xlu1 %2442  ;;  %5470 = vmatmul.msk.f32.gmra.mxu3 %vm1495_vm8, %v7821_v42  ;;  %v3364_v12 = vpop.permute.xlu0 %3363  ;;  %v10318_v42 = vld [vmem:[#allocation83_spill] sm:$0xff] }
 0x3a5   : > { %v3139_v34 = vadd.f32 %v3138_v8, %v3026_v22  ;;  %v2484_v11 = vsel %vm2231_vm6, %v5723_v49, %v2443_v33  ;;  %v7866_v62 = vsel %vm3447_vm4, %v721_v31, %v3364_v12  ;;  %v2916_v55 = vadd.f32 %v2915_v9, %v2803_v53  ;;  %v3141_v9 = vpop.f32.mrf.mxu1  ;;  %v10262_v12 = vld [vmem:[#allocation76_spill] sm:$0xff] }
 0x3a6   : > { %3048 = vmatmul.f32.gmra.mxu0 %v2484_v11  ;;  %v3651_v23 = vrot.slane %v7866_v62, 1  ;;  %v3524_v22 = vrot.slane %v7866_v62, 7  ;;  %v722_v33 = vmax.f32 %v641_v40, 0.0  ;;  %v644_v53 = vadd.f32 %v7641_v26, %v10260_v61 }
 0x3a7   : > { %v2918_v37 = vpop.f32.mrf.mxu3  ;;  %v3252_v8 = vadd.f32 %v3251_v44, %v3139_v34  ;;  %v2818_v51 = vadd.f32 %v7813_v15, %v10318_v42 }
 0x3a8   : > { %v7873_v49 = vsel %vm2005_vm2, %v3649_v57, %v3651_v23  ;;  %v7876_v38 = vsel %vm598_vm3, %v3522_v29, %v3524_v22  ;;  %v3254_v57 = vpop.f32.mrf.mxu2  ;;  %v7886_v34 = vsel %vm3447_vm4, %v722_v33, %v3366_v63 }
 0x3a9   : > { %10256 = vst [vmem:[#allocation39_spill] sm:$0xff] %v7873_v49  ;;  %v3307_v31 = vmax.f32 %v3252_v8, 0.0  ;;  %5485 = vmatmul.msk.f32.gmra.mxu1 %vm1882_vm1, %v7873_v49  ;;  %5501 = vmatmul.msk.f32.gmra.mxu2 %vm1497_vm9, %v7876_v38  ;;  %v10261_v8 = vunpack.i.h.bf16 %v7277_v39  ;;  %v3653_v63 = vrot.slane %v7886_v34, 1  ;;  %v3526_v33 = vrot.slane %v7886_v34, 7 }
 0x3aa   : > { %10257 = vst [vmem:[#allocation42_spill] sm:$0xff] %v7876_v38  ;;  %v3028_v20 = vpop.f32.mrf.mxu0 }
 0x3ab   : > { %v3029_v44 = vadd.f32 %v3028_v20, %v2916_v55  ;;  %3391 = vrot.lane.b32.xlu1 %v3307_v31, %s5757_s14  ;;  %v2806_v55 = vadd.f32 %v7813_v15, %v10262_v12  ;;  %v7904_v61 = vsel %vm598_vm3, %v3524_v22, %v3526_v33  ;;  %v3790_v12 = vld [vmem:[%s9893_s9 + $0xb0] sm:$0xff] }
 0x3ac   : > { %3953 = vmatmul.f32.gmra.mxu3 %v7846_v25  ;;  %v2447_v40 = vpop.permute.xlu0 %2446  ;;  %10264 = vst [vmem:[#allocation21_spill] sm:$0xff] %v7904_v61  ;;  %4038 = vmatpush.msra.mxu0 %v3790_v12  ;;  %v10296_v25 = vld [vmem:[#allocation41_spill] sm:$0xff] }
 0x3ad   : > { %v3142_v29 = vadd.f32 %v3141_v9, %v3029_v44  ;;  %v2485_v2 = vsel %vm2231_vm6, %v10261_v8, %v2447_v40  ;;  %v2919_v44 = vadd.f32 %v2918_v37, %v2806_v55  ;;  %v7901_v9 = vsel %vm2005_vm2, %v3651_v23, %v3653_v63  ;;  %v3845_v37 = vld [vmem:[%s9893_s9 + $0x268] sm:$0xff]  ;;  %v3144_v22 = vpop.f32.mrf.mxu1  ;;  %v10265_v55 = vld [vmem:[#allocation46_spill] sm:$0xff] }
 0x3ae   : > { %3051 = vmatmul.f32.gmra.mxu0 %v2485_v2  ;;  %10263 = vst [vmem:[#allocation45_spill] sm:$0xff] %v7901_v9  ;;  %4370 = vmatpush.msra.mxu3 %v3845_v37 }
 0x3af   : > { %v7896_v31 = vpop.f32.mrf.mxu3  ;;  %v3255_v20 = vadd.f32 %v3254_v57, %v3142_v29  ;;  %v723_v57 = vmax.f32 %v644_v53, 0.0  ;;  %v647_v53 = vadd.f32 %v7641_v26, %v10265_v55 }
 0x3b1   : > { %v3308_v39 = vmax.f32 %v3255_v20, 0.0  ;;  %4182 = vmatmul.f32.gmra.mxu1 %v7901_v9  ;;  %4292 = vmatmul.f32.gmra.mxu2 %v7904_v61  ;;  %v3257_v20 = vpop.f32.mrf.mxu2  ;;  %v724_v37 = vmax.f32 %v647_v53, 0.0 }
 0x3b2   : > { %v3031_v2 = vpop.f32.mrf.mxu0 }
 0x3b3   : > { %v3032_v23 = vadd.f32 %v3031_v2, %v2919_v44  ;;  %3393 = vrot.lane.b32.xlu2 %v3308_v39, %s5757_s14  ;;  %2450 = vrot.lane.b32.xlu1 %v7509_v6, %s5755_s22 }
 0x3b4   : > { %v3368_v29 = vpop.permute.xlu1 %3367  ;;  %5471 = vmatmul.msk.f32.gmra.mxu3 %vm1497_vm9, %v7876_v38 }
 0x3b5   : > { %v3145_v40 = vadd.f32 %v3144_v22, %v3032_v23  ;;  %v7921_v8 = vsel %vm3447_vm4, %v723_v57, %v3368_v29  ;;  %v3370_v57 = vpop.permute.xlu2 %3369 }
 0x3b6   : > { %v3655_v44 = vrot.slane %v7921_v8, 1  ;;  %v3528_v6 = vrot.slane %v7921_v8, 7 }
 0x3b7   : > { %v7927_v39 = vpop.f32.mrf.mxu3  ;;  %v3258_v2 = vadd.f32 %v3257_v20, %v3145_v40  ;;  %v7943_v40 = vsel %vm3447_vm4, %v724_v37, %v3370_v57 }
 0x3b8   : > { %v7930_v9 = vsel %vm2005_vm2, %v3653_v63, %v3655_v44  ;;  %v7933_v12 = vsel %vm598_vm3, %v3526_v33, %v3528_v6  ;;  %v10270_v63 = vld [vmem:[#allocation48_spill] sm:$0xff]  ;;  %v3657_v53 = vrot.slane %v7943_v40, 1  ;;  %v3530_v20 = vrot.slane %v7943_v40, 7 }
 0x3b9   : > { %10266 = vst [vmem:[#allocation17_spill] sm:$0xff] %v7930_v9  ;;  %v3309_v23 = vmax.f32 %v3258_v2, 0.0  ;;  %5486 = vmatmul.msk.f32.gmra.mxu1 %vm1884_vm14, %v7930_v9  ;;  %5502 = vmatmul.msk.f32.gmra.mxu2 %vm1499_vm10, %v7933_v12  ;;  %v650_v33 = vadd.f32 %v7641_v26, %v10270_v63 }
 0x3ba   : > { %10267 = vst [vmem:[#allocation47_spill] sm:$0xff] %v7933_v12  ;;  %v7953_v2 = vsel %vm2005_vm2, %v3655_v44, %v3657_v53  ;;  %v7956_v22 = vsel %vm598_vm3, %v3528_v6, %v3530_v20  ;;  %v3844_v44 = vld [vmem:[%s9893_s9 + $0x260] sm:$0xff] }
 0x3bb   : > { %3395 = vrot.lane.b32.xlu0 %v3309_v23, %s5757_s14  ;;  %10271 = vst [vmem:[#allocation3_spill] sm:$0xff] %v7953_v2  ;;  %v725_v57 = vmax.f32 %v650_v33, 0.0  ;;  %v3789_v23 = vld [vmem:[%s9893_s9 + $0xa8] sm:$0xff]  ;;  %4371 = vmatpush.msra.mxu3 %v3844_v44  ;;  %v10273_v33 = vld [vmem:[#allocation52_spill] sm:$0xff] }
 0x3bc   : > { %3959 = vmatmul.f32.gmra.mxu3 %v7904_v61  ;;  %10272 = vst [vmem:[#allocation50_spill] sm:$0xff] %v7956_v22  ;;  %4039 = vmatpush.msra.mxu0 %v3789_v23 }
 0x3bf   : > { %v7948_v55 = vpop.f32.mrf.mxu3 }
 0x3c1   : > { %4188 = vmatmul.f32.gmra.mxu1 %v7953_v2  ;;  %4298 = vmatmul.f32.gmra.mxu2 %v7956_v22  ;;  %v653_v2 = vadd.f32 %v7641_v26, %v10273_v33 }
 0x3c3   : > { %2454 = vrot.lane.b32.xlu0 %v7558_v54, %s5755_s22  ;;  %v726_v44 = vmax.f32 %v653_v2, 0.0  ;;  %s5581_s22 = smul.u32 176, %s10751_s18 }
 0x3c4   : > { %5472 = vmatmul.msk.f32.gmra.mxu3 %vm1499_vm10, %v7933_v12  ;;  %v3372_v6 = vpop.permute.xlu0 %3371 }
 0x3c5   : > { %v7972_v37 = vsel %vm3447_vm4, %v725_v57, %v3372_v6  ;;  %v10277_v57 = vld [vmem:[#allocation8_spill] sm:$0xff] }
 0x3c6   : > { %v3659_v54 = vrot.slane %v7972_v37, 1  ;;  %v3532_v63 = vrot.slane %v7972_v37, 7  ;;  %vm10278_vm5 = vcmp.ge.s32.totalorder %v10277_v57, 0  ;;  %v2809_v57 = vadd.f32 %v7813_v15, %v7038_v14 }
 0x3c7   : > { %v7978_v9 = vpop.f32.mrf.mxu3 }
 0x3c8   : > { %v7981_v49 = vsel %vm2005_vm2, %v3657_v53, %v3659_v54  ;;  %v7984_v5 = vsel %vm598_vm3, %v3530_v20, %v3532_v63  ;;  %v10279_v53 = vld [vmem:[#allocation55_spill] sm:$0xff]  ;;  %v2922_v59 = vadd.f32 %v7896_v31, %v2809_v57  ;;  %v3787_v31 = vld [vmem:[%s9893_s9 + $0x98] sm:$0xff]  ;;  %v3842_v57 = vld [vmem:[%s9893_s9 + $0x250] sm:$0xff] }
 0x3c9   : > { %10274 = vst [vmem:[#allocation2_spill] sm:$0xff] %v7981_v49  ;;  %5487 = vmatmul.msk.f32.gmra.mxu1 %vm10012_vm0, %v7981_v49  ;;  %5503 = vmatmul.msk.f32.gmra.mxu2 %vm10278_vm5, %v7984_v5  ;;  %v656_v29 = vadd.f32 %v7641_v26, %v10279_v53 }
 0x3ca   : > { %10275 = vst [vmem:[#allocation53_spill] sm:$0xff] %v7984_v5 }
 0x3cb   : > { %v727_v4 = vmax.f32 %v656_v29, 0.0  ;;  %v10282_v29 = vld [vmem:[#allocation59_spill] sm:$0xff] }
 0x3cc   : > { %3965 = vmatmul.f32.gmra.mxu3 %v7956_v22  ;;  %v3374_v6 = vpop.permute.xlu1 %3373  ;;  %v3376_v22 = vpop.permute.xlu2 %3375 }
 0x3cd   : > { %v7994_v33 = vsel %vm3447_vm4, %v726_v44, %v3374_v6  ;;  %v3788_v44 = vld [vmem:[%s9893_s9 + $0xa0] sm:$0xff]  ;;  %v3843_v6 = vld [vmem:[%s9893_s9 + $0x258] sm:$0xff] }
 0x3ce   : > { %v3661_v20 = vrot.slane %v7994_v33, 1  ;;  %v3534_v12 = vrot.slane %v7994_v33, 7  ;;  %4040 = vmatpush.msra.mxu0 %v3788_v44  ;;  %4372 = vmatpush.msra.mxu3 %v3843_v6 }
 0x3cf   : > { %v8000_v23 = vpop.f32.mrf.mxu3 }
 0x3d0   : > { %v8003_v49 = vsel %vm2005_vm2, %v3659_v54, %v3661_v20  ;;  %v8006_v2 = vsel %vm598_vm3, %v3532_v63, %v3534_v12  ;;  %v8017_v54 = vsel %vm3447_vm4, %v727_v4, %v3376_v22  ;;  %v659_v63 = vadd.f32 %v7641_v26, %v10282_v29  ;;  %v10285_v4 = vld [vmem:[#allocation38_spill] sm:$0xff]  ;;  %v10287_v22 = vld [vmem:[#allocation9_spill] sm:$0xff]  ;;  %4041 = vmatpush.msra.mxu0 %v3787_v31 }
 0x3d1   : > { %10280 = vst [vmem:[#allocation58_spill] sm:$0xff] %v8003_v49  ;;  %4194 = vmatmul.f32.gmra.mxu1 %v8003_v49  ;;  %4304 = vmatmul.f32.gmra.mxu2 %v8006_v2  ;;  %v3663_v49 = vrot.slane %v8017_v54, 1  ;;  %v3536_v18 = vrot.slane %v8017_v54, 7  ;;  %vm10286_vm0 = vcmp.lt.s32.totalorder %v10285_v4, 16  ;;  %v10289_v4 = vld [vmem:[#allocation62_spill] sm:$0xff] }
 0x3d2   : > { %10281 = vst [vmem:[#allocation61_spill] sm:$0xff] %v8006_v2  ;;  %v728_v6 = vmax.f32 %v659_v63, 0.0  ;;  %v3147_v63 = vpop.f32.mrf.mxu1  ;;  %4373 = vmatpush.msra.mxu3 %v3842_v57 }
 0x3d3   : > { %v8029_v61 = vsel %vm2005_vm2, %v3661_v20, %v3663_v49  ;;  %v8032_v44 = vsel %vm598_vm3, %v3534_v12, %v3536_v18 }
 0x3d4   : > { %5473 = vmatmul.msk.f32.gmra.mxu3 %vm10278_vm5, %v7984_v5  ;;  %10283 = vst [vmem:[#allocation63_spill] sm:$0xff] %v8029_v61  ;;  %vm10288_vm5 = vcmp.ge.s32.totalorder %v10287_v22, 0  ;;  %v3382_v46 = vpop.permute.xlu2 %3381 }
 0x3d5   : > { %10284 = vst [vmem:[#allocation24_spill] sm:$0xff] %v8032_v44 }
 0x3d7   : > { %v8024_v53 = vpop.f32.mrf.mxu3 }
 0x3d9   : > { %5488 = vmatmul.msk.f32.gmra.mxu1 %vm10286_vm0, %v8029_v61  ;;  %5504 = vmatmul.msk.f32.gmra.mxu2 %vm10288_vm5, %v8032_v44  ;;  %v662_v61 = vadd.f32 %v7641_v26, %v10289_v4  ;;  %vm10292_vm0 = vmmov %vm10288_vm5  ;;  %vm10297_vm5 = vcmp.lt.s32.totalorder %v10296_v25, 16 }
 0x3db   : > { %v729_v4 = vmax.f32 %v662_v61, 0.0  ;;  %v2830_v61 = vadd.f32 %v7813_v15, %v7185_v27  ;;  %v730_v27 = vmax.f32 %v665_v47, 0.0  ;;  %v2833_v47 = vadd.f32 %v7813_v15, %v7203_v17 }
 0x3dc   : > { %3971 = vmatmul.f32.gmra.mxu3 %v8006_v2  ;;  %v3378_v29 = vpop.permute.xlu0 %3377 }
 0x3dd   : > { %v8044_v20 = vsel %vm3447_vm4, %v728_v6, %v3378_v29  ;;  %v3260_v29 = vpop.f32.mrf.mxu2 }
 0x3de   : > { %v3665_v12 = vrot.slane %v8044_v20, 1  ;;  %v3538_v5 = vrot.slane %v8044_v20, 7 }
 0x3df   : > { %v8051_v11 = vpop.f32.mrf.mxu3 }
 0x3e0   : > { %v3034_v2 = vpop.f32.mrf.mxu0  ;;  %v8054_v38 = vsel %vm2005_vm2, %v3663_v49, %v3665_v12  ;;  %v8057_v14 = vsel %vm598_vm3, %v3536_v18, %v3538_v5 }
 0x3e1   : > { %10290 = vst [vmem:[#allocation65_spill] sm:$0xff] %v8054_v38  ;;  %v3035_v6 = vadd.f32 %v3034_v2, %v2922_v59  ;;  %4200 = vmatmul.f32.gmra.mxu1 %v8054_v38  ;;  %4310 = vmatmul.f32.gmra.mxu2 %v8057_v14  ;;  %v2812_v59 = vadd.f32 %v7813_v15, %v7056_v45 }
 0x3e2   : > { %10291 = vst [vmem:[#allocation26_spill] sm:$0xff] %v8057_v14 }
 0x3e3   : > { %v3148_v49 = vadd.f32 %v3147_v63, %v3035_v6  ;;  %v2925_v31 = vadd.f32 %v7927_v39, %v2812_v59  ;;  %v8098_v59 = vsel %vm3447_vm4, %v730_v27, %v3382_v46  ;;  %v3786_v46 = vld [vmem:[%s9893_s9 + $0x90] sm:$0xff] }
 0x3e4   : > { %v3380_v18 = vpop.permute.xlu1 %3379  ;;  %5474 = vmatmul.msk.f32.gmra.mxu3 %vm10292_vm0, %v8032_v44  ;;  %v3542_v25 = vrot.slane %v8098_v59, 7  ;;  %4042 = vmatpush.msra.mxu0 %v3786_v46  ;;  %v10308_v46 = vld [vmem:[#allocation12_spill] sm:$0xff] }
 0x3e5   : > { %v8073_v2 = vsel %vm3447_vm4, %v729_v4, %v3380_v18  ;;  %v3261_v38 = vadd.f32 %v3260_v29, %v3148_v49  ;;  %v3150_v18 = vpop.f32.mrf.mxu1 }
 0x3e6   : > { %v3667_v63 = vrot.slane %v8073_v2, 1  ;;  %v3540_v6 = vrot.slane %v8073_v2, 7 }
 0x3e7   : > { %v2942_v57 = vpop.f32.mrf.mxu3  ;;  %v3310_v22 = vmax.f32 %v3261_v38, 0.0  ;;  %v10298_v38 = vld [vmem:[#allocation11_spill] sm:$0xff] }
 0x3e8   : > { %v8082_v44 = vadd.f32 %v2942_v57, %v2830_v61  ;;  %v3037_v45 = vpop.f32.mrf.mxu0  ;;  %v8085_v4 = vsel %vm2005_vm2, %v3665_v12, %v3667_v63  ;;  %v8088_v29 = vsel %vm598_vm3, %v3538_v5, %v3540_v6  ;;  %vm10299_vm0 = vcmp.ge.s32.totalorder %v10298_v38, 0  ;;  %v3263_v12 = vpop.f32.mrf.mxu2 }
 0x3e9   : > { %10294 = vst [vmem:[#allocation30_spill] sm:$0xff] %v8085_v4  ;;  %v3038_v49 = vadd.f32 %v3037_v45, %v2925_v31  ;;  %3397 = vrot.lane.b32.xlu2 %v3310_v22, %s5757_s14  ;;  %5489 = vmatmul.msk.f32.gmra.mxu1 %vm10297_vm5, %v8085_v4  ;;  %v10300_v22 = vld [vmem:[#allocation66_spill] sm:$0xff]  ;;  %v3669_v45 = vrot.slane %v8098_v59, 1  ;;  %v8117_v17 = vsel %vm598_vm3, %v3540_v6, %v3542_v25  ;;  %vm10303_vm5 = vmmov %vm10299_vm0 }
 0x3ea   : > { %10295 = vst [vmem:[#allocation34_spill] sm:$0xff] %v8088_v29  ;;  %5505 = vmatmul.msk.f32.gmra.mxu2 %vm10299_vm0, %v8088_v29  ;;  %v668_v61 = vadd.f32 %v7641_v26, %v10300_v22  ;;  %vm10309_vm0 = vcmp.ge.s32.totalorder %v10308_v46, 0 }
 0x3eb   : > { %v3151_v39 = vadd.f32 %v3150_v18, %v3038_v49  ;;  %v8114_v27 = vsel %vm2005_vm2, %v3667_v63, %v3669_v45  ;;  %10302 = vst [vmem:[#allocation70_spill] sm:$0xff] %v8117_v17 }
 0x3ec   : > { %3977 = vmatmul.f32.gmra.mxu3 %v8057_v14  ;;  %10301 = vst [vmem:[#allocation67_spill] sm:$0xff] %v8114_v27  ;;  %v731_v18 = vmax.f32 %v668_v61, 0.0  ;;  %v2931_v14 = vadd.f32 %v7978_v9, %v2818_v51 }
 0x3ed   : > { %v3264_v5 = vadd.f32 %v3263_v12, %v3151_v39 }
 0x3ef   : > { %v2945_v31 = vpop.f32.mrf.mxu3  ;;  %v3311_v57 = vmax.f32 %v3264_v5, 0.0  ;;  %v3153_v5 = vpop.f32.mrf.mxu1 }
 0x3f0   : > { %v8107_v49 = vadd.f32 %v2945_v31, %v2833_v47  ;;  %v10304_v47 = vld [vmem:[#allocation68_spill] sm:$0xff]  ;;  %v3266_v38 = vpop.f32.mrf.mxu2 }
 0x3f1   : > { %3399 = vrot.lane.b32.xlu1 %v3311_v57, %s5757_s14  ;;  %4206 = vmatmul.f32.gmra.mxu1 %v8114_v27  ;;  %v671_v22 = vadd.f32 %v7641_v26, %v10304_v47 }
 0x3f2   : > { %4316 = vmatmul.f32.gmra.mxu2 %v8117_v17 }
 0x3f4   : > { %5475 = vmatmul.msk.f32.gmra.mxu3 %vm10303_vm5, %v8088_v29  ;;  %v3384_v39 = vpop.permute.xlu0 %3383  ;;  %vm10312_vm5 = vmmov %vm10309_vm0 }
 0x3f5   : > { %v8125_v12 = vsel %vm3447_vm4, %v731_v18, %v3384_v39  ;;  %v3841_v18 = vld [vmem:[%s9893_s9 + $0x248] sm:$0xff]  ;;  %v732_v39 = vmax.f32 %v671_v22, 0.0 }
 0x3f6   : > { %v3671_v63 = vrot.slane %v8125_v12, 1  ;;  %v3544_v6 = vrot.slane %v8125_v12, 7  ;;  %4374 = vmatpush.msra.mxu3 %v3841_v18  ;;  %v3785_v18 = vld [vmem:[%s9893_s9 + $0x88] sm:$0xff] }
 0x3f7   : > { %v3156_v4 = vpop.f32.mrf.mxu1  ;;  %4043 = vmatpush.msra.mxu0 %v3785_v18 }
 0x3f8   : > { %v8132_v31 = vsel %vm2005_vm2, %v3669_v45, %v3671_v63  ;;  %v8135_v61 = vsel %vm598_vm3, %v3542_v25, %v3544_v6  ;;  %v10310_v45 = vld [vmem:[#allocation69_spill] sm:$0xff] }
 0x3f9   : > { %10305 = vst [vmem:[#allocation37_spill] sm:$0xff] %v8132_v31  ;;  %5490 = vmatmul.msk.f32.gmra.mxu1 %vm1892_vm12, %v8132_v31  ;;  %v674_v57 = vadd.f32 %v7641_v26, %v10310_v45 }
 0x3fa   : > { %10306 = vst [vmem:[#allocation40_spill] sm:$0xff] %v8135_v61  ;;  %5506 = vmatmul.msk.f32.gmra.mxu2 %vm10309_vm0, %v8135_v61  ;;  %vm10316_vm0 = vcmp.ge.s32.totalorder %v10315_v52, 0 }
 0x3fc   : > { %v3386_v47 = vpop.permute.xlu1 %3385  ;;  %3983 = vmatmul.f32.gmra.mxu3 %v8117_v17 }
 0x3fd   : > { %v8148_v25 = vsel %vm3447_vm4, %v732_v39, %v3386_v47  ;;  %v3388_v39 = vpop.permute.xlu2 %3387  ;;  %v733_v47 = vmax.f32 %v674_v57, 0.0 }
 0x3fe   : > { %v3673_v31 = vrot.slane %v8148_v25, 1  ;;  %v3546_v27 = vrot.slane %v8148_v25, 7 }
 0x3ff   : > { %v8166_v45 = vsel %vm3447_vm4, %v733_v47, %v3388_v39  ;;  %v3159_v46 = vpop.f32.mrf.mxu1 }
 0x400   : > { %v8155_v29 = vsel %vm2005_vm2, %v3671_v63, %v3673_v31  ;;  %v8158_v22 = vsel %vm598_vm3, %v3544_v6, %v3546_v27  ;;  %v8171_v63 = vpop.f32.mrf.mxu3  ;;  %v3840_v6 = vld [vmem:[%s9893_s9 + $0x240] sm:$0xff]  ;;  %v3675_v18 = vrot.slane %v8166_v45, 1  ;;  %v3548_v57 = vrot.slane %v8166_v45, 7 }
 0x401   : > { %10311 = vst [vmem:[#allocation72_spill] sm:$0xff] %v8155_v29  ;;  %4212 = vmatmul.f32.gmra.mxu1 %v8155_v29  ;;  %4375 = vmatpush.msra.mxu3 %v3840_v6  ;;  %v2815_v29 = vadd.f32 %v7813_v15, %v7079_v10 }
 0x402   : > { %4322 = vmatmul.f32.gmra.mxu2 %v8158_v22  ;;  %v8181_v39 = vsel %vm2005_vm2, %v3673_v31, %v3675_v18  ;;  %v8184_v47 = vsel %vm598_vm3, %v3546_v27, %v3548_v57  ;;  %v677_v27 = vadd.f32 %v7641_v26, %v10317_v7 }
 0x403   : > { %10313 = vst [vmem:[#allocation44_spill] sm:$0xff] %v8181_v39  ;;  %v2928_v17 = vadd.f32 %v7948_v55, %v2815_v29 }
 0x404   : > { %5476 = vmatmul.msk.f32.gmra.mxu3 %vm10312_vm5, %v8135_v61  ;;  %v3269_v61 = vpop.f32.mrf.mxu2  ;;  %vm10319_vm5 = vmmov %vm10316_vm0 }
 0x408   : > { %v8198_v55 = vpop.f32.mrf.mxu3 }
 0x409   : > { %5491 = vmatmul.msk.f32.gmra.mxu1 %vm10051_vm11, %v8181_v39 }
 0x40a   : > { %5507 = vmatmul.msk.f32.gmra.mxu2 %vm10316_vm0, %v8184_v47  ;;  %vm10325_vm0 = vcmp.lt.s32.totalorder %v7090_v30, 16 }
 0x40b   : > { %v3040_v6 = vpop.f32.mrf.mxu0 }
 0x40c   : > { %v3041_v10 = vadd.f32 %v3040_v6, %v2928_v17  ;;  %3989 = vmatmul.f32.gmra.mxu3 %v8158_v22  ;;  %v3784_v17 = vld [vmem:[%s9893_s9 + $0x80] sm:$0xff]  ;;  %v734_v6 = vmax.f32 %v677_v27, 0.0  ;;  %v3272_v51 = vpop.f32.mrf.mxu2 }
 0x40d   : > { %4044 = vmatpush.msra.mxu0 %v3784_v17  ;;  %v10320_v27 = vld [vmem:[#allocation74_spill] sm:$0xff] }
 0x40e   : > { %v3154_v31 = vadd.f32 %v3153_v5, %v3041_v10  ;;  %v3839_v5 = vld [vmem:[%s9893_s9 + $0x238] sm:$0xff] }
 0x40f   : > { %4376 = vmatpush.msra.mxu3 %v3839_v5 }
 0x410   : > { %v3267_v29 = vadd.f32 %v3266_v38, %v3154_v31 }
 0x412   : > { %v3312_v39 = vmax.f32 %v3267_v29, 0.0 }
 0x413   : > { %v3043_v41 = vpop.f32.mrf.mxu0 }
 0x414   : > { %v3044_v7 = vadd.f32 %v3043_v41, %v2931_v14  ;;  %3401 = vrot.lane.b32.xlu2 %v3312_v39, %s5757_s14  ;;  %5477 = vmatmul.msk.f32.gmra.mxu3 %vm10319_vm5, %v8184_v47  ;;  %v680_v41 = vadd.f32 %v7641_v26, %v10320_v27  ;;  %v2821_v14 = vadd.f32 %v7813_v15, %v7128_v48  ;;  %v3162_v39 = vpop.f32.mrf.mxu1 }
 0x415   : > { %v3390_v42 = vpop.permute.xlu0 %3389 }
 0x416   : > { %v3157_v9 = vadd.f32 %v3156_v4, %v3044_v7  ;;  %v8212_v38 = vsel %vm3447_vm4, %v734_v6, %v3390_v42  ;;  %v2934_v5 = vadd.f32 %v8000_v23, %v2821_v14  ;;  %v8227_v6 = vpop.f32.mrf.mxu3  ;;  %v735_v27 = vmax.f32 %v680_v41, 0.0 }
 0x417   : > { %v3677_v10 = vrot.slane %v8212_v38, 1  ;;  %v3550_v31 = vrot.slane %v8212_v38, 7  ;;  %10322 = vst [vmem:[#allocation46_spill] sm:$0xff] %v8227_v6  ;;  %v2824_v41 = vadd.f32 %v7813_v15, %v7145_v36 }
 0x418   : > { %v3270_v29 = vadd.f32 %v3269_v61, %v3157_v9 }
 0x419   : > { %v8221_v17 = vsel %vm2005_vm2, %v3675_v18, %v3677_v10  ;;  %v8224_v4 = vsel %vm598_vm3, %v3548_v57, %v3550_v31  ;;  %v10323_v18 = vld [vmem:[#allocation77_spill] sm:$0xff] }
 0x41a   : > { %10321 = vst [vmem:[#allocation76_spill] sm:$0xff] %v8221_v17  ;;  %v3313_v7 = vmax.f32 %v3270_v29, 0.0  ;;  %4218 = vmatmul.f32.gmra.mxu1 %v8221_v17  ;;  %4328 = vmatmul.f32.gmra.mxu2 %v8224_v4  ;;  %v683_v57 = vadd.f32 %v7641_v26, %v10323_v18  ;;  %v3863_v17 = vld [vmem:[%s9893_s9 + $0x2f8] sm:$0xff]  ;;  %v3838_v26 = vld [vmem:[%s9893_s9 + $0x230] sm:$0xff] }
 0x41b   : > { %v3046_v42 = vpop.f32.mrf.mxu0  ;;  %4481 = vmatpush.msrb.mxu0 %v3863_v17  ;;  %4377 = vmatpush.msra.mxu3 %v3838_v26 }
 0x41c   : > { %v3047_v48 = vadd.f32 %v3046_v42, %v2934_v5  ;;  %3403 = vrot.lane.b32.xlu0 %v3313_v7, %s5757_s14  ;;  %3995 = vmatmul.f32.gmra.mxu3 %v8224_v4  ;;  %v3165_v5 = vpop.f32.mrf.mxu1  ;;  %v3275_v42 = vpop.f32.mrf.mxu2  ;;  %v736_v36 = vmax.f32 %v683_v57, 0.0 }
 0x41d   : > { %v3392_v61 = vpop.permute.xlu1 %3391 }
 0x41e   : > { %v3160_v9 = vadd.f32 %v3159_v46, %v3047_v48  ;;  %v8236_v23 = vsel %vm3447_vm4, %v735_v27, %v3392_v61  ;;  %v3394_v46 = vpop.permute.xlu2 %3393  ;;  %v2937_v61 = vadd.f32 %v8024_v53, %v2824_v41  ;;  %v10330_v41 = vunpack.i.h.bf16 %v7299_v0 }
 0x41f   : > { %v3679_v14 = vrot.slane %v8236_v23, 1  ;;  %v3552_v29 = vrot.slane %v8236_v23, 7  ;;  %v2827_v0 = vadd.f32 %v7813_v15, %v7163_v24 }
 0x420   : > { %v3273_v7 = vadd.f32 %v3272_v51, %v3160_v9  ;;  %v10326_v51 = vld [vmem:[#allocation22_spill] sm:$0xff] }
 0x421   : > { %v8249_v27 = vsel %vm2005_vm2, %v3677_v10, %v3679_v14  ;;  %v8252_v48 = vsel %vm598_vm3, %v3550_v31, %v3552_v29  ;;  %vm10327_vm5 = vcmp.ge.s32.totalorder %v10326_v51, 0  ;;  %v8262_v10 = vsel %vm3447_vm4, %v736_v36, %v3394_v46  ;;  %v8264_v31 = vpop.f32.mrf.mxu3  ;;  %v8278_v36 = vld [vmem:[%s9888_s4] ss:$0 sm:$0xff] }
 0x422   : > { %10324 = vst [vmem:[#allocation48_spill] sm:$0xff] %v8249_v27  ;;  %5492 = vmatmul.msk.f32.gmra.mxu1 %vm10325_vm0, %v8249_v27  ;;  %5508 = vmatmul.msk.f32.gmra.mxu2 %vm10327_vm5, %v8252_v48  ;;  %v3314_v18 = vmax.f32 %v3273_v7, 0.0  ;;  %vm10329_vm11 = vmmov %vm10327_vm5  ;;  %v3681_v26 = vrot.slane %v8262_v10, 1  ;;  %v3554_v46 = vrot.slane %v8262_v10, 7 }
 0x423   : > { %v3049_v9 = vpop.f32.mrf.mxu0  ;;  %10328 = vst [vmem:[#allocation52_spill] sm:$0xff] %v8264_v31 }
 0x424   : > { %v3050_v17 = vadd.f32 %v3049_v9, %v2937_v61  ;;  %3405 = vrot.lane.b32.xlu1 %v3314_v18, %s5757_s14  ;;  %5478 = vmatmul.msk.f32.gmra.mxu3 %vm10329_vm11, %v8252_v48  ;;  %v10331_v61 = vld [vmem:[#allocation79_spill] sm:$0xff]  ;;  %v8282_v9 = vpop.f32.mrf.mxu1 }
 0x425   : > { %v2451_v53 = vpop.permute.xlu1 %2450  ;;  %v686_v18 = vadd.f32 %v8278_v36, %v10331_v61  ;;  %v2940_v61 = vadd.f32 %v8051_v11, %v2827_v0  ;;  %v3862_v11 = vld [vmem:[%s9893_s9 + $0x2f0] sm:$0xff] }
 0x426   : > { %v3163_v57 = vadd.f32 %v3162_v39, %v3050_v17  ;;  %v2486_v7 = vsel %vm2231_vm6, %v10330_v41, %v2451_v53  ;;  %v8287_v17 = vsel %vm2005_vm2, %v3679_v14, %v3681_v26  ;;  %v8290_v53 = vsel %vm598_vm3, %v3552_v29, %v3554_v46  ;;  %v3278_v41 = vpop.f32.mrf.mxu2  ;;  %4482 = vmatpush.msrb.mxu0 %v3862_v11  ;;  %v10344_v11 = vld [vmem:[#allocation80_spill] sm:$0xff] }
 0x427   : > { %3054 = vmatmul.f32.gmra.mxu0 %v2486_v7  ;;  %10332 = vst [vmem:[#allocation55_spill] sm:$0xff] %v8287_v17  ;;  %v737_v30 = vmax.f32 %v686_v18, 0.0  ;;  %v3837_v18 = vld [vmem:[%s9893_s9 + $0x228] sm:$0xff] }
 0x428   : > { %v3276_v39 = vadd.f32 %v3275_v42, %v3163_v57  ;;  %10333 = vst [vmem:[#allocation59_spill] sm:$0xff] %v8290_v53  ;;  %4378 = vmatpush.msra.mxu3 %v3837_v18  ;;  %v689_v18 = vadd.f32 %v8278_v36, %v10344_v11 }
 0x429   : > { %v8297_v14 = vpop.f32.mrf.mxu3 }
 0x42a   : > { %4224 = vmatmul.f32.gmra.mxu1 %v8287_v17  ;;  %4334 = vmatmul.f32.gmra.mxu2 %v8290_v53  ;;  %v3315_v7 = vmax.f32 %v3276_v39, 0.0  ;;  %10334 = vst [vmem:[#allocation62_spill] sm:$0xff] %v8297_v14 }
 0x42b   : > { %v3052_v27 = vpop.f32.mrf.mxu0 }
 0x42c   : > { %3407 = vrot.lane.b32.xlu2 %v3315_v7, %s5757_s14  ;;  %4001 = vmatmul.f32.gmra.mxu3 %v8290_v53  ;;  %v3053_v24 = vadd.f32 %v3052_v27, %v2940_v61  ;;  %v10337_v61 = vld [vmem:[#allocation78_spill] sm:$0xff] }
 0x42d   : > { %v3396_v15 = vpop.permute.xlu0 %3395  ;;  %vm10338_vm11 = vcmp.lt.s32.totalorder %v10337_v61, 16  ;;  %v10388_v53 = vld [vmem:[#allocation54_spill] sm:$0xff] }
 0x42e   : > { %v8300_v29 = vsel %vm3447_vm4, %v737_v30, %v3396_v15  ;;  %v3166_v42 = vadd.f32 %v3165_v5, %v3053_v24  ;;  %v8316_v5 = vpop.f32.mrf.mxu1  ;;  %v8318_v7 = vpop.f32.mrf.mxu2  ;;  %v10339_v24 = vld [vmem:[#allocation31_spill] sm:$0xff] }
 0x42f   : > { %v3683_v57 = vrot.slane %v8300_v29, 1  ;;  %v3556_v39 = vrot.slane %v8300_v29, 7  ;;  %vm10340_vm0 = vcmp.ge.s32.totalorder %v10339_v24, 0 }
 0x430   : > { %v3279_v27 = vadd.f32 %v3278_v41, %v3166_v42  ;;  %vm10341_vm5 = vmmov %vm10340_vm0 }
 0x431   : > { %v8311_v0 = vsel %vm2005_vm2, %v3681_v26, %v3683_v57  ;;  %v8314_v30 = vsel %vm598_vm3, %v3554_v46, %v3556_v39  ;;  %v10342_v46 = vunpack.i.h.bf16 %v7388_v58  ;;  %v8333_v42 = vpop.f32.mrf.mxu3  ;;  %v738_v58 = vmax.f32 %v689_v18, 0.0 }
 0x432   : > { %10335 = vst [vmem:[#allocation64_spill] sm:$0xff] %v8311_v0  ;;  %5493 = vmatmul.msk.f32.gmra.mxu1 %vm10338_vm11, %v8311_v0  ;;  %5509 = vmatmul.msk.f32.gmra.mxu2 %vm10340_vm0, %v8314_v30  ;;  %v3316_v41 = vmax.f32 %v3279_v27, 0.0  ;;  %v3861_v27 = vld [vmem:[%s9893_s9 + $0x2e8] sm:$0xff]  ;;  %vm10356_vm11 = vcmp.lt.s32.totalorder %v7250_v43, 16 }
 0x433   : > { %10336 = vst [vmem:[#allocation66_spill] sm:$0xff] %v8314_v30  ;;  %4483 = vmatpush.msrb.mxu0 %v3861_v27 }
 0x434   : > { %5479 = vmatmul.msk.f32.gmra.mxu3 %vm10341_vm5, %v8314_v30  ;;  %3409 = vrot.lane.b32.xlu0 %v3316_v41, %s5757_s14  ;;  %10343 = vst [vmem:[#allocation68_spill] sm:$0xff] %v8333_v42  ;;  %v3836_v41 = vld [vmem:[%s9893_s9 + $0x220] sm:$0xff] }
 0x435   : > { %v2455_v26 = vpop.permute.xlu0 %2454  ;;  %4379 = vmatpush.msra.mxu3 %v3836_v41 }
 0x436   : > { %v2487_v15 = vsel %vm2231_vm6, %v10342_v46, %v2455_v26  ;;  %v8358_v27 = vpop.f32.mrf.mxu1  ;;  %v8362_v18 = vpop.f32.mrf.mxu2 }
 0x437   : > { %3057 = vmatmul.f32.gmra.mxu0 %v2487_v15 }
 0x439   : > { %v8344_v26 = vpop.f32.mrf.mxu3 }
 0x43a   : > { %10345 = vst [vmem:[#allocation69_spill] sm:$0xff] %v8344_v26 }
 0x43e   : > { %v8400_v14 = vpop.f32.mrf.mxu1 }
 0x43f   : > { %4045 = vmatmul.f32.vlgmr.msra.gmra.mxu0 %v10190_v60 }
 0x441   : > { %v8365_v41 = vpop.f32.mrf.mxu3 }
 0x442   : > { %10348 = vst [vmem:[#allocation83_spill] sm:$0xff] %v8365_v41  ;;  %v3834_v41 = vld [vmem:[%s9893_s9 + $0x210] sm:$0xff] }
 0x443   : > { %v3398_v46 = vpop.permute.xlu2 %3397 }
 0x444   : > { %v8347_v15 = vsel %vm3447_vm4, %v738_v58, %v3398_v46  ;;  %v10350_v46 = vld [vmem:[#allocation82_spill] sm:$0xff] }
 0x445   : > { %v3558_v11 = vrot.slane %v8347_v15, 7  ;;  %v3685_v61 = vrot.slane %v8347_v15, 1 }
 0x447   : > { %4048 = vmatmul.f32.gmra.mxu0 %v10190_v60  ;;  %v8353_v0 = vsel %vm598_vm3, %v3556_v39, %v3558_v11  ;;  %v8356_v17 = vsel %vm2005_vm2, %v3683_v57, %v3685_v61  ;;  %v3860_v39 = vld [vmem:[%s9893_s9 + $0x2e0] sm:$0xff]  ;;  %v3835_v57 = vld [vmem:[%s9893_s9 + $0x218] sm:$0xff]  ;;  %v692_v60 = vadd.f32 %v8278_v36, %v10350_v46 }
 0x448   : > { %10346 = vst [vmem:[#allocation13_spill] sm:$0xff] %v8353_v0  ;;  %4007 = vmatmul.f32.gmra.mxu3 %v8353_v0  ;;  %4230 = vmatmul.f32.gmra.mxu1 %v8356_v17 }
 0x449   : > { %10347 = vst [vmem:[#allocation71_spill] sm:$0xff] %v8356_v17  ;;  %4340 = vmatmul.f32.gmra.mxu2 %v8353_v0  ;;  %4484 = vmatpush.msrb.mxu0 %v3860_v39  ;;  %v8374_v58 = vpop.f32.mrf.mxu3  ;;  %v3859_v39 = vld [vmem:[%s9893_s9 + $0x2d8] sm:$0xff] }
 0x44a   : > { %4380 = vmatpush.msra.mxu3 %v3835_v57  ;;  %10349 = vst [vmem:[#allocation74_spill] sm:$0xff] %v8374_v58  ;;  %v739_v57 = vmax.f32 %v692_v60, 0.0  ;;  %v10354_v60 = vld [vmem:[#allocation43_spill] sm:$0xff] }
 0x44b   : > { %4485 = vmatpush.msrb.mxu0 %v3859_v39  ;;  %vm10355_vm6 = vcmp.ge.s32.totalorder %v10354_v60, 0 }
 0x44c   : > { %4381 = vmatpush.msra.mxu3 %v3834_v41  ;;  %v695_v41 = vadd.f32 %v8278_v36, %v7124_v21  ;;  %vm10357_vm0 = vmmov %vm10355_vm6  ;;  %v3858_v21 = vld [vmem:[%s9893_s9 + $0x2d0] sm:$0xff] }
 0x44d   : > { %4486 = vmatpush.msrb.mxu0 %v3858_v21  ;;  %v3857_v21 = vld [vmem:[%s9893_s9 + $0x2c8] sm:$0xff] }
 0x44f   : > { %4051 = vmatmul.f32.gmra.mxu0 %v7668_v16 }
 0x450   : > { %4487 = vmatpush.msrb.mxu0 %v3857_v21 }
 0x451   : > { %v8380_v17 = vpop.f32.mrf.mxu3 }
 0x452   : > { %10351 = vst [vmem:[#allocation77_spill] sm:$0xff] %v8380_v17 }
 0x457   : > { %4054 = vmatmul.f32.gmra.mxu0 %v7665_v19 }
 0x45f   : > { %4057 = vmatmul.f32.gmra.mxu0 %v7743_v32 }
 0x463   : > { %v3400_v58 = vpop.permute.xlu1 %3399 }
 0x464   : > { %v8389_v26 = vsel %vm3447_vm4, %v739_v57, %v3400_v58  ;;  %v8410_v58 = vpop.f32.mrf.mxu2 }
 0x465   : > { %v3560_v46 = vrot.slane %v8389_v26, 7  ;;  %v3687_v42 = vrot.slane %v8389_v26, 1 }
 0x467   : > { %4060 = vmatmul.f32.gmra.mxu0 %v7775_v13  ;;  %v8395_v17 = vsel %vm598_vm3, %v3558_v11, %v3560_v46  ;;  %v8398_v0 = vsel %vm2005_vm2, %v3685_v61, %v3687_v42  ;;  %v8415_v61 = vpop.f32.mrf.mxu3  ;;  %v740_v11 = vmax.f32 %v695_v41, 0.0 }
 0x468   : > { %10352 = vst [vmem:[#allocation22_spill] sm:$0xff] %v8395_v17  ;;  %5480 = vmatmul.msk.f32.gmra.mxu3 %vm10355_vm6, %v8395_v17  ;;  %5494 = vmatmul.msk.f32.gmra.mxu1 %vm10356_vm11, %v8398_v0  ;;  %vm10374_vm6 = vcmp.lt.s32.totalorder %v7304_v1, 16  ;;  %v3879_v1 = vld [vmem:[%s9893_s9 + $0x378] sm:$0xff] }
 0x469   : > { %10353 = vst [vmem:[#allocation79_spill] sm:$0xff] %v8398_v0  ;;  %5510 = vmatmul.msk.f32.gmra.mxu2 %vm10357_vm0, %v8395_v17  ;;  %4594 = vmatpush.msrb.mxu1 %v3879_v1  ;;  %vm10389_vm0 = vcmp.ge.s32.totalorder %v10388_v53, 0 }
 0x46a   : > { %10358 = vst [vmem:[#allocation80_spill] sm:$0xff] %v8415_v61  ;;  %v8432_v61 = vpop.f32.mrf.mxu1 }
 0x46b   : > { %10361 = vst [vmem:[#allocation91_spill] sm:$0xff] %v8432_v61  ;;  %v10383_v61 = vld [vmem:[#allocation86_spill] sm:$0xff] }
 0x46e   : > { %v3402_v39 = vpop.permute.xlu2 %3401 }
 0x46f   : > { %v8418_v57 = vsel %vm3447_vm4, %v740_v11, %v3402_v39  ;;  %4063 = vmatmul.f32.gmra.mxu0 %v7792_v56  ;;  %v8436_v11 = vpop.f32.mrf.mxu2  ;;  %v8438_v39 = vpop.f32.mrf.mxu3 }
 0x470   : > { %v3562_v43 = vrot.slane %v8418_v57, 7  ;;  %v3689_v0 = vrot.slane %v8418_v57, 1  ;;  %10362 = vst [vmem:[#allocation92_spill] sm:$0xff] %v8436_v11  ;;  %v10390_v11 = vld [vmem:[#allocation15_spill] sm:$0xff] }
 0x471   : > { %10363 = vst [vmem:[#allocation93_spill] sm:$0xff] %v8438_v39  ;;  %v3832_v39 = vld [vmem:[%s9893_s9 + $0x200] sm:$0xff] }
 0x472   : > { %v8427_v60 = vsel %vm598_vm3, %v3560_v46, %v3562_v43  ;;  %v8430_v41 = vsel %vm2005_vm2, %v3687_v42, %v3689_v0  ;;  %v3833_v46 = vld [vmem:[%s9893_s9 + $0x208] sm:$0xff] }
 0x473   : > { %10359 = vst [vmem:[#allocation82_spill] sm:$0xff] %v8427_v60  ;;  %4013 = vmatmul.f32.gmra.mxu3 %v8427_v60  ;;  %4236 = vmatmul.f32.gmra.mxu1 %v8430_v41 }
 0x474   : > { %10360 = vst [vmem:[#allocation90_spill] sm:$0xff] %v8430_v41  ;;  %4346 = vmatmul.f32.gmra.mxu2 %v8427_v60  ;;  %4382 = vmatpush.msra.mxu3 %v3833_v46  ;;  %v698_v46 = vadd.f32 %v8278_v36, %v7142_v35  ;;  %v8459_v60 = vpop.f32.mrf.mxu1  ;;  %v10368_v35 = vld [vmem:[#allocation84_spill] sm:$0xff] }
 0x475   : > { %10366 = vst [vmem:[#allocation96_spill] sm:$0xff] %v8459_v60 }
 0x476   : > { %4383 = vmatpush.msra.mxu3 %v3832_v39 }
 0x477   : > { %4066 = vmatmul.f32.gmra.mxu0 %v7831_v28  ;;  %v8445_v42 = vpop.f32.mrf.mxu3  ;;  %v8461_v24 = vpop.f32.mrf.mxu2 }
 0x478   : > { %10364 = vst [vmem:[#allocation94_spill] sm:$0xff] %v8445_v42  ;;  %v741_v42 = vmax.f32 %v698_v46, 0.0  ;;  %v701_v46 = vadd.f32 %v8278_v36, %v10368_v35  ;;  %v10376_v35 = vld [vmem:[#allocation85_spill] sm:$0xff] }
 0x479   : > { %10367 = vst [vmem:[#allocation97_spill] sm:$0xff] %v8461_v24 }
 0x47f   : > { %4069 = vmatmul.f32.gmra.mxu0 %v7866_v62  ;;  %v8455_v41 = vpop.f32.mrf.mxu3 }
 0x480   : > { %10365 = vst [vmem:[#allocation95_spill] sm:$0xff] %v8455_v41  ;;  %v3856_v41 = vld [vmem:[%s9893_s9 + $0x2c0] sm:$0xff] }
 0x481   : > { %4488 = vmatpush.msrb.mxu0 %v3856_v41  ;;  %v742_v41 = vmax.f32 %v701_v46, 0.0 }
 0x487   : > { %4072 = vmatmul.f32.gmra.mxu0 %v7886_v34  ;;  %v8474_v60 = vpop.f32.mrf.mxu3 }
 0x488   : > { %10369 = vst [vmem:[#allocation84_spill] sm:$0xff] %v8474_v60  ;;  %v704_v60 = vadd.f32 %v8278_v36, %v10376_v35 }
 0x48e   : > { %v3404_v17 = vpop.permute.xlu0 %3403 }
 0x48f   : > { %v8464_v21 = vsel %vm3447_vm4, %v741_v42, %v3404_v17  ;;  %4075 = vmatmul.f32.gmra.mxu0 %v7921_v8  ;;  %v10372_v42 = vld [vmem:[#allocation49_spill] sm:$0xff]  ;;  %v8523_v1 = vpop.f32.mrf.mxu3 }
 0x490   : > { %v3564_v39 = vrot.slane %v8464_v21, 7  ;;  %v3691_v30 = vrot.slane %v8464_v21, 1  ;;  %vm10373_vm5 = vcmp.ge.s32.totalorder %v10372_v42, 0  ;;  %10381 = vst [vmem:[#allocation103_spill] sm:$0xff] %v8523_v1 }
 0x491   : > { %vm10375_vm11 = vmmov %vm10373_vm5 }
 0x492   : > { %v8477_v24 = vsel %vm598_vm3, %v3562_v43, %v3564_v39  ;;  %v8480_v17 = vsel %vm2005_vm2, %v3689_v0, %v3691_v30  ;;  %v3911_v43 = vld [vmem:[%s9893_s9 + $0x478] sm:$0xff] }
 0x493   : > { %10370 = vst [vmem:[#allocation98_spill] sm:$0xff] %v8477_v24  ;;  %5481 = vmatmul.msk.f32.gmra.mxu3 %vm10373_vm5, %v8477_v24  ;;  %5495 = vmatmul.msk.f32.gmra.mxu1 %vm10374_vm6, %v8480_v17  ;;  %vm10391_vm5 = vcmp.lt.s32.totalorder %v10390_v11, 16  ;;  %vm10392_vm6 = vmmov %vm10389_vm0  ;;  %v3878_v11 = vld [vmem:[%s9893_s9 + $0x370] sm:$0xff] }
 0x494   : > { %10371 = vst [vmem:[#allocation99_spill] sm:$0xff] %v8480_v17  ;;  %5511 = vmatmul.msk.f32.gmra.mxu2 %vm10375_vm11, %v8477_v24  ;;  %4820 = vmatpush.msrb.mxu3 %v3911_v43  ;;  %v8503_v17 = vpop.f32.mrf.mxu1  ;;  %v8510_v43 = vld [vmem:[%s9893_s9 + $0x3f8] sm:$0xff]  ;;  %vm10450_vm11 = vcmp.lt.s32.totalorder %v7414_v50, 16 }
 0x495   : > { %10377 = vst [vmem:[#allocation85_spill] sm:$0xff] %v8503_v17  ;;  %5565 = vmatpush.msrb.mxu2 %v8510_v43  ;;  %v743_v17 = vmax.f32 %v704_v60, 0.0  ;;  %4595 = vmatpush.msrb.mxu1 %v3878_v11 }
 0x496   : > { %v3406_v0 = vpop.permute.xlu1 %3405 }
 0x497   : > { %v8497_v31 = vsel %vm3447_vm4, %v742_v41, %v3406_v0  ;;  %4078 = vmatmul.f32.gmra.mxu0 %v7943_v40  ;;  %v8512_v41 = vpop.f32.mrf.mxu2  ;;  %v3408_v0 = vpop.permute.xlu2 %3407 }
 0x498   : > { %v3566_v42 = vrot.slane %v8497_v31, 7  ;;  %v3693_v46 = vrot.slane %v8497_v31, 1  ;;  %10378 = vst [vmem:[#allocation100_spill] sm:$0xff] %v8512_v41  ;;  %v8527_v41 = vsel %vm3447_vm4, %v743_v17, %v3408_v0 }
 0x499   : > { %10382 = vst [vmem:[#allocation104_spill] sm:$0xff] %v8527_v41  ;;  %v3695_v60 = vrot.slane %v8527_v41, 1 }
 0x49a   : > { %v8516_v35 = vsel %vm598_vm3, %v3564_v39, %v3566_v42  ;;  %v8519_v24 = vsel %vm2005_vm2, %v3691_v30, %v3693_v46  ;;  %v3855_v39 = vld [vmem:[%s9893_s9 + $0x2b8] sm:$0xff]  ;;  %v3568_v30 = vrot.slane %v8527_v41, 7 }
 0x49b   : > { %10379 = vst [vmem:[#allocation101_spill] sm:$0xff] %v8516_v35  ;;  %4019 = vmatmul.f32.gmra.mxu3 %v8516_v35  ;;  %4242 = vmatmul.f32.gmra.mxu1 %v8519_v24  ;;  %v8543_v17 = vsel %vm2005_vm2, %v3693_v46, %v3695_v60 }
 0x49c   : > { %10380 = vst [vmem:[#allocation102_spill] sm:$0xff] %v8519_v24  ;;  %4352 = vmatmul.f32.gmra.mxu2 %v8516_v35  ;;  %4489 = vmatpush.msrb.mxu0 %v3855_v39  ;;  %v707_v24 = vadd.f32 %v8278_v36, %v10383_v61  ;;  %v8537_v1 = vpop.f32.mrf.mxu1  ;;  %v8540_v35 = vsel %vm598_vm3, %v3566_v42, %v3568_v30  ;;  %v3910_v42 = vld [vmem:[%s9893_s9 + $0x470] sm:$0xff] }
 0x49d   : > { %10384 = vst [vmem:[#allocation86_spill] sm:$0xff] %v8537_v1  ;;  %4821 = vmatpush.msrb.mxu3 %v3910_v42  ;;  %v8560_v1 = vpop.f32.mrf.mxu3 }
 0x49e   : > { %10385 = vst [vmem:[#allocation105_spill] sm:$0xff] %v8540_v35  ;;  %v744_v39 = vmax.f32 %v707_v24, 0.0 }
 0x49f   : > { %4081 = vmatmul.f32.gmra.mxu0 %v7972_v37  ;;  %10386 = vst [vmem:[#allocation106_spill] sm:$0xff] %v8543_v17  ;;  %v8545_v0 = vpop.f32.mrf.mxu2 }
 0x4a0   : > { %10387 = vst [vmem:[#allocation107_spill] sm:$0xff] %v8545_v0 }
 0x4a1   : > { %10393 = vst [vmem:[#allocation108_spill] sm:$0xff] %v8560_v1 }
 0x4a3   : > { %5482 = vmatmul.msk.f32.gmra.mxu3 %vm10389_vm0, %v8540_v35  ;;  %5496 = vmatmul.msk.f32.gmra.mxu1 %vm10391_vm5, %v8543_v17  ;;  %v8570_v17 = vld [vmem:[%s9893_s9 + $0x3f0] sm:$0xff]  ;;  %vm10548_vm5 = vcmp.ge.s32.totalorder %v10315_v52, 0 }
 0x4a4   : > { %5512 = vmatmul.msk.f32.gmra.mxu2 %vm10392_vm6, %v8540_v35  ;;  %v3055_v61 = vpop.f32.mrf.mxu0  ;;  %v8589_v11 = vpop.f32.mrf.mxu1  ;;  %vm10552_vm6 = vcmp.ge.s32.totalorder %v10326_v51, 0 }
 0x4a5   : > { %v3056_v46 = vadd.f32 %v3055_v61, %v8082_v44  ;;  %5566 = vmatpush.msrb.mxu2 %v8570_v17  ;;  %10397 = vst [vmem:[#allocation112_spill] sm:$0xff] %v8589_v11 }
 0x4a6   : > { %v3410_v6 = vpop.permute.xlu0 %3409 }
 0x4a7   : > { %v3169_v0 = vadd.f32 %v8282_v9, %v3056_v46  ;;  %4084 = vmatmul.f32.gmra.mxu0 %v7994_v33  ;;  %v8573_v44 = vsel %vm3447_vm4, %v744_v39, %v3410_v6  ;;  %v8593_v39 = vpop.f32.mrf.mxu2 }
 0x4a8   : > { %10394 = vst [vmem:[#allocation109_spill] sm:$0xff] %v8573_v44  ;;  %v10087_v9 = vrot.slane %v8573_v44, 7  ;;  %v10088_v24 = vrot.slane %v8573_v44, 1 }
 0x4a9   : > { %v3282_v61 = vadd.f32 %v8318_v7, %v3169_v0  ;;  %10398 = vst [vmem:[#allocation113_spill] sm:$0xff] %v8593_v39  ;;  %v3854_v7 = vld [vmem:[%s9893_s9 + $0x2b0] sm:$0xff]  ;;  %v3909_v0 = vld [vmem:[%s9893_s9 + $0x468] sm:$0xff]  ;;  %v8834_v39 = vld [vmem:[%s9893_s9 + $0x3a0] sm:$0xff] }
 0x4aa   : > { %v8582_v42 = vsel %vm598_vm3, %v3568_v30, %v10087_v9  ;;  %v8587_v46 = vsel %vm2005_vm2, %v3695_v60, %v10088_v24  ;;  %v8601_v30 = vpop.f32.mrf.mxu3  ;;  %4490 = vmatpush.msrb.mxu0 %v3854_v7  ;;  %4822 = vmatpush.msrb.mxu3 %v3909_v0  ;;  %v3877_v9 = vld [vmem:[%s9893_s9 + $0x368] sm:$0xff] }
 0x4ab   : > { %10395 = vst [vmem:[#allocation110_spill] sm:$0xff] %v8582_v42  ;;  %v3317_v6 = vmax.f32 %v3282_v61, 0.0  ;;  %4025 = vmatmul.f32.gmra.mxu3 %v8582_v42  ;;  %4248 = vmatmul.f32.gmra.mxu1 %v8587_v46 }
 0x4ac   : > { %10396 = vst [vmem:[#allocation111_spill] sm:$0xff] %v8587_v46  ;;  %4358 = vmatmul.f32.gmra.mxu2 %v8582_v42  ;;  %4596 = vmatpush.msrb.mxu1 %v3877_v9  ;;  %v8625_v0 = vpop.f32.mrf.mxu1  ;;  %v3853_v9 = vld [vmem:[%s9893_s9 + $0x2a8] sm:$0xff] }
 0x4ad   : > { %3411 = vrot.lane.b32.xlu1 %v3317_v6, %s5757_s14  ;;  %10399 = vst [vmem:[#allocation114_spill] sm:$0xff] %v8601_v30  ;;  %4491 = vmatpush.msrb.mxu0 %v3853_v9  ;;  %v8651_v9 = vld [vmem:[%s9893_s9 + $0x3e0] sm:$0xff]  ;;  %v3907_v30 = vld [vmem:[%s9893_s9 + $0x458] sm:$0xff] }
 0x4ae   : > { %10401 = vst [vmem:[#allocation116_spill] sm:$0xff] %v8625_v0  ;;  %v8750_v0 = vld [vmem:[%s9893_s9 + $0x3c8] sm:$0xff] }
 0x4af   : > { %4087 = vmatmul.f32.gmra.mxu0 %v8017_v54 }
 0x4b3   : > { %4384 = vmatmul.f32.vlgmr.msra.gmra.mxu3 %v7668_v16  ;;  %v8616_v16 = vld [vmem:[%s9893_s9 + $0x3e8] sm:$0xff] }
 0x4b4   : > { %v3058_v60 = vpop.f32.mrf.mxu0  ;;  %5567 = vmatpush.msrb.mxu2 %v8616_v16 }
 0x4b5   : > { %v3059_v61 = vadd.f32 %v3058_v60, %v8107_v49  ;;  %v8620_v49 = vpop.f32.mrf.mxu3 }
 0x4b6   : > { %10400 = vst [vmem:[#allocation115_spill] sm:$0xff] %v8620_v49  ;;  %5568 = vmatpush.msrb.mxu2 %v8651_v9 }
 0x4b7   : > { %v3172_v6 = vadd.f32 %v8316_v5, %v3059_v61  ;;  %4090 = vmatmul.f32.gmra.mxu0 %v8044_v20  ;;  %v8632_v61 = vpop.f32.mrf.mxu2 }
 0x4b8   : > { %10402 = vst [vmem:[#allocation117_spill] sm:$0xff] %v8632_v61 }
 0x4b9   : > { %v3285_v7 = vadd.f32 %v8362_v18, %v3172_v6  ;;  %v3908_v6 = vld [vmem:[%s9893_s9 + $0x460] sm:$0xff] }
 0x4ba   : > { %4823 = vmatpush.msrb.mxu3 %v3908_v6 }
 0x4bb   : > { %v3318_v60 = vmax.f32 %v3285_v7, 0.0  ;;  %4387 = vmatmul.f32.gmra.mxu3 %v7665_v19  ;;  %v8642_v7 = vpop.f32.mrf.mxu1 }
 0x4bc   : > { %v8623_v5 = vpop.f32.mrf.mxu0  ;;  %10404 = vst [vmem:[#allocation119_spill] sm:$0xff] %v8642_v7  ;;  %4824 = vmatpush.msrb.mxu3 %v3907_v30  ;;  %v3850_v7 = vld [vmem:[%s9893_s9 + $0x290] sm:$0xff] }
 0x4bd   : > { %3413 = vrot.lane.b32.xlu2 %v3318_v60, %s5757_s14  ;;  %v8634_v18 = vpop.f32.mrf.mxu3  ;;  %v3876_v60 = vld [vmem:[%s9893_s9 + $0x360] sm:$0xff]  ;;  %s9857_s14 = scalar_lea.vmem %s9895_s11, %s5581_s22 }
 0x4be   : > { %10403 = vst [vmem:[#allocation118_spill] sm:$0xff] %v8634_v18  ;;  %4597 = vmatpush.msrb.mxu1 %v3876_v60 }
 0x4bf   : > { %4093 = vmatmul.f32.gmra.mxu0 %v8073_v2  ;;  %v8657_v6 = vpop.f32.mrf.mxu2 }
 0x4c0   : > { %10406 = vst [vmem:[#allocation121_spill] sm:$0xff] %v8657_v6 }
 0x4c3   : > { %4390 = vmatmul.f32.gmra.mxu3 %v7743_v32  ;;  %v3852_v32 = vld [vmem:[%s9893_s9 + $0x2a0] sm:$0xff]  ;;  %v8665_v49 = vpop.f32.mrf.mxu1 }
 0x4c4   : > { %v8637_v19 = vpop.f32.mrf.mxu0  ;;  %10408 = vst [vmem:[#allocation123_spill] sm:$0xff] %v8665_v49  ;;  %4492 = vmatpush.msrb.mxu0 %v3852_v32  ;;  %v8682_v32 = vld [vmem:[%s9893_s9 + $0x3d8] sm:$0xff] }
 0x4c5   : > { %v8659_v18 = vpop.f32.mrf.mxu3  ;;  %5569 = vmatpush.msrb.mxu2 %v8682_v32  ;;  %v3851_v49 = vld [vmem:[%s9893_s9 + $0x298] sm:$0xff] }
 0x4c6   : > { %10407 = vst [vmem:[#allocation122_spill] sm:$0xff] %v8659_v18  ;;  %v3875_v18 = vld [vmem:[%s9893_s9 + $0x358] sm:$0xff]  ;;  %4493 = vmatpush.msrb.mxu0 %v3851_v49  ;;  %v3874_v49 = vld [vmem:[%s9893_s9 + $0x350] sm:$0xff] }
 0x4c7   : > { %4096 = vmatmul.f32.gmra.mxu0 %v8098_v59  ;;  %v8673_v1 = vpop.f32.mrf.mxu2  ;;  %4598 = vmatpush.msrb.mxu1 %v3875_v18 }
 0x4c8   : > { %10410 = vst [vmem:[#allocation125_spill] sm:$0xff] %v8673_v1  ;;  %4494 = vmatpush.msrb.mxu0 %v3850_v7 }
 0x4c9   : > { %4599 = vmatpush.msrb.mxu1 %v3874_v49 }
 0x4cb   : > { %4393 = vmatmul.f32.gmra.mxu3 %v7775_v13  ;;  %v8687_v42 = vpop.f32.mrf.mxu1 }
 0x4cc   : > { %v8655_v24 = vpop.f32.mrf.mxu0  ;;  %10412 = vst [vmem:[#allocation127_spill] sm:$0xff] %v8687_v42 }
 0x4cd   : > { %10405 = vst [vmem:[#allocation120_spill] sm:$0xff] %v8655_v24  ;;  %v8684_v46 = vpop.f32.mrf.mxu3 }
 0x4ce   : > { %10411 = vst [vmem:[#allocation126_spill] sm:$0xff] %v8684_v46  ;;  %v3906_v46 = vld [vmem:[%s9893_s9 + $0x450] sm:$0xff] }
 0x4cf   : > { %4099 = vmatmul.f32.gmra.mxu0 %v8125_v12  ;;  %v8696_v53 = vpop.f32.mrf.mxu2  ;;  %4825 = vmatpush.msrb.mxu3 %v3906_v46 }
 0x4d0   : > { %10414 = vst [vmem:[#allocation129_spill] sm:$0xff] %v8696_v53 }
 0x4d3   : > { %4396 = vmatmul.f32.gmra.mxu3 %v7792_v56  ;;  %v8706_v42 = vpop.f32.mrf.mxu1 }
 0x4d4   : > { %v8668_v60 = vpop.f32.mrf.mxu0  ;;  %10417 = vst [vmem:[#allocation132_spill] sm:$0xff] %v8706_v42 }
 0x4d5   : > { %10409 = vst [vmem:[#allocation124_spill] sm:$0xff] %v8668_v60  ;;  %v8698_v35 = vpop.f32.mrf.mxu3 }
 0x4d6   : > { %10415 = vst [vmem:[#allocation130_spill] sm:$0xff] %v8698_v35  ;;  %v8715_v35 = vld [vmem:[%s9893_s9 + $0x3d0] sm:$0xff] }
 0x4d7   : > { %4102 = vmatmul.f32.gmra.mxu0 %v8148_v25  ;;  %5570 = vmatpush.msrb.mxu2 %v8715_v35  ;;  %v8718_v53 = vpop.f32.mrf.mxu2 }
 0x4d8   : > { %10418 = vst [vmem:[#allocation133_spill] sm:$0xff] %v8718_v53 }
 0x4d9   : > { %5571 = vmatpush.msrb.mxu2 %v8750_v0 }
 0x4db   : > { %4399 = vmatmul.f32.gmra.mxu3 %v7831_v28  ;;  %v8725_v42 = vpop.f32.mrf.mxu1 }
 0x4dc   : > { %v8690_v30 = vpop.f32.mrf.mxu0  ;;  %10421 = vst [vmem:[#allocation136_spill] sm:$0xff] %v8725_v42  ;;  %v3873_v42 = vld [vmem:[%s9893_s9 + $0x348] sm:$0xff] }
 0x4dd   : > { %10413 = vst [vmem:[#allocation128_spill] sm:$0xff] %v8690_v30  ;;  %v8720_v1 = vpop.f32.mrf.mxu3  ;;  %4600 = vmatpush.msrb.mxu1 %v3873_v42  ;;  %v3871_v42 = vld [vmem:[%s9893_s9 + $0x338] sm:$0xff]  ;;  %v8872_v30 = vld [vmem:[%s9893_s9 + $0x380] sm:$0xff] }
 0x4de   : > { %10419 = vst [vmem:[#allocation134_spill] sm:$0xff] %v8720_v1  ;;  %v3905_v1 = vld [vmem:[%s9893_s9 + $0x448] sm:$0xff] }
 0x4df   : > { %4105 = vmatmul.f32.gmra.mxu0 %v8166_v45  ;;  %4826 = vmatpush.msrb.mxu3 %v3905_v1  ;;  %v8737_v53 = vpop.f32.mrf.mxu2 }
 0x4e0   : > { %10423 = vst [vmem:[#allocation138_spill] sm:$0xff] %v8737_v53 }
 0x4e3   : > { %4402 = vmatmul.f32.gmra.mxu3 %v7866_v62  ;;  %v8745_v7 = vpop.f32.mrf.mxu1 }
 0x4e4   : > { %v8701_v18 = vpop.f32.mrf.mxu0  ;;  %10425 = vst [vmem:[#allocation140_spill] sm:$0xff] %v8745_v7  ;;  %v3870_v7 = vld [vmem:[%s9893_s9 + $0x330] sm:$0xff] }
 0x4e5   : > { %10416 = vst [vmem:[#allocation131_spill] sm:$0xff] %v8701_v18  ;;  %v8739_v6 = vpop.f32.mrf.mxu3 }
 0x4e6   : > { %10424 = vst [vmem:[#allocation139_spill] sm:$0xff] %v8739_v6  ;;  %v3872_v6 = vld [vmem:[%s9893_s9 + $0x340] sm:$0xff] }
 0x4e7   : > { %4108 = vmatmul.f32.gmra.mxu0 %v8212_v38  ;;  %4601 = vmatpush.msrb.mxu1 %v3872_v6  ;;  %v8768_v61 = vpop.f32.mrf.mxu2  ;;  %v3869_v6 = vld [vmem:[%s9893_s9 + $0x328] sm:$0xff] }
 0x4e8   : > { %10428 = vst [vmem:[#allocation143_spill] sm:$0xff] %v8768_v61  ;;  %v8787_v61 = vld [vmem:[%s9893_s9 + $0x3c0] sm:$0xff] }
 0x4e9   : > { %4602 = vmatpush.msrb.mxu1 %v3871_v42  ;;  %5572 = vmatpush.msrb.mxu2 %v8787_v61 }
 0x4eb   : > { %4405 = vmatmul.f32.gmra.mxu3 %v7886_v34  ;;  %4603 = vmatpush.msrb.mxu1 %v3870_v7  ;;  %v3868_v7 = vld [vmem:[%s9893_s9 + $0x320] sm:$0xff] }
 0x4ec   : > { %v8723_v46 = vpop.f32.mrf.mxu0 }
 0x4ed   : > { %10420 = vst [vmem:[#allocation135_spill] sm:$0xff] %v8723_v46  ;;  %v8759_v53 = vpop.f32.mrf.mxu3  ;;  %4604 = vmatpush.msrb.mxu1 %v3869_v6 }
 0x4ee   : > { %10427 = vst [vmem:[#allocation142_spill] sm:$0xff] %v8759_v53  ;;  %v3849_v53 = vld [vmem:[%s9893_s9 + $0x288] sm:$0xff] }
 0x4ef   : > { %4111 = vmatmul.f32.gmra.mxu0 %v8236_v23  ;;  %4605 = vmatpush.msrb.mxu1 %v3868_v7  ;;  %v3866_v7 = vld [vmem:[%s9893_s9 + $0x310] sm:$0xff] }
 0x4f0   : > { %4495 = vmatpush.msrb.mxu0 %v3849_v53  ;;  %v3904_v53 = vld [vmem:[%s9893_s9 + $0x440] sm:$0xff] }
 0x4f1   : > { %4827 = vmatpush.msrb.mxu3 %v3904_v53  ;;  %v8810_v53 = vld [vmem:[%s9893_s9 + $0x3b0] sm:$0xff] }
 0x4f3   : > { %4408 = vmatmul.f32.gmra.mxu3 %v7921_v8 }
 0x4f4   : > { %v8732_v49 = vpop.f32.mrf.mxu0 }
 0x4f5   : > { %10422 = vst [vmem:[#allocation137_spill] sm:$0xff] %v8732_v49  ;;  %v8793_v6 = vpop.f32.mrf.mxu3  ;;  %v8821_v49 = vpop.f32.mrf.mxu2 }
 0x4f6   : > { %10431 = vst [vmem:[#allocation146_spill] sm:$0xff] %v8793_v6  ;;  %v3865_v6 = vld [vmem:[%s9893_s9 + $0x308] sm:$0xff] }
 0x4f7   : > { %4114 = vmatmul.f32.gmra.mxu0 %v8262_v10  ;;  %10432 = vst [vmem:[#allocation147_spill] sm:$0xff] %v8821_v49 }
 0x4fb   : > { %4411 = vmatmul.f32.gmra.mxu3 %v7943_v40 }
 0x4fc   : > { %v8754_v1 = vpop.f32.mrf.mxu0 }
 0x4fd   : > { %10426 = vst [vmem:[#allocation141_spill] sm:$0xff] %v8754_v1  ;;  %v8776_v1 = vpop.f32.mrf.mxu1  ;;  %v8838_v49 = vpop.f32.mrf.mxu3 }
 0x4fe   : > { %10429 = vst [vmem:[#allocation144_spill] sm:$0xff] %v8776_v1  ;;  %v3867_v1 = vld [vmem:[%s9893_s9 + $0x318] sm:$0xff] }
 0x4ff   : > { %4117 = vmatmul.f32.gmra.mxu0 %v8300_v29  ;;  %4606 = vmatpush.msrb.mxu1 %v3867_v1  ;;  %v8819_v1 = vld [vmem:[%s9893_s9 + $0x3a8] sm:$0xff]  ;;  %10435 = vst [vmem:[#allocation150_spill] sm:$0xff] %v8838_v49 }
 0x500   : > { %v8859_v49 = vld [vmem:[%s9893_s9 + $0x388] sm:$0xff] }
 0x501   : > { %4607 = vmatpush.msrb.mxu1 %v3866_v7  ;;  %v3864_v7 = vld [vmem:[%s9893_s9 + $0x300] sm:$0xff] }
 0x503   : > { %4414 = vmatmul.f32.gmra.mxu3 %v7972_v37  ;;  %4608 = vmatpush.msrb.mxu1 %v3865_v6  ;;  %v8844_v6 = vld [vmem:[%s9893_s9 + $0x398] sm:$0xff] }
 0x504   : > { %v8779_v42 = vpop.f32.mrf.mxu0 }
 0x505   : > { %10430 = vst [vmem:[#allocation145_spill] sm:$0xff] %v8779_v42  ;;  %v8801_v42 = vld [vmem:[%s9893_s9 + $0x3b8] sm:$0xff]  ;;  %v8836_v46 = vpop.f32.mrf.mxu1  ;;  %4609 = vmatpush.msrb.mxu1 %v3864_v7  ;;  %v3848_v7 = vld [vmem:[%s9893_s9 + $0x280] sm:$0xff] }
 0x506   : > { %5573 = vmatpush.msrb.mxu2 %v8801_v42  ;;  %10434 = vst [vmem:[#allocation149_spill] sm:$0xff] %v8836_v46  ;;  %4496 = vmatpush.msrb.mxu0 %v3848_v7  ;;  %v8863_v46 = vpop.f32.mrf.mxu2  ;;  %v3903_v7 = vld [vmem:[%s9893_s9 + $0x438] sm:$0xff] }
 0x507   : > { %4120 = vmatmul.f32.gmra.mxu0 %v8347_v15  ;;  %10436 = vst [vmem:[#allocation151_spill] sm:$0xff] %v8863_v46  ;;  %4828 = vmatpush.msrb.mxu3 %v3903_v7 }
 0x508   : > { %5574 = vmatpush.msrb.mxu2 %v8810_v53  ;;  %4707 = vmatpush.msra.mxu0 %v8510_v43 }
 0x50a   : > { %5575 = vmatpush.msrb.mxu2 %v8819_v1  ;;  %4708 = vmatpush.msra.mxu0 %v8570_v17 }
 0x50b   : > { %4417 = vmatmul.f32.gmra.mxu3 %v7994_v33 }
 0x50c   : > { %v8825_v11 = vpop.f32.mrf.mxu0  ;;  %5576 = vmatpush.msrb.mxu2 %v8834_v39  ;;  %4709 = vmatpush.msra.mxu0 %v8616_v16 }
 0x50d   : > { %10433 = vst [vmem:[#allocation148_spill] sm:$0xff] %v8825_v11  ;;  %v8851_v11 = vld [vmem:[%s9893_s9 + $0x390] sm:$0xff]  ;;  %v8881_v46 = vpop.f32.mrf.mxu1 }
 0x50e   : > { %5577 = vmatpush.msrb.mxu2 %v8844_v6  ;;  %10439 = vst [vmem:[#allocation154_spill] sm:$0xff] %v8881_v46  ;;  %4710 = vmatpush.msra.mxu0 %v8651_v9  ;;  %v10443_v9 = vld [vmem:[#allocation88_spill] sm:$0xff] }
 0x50f   : > { %4123 = vmatmul.f32.gmra.mxu0 %v8389_v26 }
 0x510   : > { %5578 = vmatpush.msrb.mxu2 %v8851_v11  ;;  %4711 = vmatpush.msra.mxu0 %v8682_v32 }
 0x512   : > { %5579 = vmatpush.msrb.mxu2 %v8859_v49  ;;  %4712 = vmatpush.msra.mxu0 %v8715_v35  ;;  %v10445_v35 = vrot.slane %v8573_v44, 1 }
 0x513   : > { %4420 = vmatmul.f32.gmra.mxu3 %v8017_v54 }
 0x514   : > { %v8866_v18 = vpop.f32.mrf.mxu0  ;;  %5580 = vmatpush.msrb.mxu2 %v8872_v30  ;;  %4713 = vmatpush.msra.mxu0 %v8750_v0  ;;  %v10447_v0 = vrot.slane %v8573_v44, 7 }
 0x515   : > { %10437 = vst [vmem:[#allocation152_spill] sm:$0xff] %v8866_v18  ;;  %v10440_v18 = vld [vmem:[#allocation87_spill] sm:$0xff] }
 0x516   : > { %v8878_v43 = vpop.f32.mrf.mxu3  ;;  %v710_v60 = vadd.f32 %v8278_v36, %v10440_v18  ;;  %v713_v18 = vadd.f32 %v8278_v36, %v10443_v9  ;;  %4714 = vmatpush.msra.mxu0 %v8787_v61  ;;  %v3902_v61 = vld [vmem:[%s9893_s9 + $0x430] sm:$0xff] }
 0x517   : > { %10438 = vst [vmem:[#allocation153_spill] sm:$0xff] %v8878_v43  ;;  %4126 = vmatmul.f32.gmra.mxu0 %v8418_v57  ;;  %v8892_v43 = vpop.f32.mrf.mxu2  ;;  %v3414_v36 = vpop.permute.xlu2 %3413  ;;  %4829 = vmatpush.msrb.mxu3 %v3902_v61 }
 0x518   : > { %v745_v17 = vmax.f32 %v710_v60, 0.0  ;;  %10442 = vst [vmem:[#allocation155_spill] sm:$0xff] %v8892_v43  ;;  %4715 = vmatpush.msra.mxu0 %v8801_v42 }
 0x51a   : > { %4716 = vmatpush.msra.mxu0 %v8810_v53 }
 0x51b   : > { %4423 = vmatmul.f32.gmra.mxu3 %v8044_v20 }
 0x51c   : > { %v8889_v7 = vpop.f32.mrf.mxu0  ;;  %4717 = vmatpush.msra.mxu0 %v8819_v1 }
 0x51d   : > { %10441 = vst [vmem:[#allocation87_spill] sm:$0xff] %v8889_v7  ;;  %v8904_v7 = vpop.f32.mrf.mxu1 }
 0x51e   : > { %v8894_v24 = vpop.f32.mrf.mxu3  ;;  %10444 = vst [vmem:[#allocation88_spill] sm:$0xff] %v8904_v7  ;;  %4718 = vmatpush.msra.mxu0 %v8834_v39  ;;  %v3901_v39 = vld [vmem:[%s9893_s9 + $0x428] sm:$0xff] }
 0x51f   : > { %v3412_v46 = vpop.permute.xlu1 %3411  ;;  %4129 = vmatmul.f32.gmra.mxu0 %v8464_v21  ;;  %v8940_v43 = vpop.f32.mrf.mxu2  ;;  %4830 = vmatpush.msrb.mxu3 %v3901_v39  ;;  %v10470_v39 = vld [vmem:[#allocation36_spill] sm:$0xff] }
 0x520   : > { %v8899_v16 = vsel %vm3447_vm4, %v745_v17, %v3412_v46  ;;  %10453 = vst [vmem:[#allocation159_spill] sm:$0xff] %v8940_v43  ;;  %4719 = vmatpush.msra.mxu0 %v8844_v6  ;;  %v10500_v43 = vld [vmem:[#allocation8_spill] sm:$0xff] }
 0x521   : > { %v3572_v60 = vrot.slane %v8899_v16, 7  ;;  %v10095_v32 = vrot.slane %v8899_v16, 1 }
 0x522   : > { %4720 = vmatpush.msra.mxu0 %v8851_v11 }
 0x523   : > { %v8914_v46 = vsel %vm2005_vm2, %v10445_v35, %v10095_v32  ;;  %v8919_v17 = vsel %vm598_vm3, %v10447_v0, %v3572_v60  ;;  %4426 = vmatmul.f32.gmra.mxu3 %v8073_v2  ;;  %v746_v35 = vmax.f32 %v713_v18, 0.0  ;;  %v10451_v32 = vld [vmem:[#allocation75_spill] sm:$0xff]  ;;  %v8946_v18 = vld [vmem:[%s9894_s10] ss:$0 sm:$0xff] }
 0x524   : > { %10446 = vst [vmem:[#allocation156_spill] sm:$0xff] %v8914_v46  ;;  %v8922_v9 = vpop.f32.mrf.mxu0  ;;  %5497 = vmatmul.msk.f32.gmra.mxu1 %vm10450_vm11, %v8914_v46  ;;  %vm10452_vm0 = vcmp.ge.s32.totalorder %v10451_v32, 0  ;;  %v3934_v42 = vadd.f32 %v8946_v18, %v8171_v63  ;;  %4721 = vmatpush.msra.mxu0 %v8859_v49 }
 0x525   : > { %10448 = vst [vmem:[#allocation157_spill] sm:$0xff] %v8919_v17  ;;  %5513 = vmatmul.msk.f32.gmra.mxu2 %vm10452_vm0, %v8919_v17  ;;  %v8937_v7 = vsel %vm3447_vm4, %v746_v35, %v3414_v36  ;;  %v8950_v50 = vpop.f32.mrf.mxu1  ;;  %v10540_v17 = vld [vmem:[#allocation40_spill] sm:$0xff] }
 0x526   : > { %10449 = vst [vmem:[#allocation158_spill] sm:$0xff] %v8922_v9  ;;  %v8933_v0 = vpop.f32.mrf.mxu3  ;;  %v3574_v61 = vrot.slane %v8937_v7, 7  ;;  %v4047_v1 = vadd.f32 %v8623_v5, %v3934_v42  ;;  %4722 = vmatpush.msra.mxu0 %v8872_v30  ;;  %v10528_v9 = vld [vmem:[#allocation11_spill] sm:$0xff] }
 0x527   : > { %4132 = vmatmul.f32.gmra.mxu0 %v8497_v31  ;;  %10454 = vst [vmem:[#allocation160_spill] sm:$0xff] %v8950_v50  ;;  %v8970_v63 = vpop.f32.mrf.mxu2 }
 0x528   : > { %v8958_v53 = vsel %vm598_vm3, %v3572_v60, %v3574_v61  ;;  %10458 = vst [vmem:[#allocation4_spill] sm:$0xff] %v8970_v63  ;;  %v4160_v60 = vadd.f32 %v8358_v27, %v4047_v1  ;;  %v10460_v61 = vld [vmem:[#allocation25_spill] sm:$0xff]  ;;  %vm10501_vm3 = vcmp.ge.s32.totalorder %v10500_v43, 0  ;;  %v3897_v43 = vld [vmem:[%s9893_s9 + $0x408] sm:$0xff] }
 0x529   : > { %10456 = vst [vmem:[#allocation162_spill] sm:$0xff] %v8958_v53  ;;  %v10464_v1 = vld [vmem:[#allocation73_spill] sm:$0xff] }
 0x52a   : > { %v4273_v6 = vadd.f32 %v8410_v58, %v4160_v60  ;;  %v10467_v60 = vld [vmem:[#allocation19_spill] sm:$0xff] }
 0x52b   : > { %4429 = vmatmul.f32.gmra.mxu3 %v8098_v59 }
 0x52c   : > { %v8955_v36 = vpop.f32.mrf.mxu0  ;;  %5530 = vmatmul.msk.f32.vlgmr.msrb.gmra.mxu1 %vm1493_vm7, %v7762_v3 }
 0x52d   : > { %10455 = vst [vmem:[#allocation161_spill] sm:$0xff] %v8955_v36  ;;  %4364 = vmatmul.f32.gmra.mxu2 %v8958_v53  ;;  %v8981_v5 = vpop.f32.mrf.mxu1  ;;  %v10523_v36 = vld [vmem:[#allocation35_spill] sm:$0xff]  ;;  %v10531_v53 = vld [vmem:[#allocation58_spill] sm:$0xff] }
 0x52e   : > { %v8966_v50 = vpop.f32.mrf.mxu3  ;;  %10461 = vst [vmem:[#allocation25_spill] sm:$0xff] %v8981_v5 }
 0x52f   : > { %4135 = vmatmul.f32.gmra.mxu0 %v8527_v41  ;;  %v8990_v42 = vpop.f32.mrf.mxu2 }
 0x530   : > { %10462 = vst [vmem:[#allocation164_spill] sm:$0xff] %v8990_v42  ;;  %v10487_v42 = vld [vmem:[#allocation47_spill] sm:$0xff] }
 0x533   : > { %4432 = vmatmul.f32.gmra.mxu3 %v8125_v12 }
 0x534   : > { %v8975_v3 = vpop.f32.mrf.mxu0  ;;  %4613 = vmatmul.f32.gmra.mxu1 %v10460_v61 }
 0x535   : > { %10459 = vst [vmem:[#allocation163_spill] sm:$0xff] %v8975_v3  ;;  %4726 = vmatmul.f32.vlgmr.msrb.gmra.mxu2 %v7775_v13  ;;  %v8998_v58 = vpop.f32.mrf.mxu1  ;;  %v10481_v13 = vld [vmem:[#allocation21_spill] sm:$0xff] }
 0x536   : > { %v4385_v27 = vpop.f32.mrf.mxu3  ;;  %10466 = vst [vmem:[#allocation73_spill] sm:$0xff] %v8998_v58  ;;  %v3899_v58 = vld [vmem:[%s9893_s9 + $0x418] sm:$0xff] }
 0x537   : > { %4138 = vmatmul.f32.gmra.mxu0 %v8573_v44  ;;  %v8987_v11 = vadd.f32 %v4385_v27, %v4273_v6  ;;  %v9004_v61 = vpop.f32.mrf.mxu2  ;;  %v3900_v6 = vld [vmem:[%s9893_s9 + $0x420] sm:$0xff]  ;;  %v10513_v3 = vld [vmem:[#allocation9_spill] sm:$0xff] }
 0x538   : > { %10468 = vst [vmem:[#allocation5_spill] sm:$0xff] %v9004_v61  ;;  %4831 = vmatpush.msrb.mxu3 %v3900_v6  ;;  %vm10514_vm7 = vcmp.ge.s32.totalorder %v10513_v3, 0 }
 0x53a   : > { %4832 = vmatpush.msrb.mxu3 %v3899_v58  ;;  %v10489_v58 = vld [vmem:[#allocation33_spill] sm:$0xff] }
 0x53b   : > { %4435 = vmatmul.f32.gmra.mxu3 %v8148_v25 }
 0x53c   : > { %v8993_v35 = vpop.f32.mrf.mxu0  ;;  %5531 = vmatmul.msk.f32.gmra.mxu1 %vm1495_vm8, %v10464_v1  ;;  %v10472_v1 = vld [vmem:[#allocation23_spill] sm:$0xff]  ;;  %vm10524_vm8 = vcmp.lt.s32.totalorder %v10523_v36, 16 }
 0x53d   : > { %10463 = vst [vmem:[#allocation165_spill] sm:$0xff] %v8993_v35  ;;  %4729 = vmatmul.f32.gmra.mxu2 %v7792_v56  ;;  %v9014_v56 = vpop.f32.mrf.mxu1 }
 0x53e   : > { %v9001_v49 = vpop.f32.mrf.mxu3  ;;  %10471 = vst [vmem:[#allocation36_spill] sm:$0xff] %v9014_v56  ;;  %v10478_v56 = vld [vmem:[#allocation20_spill] sm:$0xff] }
 0x53f   : > { %4497 = vmatmul.f32.vlgmr.msrb.gmra.mxu0 %v10467_v60 }
 0x543   : > { %4438 = vmatmul.f32.gmra.mxu3 %v8166_v45 }
 0x544   : > { %v9007_v30 = vpop.f32.mrf.mxu0  ;;  %4619 = vmatmul.f32.gmra.mxu1 %v10470_v39  ;;  %v10475_v39 = vld [vmem:[#allocation42_spill] sm:$0xff] }
 0x545   : > { %10469 = vst [vmem:[#allocation19_spill] sm:$0xff] %v9007_v30  ;;  %4732 = vmatmul.f32.gmra.mxu2 %v7831_v28  ;;  %v9028_v28 = vpop.f32.mrf.mxu2  ;;  %v9033_v61 = vpop.f32.mrf.mxu1 }
 0x546   : > { %v9016_v27 = vpop.f32.mrf.mxu3  ;;  %10477 = vst [vmem:[#allocation10_spill] sm:$0xff] %v9028_v28 }
 0x547   : > { %5514 = vmatmul.msk.f32.gmra.mxu0 %vm1878_vm13, %v10472_v1  ;;  %10479 = vst [vmem:[#allocation42_spill] sm:$0xff] %v9033_v61 }
 0x54b   : > { %4441 = vmatmul.f32.gmra.mxu3 %v8212_v38 }
 0x54c   : > { %v9022_v60 = vpop.f32.mrf.mxu0  ;;  %5532 = vmatmul.msk.f32.gmra.mxu1 %vm1497_vm9, %v10475_v39  ;;  %v10482_v39 = vld [vmem:[#allocation28_spill] sm:$0xff]  ;;  %vm10529_vm9 = vcmp.ge.s32.totalorder %v10528_v9, 0  ;;  %v10536_v9 = vld [vmem:[#allocation63_spill] sm:$0xff] }
 0x54d   : > { %10474 = vst [vmem:[#allocation23_spill] sm:$0xff] %v9022_v60  ;;  %4735 = vmatmul.f32.gmra.mxu2 %v7866_v62  ;;  %v9048_v61 = vpop.f32.mrf.mxu2  ;;  %v9050_v5 = vpop.f32.mrf.mxu1 }
 0x54e   : > { %v9030_v6 = vpop.f32.mrf.mxu3  ;;  %10484 = vst [vmem:[#allocation20_spill] sm:$0xff] %v9048_v61  ;;  %v10493_v61 = vld [vmem:[#allocation50_spill] sm:$0xff] }
 0x54f   : > { %4503 = vmatmul.f32.gmra.mxu0 %v10478_v56  ;;  %10485 = vst [vmem:[#allocation21_spill] sm:$0xff] %v9050_v5 }
 0x553   : > { %4444 = vmatmul.f32.gmra.mxu3 %v8236_v23 }
 0x554   : > { %v9036_v1 = vpop.f32.mrf.mxu0  ;;  %4625 = vmatmul.f32.gmra.mxu1 %v10481_v13 }
 0x555   : > { %10480 = vst [vmem:[#allocation6_spill] sm:$0xff] %v9036_v1  ;;  %4738 = vmatmul.f32.gmra.mxu2 %v7886_v34  ;;  %v9062_v63 = vpop.f32.mrf.mxu2  ;;  %v9064_v60 = vpop.f32.mrf.mxu1  ;;  %v10494_v1 = vld [vmem:[#allocation39_spill] sm:$0xff] }
 0x556   : > { %v9043_v62 = vpop.f32.mrf.mxu3  ;;  %10490 = vst [vmem:[#allocation27_spill] sm:$0xff] %v9062_v63 }
 0x557   : > { %5515 = vmatmul.msk.f32.gmra.mxu0 %vm1880_vm15, %v10482_v39  ;;  %10491 = vst [vmem:[#allocation47_spill] sm:$0xff] %v9064_v60 }
 0x55b   : > { %4447 = vmatmul.f32.gmra.mxu3 %v8262_v10 }
 0x55c   : > { %v9053_v13 = vpop.f32.mrf.mxu0  ;;  %5533 = vmatmul.msk.f32.gmra.mxu1 %vm1499_vm10, %v10487_v42  ;;  %v3898_v42 = vld [vmem:[%s9893_s9 + $0x410] sm:$0xff] }
 0x55d   : > { %10486 = vst [vmem:[#allocation28_spill] sm:$0xff] %v9053_v13  ;;  %4741 = vmatmul.f32.gmra.mxu2 %v7921_v8  ;;  %4833 = vmatpush.msrb.mxu3 %v3898_v42  ;;  %v9079_v60 = vpop.f32.mrf.mxu2  ;;  %v9081_v63 = vpop.f32.mrf.mxu1  ;;  %v10502_v42 = vld [vmem:[#allocation45_spill] sm:$0xff] }
 0x55e   : > { %v9059_v34 = vpop.f32.mrf.mxu3  ;;  %10496 = vst [vmem:[#allocation33_spill] sm:$0xff] %v9079_v60  ;;  %v10506_v60 = vld [vmem:[#allocation61_spill] sm:$0xff] }
 0x55f   : > { %4509 = vmatmul.f32.gmra.mxu0 %v10489_v58  ;;  %10497 = vst [vmem:[#allocation50_spill] sm:$0xff] %v9081_v63  ;;  %4834 = vmatpush.msrb.mxu3 %v3897_v43  ;;  %v10516_v43 = vld [vmem:[#allocation3_spill] sm:$0xff] }
 0x563   : > { %4450 = vmatmul.f32.gmra.mxu3 %v8300_v29 }
 0x564   : > { %v9067_v5 = vpop.f32.mrf.mxu0  ;;  %4631 = vmatmul.f32.gmra.mxu1 %v10493_v61 }
 0x565   : > { %10492 = vst [vmem:[#allocation7_spill] sm:$0xff] %v9067_v5  ;;  %4744 = vmatmul.f32.gmra.mxu2 %v7943_v40  ;;  %v10499_v5 = vld [vmem:[#allocation53_spill] sm:$0xff]  ;;  %v9093_v30 = vpop.f32.mrf.mxu2  ;;  %v9095_v35 = vpop.f32.mrf.mxu1 }
 0x566   : > { %v9074_v8 = vpop.f32.mrf.mxu3  ;;  %10503 = vst [vmem:[#allocation29_spill] sm:$0xff] %v9093_v30 }
 0x567   : > { %5516 = vmatmul.msk.f32.gmra.mxu0 %vm1882_vm1, %v10494_v1  ;;  %10504 = vst [vmem:[#allocation53_spill] sm:$0xff] %v9095_v35 }
 0x56b   : > { %4453 = vmatmul.f32.gmra.mxu3 %v8347_v15 }
 0x56c   : > { %v9084_v61 = vpop.f32.mrf.mxu0  ;;  %5534 = vmatmul.msk.f32.gmra.mxu1 %vm10501_vm3, %v10499_v5  ;;  %v10507_v5 = vld [vmem:[#allocation17_spill] sm:$0xff]  ;;  %vm10599_vm3 = vmmov %vm10524_vm8 }
 0x56d   : > { %10498 = vst [vmem:[#allocation39_spill] sm:$0xff] %v9084_v61  ;;  %4747 = vmatmul.f32.gmra.mxu2 %v7972_v37  ;;  %v9110_v35 = vpop.f32.mrf.mxu2  ;;  %v9112_v30 = vpop.f32.mrf.mxu1 }
 0x56e   : > { %v9090_v40 = vpop.f32.mrf.mxu3  ;;  %10509 = vst [vmem:[#allocation45_spill] sm:$0xff] %v9110_v35 }
 0x56f   : > { %4515 = vmatmul.f32.gmra.mxu0 %v10502_v42  ;;  %10510 = vst [vmem:[#allocation61_spill] sm:$0xff] %v9112_v30  ;;  %v10519_v30 = vld [vmem:[#allocation26_spill] sm:$0xff] }
 0x573   : > { %4456 = vmatmul.f32.gmra.mxu3 %v8389_v26 }
 0x574   : > { %v9098_v63 = vpop.f32.mrf.mxu0  ;;  %4637 = vmatmul.f32.gmra.mxu1 %v10506_v60 }
 0x575   : > { %10505 = vst [vmem:[#allocation8_spill] sm:$0xff] %v9098_v63  ;;  %4750 = vmatmul.f32.gmra.mxu2 %v7994_v33  ;;  %v10512_v63 = vld [vmem:[#allocation24_spill] sm:$0xff]  ;;  %v9124_v46 = vpop.f32.mrf.mxu2  ;;  %v9133_v3 = vpop.f32.mrf.mxu1 }
 0x576   : > { %v9105_v37 = vpop.f32.mrf.mxu3  ;;  %10517 = vst [vmem:[#allocation24_spill] sm:$0xff] %v9124_v46 }
 0x577   : > { %5517 = vmatmul.msk.f32.gmra.mxu0 %vm1884_vm14, %v10507_v5  ;;  %10520 = vst [vmem:[#allocation3_spill] sm:$0xff] %v9133_v3 }
 0x57b   : > { %4459 = vmatmul.f32.gmra.mxu3 %v8418_v57 }
 0x57c   : > { %v9115_v60 = vpop.f32.mrf.mxu0  ;;  %5535 = vmatmul.msk.f32.gmra.mxu1 %vm10514_vm7, %v10512_v63  ;;  %v10522_v63 = vld [vmem:[#allocation2_spill] sm:$0xff] }
 0x57d   : > { %10511 = vst [vmem:[#allocation17_spill] sm:$0xff] %v9115_v60  ;;  %4753 = vmatmul.f32.gmra.mxu2 %v8017_v54  ;;  %v3896_v60 = vld [vmem:[%s9893_s9 + $0x400] sm:$0xff]  ;;  %v9141_v46 = vpop.f32.mrf.mxu2 }
 0x57e   : > { %v9121_v33 = vpop.f32.mrf.mxu3  ;;  %4835 = vmatpush.msrb.mxu3 %v3896_v60  ;;  %10525 = vst [vmem:[#allocation2_spill] sm:$0xff] %v9141_v46  ;;  %v10533_v46 = vld [vmem:[#allocation70_spill] sm:$0xff] }
 0x57f   : > { %10515 = vst [vmem:[#allocation32_spill] sm:$0xff] %v9121_v33  ;;  %4521 = vmatmul.f32.gmra.mxu0 %v10516_v43 }
 0x583   : > { %4462 = vmatmul.f32.gmra.mxu3 %v8464_v21 }
 0x584   : > { %v9127_v35 = vpop.f32.mrf.mxu0  ;;  %4643 = vmatmul.f32.gmra.mxu1 %v10519_v30 }
 0x585   : > { %10518 = vst [vmem:[#allocation9_spill] sm:$0xff] %v9127_v35  ;;  %4756 = vmatmul.f32.gmra.mxu2 %v8044_v20  ;;  %v10527_v35 = vld [vmem:[#allocation34_spill] sm:$0xff]  ;;  %v4246_v20 = vpop.f32.mrf.mxu1 }
 0x586   : > { %v9136_v54 = vpop.f32.mrf.mxu3 }
 0x587   : > { %10521 = vst [vmem:[#allocation26_spill] sm:$0xff] %v9136_v54  ;;  %5518 = vmatmul.msk.f32.gmra.mxu0 %vm10524_vm8, %v10522_v63  ;;  %v10541_v54 = vld [vmem:[#allocation12_spill] sm:$0xff] }
 0x588   : > { %vm10542_vm13 = vcmp.ge.s32.totalorder %v10541_v54, 0  ;;  %v10545_v54 = vld [vmem:[#allocation30_spill] sm:$0xff] }
 0x58b   : > { %4465 = vmatmul.f32.gmra.mxu3 %v8497_v31 }
 0x58c   : > { %v9144_v30 = vpop.f32.mrf.mxu0  ;;  %5536 = vmatmul.msk.f32.gmra.mxu1 %vm10529_vm9, %v10527_v35  ;;  %v10537_v35 = vld [vmem:[#allocation38_spill] sm:$0xff] }
 0x58d   : > { %10526 = vst [vmem:[#allocation35_spill] sm:$0xff] %v9144_v30  ;;  %4759 = vmatmul.f32.gmra.mxu2 %v8073_v2  ;;  %v9158_v30 = vpop.f32.mrf.mxu2  ;;  %vm10538_vm10 = vcmp.lt.s32.totalorder %v10537_v35, 16  ;;  %v4249_v2 = vpop.f32.mrf.mxu1  ;;  %v4976_v35 = vld [vmem:[%s9198_s20 + $0x58] sm:$0xff] }
 0x58e   : > { %v9150_v60 = vpop.f32.mrf.mxu3  ;;  %10534 = vst [vmem:[#allocation58_spill] sm:$0xff] %v9158_v30  ;;  %v4021_v30 = vadd.f32 %v8946_v18, %v8894_v24  ;;  %v4024_v24 = vadd.f32 %v8946_v18, %v8933_v0  ;;  %v10549_v0 = vld [vmem:[#allocation67_spill] sm:$0xff]  ;;  %vm10616_vm9 = vmmov %vm10538_vm10 }
 0x58f   : > { %10530 = vst [vmem:[#allocation34_spill] sm:$0xff] %v9150_v60  ;;  %4527 = vmatmul.f32.gmra.mxu0 %v10531_v53 }
 0x593   : > { %4468 = vmatmul.f32.gmra.mxu3 %v8527_v41 }
 0x594   : > { %v9154_v3 = vpop.f32.mrf.mxu0  ;;  %4649 = vmatmul.f32.gmra.mxu1 %v10533_v46  ;;  %v10544_v46 = vld [vmem:[#allocation65_spill] sm:$0xff] }
 0x595   : > { %10532 = vst [vmem:[#allocation11_spill] sm:$0xff] %v9154_v3  ;;  %4762 = vmatmul.f32.gmra.mxu2 %v8098_v59  ;;  %v4359_v3 = vpop.f32.mrf.mxu2 }
 0x596   : > { %v9160_v32 = vpop.f32.mrf.mxu3 }
 0x597   : > { %10535 = vst [vmem:[#allocation70_spill] sm:$0xff] %v9160_v32  ;;  %5519 = vmatmul.msk.f32.gmra.mxu0 %vm10538_vm10, %v10536_v9 }
 0x59b   : > { %4471 = vmatmul.f32.gmra.mxu3 %v8573_v44 }
 0x59c   : > { %v9166_v60 = vpop.f32.mrf.mxu0  ;;  %5537 = vmatmul.msk.f32.gmra.mxu1 %vm10542_vm13, %v10540_v17 }
 0x59d   : > { %10539 = vst [vmem:[#allocation63_spill] sm:$0xff] %v9166_v60  ;;  %4765 = vmatmul.f32.gmra.mxu2 %v8125_v12 }
 0x59e   : > { %v9172_v59 = vpop.f32.mrf.mxu3 }
 0x59f   : > { %10543 = vst [vmem:[#allocation38_spill] sm:$0xff] %v9172_v59  ;;  %4533 = vmatmul.f32.gmra.mxu0 %v10544_v46  ;;  %v10546_v59 = vld [vmem:[#allocation41_spill] sm:$0xff] }
 0x5a0   : > { %vm10547_vm4 = vcmp.lt.s32.totalorder %v10546_v59, 16  ;;  %v10649_v59 = vld [vmem:[#allocation102_spill] sm:$0xff] }
 0x5a1   : > { %v4252_v32 = vpop.f32.mrf.mxu1 }
 0x5a3   : > { %4474 = vmatmul.f32.gmra.mxu3 %v8899_v16 }
 0x5a4   : > { %v4133_v44 = vpop.f32.mrf.mxu0  ;;  %4655 = vmatmul.f32.gmra.mxu1 %v8158_v22 }
 0x5a5   : > { %v4134_v60 = vadd.f32 %v4133_v44, %v4021_v30  ;;  %4768 = vmatmul.f32.gmra.mxu2 %v8148_v25 }
 0x5a6   : > { %v9180_v12 = vpop.f32.mrf.mxu3 }
 0x5a7   : > { %v4247_v17 = vadd.f32 %v4246_v20, %v4134_v60  ;;  %5520 = vmatmul.msk.f32.gmra.mxu0 %vm10547_vm4, %v10545_v54  ;;  %v4966_v20 = vld [vmem:[%s9198_s20 + $0x8] sm:$0xff]  ;;  %v4027_v60 = vadd.f32 %v8946_v18, %v8966_v50  ;;  %v4965_v50 = vld [vmem:[%s9198_s20] sm:$0xff] }
 0x5a8   : > { %v4362_v46 = vpop.f32.mrf.mxu2  ;;  %5031 = vrot.lane.b32.xlu1 %v4966_v20, %s5758_s21  ;;  %5029 = vrot.lane.b32.xlu0 %v4965_v50, %s5758_s21  ;;  %v10558_v50 = vld [vmem:[#allocation59_spill] sm:$0xff] }
 0x5a9   : > { %v4611_v33 = vpop.f32.mrf.mxu1  ;;  %v9185_v41 = vadd.f32 %v4359_v3, %v4247_v17  ;;  %v3937_v17 = vadd.f32 %v8946_v18, %v8198_v55 }
 0x5ab   : > { %4477 = vmatmul.f32.gmra.mxu3 %v8937_v7 }
 0x5ac   : > { %v4136_v22 = vpop.f32.mrf.mxu0  ;;  %5538 = vmatmul.msk.f32.gmra.mxu1 %vm10548_vm5, %v8184_v47 }
 0x5ad   : > { %v4137_v25 = vadd.f32 %v4136_v22, %v4024_v24  ;;  %4771 = vmatmul.f32.gmra.mxu2 %v8166_v45 }
 0x5ae   : > { %v9201_v3 = vpop.f32.mrf.mxu3 }
 0x5af   : > { %v4250_v44 = vadd.f32 %v4249_v2, %v4137_v25  ;;  %4539 = vmatmul.f32.gmra.mxu0 %v10549_v0  ;;  %v10550_v25 = vld [vmem:[#allocation37_spill] sm:$0xff] }
 0x5b0   : > { %v4365_v30 = vpop.f32.mrf.mxu2 }
 0x5b1   : > { %v4614_v52 = vpop.f32.mrf.mxu1  ;;  %v9206_v47 = vadd.f32 %v4362_v46, %v4250_v44  ;;  %v10670_v46 = vld [vmem:[#allocation161_spill] sm:$0xff] }
 0x5b3   : > { %4836 = vmatmul.f32.vlgmr.msrb.gmra.mxu3 %v10478_v56  ;;  %v4050_v56 = vadd.f32 %v8637_v19, %v3937_v17  ;;  %v10553_v19 = vld [vmem:[#allocation46_spill] sm:$0xff]  ;;  %v10556_v17 = vld [vmem:[#allocation120_spill] sm:$0xff] }
 0x5b4   : > { %v4139_v45 = vpop.f32.mrf.mxu0  ;;  %4661 = vmatmul.f32.gmra.mxu1 %v8224_v4 }
 0x5b5   : > { %v4140_v2 = vadd.f32 %v4139_v45, %v4027_v60  ;;  %4774 = vmatmul.f32.gmra.mxu2 %v8212_v38  ;;  %v4163_v38 = vadd.f32 %v8400_v14, %v4050_v56  ;;  %v3940_v60 = vadd.f32 %v8946_v18, %v10553_v19  ;;  %v10554_v45 = vld [vmem:[#allocation72_spill] sm:$0xff] }
 0x5b6   : > { %v9215_v22 = vpop.f32.mrf.mxu3 }
 0x5b7   : > { %v4253_v24 = vadd.f32 %v4252_v32, %v4140_v2  ;;  %5521 = vmatmul.msk.f32.gmra.mxu0 %vm1892_vm12, %v10550_v25  ;;  %v4968_v2 = vld [vmem:[%s9198_s20 + $0x18] sm:$0xff]  ;;  %v4053_v51 = vadd.f32 %v10556_v17, %v3940_v60  ;;  %v10562_v17 = vld [vmem:[#allocation44_spill] sm:$0xff] }
 0x5b8   : > { %v4727_v44 = vpop.f32.mrf.mxu2  ;;  %5035 = vrot.lane.b32.xlu0 %v4968_v2, %s5758_s21  ;;  %v10563_v2 = vld [vmem:[#allocation57_spill] sm:$0xff] }
 0x5b9   : > { %v4617_v20 = vpop.f32.mrf.mxu1  ;;  %v9223_v4 = vadd.f32 %v4365_v30, %v4253_v24 }
 0x5bb   : > { %5545 = vmatmul.msk.f32.gmra.mxu3 %vm1880_vm15, %v10482_v39  ;;  %vm10564_vm15 = vcmp.lt.s32.totalorder %v10563_v2, 16 }
 0x5bc   : > { %v4498_v55 = vpop.f32.mrf.mxu0  ;;  %5539 = vmatmul.msk.f32.gmra.mxu1 %vm10552_vm6, %v8252_v48  ;;  %v10557_v48 = vld [vmem:[#allocation92_spill] sm:$0xff] }
 0x5bd   : > { %v4499_v32 = vadd.f32 %v4498_v55, %v8987_v11  ;;  %4777 = vmatmul.f32.gmra.mxu2 %v8236_v23  ;;  %v4276_v14 = vadd.f32 %v10557_v48, %v4163_v38  ;;  %v4981_v48 = vld [vmem:[%s9198_s20 + $0x80] sm:$0xff] }
 0x5be   : > { %v9236_v30 = vpop.f32.mrf.mxu3 }
 0x5bf   : > { %4545 = vmatmul.f32.gmra.mxu0 %v10554_v45  ;;  %v9239_v28 = vadd.f32 %v4611_v33, %v4499_v32  ;;  %v4389_v23 = vadd.f32 %v9001_v49, %v4276_v14  ;;  %v10559_v33 = vld [vmem:[#allocation91_spill] sm:$0xff]  ;;  %v10560_v32 = vld [vmem:[#allocation52_spill] sm:$0xff] }
 0x5c0   : > { %v4730_v39 = vpop.f32.mrf.mxu2  ;;  %v4166_v56 = vadd.f32 %v10559_v33, %v4053_v51  ;;  %v3943_v19 = vadd.f32 %v8946_v18, %v10560_v32  ;;  %v10565_v14 = vld [vmem:[#allocation124_spill] sm:$0xff]  ;;  %5061 = vrot.lane.b32.xlu0 %v4981_v48, %s5758_s21  ;;  %v10567_v33 = vld [vmem:[#allocation66_spill] sm:$0xff]  ;;  %v4984_v48 = vld [vmem:[%s9198_s20 + $0x98] sm:$0xff] }
 0x5c1   : > { %10555 = vst [vmem:[#allocation40_spill] sm:$0xff] %v9239_v28  ;;  %v4620_v11 = vpop.f32.mrf.mxu1  ;;  %v10566_v28 = vld [vmem:[#allocation97_spill] sm:$0xff] }
 0x5c2   : > { %v4279_v51 = vadd.f32 %v10566_v28, %v4166_v56  ;;  %v10570_v28 = vld [vmem:[#allocation96_spill] sm:$0xff] }
 0x5c3   : > { %4842 = vmatmul.f32.gmra.mxu3 %v10489_v58  ;;  %v4969_v58 = vld [vmem:[%s9198_s20 + $0x20] sm:$0xff] }
 0x5c4   : > { %v4501_v24 = vpop.f32.mrf.mxu0  ;;  %4667 = vmatmul.f32.gmra.mxu1 %v10558_v50  ;;  %v4056_v50 = vadd.f32 %v10565_v14, %v3943_v19  ;;  %5037 = vrot.lane.b32.xlu1 %v4969_v58, %s5758_s21  ;;  %v10571_v19 = vld [vmem:[#allocation62_spill] sm:$0xff]  ;;  %v4967_v14 = vld [vmem:[%s9198_s20 + $0x10] sm:$0xff] }
 0x5c5   : > { %v4502_v55 = vadd.f32 %v4501_v24, %v4389_v23  ;;  %4780 = vmatmul.f32.gmra.mxu2 %v8262_v10  ;;  %5033 = vrot.lane.b32.xlu2 %v4967_v14, %s5758_s21  ;;  %v10581_v14 = vld [vmem:[#allocation131_spill] sm:$0xff] }
 0x5c6   : > { %v9252_v60 = vpop.f32.mrf.mxu3  ;;  %v4169_v56 = vadd.f32 %v10570_v28, %v4056_v50  ;;  %v10576_v28 = vld [vmem:[#allocation85_spill] sm:$0xff] }
 0x5c7   : > { %v4615_v38 = vadd.f32 %v4614_v52, %v4502_v55  ;;  %10561 = vst [vmem:[#allocation12_spill] sm:$0xff] %v9252_v60  ;;  %5522 = vmatmul.msk.f32.gmra.mxu0 %vm10564_vm15, %v10562_v17  ;;  %v4392_v52 = vadd.f32 %v9016_v27, %v4279_v51  ;;  %v10568_v55 = vld [vmem:[#allocation31_spill] sm:$0xff]  ;;  %v10572_v27 = vld [vmem:[#allocation76_spill] sm:$0xff] }
 0x5c8   : > { %v4733_v49 = vpop.f32.mrf.mxu2  ;;  %vm10569_vm11 = vcmp.ge.s32.totalorder %v10568_v55, 0  ;;  %v10573_v51 = vld [vmem:[#allocation128_spill] sm:$0xff]  ;;  %5067 = vrot.lane.b32.xlu0 %v4984_v48, %s5758_s21  ;;  %v10579_v48 = vld [vmem:[#allocation81_spill] sm:$0xff] }
 0x5c9   : > { %v4623_v23 = vpop.f32.mrf.mxu1  ;;  %v9263_v10 = vadd.f32 %v4727_v44, %v4615_v38  ;;  %v3946_v44 = vadd.f32 %v8946_v18, %v10571_v19  ;;  %v10577_v19 = vld [vmem:[#allocation68_spill] sm:$0xff] }
 0x5cb   : > { %5546 = vmatmul.msk.f32.gmra.mxu3 %vm1882_vm1, %v10494_v1  ;;  %v4982_v1 = vld [vmem:[%s9198_s20 + $0x88] sm:$0xff]  ;;  %v4059_v55 = vadd.f32 %v10573_v51, %v3946_v44  ;;  %vm10580_vm1 = vcmp.lt.s32.totalorder %v10579_v48, 16 }
 0x5cc   : > { %v4504_v24 = vpop.f32.mrf.mxu0  ;;  %5540 = vmatmul.msk.f32.gmra.mxu1 %vm10569_vm11, %v10567_v33  ;;  %v10574_v33 = vld [vmem:[#allocation100_spill] sm:$0xff]  ;;  %5063 = vrot.lane.b32.xlu1 %v4982_v1, %s5758_s21 }
 0x5cd   : > { %v4505_v32 = vadd.f32 %v4504_v24, %v4392_v52  ;;  %4783 = vmatmul.f32.gmra.mxu2 %v8300_v29  ;;  %v4282_v60 = vadd.f32 %v10574_v33, %v4169_v56  ;;  %v10575_v24 = vld [vmem:[#allocation13_spill] sm:$0xff]  ;;  %v4172_v56 = vadd.f32 %v10576_v28, %v4059_v55  ;;  %v10578_v1 = vld [vmem:[#allocation48_spill] sm:$0xff]  ;;  %v10582_v33 = vld [vmem:[#allocation107_spill] sm:$0xff] }
 0x5ce   : > { %v9276_v58 = vpop.f32.mrf.mxu3  ;;  %v10584_v28 = vld [vmem:[#allocation43_spill] sm:$0xff] }
 0x5cf   : > { %v4618_v38 = vadd.f32 %v4617_v20, %v4505_v32  ;;  %4551 = vmatmul.f32.gmra.mxu0 %v10572_v27  ;;  %v4395_v50 = vadd.f32 %v9030_v6, %v4282_v60  ;;  %v4971_v60 = vld [vmem:[%s9198_s20 + $0x30] sm:$0xff]  ;;  %v4285_v55 = vadd.f32 %v10582_v33, %v4172_v56  ;;  %vm10585_vm0 = vcmp.ge.s32.totalorder %v10584_v28, 0  ;;  %v10586_v56 = vld [vmem:[#allocation86_spill] sm:$0xff] }
 0x5d0   : > { %v4736_v13 = vpop.f32.mrf.mxu2  ;;  %5041 = vrot.lane.b32.xlu0 %v4971_v60, %s5758_s21  ;;  %v4970_v60 = vld [vmem:[%s9198_s20 + $0x28] sm:$0xff] }
 0x5d1   : > { %v9286_v29 = vadd.f32 %v4730_v39, %v4618_v38  ;;  %v4626_v20 = vpop.f32.mrf.mxu1  ;;  %v3949_v39 = vadd.f32 %v8946_v18, %v10577_v19  ;;  %5039 = vrot.lane.b32.xlu2 %v4970_v60, %s5758_s21  ;;  %v4988_v60 = vld [vmem:[%s9198_s20 + $0xb8] sm:$0xff] }
 0x5d3   : > { %4848 = vmatmul.f32.gmra.mxu3 %v10502_v42  ;;  %v4985_v42 = vld [vmem:[%s9198_s20 + $0xa0] sm:$0xff]  ;;  %v4062_v51 = vadd.f32 %v10581_v14, %v3949_v39  ;;  %v10587_v39 = vld [vmem:[#allocation69_spill] sm:$0xff]  ;;  %v10589_v14 = vld [vmem:[#allocation135_spill] sm:$0xff] }
 0x5d4   : > { %v4507_v52 = vpop.f32.mrf.mxu0  ;;  %4673 = vmatmul.f32.gmra.mxu1 %v10575_v24  ;;  %5069 = vrot.lane.b32.xlu1 %v4985_v42, %s5758_s21  ;;  %v10583_v24 = vld [vmem:[#allocation22_spill] sm:$0xff]  ;;  %v10588_v42 = vld [vmem:[#allocation55_spill] sm:$0xff] }
 0x5d5   : > { %v4508_v32 = vadd.f32 %v4507_v52, %v4395_v50  ;;  %4786 = vmatmul.f32.gmra.mxu2 %v8347_v15 }
 0x5d6   : > { %v9296_v38 = vpop.f32.mrf.mxu3 }
 0x5d7   : > { %v4621_v44 = vadd.f32 %v4620_v11, %v4508_v32  ;;  %5523 = vmatmul.msk.f32.gmra.mxu0 %vm10580_vm1, %v10578_v1  ;;  %v4398_v11 = vadd.f32 %v9043_v62, %v4285_v55  ;;  %v4175_v32 = vadd.f32 %v10586_v56, %v4062_v51  ;;  %v10590_v55 = vld [vmem:[#allocation113_spill] sm:$0xff] }
 0x5d8   : > { %v4739_v6 = vpop.f32.mrf.mxu2  ;;  %5075 = vrot.lane.b32.xlu0 %v4988_v60, %s5758_s21  ;;  %v4986_v60 = vld [vmem:[%s9198_s20 + $0xa8] sm:$0xff] }
 0x5d9   : > { %v9307_v15 = vadd.f32 %v4733_v49, %v4621_v44  ;;  %v4629_v50 = vpop.f32.mrf.mxu1  ;;  %v3952_v49 = vadd.f32 %v8946_v18, %v10587_v39 }
 0x5db   : > { %5547 = vmatmul.msk.f32.gmra.mxu3 %vm1884_vm14, %v10507_v5  ;;  %v4987_v5 = vld [vmem:[%s9198_s20 + $0xb0] sm:$0xff]  ;;  %v4065_v33 = vadd.f32 %v10589_v14, %v3952_v49 }
 0x5dc   : > { %v4510_v52 = vpop.f32.mrf.mxu0  ;;  %5541 = vmatmul.msk.f32.gmra.mxu1 %vm10585_vm0, %v10583_v24  ;;  %v4288_v24 = vadd.f32 %v10590_v55, %v4175_v32  ;;  %5073 = vrot.lane.b32.xlu1 %v4987_v5, %s5758_s21  ;;  %v10595_v5 = vld [vmem:[#allocation78_spill] sm:$0xff]  ;;  %v4983_v14 = vld [vmem:[%s9198_s20 + $0x90] sm:$0xff]  ;;  %v10597_v55 = vld [vmem:[#allocation137_spill] sm:$0xff] }
 0x5dd   : > { %v4511_v19 = vadd.f32 %v4510_v52, %v4398_v11  ;;  %4789 = vmatmul.f32.gmra.mxu2 %v8389_v26  ;;  %v10591_v11 = vld [vmem:[#allocation82_spill] sm:$0xff]  ;;  %v10592_v52 = vld [vmem:[#allocation112_spill] sm:$0xff]  ;;  %vm10596_vm14 = vcmp.lt.s32.totalorder %v10595_v5, 16  ;;  %5065 = vrot.lane.b32.xlu2 %v4983_v14, %s5758_s21  ;;  %v10606_v14 = vld [vmem:[#allocation141_spill] sm:$0xff] }
 0x5de   : > { %v9320_v62 = vpop.f32.mrf.mxu3  ;;  %v4178_v28 = vadd.f32 %v10592_v52, %v4065_v33  ;;  %v10601_v52 = vld [vmem:[#allocation49_spill] sm:$0xff] }
 0x5df   : > { %v4624_v44 = vadd.f32 %v4623_v23, %v4511_v19  ;;  %4557 = vmatmul.f32.gmra.mxu0 %v10588_v42  ;;  %v4401_v23 = vadd.f32 %v9059_v34, %v4288_v24  ;;  %v10593_v19 = vld [vmem:[#allocation83_spill] sm:$0xff]  ;;  %v10598_v24 = vld [vmem:[#allocation117_spill] sm:$0xff]  ;;  %vm10602_vm7 = vcmp.ge.s32.totalorder %v10601_v52, 0 }
 0x5e0   : > { %v4742_v61 = vpop.f32.mrf.mxu2  ;;  %v3955_v39 = vadd.f32 %v8946_v18, %v10593_v19  ;;  %v10708_v5 = vld [vmem:[#allocation73_spill] sm:$0xff] }
 0x5e1   : > { %v9329_v26 = vadd.f32 %v4736_v13, %v4624_v44  ;;  %v4632_v32 = vpop.f32.mrf.mxu1  ;;  %v10594_v44 = vld [vmem:[#allocation64_spill] sm:$0xff] }
 0x5e2   : > { %v4068_v33 = vadd.f32 %v10597_v55, %v3955_v39 }
 0x5e3   : > { %4854 = vmatmul.f32.gmra.mxu3 %v10516_v43  ;;  %v4973_v43 = vld [vmem:[%s9198_s20 + $0x40] sm:$0xff] }
 0x5e4   : > { %v4513_v51 = vpop.f32.mrf.mxu0  ;;  %4679 = vmatmul.f32.gmra.mxu1 %v10591_v11  ;;  %5045 = vrot.lane.b32.xlu1 %v4973_v43, %s5758_s21  ;;  %v10600_v11 = vld [vmem:[#allocation98_spill] sm:$0xff] }
 0x5e5   : > { %v4514_v56 = vadd.f32 %v4513_v51, %v4401_v23  ;;  %4792 = vmatmul.f32.gmra.mxu2 %v8418_v57  ;;  %v4291_v23 = vadd.f32 %v10598_v24, %v4178_v28  ;;  %v10603_v28 = vld [vmem:[#allocation116_spill] sm:$0xff]  ;;  %v10607_v24 = vld [vmem:[#allocation121_spill] sm:$0xff]  ;;  %5071 = vrot.lane.b32.xlu2 %v4986_v60, %s5758_s21 }
 0x5e6   : > { %v9338_v13 = vpop.f32.mrf.mxu3 }
 0x5e7   : > { %v4627_v49 = vadd.f32 %v4626_v20, %v4514_v56  ;;  %5524 = vmatmul.msk.f32.gmra.mxu0 %vm10596_vm14, %v10594_v44  ;;  %v4404_v20 = vadd.f32 %v9074_v8, %v4291_v23  ;;  %v4181_v56 = vadd.f32 %v10603_v28, %v4068_v33  ;;  %v10605_v8 = vld [vmem:[#allocation71_spill] sm:$0xff] }
 0x5e8   : > { %v4745_v34 = vpop.f32.mrf.mxu2 }
 0x5e9   : > { %v9350_v57 = vadd.f32 %v4739_v6, %v4627_v49  ;;  %v10604_v6 = vld [vmem:[#allocation74_spill] sm:$0xff]  ;;  %v4635_v36 = vpop.f32.mrf.mxu1  ;;  %v4294_v23 = vadd.f32 %v10607_v24, %v4181_v56  ;;  %v10610_v56 = vld [vmem:[#allocation77_spill] sm:$0xff] }
 0x5ea   : > { %v3958_v39 = vadd.f32 %v8946_v18, %v10604_v6 }
 0x5eb   : > { %5548 = vmatmul.msk.f32.gmra.mxu3 %vm10599_vm3, %v10522_v63  ;;  %v4974_v63 = vld [vmem:[%s9198_s20 + $0x48] sm:$0xff] }
 0x5ec   : > { %v4516_v51 = vpop.f32.mrf.mxu0  ;;  %5542 = vmatmul.msk.f32.gmra.mxu1 %vm10602_vm7, %v10600_v11  ;;  %v4071_v55 = vadd.f32 %v10606_v14, %v3958_v39  ;;  %5047 = vrot.lane.b32.xlu0 %v4974_v63, %s5758_s21  ;;  %v10609_v11 = vld [vmem:[#allocation119_spill] sm:$0xff]  ;;  %v10614_v63 = vld [vmem:[#allocation145_spill] sm:$0xff] }
 0x5ed   : > { %v4517_v19 = vadd.f32 %v4516_v51, %v4404_v20  ;;  %4795 = vmatmul.f32.gmra.mxu2 %v8464_v21  ;;  %v10608_v51 = vld [vmem:[#allocation101_spill] sm:$0xff]  ;;  %v10611_v39 = vld [vmem:[#allocation79_spill] sm:$0xff] }
 0x5ee   : > { %v9364_v43 = vpop.f32.mrf.mxu3  ;;  %v4184_v52 = vadd.f32 %v10609_v11, %v4071_v55  ;;  %v10615_v14 = vld [vmem:[#allocation125_spill] sm:$0xff]  ;;  %v10620_v11 = vld [vmem:[#allocation123_spill] sm:$0xff] }
 0x5ef   : > { %v4630_v49 = vadd.f32 %v4629_v50, %v4517_v19  ;;  %4563 = vmatmul.f32.gmra.mxu0 %v10605_v8  ;;  %v4407_v50 = vadd.f32 %v9090_v40, %v4294_v23  ;;  %v3961_v19 = vadd.f32 %v8946_v18, %v10610_v56  ;;  %v4990_v40 = vld [vmem:[%s9198_s20 + $0xc8] sm:$0xff]  ;;  %v10622_v56 = vld [vmem:[#allocation80_spill] sm:$0xff] }
 0x5f0   : > { %v4748_v33 = vpop.f32.mrf.mxu2  ;;  %v4297_v24 = vadd.f32 %v10615_v14, %v4184_v52  ;;  %5079 = vrot.lane.b32.xlu1 %v4990_v40, %s5758_s21  ;;  %v10624_v40 = vld [vmem:[#allocation90_spill] sm:$0xff]  ;;  %v10626_v14 = vld [vmem:[#allocation129_spill] sm:$0xff] }
 0x5f1   : > { %v9372_v21 = vadd.f32 %v4742_v61, %v4630_v49  ;;  %v10612_v49 = vld [vmem:[#allocation89_spill] sm:$0xff]  ;;  %v4074_v60 = vadd.f32 %v10614_v63, %v3961_v19  ;;  %v4638_v55 = vpop.f32.mrf.mxu1  ;;  %v3964_v19 = vadd.f32 %v8946_v18, %v10622_v56 }
 0x5f2   : > { %vm10613_vm8 = vcmp.lt.s32.totalorder %v10612_v49, 16  ;;  %v10717_v49 = vld [vmem:[#allocation42_spill] sm:$0xff] }
 0x5f3   : > { %4860 = vmatmul.f32.gmra.mxu3 %v10531_v53  ;;  %v4972_v53 = vld [vmem:[%s9198_s20 + $0x38] sm:$0xff]  ;;  %v4187_v52 = vadd.f32 %v10620_v11, %v4074_v60  ;;  %v10629_v11 = vld [vmem:[#allocation110_spill] sm:$0xff]  ;;  %vm10712_vm0 = vmmov %vm10613_vm8 }
 0x5f4   : > { %v4519_v20 = vpop.f32.mrf.mxu0  ;;  %4685 = vmatmul.f32.gmra.mxu1 %v10608_v51  ;;  %5043 = vrot.lane.b32.xlu2 %v4972_v53, %s5758_s21  ;;  %v10618_v51 = vld [vmem:[#allocation54_spill] sm:$0xff]  ;;  %v10625_v53 = vld [vmem:[#allocation148_spill] sm:$0xff] }
 0x5f5   : > { %v4520_v28 = vadd.f32 %v4519_v20, %v4407_v50  ;;  %4798 = vmatmul.f32.gmra.mxu2 %v8497_v31  ;;  %v10617_v20 = vld [vmem:[#allocation105_spill] sm:$0xff]  ;;  %vm10619_vm10 = vcmp.ge.s32.totalorder %v10618_v51, 0  ;;  %v4077_v63 = vadd.f32 %v10625_v53, %v3964_v19 }
 0x5f6   : > { %v9382_v6 = vpop.f32.mrf.mxu3 }
 0x5f7   : > { %v4633_v61 = vadd.f32 %v4632_v32, %v4520_v28  ;;  %5525 = vmatmul.msk.f32.gmra.mxu0 %vm10613_vm8, %v10611_v39  ;;  %v4410_v32 = vadd.f32 %v9105_v37, %v4297_v24  ;;  %v10621_v28 = vld [vmem:[#allocation104_spill] sm:$0xff]  ;;  %v4300_v24 = vadd.f32 %v10626_v14, %v4187_v52  ;;  %v10631_v52 = vld [vmem:[#allocation109_spill] sm:$0xff]  ;;  %v10635_v14 = vld [vmem:[#allocation14_spill] sm:$0xff] }
 0x5f8   : > { %v4751_v23 = vpop.f32.mrf.mxu2  ;;  %5051 = vrot.lane.b32.xlu1 %v4976_v35, %s5758_s21  ;;  %v10632_v35 = vld [vmem:[#allocation93_spill] sm:$0xff]  ;;  %vm10636_vm13 = vcmp.lt.s32.totalorder %v10635_v14, 16  ;;  %v10726_v14 = vld [vmem:[#allocation47_spill] sm:$0xff] }
 0x5f9   : > { %v9392_v31 = vadd.f32 %v4745_v34, %v4633_v61 }
 0x5fb   : > { %5549 = vmatmul.msk.f32.gmra.mxu3 %vm10616_vm9, %v10536_v9  ;;  %v4991_v9 = vld [vmem:[%s9198_s20 + $0xd0] sm:$0xff]  ;;  %vm5125_vm9 = vcmask 654336  }
 0x5fc   : > { %v4522_v50 = vpop.f32.mrf.mxu0  ;;  %5543 = vmatmul.msk.f32.gmra.mxu1 %vm10619_vm10, %v10617_v20  ;;  %5081 = vrot.lane.b32.xlu0 %v4991_v9, %s5758_s21  ;;  %v10628_v20 = vld [vmem:[#allocation65_spill] sm:$0xff]  ;;  %v3967_v9 = vadd.f32 %v8946_v18, %v10632_v35  ;;  %vm5158_vm10 = vcmask 670720  }
 0x5fd   : > { %v4523_v34 = vadd.f32 %v4522_v50, %v4410_v32  ;;  %4801 = vmatmul.f32.gmra.mxu2 %v10621_v28  ;;  %v10627_v32 = vld [vmem:[#allocation32_spill] sm:$0xff]  ;;  %v4641_v50 = vpop.f32.mrf.mxu1  ;;  %v10642_v35 = vld [vmem:[#allocation157_spill] sm:$0xff] }
 0x5fe   : > { %v9406_v37 = vpop.f32.mrf.mxu3 }
 0x5ff   : > { %v4636_v61 = vadd.f32 %v4635_v36, %v4523_v34  ;;  %10623 = vst [vmem:[#allocation30_spill] sm:$0xff] %v9406_v37  ;;  %4569 = vmatmul.f32.gmra.mxu0 %v10624_v40  ;;  %v4413_v36 = vadd.f32 %v10627_v32, %v4300_v24  ;;  %v10630_v34 = vld [vmem:[#allocation127_spill] sm:$0xff]  ;;  %v4977_v24 = vld [vmem:[%s9198_s20 + $0x60] sm:$0xff]  ;;  %v10638_v37 = vld [vmem:[#allocation133_spill] sm:$0xff] }
 0x600   : > { %v4190_v28 = vadd.f32 %v10630_v34, %v4077_v63  ;;  %v4754_v19 = vpop.f32.mrf.mxu2  ;;  %v4989_v32 = vld [vmem:[%s9198_s20 + $0xc0] sm:$0xff]  ;;  %v10641_v34 = vld [vmem:[#allocation153_spill] sm:$0xff] }
 0x601   : > { %v9415_v60 = vadd.f32 %v4748_v33, %v4636_v61  ;;  %v10634_v61 = vld [vmem:[#allocation99_spill] sm:$0xff]  ;;  %5077 = vrot.lane.b32.xlu2 %v4989_v32, %s5758_s21 }
 0x602   : > { %v4303_v63 = vadd.f32 %v10638_v37, %v4190_v28  ;;  %v10643_v37 = vld [vmem:[#allocation75_spill] sm:$0xff]  ;;  %v10645_v28 = vld [vmem:[#allocation132_spill] sm:$0xff] }
 0x603   : > { %4866 = vmatmul.f32.gmra.mxu3 %v10628_v20  ;;  %v10637_v20 = vld [vmem:[#allocation152_spill] sm:$0xff]  ;;  %vm10644_vm5 = vcmp.ge.s32.totalorder %v10643_v37, 0 }
 0x604   : > { %v4525_v51 = vpop.f32.mrf.mxu0  ;;  %4691 = vmatmul.f32.gmra.mxu1 %v10629_v11  ;;  %v4080_v11 = vadd.f32 %v10637_v20, %v3967_v9  ;;  %5053 = vrot.lane.b32.xlu0 %v4977_v24, %s5758_s21  ;;  %v10647_v20 = vld [vmem:[#allocation94_spill] sm:$0xff]  ;;  %v4975_v37 = vld [vmem:[%s9198_s20 + $0x50] sm:$0xff] }
 0x605   : > { %v4526_v56 = vadd.f32 %v4525_v51, %v4413_v36  ;;  %4804 = vmatmul.f32.gmra.mxu2 %v10631_v52  ;;  %v10640_v51 = vld [vmem:[#allocation26_spill] sm:$0xff]  ;;  %v4644_v32 = vpop.f32.mrf.mxu1 }
 0x606   : > { %v9424_v33 = vpop.f32.mrf.mxu3  ;;  %v4193_v9 = vadd.f32 %v10645_v28, %v4080_v11  ;;  %v10651_v11 = vld [vmem:[#allocation138_spill] sm:$0xff] }
 0x607   : > { %v4639_v53 = vadd.f32 %v4638_v55, %v4526_v56  ;;  %10633 = vst [vmem:[#allocation41_spill] sm:$0xff] %v9424_v33  ;;  %5526 = vmatmul.msk.f32.gmra.mxu0 %vm10636_vm13, %v10634_v61  ;;  %v4416_v55 = vadd.f32 %v10640_v51, %v4303_v63  ;;  %v4018_v56 = vadd.f32 %v8946_v18, %v10641_v34  ;;  %v4993_v33 = vld [vmem:[%s9198_s20 + $0xe0] sm:$0xff] }
 0x608   : > { %v3970_v63 = vadd.f32 %v8946_v18, %v10647_v20  ;;  %5085 = vrot.lane.b32.xlu1 %v4993_v33, %s5758_s21  ;;  %v10653_v28 = vld [vmem:[#allocation34_spill] sm:$0xff] }
 0x609   : > { %v9435_v36 = vadd.f32 %v4751_v23, %v4639_v53  ;;  %v10646_v53 = vld [vmem:[#allocation63_spill] sm:$0xff]  ;;  %5049 = vrot.lane.b32.xlu2 %v4975_v37, %s5758_s21  ;;  %v10654_v20 = vld [vmem:[#allocation162_spill] sm:$0xff] }
 0x60a   : > { %v4131_v24 = vadd.f32 %v10646_v53, %v4018_v56  ;;  %v10656_v33 = vld [vmem:[#allocation58_spill] sm:$0xff] }
 0x60b   : > { %10639 = vst [vmem:[#allocation67_spill] sm:$0xff] %v9435_v36  ;;  %5550 = vmatmul.msk.f32.gmra.mxu3 %vm10547_vm4, %v10545_v54  ;;  %v4757_v54 = vpop.f32.mrf.mxu2 }
 0x60c   : > { %v4528_v52 = vpop.f32.mrf.mxu0  ;;  %5544 = vmatmul.msk.f32.gmra.mxu1 %vm10644_vm5, %v10642_v35  ;;  %v10650_v35 = vld [vmem:[#allocation87_spill] sm:$0xff] }
 0x60d   : > { %v4529_v23 = vadd.f32 %v4528_v52, %v4416_v55  ;;  %4807 = vmatmul.f32.gmra.mxu2 %v8899_v16  ;;  %v4083_v36 = vadd.f32 %v10650_v35, %v3970_v63  ;;  %v4306_v55 = vadd.f32 %v10651_v11, %v4193_v9  ;;  %v10652_v52 = vld [vmem:[#allocation3_spill] sm:$0xff]  ;;  %v10655_v63 = vld [vmem:[#allocation136_spill] sm:$0xff] }
 0x60e   : > { %v9451_v34 = vpop.f32.mrf.mxu3 }
 0x60f   : > { %v4642_v51 = vadd.f32 %v4641_v50, %v4529_v23  ;;  %10648 = vst [vmem:[#allocation37_spill] sm:$0xff] %v9451_v34  ;;  %4575 = vmatmul.f32.gmra.mxu0 %v10649_v59  ;;  %v4244_v50 = vadd.f32 %v10652_v52, %v4131_v24  ;;  %v4419_v23 = vadd.f32 %v10653_v28, %v4306_v55  ;;  %v10658_v52 = vld [vmem:[#allocation106_spill] sm:$0xff]  ;;  %v10659_v34 = vld [vmem:[#allocation15_spill] sm:$0xff]  ;;  %v4979_v28 = vld [vmem:[%s9198_s20 + $0x70] sm:$0xff] }
 0x610   : > { %v4196_v35 = vadd.f32 %v10655_v63, %v4083_v36  ;;  %vm10660_vm6 = vcmp.lt.s32.totalorder %v10659_v34, 16  ;;  %v10662_v36 = vld [vmem:[#allocation158_spill] sm:$0xff]  ;;  %5057 = vrot.lane.b32.xlu1 %v4979_v28, %s5758_s21  ;;  %v10668_v28 = vld [vmem:[#allocation84_spill] sm:$0xff] }
 0x611   : > { %v9460_v56 = vadd.f32 %v4754_v19, %v4642_v51  ;;  %v4357_v37 = vadd.f32 %v10656_v33, %v4244_v50  ;;  %v10657_v19 = vld [vmem:[#allocation95_spill] sm:$0xff]  ;;  %vm10730_vm3 = vmmov %vm10660_vm6  ;;  %v10736_v34 = vld [vmem:[#allocation30_spill] sm:$0xff] }
 0x612   : > { %v3973_v51 = vadd.f32 %v8946_v18, %v10657_v19  ;;  %v10666_v19 = vmov 0.0  }
 0x613   : > { %4872 = vmatmul.f32.gmra.mxu3 %v10549_v0  ;;  %v4647_v0 = vpop.f32.mrf.mxu1 }
 0x614   : > { %v4531_v53 = vpop.f32.mrf.mxu0  ;;  %4697 = vmatmul.f32.gmra.mxu1 %v10654_v20  ;;  %v4994_v20 = vld [vmem:[%s9198_s20 + $0xe8] sm:$0xff] }
 0x615   : > { %v4532_v9 = vadd.f32 %v4531_v53, %v4419_v23  ;;  %4810 = vmatmul.f32.gmra.mxu2 %v8937_v7  ;;  %v4086_v23 = vadd.f32 %v10662_v36, %v3973_v51  ;;  %v10663_v53 = vld [vmem:[#allocation143_spill] sm:$0xff]  ;;  %5087 = vrot.lane.b32.xlu0 %v4994_v20, %s5758_s21  ;;  %v10667_v51 = vld [vmem:[#allocation140_spill] sm:$0xff] }
 0x616   : > { %v4469_v24 = vpop.f32.mrf.mxu3  ;;  %v4309_v63 = vadd.f32 %v10663_v53, %v4196_v35  ;;  %v10669_v36 = vld [vmem:[#allocation111_spill] sm:$0xff] }
 0x617   : > { %v4645_v11 = vadd.f32 %v4644_v32, %v4532_v9  ;;  %5527 = vmatmul.msk.f32.gmra.mxu0 %vm10660_vm6, %v10658_v52  ;;  %v9474_v55 = vadd.f32 %v4469_v24, %v4357_v37  ;;  %v4760_v32 = vpop.f32.mrf.mxu2  ;;  %v10665_v9 = vld [vmem:[#allocation70_spill] sm:$0xff]  ;;  %v4199_v35 = vadd.f32 %v10667_v51, %v4086_v23 }
 0x618   : > { %v4422_v33 = vadd.f32 %v10665_v9, %v4309_v63  ;;  %v10671_v63 = vld [vmem:[#allocation147_spill] sm:$0xff] }
 0x619   : > { %10661 = vst [vmem:[#allocation51_spill] sm:$0xff] %v9474_v55  ;;  %v9482_v50 = vadd.f32 %v4757_v54, %v4645_v11  ;;  %v3976_v54 = vadd.f32 %v8946_v18, %v10668_v28  ;;  %v4312_v9 = vadd.f32 %v10671_v63, %v4199_v35  ;;  %v4980_v55 = vld [vmem:[%s9198_s20 + $0x78] sm:$0xff] }
 0x61b   : > { %10664 = vst [vmem:[#allocation46_spill] sm:$0xff] %v9482_v50  ;;  %5551 = vmatmul.msk.f32.gmra.mxu3 %vm1892_vm12, %v10550_v25  ;;  %v4089_v25 = vadd.f32 %v10670_v46, %v3976_v54  ;;  %v4992_v50 = vld [vmem:[%s9198_s20 + $0xd8] sm:$0xff] }
 0x61c   : > { %v4534_v37 = vpop.f32.mrf.mxu0  ;;  %4700 = vmatmul.f32.gmra.mxu1 %v10666_v19  ;;  %5083 = vrot.lane.b32.xlu2 %v4992_v50, %s5758_s21  ;;  %v10675_v50 = vld [vmem:[#allocation156_spill] sm:$0xff] }
 0x61d   : > { %v4535_v24 = vadd.f32 %v4534_v37, %v4422_v33  ;;  %4813 = vmatmul.f32.gmra.mxu2 %v10666_v19  ;;  %v4650_v33 = vpop.f32.mrf.mxu1  ;;  %5059 = vrot.lane.b32.xlu0 %v4980_v55, %s5758_s21 }
 0x61e   : > { %v4472_v20 = vpop.f32.mrf.mxu3 }
 0x61f   : > { %v4648_v11 = vadd.f32 %v4647_v0, %v4535_v24  ;;  %4581 = vmatmul.f32.gmra.mxu0 %v10669_v36  ;;  %v9495_v53 = vadd.f32 %v4472_v20, %v9185_v41  ;;  %v10672_v0 = vld [vmem:[#allocation38_spill] sm:$0xff]  ;;  %v4763_v51 = vpop.f32.mrf.mxu2  ;;  %v10673_v24 = vld [vmem:[#allocation144_spill] sm:$0xff] }
 0x620   : > { %v4425_v37 = vadd.f32 %v10672_v0, %v4312_v9  ;;  %v4202_v35 = vadd.f32 %v10673_v24, %v4089_v25  ;;  %v10676_v20 = vld [vmem:[#allocation16_spill] sm:$0xff]  ;;  %v10679_v9 = vld [vmem:[#allocation151_spill] sm:$0xff] }
 0x621   : > { %v9501_v23 = vadd.f32 %v4760_v32, %v4648_v11  ;;  %v10674_v32 = vld [vmem:[#allocation103_spill] sm:$0xff]  ;;  %vm10677_vm12 = vcmp.lt.s32.totalorder %v10676_v20, 16 }
 0x622   : > { %v3979_v54 = vadd.f32 %v8946_v18, %v10674_v32  ;;  %v4315_v0 = vadd.f32 %v10679_v9, %v4202_v35  ;;  %v4978_v25 = vld [vmem:[%s9198_s20 + $0x68] sm:$0xff]  ;;  %v10681_v35 = vrot.slane %v8899_v16, 1  ;;  %vm10742_vm7 = vmmov %vm10677_vm12 }
 0x623   : > { %4878 = vmatmul.f32.gmra.mxu3 %v10554_v45  ;;  %v10678_v45 = vld [vmem:[#allocation163_spill] sm:$0xff] }
 0x624   : > { %v4537_v41 = vpop.f32.mrf.mxu0  ;;  %4703 = vmatmul.f32.gmra.mxu1 %v10666_v19  ;;  %v4092_v63 = vadd.f32 %v10678_v45, %v3979_v54  ;;  %5055 = vrot.lane.b32.xlu2 %v4978_v25, %s5758_s21 }
 0x625   : > { %v4538_v28 = vadd.f32 %v4537_v41, %v4425_v37  ;;  %4816 = vmatmul.f32.gmra.mxu2 %v10666_v19  ;;  %v4428_v41 = vadd.f32 %v9180_v12, %v4315_v0  ;;  %v4653_v24 = vpop.f32.mrf.mxu1 }
 0x626   : > { %v4475_v11 = vpop.f32.mrf.mxu3 }
 0x627   : > { %v4651_v55 = vadd.f32 %v4650_v33, %v4538_v28  ;;  %5528 = vmatmul.msk.f32.gmra.mxu0 %vm10677_vm12, %v10675_v50  ;;  %v9516_v46 = vadd.f32 %v4475_v11, %v9206_v47  ;;  %v3701_v33 = vrot.slane %v8937_v7, 1  ;;  %v10680_v28 = vld [vmem:[#allocation149_spill] sm:$0xff]  ;;  %v4766_v11 = vpop.f32.mrf.mxu2 }
 0x628   : > { %v4205_v32 = vadd.f32 %v10680_v28, %v4092_v63  ;;  %v10684_v63 = vld [vmem:[#allocation155_spill] sm:$0xff] }
 0x629   : > { %v9521_v37 = vadd.f32 %v4763_v51, %v4651_v55  ;;  %v9533_v51 = vsel %vm2005_vm2, %v10681_v35, %v3701_v33  ;;  %v10682_v55 = vld [vmem:[#allocation108_spill] sm:$0xff]  ;;  %v10686_v35 = vld [vmem:[#allocation18_spill] sm:$0xff] }
 0x62a   : > { %v3982_v12 = vadd.f32 %v8946_v18, %v10682_v55  ;;  %v4318_v0 = vadd.f32 %v10684_v63, %v4205_v32  ;;  %v9550_v55 = vsel %vm2005_vm2, %v3701_v33, %v10686_v35  ;;  %vm10692_vm2 = vmmov %vm10580_vm1 }
 0x62b   : > { %5552 = vmatmul.msk.f32.gmra.mxu3 %vm10564_vm15, %v10562_v17  ;;  %v10683_v17 = vld [vmem:[#allocation165_spill] sm:$0xff]  ;;  %vm10703_vm1 = vmmov %vm10596_vm14 }
 0x62c   : > { %v4540_v47 = vpop.f32.mrf.mxu0  ;;  %v4095_v9 = vadd.f32 %v10683_v17, %v3982_v12  ;;  %v4431_v16 = vadd.f32 %v9201_v3, %v4318_v0  ;;  %v10691_v17 = vld [vmem:[#allocation159_spill] sm:$0xff]  ;;  %vm10721_vm14 = vmmov %vm10636_vm13 }
 0x62d   : > { %v4541_v54 = vadd.f32 %v4540_v47, %v4428_v41  ;;  %v10685_v47 = vld [vmem:[#allocation154_spill] sm:$0xff] }
 0x62e   : > { %v4478_v7 = vpop.f32.mrf.mxu3  ;;  %v4208_v28 = vadd.f32 %v10685_v47, %v4095_v9 }
 0x62f   : > { %v4654_v45 = vadd.f32 %v4653_v24, %v4541_v54  ;;  %4587 = vmatmul.f32.gmra.mxu0 %v9533_v51  ;;  %v9539_v2 = vadd.f32 %v4478_v7, %v9223_v4  ;;  %v4656_v54 = vpop.f32.mrf.mxu1  ;;  %v10687_v4 = vld [vmem:[#allocation114_spill] sm:$0xff]  ;;  %v4769_v3 = vpop.f32.mrf.mxu2 }
 0x630   : > { %v3985_v12 = vadd.f32 %v8946_v18, %v10687_v4  ;;  %v4321_v9 = vadd.f32 %v10691_v17, %v4208_v28  ;;  %v10695_v4 = vld [vmem:[#allocation60_spill] sm:$0xff] }
 0x631   : > { %v9543_v25 = vadd.f32 %v4766_v11, %v4654_v45  ;;  %v10688_v11 = vld [vmem:[#allocation56_spill] sm:$0xff] }
 0x632   : > { %vm10689_vm11 = vcmp.lt.s32.totalorder %v10688_v11, 16  ;;  %v4434_v33 = vadd.f32 %v9215_v22, %v4321_v9 }
 0x633   : > { %4884 = vmatmul.f32.gmra.mxu3 %v10572_v27  ;;  %v10690_v27 = vld [vmem:[#allocation19_spill] sm:$0xff]  ;;  %vm10747_vm8 = vmmov %vm10689_vm11 }
 0x634   : > { %v4543_v41 = vpop.f32.mrf.mxu0  ;;  %v4098_v45 = vadd.f32 %v10690_v27, %v3985_v12  ;;  %v10696_v12 = vld [vmem:[#allocation23_spill] sm:$0xff]  ;;  %v10698_v27 = vld [vmem:[#allocation160_spill] sm:$0xff] }
 0x635   : > { %v4544_v24 = vadd.f32 %v4543_v41, %v4431_v16  ;;  %v10693_v16 = vld [vmem:[#allocation88_spill] sm:$0xff] }
 0x636   : > { %v9554_v32 = vpop.f32.mrf.mxu3  ;;  %v4211_v41 = vadd.f32 %v10693_v16, %v4098_v45 }
 0x637   : > { %v4657_v7 = vadd.f32 %v4656_v54, %v4544_v24  ;;  %5529 = vmatmul.msk.f32.gmra.mxu0 %vm10689_vm11, %v9550_v55  ;;  %v10694_v24 = vld [vmem:[#allocation115_spill] sm:$0xff] }
 0x638   : > { %v3988_v54 = vadd.f32 %v8946_v18, %v10694_v24  ;;  %v9586_v18 = vld [vmem:[%s9894_s10] ss:$0 sm:$0xff]  ;;  %v10702_v24 = vld [vmem:[#allocation12_spill] sm:$0xff] }
 0x639   : > { %v9561_v63 = vadd.f32 %v4769_v3, %v4657_v7  ;;  %v10697_v7 = vld [vmem:[#allocation4_spill] sm:$0xff] }
 0x63a   : > { %v4101_v22 = vadd.f32 %v10696_v12, %v3988_v54  ;;  %v4324_v3 = vadd.f32 %v10697_v7, %v4211_v41  ;;  %v10705_v7 = vld [vmem:[#allocation122_spill] sm:$0xff] }
 0x63b   : > { %5553 = vmatmul.msk.f32.gmra.mxu3 %vm10692_vm2, %v10578_v1 }
 0x63c   : > { %v4546_v0 = vpop.f32.mrf.mxu0  ;;  %v4437_v1 = vadd.f32 %v9236_v30, %v4324_v3  ;;  %v4214_v45 = vadd.f32 %v10698_v27, %v4101_v22  ;;  %v10700_v30 = vld [vmem:[#allocation6_spill] sm:$0xff]  ;;  %v3994_v3 = vadd.f32 %v9586_v18, %v10705_v7 }
 0x63d   : > { %v9568_v47 = vadd.f32 %v4546_v0, %v4434_v33 }
 0x63e   : > { %v4840_v35 = vpop.f32.mrf.mxu3 }
 0x63f   : > { %4723 = vmatmul.f32.vlgmr.msra.gmra.mxu0 %v10695_v4  ;;  %v9574_v28 = vadd.f32 %v4840_v35, %v9263_v10  ;;  %v10699_v10 = vld [vmem:[#allocation118_spill] sm:$0xff]  ;;  %v10704_v4 = vld [vmem:[#allocation25_spill] sm:$0xff] }
 0x640   : > { %v3991_v9 = vadd.f32 %v9586_v18, %v10699_v10 }
 0x642   : > { %v4104_v16 = vadd.f32 %v10700_v30, %v3991_v9 }
 0x643   : > { %4890 = vmatmul.f32.gmra.mxu3 %v10588_v42  ;;  %v10701_v42 = vld [vmem:[#allocation164_spill] sm:$0xff] }
 0x644   : > { %v4549_v48 = vpop.f32.mrf.mxu0  ;;  %v4327_v41 = vadd.f32 %v10701_v42, %v4214_v45  ;;  %v4217_v12 = vadd.f32 %v10704_v4, %v4104_v16  ;;  %v10707_v45 = vld [vmem:[#allocation5_spill] sm:$0xff]  ;;  %v10709_v16 = vld [vmem:[#allocation126_spill] sm:$0xff] }
 0x645   : > { %v9581_v17 = vadd.f32 %v4549_v48, %v4437_v1  ;;  %v10706_v48 = vld [vmem:[#allocation28_spill] sm:$0xff]  ;;  %v3997_v42 = vadd.f32 %v9586_v18, %v10709_v16  ;;  %v10718_v16 = vld [vmem:[#allocation134_spill] sm:$0xff] }
 0x646   : > { %v4843_v33 = vpop.f32.mrf.mxu3  ;;  %v4440_v54 = vadd.f32 %v10702_v24, %v4327_v41  ;;  %v4107_v27 = vadd.f32 %v10706_v48, %v3994_v3  ;;  %v4330_v10 = vadd.f32 %v10707_v45, %v4217_v12  ;;  %v10710_v24 = vld [vmem:[#allocation7_spill] sm:$0xff]  ;;  %v10713_v12 = vld [vmem:[#allocation36_spill] sm:$0xff] }
 0x647   : > { %v9591_v0 = vadd.f32 %v4843_v33, %v9286_v29  ;;  %v10715_v45 = vld [vmem:[#allocation39_spill] sm:$0xff] }
 0x648   : > { %v4443_v9 = vadd.f32 %v9276_v58, %v4330_v10  ;;  %v4220_v33 = vadd.f32 %v10708_v5, %v4107_v27 }
 0x64b   : > { %5554 = vmatmul.msk.f32.gmra.mxu3 %vm10703_vm1, %v10594_v44 }
 0x64c   : > { %v4552_v35 = vpop.f32.mrf.mxu0 }
 0x64d   : > { %v9600_v22 = vadd.f32 %v4552_v35, %v4440_v54  ;;  %v4110_v54 = vadd.f32 %v10710_v24, %v3997_v42  ;;  %v10711_v35 = vld [vmem:[#allocation10_spill] sm:$0xff]  ;;  %v4003_v42 = vadd.f32 %v9586_v18, %v10718_v16  ;;  %v10719_v24 = vld [vmem:[#allocation8_spill] sm:$0xff]  ;;  %v10728_v16 = vld [vmem:[#allocation9_spill] sm:$0xff] }
 0x64e   : > { %v4846_v29 = vpop.f32.mrf.mxu3  ;;  %v4333_v4 = vadd.f32 %v10711_v35, %v4220_v33  ;;  %v10720_v35 = vld [vmem:[#allocation27_spill] sm:$0xff] }
 0x64f   : > { %v9605_v1 = vadd.f32 %v4846_v29, %v9307_v15  ;;  %v4223_v7 = vadd.f32 %v10713_v12, %v4110_v54  ;;  %v10714_v29 = vld [vmem:[#allocation130_spill] sm:$0xff]  ;;  %v4116_v54 = vadd.f32 %v10719_v24, %v4003_v42 }
 0x650   : > { %v4446_v58 = vadd.f32 %v9296_v38, %v4333_v4  ;;  %v4000_v48 = vadd.f32 %v9586_v18, %v10714_v29 }
 0x652   : > { %v4113_v10 = vadd.f32 %v10715_v45, %v4000_v48 }
 0x653   : > { %4896 = vmatmul.f32.gmra.mxu3 %v10605_v8 }
 0x654   : > { %v4555_v44 = vpop.f32.mrf.mxu0  ;;  %v4226_v5 = vadd.f32 %v10717_v49, %v4113_v10  ;;  %v10725_v10 = vld [vmem:[#allocation33_spill] sm:$0xff] }
 0x655   : > { %v9612_v30 = vadd.f32 %v4555_v44, %v4443_v9  ;;  %v10716_v9 = vld [vmem:[#allocation20_spill] sm:$0xff] }
 0x656   : > { %v4849_v41 = vpop.f32.mrf.mxu3  ;;  %v4336_v38 = vadd.f32 %v10716_v9, %v4223_v7  ;;  %v4339_v4 = vadd.f32 %v10720_v35, %v4226_v5  ;;  %v10723_v7 = vld [vmem:[#allocation139_spill] sm:$0xff] }
 0x657   : > { %v9617_v15 = vadd.f32 %v4849_v41, %v9329_v26  ;;  %v4006_v29 = vadd.f32 %v9586_v18, %v10723_v7  ;;  %v4995_v7 = vld [vmem:[%s9198_s20 + $0xf0] sm:$0xff] }
 0x658   : > { %v4449_v44 = vadd.f32 %v9320_v62, %v4336_v38  ;;  %v4452_v62 = vadd.f32 %v9338_v13, %v4339_v4  ;;  %5089 = vrot.lane.b32.xlu2 %v4995_v7, %s5758_s21  ;;  %v4659_v7 = vpop.f32.mrf.mxu1 }
 0x65b   : > { %5555 = vmatmul.msk.f32.gmra.mxu3 %vm10712_vm0, %v10611_v39 }
 0x65c   : > { %v4558_v8 = vpop.f32.mrf.mxu0 }
 0x65d   : > { %v9626_v3 = vadd.f32 %v4558_v8, %v4446_v58  ;;  %v10722_v58 = vld [vmem:[#allocation21_spill] sm:$0xff] }
 0x65e   : > { %v4852_v26 = vpop.f32.mrf.mxu3  ;;  %v4229_v8 = vadd.f32 %v10722_v58, %v4116_v54  ;;  %v10731_v54 = vld [vmem:[#allocation50_spill] sm:$0xff]  ;;  %v10733_v58 = vld [vmem:[#allocation67_spill] sm:$0xff] }
 0x65f   : > { %v9631_v27 = vadd.f32 %v4852_v26, %v9350_v57  ;;  %v10724_v26 = vld [vmem:[#allocation17_spill] sm:$0xff] }
 0x660   : > { %v4119_v45 = vadd.f32 %v10724_v26, %v4006_v29  ;;  %v4342_v13 = vadd.f32 %v10725_v10, %v4229_v8  ;;  %v10734_v29 = vld [vmem:[#allocation35_spill] sm:$0xff]  ;;  %v10737_v10 = vld [vmem:[#allocation53_spill] sm:$0xff] }
 0x662   : > { %v4455_v9 = vadd.f32 %v9364_v43, %v4342_v13  ;;  %v4232_v38 = vadd.f32 %v10726_v14, %v4119_v45 }
 0x663   : > { %4902 = vmatmul.f32.gmra.mxu3 %v10624_v40 }
 0x664   : > { %v4561_v39 = vpop.f32.mrf.mxu0 }
 0x665   : > { %v9638_v33 = vadd.f32 %v4561_v39, %v4449_v44  ;;  %v10727_v39 = vld [vmem:[#allocation142_spill] sm:$0xff] }
 0x666   : > { %v4855_v41 = vpop.f32.mrf.mxu3  ;;  %v4009_v49 = vadd.f32 %v9586_v18, %v10727_v39 }
 0x667   : > { %v9643_v57 = vadd.f32 %v4855_v41, %v9372_v21  ;;  %v10729_v41 = vld [vmem:[#allocation29_spill] sm:$0xff] }
 0x668   : > { %v4122_v42 = vadd.f32 %v10728_v16, %v4009_v49  ;;  %v4345_v24 = vadd.f32 %v10729_v41, %v4232_v38  ;;  %v10739_v49 = vld [vmem:[#allocation11_spill] sm:$0xff]  ;;  %v10740_v16 = vld [vmem:[#allocation24_spill] sm:$0xff]  ;;  %v10741_v41 = vld [vmem:[#allocation41_spill] sm:$0xff] }
 0x66a   : > { %v4458_v43 = vadd.f32 %v9382_v6, %v4345_v24  ;;  %v4235_v35 = vadd.f32 %v10731_v54, %v4122_v42  ;;  %v10735_v6 = vld [vmem:[#allocation45_spill] sm:$0xff] }
 0x66b   : > { %5556 = vmatmul.msk.f32.gmra.mxu3 %vm10721_vm14, %v10634_v61 }
 0x66c   : > { %v4564_v40 = vpop.f32.mrf.mxu0  ;;  %v4348_v26 = vadd.f32 %v10735_v6, %v4235_v35  ;;  %v10744_v35 = vld [vmem:[#allocation46_spill] sm:$0xff] }
 0x66d   : > { %v9652_v12 = vadd.f32 %v4564_v40, %v4452_v62  ;;  %v10732_v62 = vld [vmem:[#allocation146_spill] sm:$0xff] }
 0x66e   : > { %v4858_v21 = vpop.f32.mrf.mxu3  ;;  %v4012_v40 = vadd.f32 %v9586_v18, %v10732_v62 }
 0x66f   : > { %v9657_v48 = vadd.f32 %v4858_v21, %v9392_v31 }
 0x670   : > { %v4125_v21 = vadd.f32 %v10734_v29, %v4012_v40 }
 0x672   : > { %v4238_v13 = vadd.f32 %v10737_v10, %v4125_v21 }
 0x673   : > { %4908 = vmatmul.f32.gmra.mxu3 %v10649_v59 }
 0x674   : > { %v4567_v61 = vpop.f32.mrf.mxu0  ;;  %v4351_v42 = vadd.f32 %v10740_v16, %v4238_v13 }
 0x675   : > { %v9664_v44 = vadd.f32 %v4567_v61, %v4455_v9  ;;  %v10738_v61 = vld [vmem:[#allocation150_spill] sm:$0xff] }
 0x676   : > { %v4861_v5 = vpop.f32.mrf.mxu3  ;;  %v4015_v14 = vadd.f32 %v9586_v18, %v10738_v61  ;;  %v4464_v24 = vadd.f32 %v10741_v41, %v4351_v42  ;;  %v4996_v61 = vld [vmem:[%s9198_s20 + $0xf8] sm:$0xff]  ;;  %v5032_v41 = vpop.permute.xlu1 %5031 }
 0x677   : > { %v9669_v31 = vadd.f32 %v4861_v5, %v9415_v60  ;;  %5091 = vrot.lane.b32.xlu1 %v4996_v61, %s5758_s21 }
 0x678   : > { %v4128_v5 = vadd.f32 %v10739_v49, %v4015_v14 }
 0x67b   : > { %5557 = vmatmul.msk.f32.gmra.mxu3 %vm10730_vm3, %v10658_v52  ;;  %v4461_v52 = vadd.f32 %v10736_v34, %v4348_v26  ;;  %v4662_v34 = vpop.f32.mrf.mxu1 }
 0x67c   : > { %v4570_v59 = vpop.f32.mrf.mxu0 }
 0x67d   : > { %v9678_v4 = vadd.f32 %v4570_v59, %v4458_v43  ;;  %v10743_v43 = vld [vmem:[#allocation61_spill] sm:$0xff] }
 0x67e   : > { %v4864_v60 = vpop.f32.mrf.mxu3  ;;  %v4241_v59 = vadd.f32 %v10743_v43, %v4128_v5  ;;  %v4660_v43 = vadd.f32 %v4659_v7, %v9568_v47  ;;  %v10749_v7 = vld [vmem:[#allocation40_spill] sm:$0xff] }
 0x67f   : > { %v9683_v8 = vadd.f32 %v4864_v60, %v10733_v58  ;;  %v10746_v60 = vld [vmem:[#allocation37_spill] sm:$0xff] }
 0x683   : > { %4914 = vmatmul.f32.gmra.mxu3 %v10669_v36  ;;  %v4665_v11 = vpop.f32.mrf.mxu1 }
 0x684   : > { %v4573_v45 = vpop.f32.mrf.mxu0 }
 0x685   : > { %v9692_v9 = vadd.f32 %v4573_v45, %v4461_v52  ;;  %v10748_v52 = vld [vmem:[#allocation51_spill] sm:$0xff] }
 0x686   : > { %v4867_v38 = vpop.f32.mrf.mxu3 }
 0x687   : > { %v9697_v39 = vadd.f32 %v4867_v38, %v9460_v56  ;;  %v10745_v56 = vld [vmem:[#allocation2_spill] sm:$0xff] }
 0x688   : > { %v4354_v40 = vadd.f32 %v10745_v56, %v4241_v59 }
 0x68a   : > { %v4467_v58 = vadd.f32 %v10746_v60, %v4354_v40  ;;  %v9750_v40 = vpop.permute.xlu1 %5037  ;;  %v4663_v60 = vadd.f32 %v4662_v34, %v9581_v17 }
 0x68b   : > { %5558 = vmatmul.msk.f32.gmra.mxu3 %vm10742_vm7, %v10675_v50  ;;  %v4772_v50 = vpop.f32.mrf.mxu2 }
 0x68c   : > { %v4576_v36 = vpop.f32.mrf.mxu0 }
 0x68d   : > { %v9706_v54 = vadd.f32 %v4576_v36, %v4464_v24 }
 0x68e   : > { %v4870_v18 = vpop.f32.mrf.mxu3 }
 0x68f   : > { %v9709_v62 = vadd.f32 %v4870_v18, %v10744_v35 }
 0x693   : > { %4920 = vmatmul.f32.gmra.mxu3 %v9533_v51  ;;  %v4775_v13 = vpop.f32.mrf.mxu2 }
 0x694   : > { %v4579_v29 = vpop.f32.mrf.mxu0 }
 0x695   : > { %v9714_v20 = vadd.f32 %v4579_v29, %v4467_v58 }
 0x696   : > { %v4873_v21 = vpop.f32.mrf.mxu3 }
 0x697   : > { %v9717_v6 = vadd.f32 %v4873_v21, %v9501_v23 }
 0x69b   : > { %5559 = vmatmul.msk.f32.gmra.mxu3 %vm10747_vm8, %v9550_v55  ;;  %v5030_v55 = vpop.permute.xlu0 %5029  ;;  %v4778_v5 = vpop.f32.mrf.mxu2 }
 0x69c   : > { %v4582_v26 = vpop.f32.mrf.mxu0 }
 0x69d   : > { %v9723_v45 = vadd.f32 %v4582_v26, %v10748_v52 }
 0x69e   : > { %v4876_v10 = vpop.f32.mrf.mxu3 }
 0x69f   : > { %v9726_v51 = vadd.f32 %v4876_v10, %v9521_v37 }
 0x6a3   : > { %4926 = vmatmul.f32.gmra.mxu3 %v10666_v19  ;;  %v9744_v36 = vpop.permute.xlu0 %5035 }
 0x6a4   : > { %v4585_v23 = vpop.f32.mrf.mxu0 }
 0x6a5   : > { %v9732_v14 = vadd.f32 %v4585_v23, %v9495_v53  ;;  %v4668_v53 = vpop.f32.mrf.mxu1 }
 0x6a6   : > { %v4879_v38 = vpop.f32.mrf.mxu3 }
 0x6a7   : > { %v9735_v49 = vadd.f32 %v4879_v38, %v9543_v25  ;;  %v4781_v25 = vpop.f32.mrf.mxu2  ;;  %v4666_v38 = vadd.f32 %v4665_v11, %v9600_v22 }
 0x6ab   : > { %4929 = vmatmul.f32.gmra.mxu3 %v10666_v19  ;;  %v4773_v19 = vadd.f32 %v4772_v50, %v4660_v43  ;;  %v5062_v29 = vpop.permute.xlu0 %5061  ;;  %v4776_v50 = vadd.f32 %v4775_v13, %v4663_v60  ;;  %v4934_v13 = vmax.f32 %v9574_v28, 0.0  ;;  %v4935_v28 = vmax.f32 %v9591_v0, 0.0 }
 0x6ac   : > { %v4588_v37 = vpop.f32.mrf.mxu0  ;;  %v4936_v0 = vmax.f32 %v9605_v1, 0.0  ;;  %v4937_v1 = vmax.f32 %v9617_v15, 0.0 }
 0x6ad   : > { %v9739_v16 = vadd.f32 %v4588_v37, %v9516_v46  ;;  %v5034_v46 = vpop.permute.xlu2 %5033  ;;  %v4671_v58 = vpop.f32.mrf.mxu1  ;;  %v5127_v22 = vsel %vm5125_vm9, %v4934_v13, %v5032_v41 }
 0x6ae   : > { %v4882_v42 = vpop.f32.mrf.mxu3  ;;  %v5128_v41 = vsel %vm5125_vm9, %v4935_v28, %v5034_v46  ;;  %v5129_v46 = vsel %vm5125_vm9, %v4936_v0, %v9744_v36  ;;  %v5130_v36 = vsel %vm5125_vm9, %v4937_v1, %v9750_v40 }
 0x6af   : > { %v9742_v24 = vadd.f32 %v4882_v42, %v9561_v63  ;;  %v4784_v52 = vpop.f32.mrf.mxu2  ;;  %v5064_v42 = vpop.permute.xlu1 %5063  ;;  %v5162_v13 = vsel %vm5158_vm10, %v5129_v46, 0.0  ;;  %v4940_v46 = vmax.f32 %v9657_v48, 0.0 }
 0x6b4   : > { %v4591_v59 = vpop.f32.mrf.mxu0 }
 0x6b5   : > { %v9748_v18 = vadd.f32 %v4591_v59, %v9539_v2  ;;  %v9757_v17 = vpop.permute.xlu2 %5039 }
 0x6b6   : > { %v4885_v35 = vpop.f32.mrf.mxu3 }
 0x6b7   : > { %v4886_v56 = vadd.f32 %v4885_v35, %v4773_v19  ;;  %v4674_v35 = vpop.f32.mrf.mxu1  ;;  %v4787_v11 = vpop.f32.mrf.mxu2 }
 0x6b9   : > { %v4949_v63 = vmax.f32 %v4886_v56, 0.0  ;;  %v4779_v56 = vadd.f32 %v4778_v5, %v4666_v38 }
 0x6bb   : > { %v5142_v47 = vsel %vm5125_vm9, %v4949_v63, %v5062_v29  ;;  %v4669_v29 = vadd.f32 %v4668_v53, %v9612_v30  ;;  %v4672_v30 = vadd.f32 %v4671_v58, %v9626_v3  ;;  %v4675_v58 = vadd.f32 %v4674_v35, %v9638_v33 }
 0x6bc   : > { %v4724_v21 = vpop.f32.mrf.mxu0  ;;  %v5175_v2 = vsel %vm5158_vm10, %v5142_v47, 0.0  ;;  %v5160_v47 = vsel %vm5158_vm10, %v5127_v22, 0.0 }
 0x6bd   : > { %v4725_v26 = vadd.f32 %v4724_v21, %v10749_v7  ;;  %5223 = vxpose.xlu0.b32.start [1/16] (narrow) %v5175_v2, 88  ;;  %v5066_v21 = vpop.permute.xlu2 %5065  ;;  %v4782_v5 = vadd.f32 %v4781_v25, %v4669_v29  ;;  %v4785_v25 = vadd.f32 %v4784_v52, %v4672_v30  ;;  %v4939_v30 = vmax.f32 %v9643_v57, 0.0 }
 0x6be   : > { %v4888_v61 = vpop.f32.mrf.mxu3 }
 0x6bf   : > { %v4838_v10 = vadd.f32 %v9554_v32, %v4725_v26  ;;  %v4889_v23 = vadd.f32 %v4888_v61, %v4776_v50  ;;  %v4677_v2 = vpop.f32.mrf.mxu1  ;;  %v4790_v61 = vpop.f32.mrf.mxu2 }
 0x6c0   : > { %v4678_v33 = vadd.f32 %v4677_v2, %v9652_v12 }
 0x6c1   : > { %v4933_v34 = vmax.f32 %v4838_v10, 0.0  ;;  %v4950_v37 = vmax.f32 %v4889_v23, 0.0  ;;  %v5068_v23 = vpop.permute.xlu0 %5067 }
 0x6c3   : > { %v5126_v43 = vsel %vm5125_vm9, %v4933_v34, %v5030_v55  ;;  %v5143_v19 = vsel %vm5125_vm9, %v4950_v37, %v5064_v42  ;;  %v5161_v34 = vsel %vm5158_vm10, %v5128_v41, 0.0 }
 0x6c4   : > { %v5159_v59 = vsel %vm5158_vm10, %v5126_v43, 0.0  ;;  %v5176_v32 = vsel %vm5158_vm10, %v5143_v19, 0.0  ;;  %v5070_v19 = vpop.permute.xlu1 %5069 }
 0x6c5   : > { %5191 = vxpose.xlu2.b32.start [1/16] (narrow) %v5159_v59, 88  ;;  %5224 = vxpose.xlu0.b32.cont [2/16] (narrow) %v5176_v32, 88 }
 0x6c6   : > { %v4891_v60 = vpop.f32.mrf.mxu3 }
 0x6c7   : > { %v4892_v63 = vadd.f32 %v4891_v60, %v4779_v56  ;;  %v4680_v3 = vpop.f32.mrf.mxu1  ;;  %v4793_v56 = vpop.f32.mrf.mxu2  ;;  %v4788_v60 = vadd.f32 %v4787_v11, %v4675_v58  ;;  %v4791_v11 = vadd.f32 %v4790_v61, %v4678_v33 }
 0x6c8   : > { %v4681_v40 = vadd.f32 %v4680_v3, %v9664_v44 }
 0x6c9   : > { %v4951_v55 = vmax.f32 %v4892_v63, 0.0 }
 0x6cb   : > { %v5144_v7 = vsel %vm5125_vm9, %v4951_v55, %v5066_v21  ;;  %v5072_v55 = vpop.permute.xlu2 %5071  ;;  %v5163_v21 = vsel %vm5158_vm10, %v5130_v36, 0.0 }
 0x6cc   : > { %v5177_v26 = vsel %vm5158_vm10, %v5144_v7, 0.0 }
 0x6cd   : > { %5192 = vxpose.xlu2.b32.cont [2/16] (narrow) %v5160_v47, 88  ;;  %5225 = vxpose.xlu0.b32.cont [3/16] (narrow) %v5177_v26, 88  ;;  %v4938_v47 = vmax.f32 %v9631_v27, 0.0 }
 0x6ce   : > { %v4894_v50 = vpop.f32.mrf.mxu3 }
 0x6cf   : > { %v4895_v10 = vadd.f32 %v4894_v50, %v4782_v5  ;;  %v4683_v29 = vpop.f32.mrf.mxu1  ;;  %v4796_v28 = vpop.f32.mrf.mxu2  ;;  %v5131_v12 = vsel %vm5125_vm9, %v4938_v47, %v9757_v17 }
 0x6d0   : > { %v5042_v50 = vpop.permute.xlu0 %5041  ;;  %v5164_v41 = vsel %vm5158_vm10, %v5131_v12, 0.0  ;;  %v4684_v0 = vadd.f32 %v4683_v29, %v9678_v4 }
 0x6d1   : > { %v4952_v53 = vmax.f32 %v4895_v10, 0.0  ;;  %v5074_v10 = vpop.permute.xlu1 %5073  ;;  %v5132_v17 = vsel %vm5125_vm9, %v4939_v30, %v5042_v50 }
 0x6d2   : > { %v4797_v58 = vadd.f32 %v4796_v28, %v4684_v0 }
 0x6d3   : > { %v5145_v38 = vsel %vm5125_vm9, %v4952_v53, %v5068_v23  ;;  %v4794_v23 = vadd.f32 %v4793_v56, %v4681_v40 }
 0x6d4   : > { %v5178_v37 = vsel %vm5158_vm10, %v5145_v38, 0.0 }
 0x6d5   : > { %5193 = vxpose.xlu2.b32.cont [3/16] (narrow) %v5161_v34, 88  ;;  %5226 = vxpose.xlu0.b32.cont [4/16] (narrow) %v5178_v37, 88 }
 0x6d6   : > { %v4897_v42 = vpop.f32.mrf.mxu3 }
 0x6d7   : > { %v4898_v43 = vadd.f32 %v4897_v42, %v4785_v25  ;;  %v4686_v53 = vpop.f32.mrf.mxu1  ;;  %v4799_v44 = vpop.f32.mrf.mxu2 }
 0x6d8   : > { %v5044_v25 = vpop.permute.xlu2 %5043  ;;  %v5076_v42 = vpop.permute.xlu0 %5075  ;;  %v4687_v1 = vadd.f32 %v4686_v53, %v9692_v9 }
 0x6d9   : > { %v4953_v59 = vmax.f32 %v4898_v43, 0.0  ;;  %v5165_v43 = vsel %vm5158_vm10, %v5132_v17, 0.0  ;;  %v5046_v4 = vpop.permute.xlu1 %5045 }
 0x6da   : > { %v4800_v33 = vadd.f32 %v4799_v44, %v4687_v1 }
 0x6db   : > { %v5146_v32 = vsel %vm5125_vm9, %v4953_v59, %v5070_v19 }
 0x6dc   : > { %v5179_v52 = vsel %vm5158_vm10, %v5146_v32, 0.0  ;;  %v5133_v32 = vsel %vm5125_vm9, %v4940_v46, %v5044_v25 }
 0x6dd   : > { %5194 = vxpose.xlu2.b32.cont [4/16] (narrow) %v5162_v13, 88  ;;  %5227 = vxpose.xlu0.b32.cont [5/16] (narrow) %v5179_v52, 88 }
 0x6de   : > { %v4900_v63 = vpop.f32.mrf.mxu3 }
 0x6df   : > { %v4901_v22 = vadd.f32 %v4900_v63, %v4788_v60  ;;  %v4689_v59 = vpop.f32.mrf.mxu1  ;;  %v4802_v52 = vpop.f32.mrf.mxu2  ;;  %v5166_v63 = vsel %vm5158_vm10, %v5133_v32, 0.0 }
 0x6e0   : > { %v5078_v60 = vpop.permute.xlu2 %5077  ;;  %v4690_v9 = vadd.f32 %v4689_v59, %v9706_v54  ;;  %v5048_v47 = vpop.permute.xlu0 %5047 }
 0x6e1   : > { %v4954_v35 = vmax.f32 %v4901_v22, 0.0  ;;  %v4941_v22 = vmax.f32 %v9669_v31, 0.0  ;;  %v4942_v31 = vmax.f32 %v9683_v8, 0.0 }
 0x6e2   : > { %v4803_v12 = vadd.f32 %v4802_v52, %v4690_v9 }
 0x6e3   : > { %v5147_v15 = vsel %vm5125_vm9, %v4954_v35, %v5072_v55  ;;  %v5134_v55 = vsel %vm5125_vm9, %v4941_v22, %v5046_v4  ;;  %v5135_v50 = vsel %vm5125_vm9, %v4942_v31, %v5048_v47  ;;  %v4946_v47 = vmax.f32 %v9726_v51, 0.0 }
 0x6e4   : > { %v5180_v7 = vsel %vm5158_vm10, %v5147_v15, 0.0  ;;  %v5168_v53 = vsel %vm5158_vm10, %v5135_v50, 0.0 }
 0x6e5   : > { %5195 = vxpose.xlu2.b32.cont [5/16] (narrow) %v5163_v21, 88  ;;  %5228 = vxpose.xlu0.b32.cont [6/16] (narrow) %v5180_v7, 88  ;;  %v5080_v7 = vpop.permute.xlu1 %5079 }
 0x6e6   : > { %v4903_v26 = vpop.f32.mrf.mxu3 }
 0x6e7   : > { %v4904_v5 = vadd.f32 %v4903_v26, %v4791_v11  ;;  %v4692_v21 = vpop.f32.mrf.mxu1  ;;  %v5167_v11 = vsel %vm5158_vm10, %v5134_v55, 0.0  ;;  %v4805_v26 = vpop.f32.mrf.mxu2 }
 0x6e8   : > { %v5050_v54 = vpop.permute.xlu2 %5049  ;;  %v5082_v30 = vpop.permute.xlu0 %5081 }
 0x6e9   : > { %v4955_v2 = vmax.f32 %v4904_v5, 0.0 }
 0x6eb   : > { %v5148_v27 = vsel %vm5125_vm9, %v4955_v2, %v5074_v10  ;;  %v4693_v10 = vadd.f32 %v4692_v21, %v9714_v20 }
 0x6ec   : > { %v5181_v61 = vsel %vm5158_vm10, %v5148_v27, 0.0 }
 0x6ed   : > { %5196 = vxpose.xlu2.b32.cont [6/16] (narrow) %v5164_v41, 88  ;;  %5229 = vxpose.xlu0.b32.cont [7/16] (narrow) %v5181_v61, 88  ;;  %v4943_v61 = vmax.f32 %v9697_v39, 0.0  ;;  %v5052_v25 = vpop.permute.xlu1 %5051  ;;  %v4944_v39 = vmax.f32 %v9709_v62, 0.0 }
 0x6ee   : > { %v4906_v34 = vpop.f32.mrf.mxu3 }
 0x6ef   : > { %v4907_v38 = vadd.f32 %v4906_v34, %v4794_v23  ;;  %v4695_v27 = vpop.f32.mrf.mxu1  ;;  %v4806_v34 = vadd.f32 %v4805_v26, %v4693_v10  ;;  %v5136_v0 = vsel %vm5125_vm9, %v4943_v61, %v5050_v54  ;;  %v4947_v10 = vmax.f32 %v9735_v49, 0.0 }
 0x6f0   : > { %v4696_v20 = vadd.f32 %v4695_v27, %v9723_v45  ;;  %v5054_v1 = vpop.permute.xlu0 %5053 }
 0x6f1   : > { %v4956_v37 = vmax.f32 %v4907_v38, 0.0  ;;  %v4808_v38 = vpop.f32.mrf.mxu2 }
 0x6f3   : > { %v5149_v57 = vsel %vm5125_vm9, %v4956_v37, %v5076_v42  ;;  %v5084_v42 = vpop.permute.xlu2 %5083 }
 0x6f4   : > { %v5182_v3 = vsel %vm5158_vm10, %v5149_v57, 0.0 }
 0x6f5   : > { %5197 = vxpose.xlu2.b32.cont [7/16] (narrow) %v5165_v43, 88  ;;  %5230 = vxpose.xlu0.b32.cont [8/16] (narrow) %v5182_v3, 88  ;;  %v5169_v43 = vsel %vm5158_vm10, %v5136_v0, 0.0 }
 0x6f6   : > { %v4909_v19 = vpop.f32.mrf.mxu3 }
 0x6f7   : > { %v4910_v13 = vadd.f32 %v4909_v19, %v4797_v58  ;;  %v4698_v46 = vpop.f32.mrf.mxu1  ;;  %v4809_v58 = vadd.f32 %v4808_v38, %v4696_v20  ;;  %v4948_v38 = vmax.f32 %v9742_v24, 0.0 }
 0x6f8   : > { %v4699_v32 = vadd.f32 %v4698_v46, %v9732_v14  ;;  %v5088_v9 = vpop.permute.xlu0 %5087 }
 0x6f9   : > { %v4957_v56 = vmax.f32 %v4910_v13, 0.0  ;;  %v5137_v13 = vsel %vm5125_vm9, %v4944_v39, %v5052_v25  ;;  %v4811_v45 = vpop.f32.mrf.mxu2 }
 0x6fa   : > { %v5170_v52 = vsel %vm5158_vm10, %v5137_v13, 0.0  ;;  %v4812_v22 = vadd.f32 %v4811_v45, %v4699_v32 }
 0x6fb   : > { %v5150_v48 = vsel %vm5125_vm9, %v4957_v56, %v5078_v60  ;;  %v5086_v56 = vpop.permute.xlu1 %5085  ;;  %v4945_v60 = vmax.f32 %v9717_v6, 0.0  ;;  %v5056_v21 = vpop.permute.xlu2 %5055 }
 0x6fc   : > { %v5183_v36 = vsel %vm5158_vm10, %v5150_v48, 0.0 }
 0x6fd   : > { %5198 = vxpose.xlu2.b32.cont [8/16] (narrow) %v5166_v63, 88  ;;  %5231 = vxpose.xlu0.b32.cont [9/16] (narrow) %v5183_v36, 88 }
 0x6fe   : > { %v4912_v35 = vpop.f32.mrf.mxu3 }
 0x6ff   : > { %v4913_v29 = vadd.f32 %v4912_v35, %v4800_v33  ;;  %v4701_v63 = vpop.f32.mrf.mxu1  ;;  %v5138_v35 = vsel %vm5125_vm9, %v4945_v60, %v5054_v1 }
 0x701   : > { %v4958_v15 = vmax.f32 %v4913_v29, 0.0  ;;  %v4814_v14 = vpop.f32.mrf.mxu2  ;;  %v4702_v29 = vadd.f32 %v4701_v63, %v9739_v16 }
 0x703   : > { %v5151_v28 = vsel %vm5125_vm9, %v4958_v15, %v5080_v7  ;;  %v5171_v15 = vsel %vm5158_vm10, %v5138_v35, 0.0  ;;  %v5058_v16 = vpop.permute.xlu1 %5057  ;;  %v5090_v50 = vpop.permute.xlu2 %5089 }
 0x704   : > { %v5184_v5 = vsel %vm5158_vm10, %v5151_v28, 0.0 }
 0x705   : > { %5199 = vxpose.xlu2.b32.cont [9/16] (narrow) %v5167_v11, 88  ;;  %5232 = vxpose.xlu0.b32.cont [10/16] (narrow) %v5184_v5, 88  ;;  %v4815_v11 = vadd.f32 %v4814_v14, %v4702_v29  ;;  %v5139_v5 = vsel %vm5125_vm9, %v4946_v47, %v5056_v21 }
 0x706   : > { %v4915_v40 = vpop.f32.mrf.mxu3  ;;  %v5172_v54 = vsel %vm5158_vm10, %v5139_v5, 0.0 }
 0x707   : > { %v4916_v2 = vadd.f32 %v4915_v40, %v4803_v12  ;;  %v4704_v28 = vpop.f32.mrf.mxu1 }
 0x708   : > { %v4705_v12 = vadd.f32 %v4704_v28, %v9748_v18 }
 0x709   : > { %v4959_v41 = vmax.f32 %v4916_v2, 0.0  ;;  %v4817_v2 = vpop.f32.mrf.mxu2 }
 0x70a   : > { %v4818_v27 = vadd.f32 %v4817_v2, %v4705_v12 }
 0x70b   : > { %v5152_v8 = vsel %vm5125_vm9, %v4959_v41, %v5082_v30  ;;  %v5092_v18 = vpop.permute.xlu1 %5091 }
 0x70c   : > { %v5185_v23 = vsel %vm5158_vm10, %v5152_v8, 0.0  ;;  %v5140_v8 = vsel %vm5125_vm9, %v4947_v10, %v5058_v16 }
 0x70d   : > { %5200 = vxpose.xlu2.b32.cont [10/16] (narrow) %v5168_v53, 88  ;;  %5233 = vxpose.xlu0.b32.cont [11/16] (narrow) %v5185_v23, 88  ;;  %v5173_v23 = vsel %vm5158_vm10, %v5140_v8, 0.0 }
 0x70e   : > { %v4918_v17 = vpop.f32.mrf.mxu3 }
 0x70f   : > { %v4919_v44 = vadd.f32 %v4918_v17, %v4806_v34  ;;  %v5060_v17 = vpop.permute.xlu0 %5059 }
 0x711   : > { %v4960_v37 = vmax.f32 %v4919_v44, 0.0  ;;  %v5141_v44 = vsel %vm5125_vm9, %v4948_v38, %v5060_v17 }
 0x712   : > { %v5174_v0 = vsel %vm5158_vm10, %v5141_v44, 0.0 }
 0x713   : > { %v5153_v57 = vsel %vm5125_vm9, %v4960_v37, %v5084_v42 }
 0x714   : > { %v5186_v3 = vsel %vm5158_vm10, %v5153_v57, 0.0 }
 0x715   : > { %5201 = vxpose.xlu2.b32.cont [11/16] (narrow) %v5169_v43, 88  ;;  %5234 = vxpose.xlu0.b32.cont [12/16] (narrow) %v5186_v3, 88 }
 0x716   : > { %v4921_v59 = vpop.f32.mrf.mxu3 }
 0x717   : > { %v4922_v19 = vadd.f32 %v4921_v59, %v4809_v58 }
 0x719   : > { %v4961_v4 = vmax.f32 %v4922_v19, 0.0 }
 0x71b   : > { %v5154_v62 = vsel %vm5125_vm9, %v4961_v4, %v5086_v56 }
 0x71c   : > { %v5187_v48 = vsel %vm5158_vm10, %v5154_v62, 0.0 }
 0x71d   : > { %5202 = vxpose.xlu2.b32.cont [12/16] (narrow) %v5170_v52, 88  ;;  %5235 = vxpose.xlu0.b32.cont [13/16] (narrow) %v5187_v48, 88 }
 0x71e   : > { %v4924_v36 = vpop.f32.mrf.mxu3 }
 0x71f   : > { %v4925_v33 = vadd.f32 %v4924_v36, %v4812_v22 }
 0x721   : > { %v4962_v55 = vmax.f32 %v4925_v33, 0.0 }
 0x723   : > { %v5155_v6 = vsel %vm5125_vm9, %v4962_v55, %v5088_v9 }
 0x724   : > { %v5188_v7 = vsel %vm5158_vm10, %v5155_v6, 0.0 }
 0x725   : > { %5203 = vxpose.xlu2.b32.cont [13/16] (narrow) %v5171_v15, 88  ;;  %5236 = vxpose.xlu0.b32.cont [14/16] (narrow) %v5188_v7, 88 }
 0x726   : > { %v4927_v31 = vpop.f32.mrf.mxu3 }
 0x727   : > { %v4928_v26 = vadd.f32 %v4927_v31, %v4815_v11 }
 0x729   : > { %v4963_v40 = vmax.f32 %v4928_v26, 0.0 }
 0x72b   : > { %v5156_v51 = vsel %vm5125_vm9, %v4963_v40, %v5090_v50 }
 0x72c   : > { %v5189_v41 = vsel %vm5158_vm10, %v5156_v51, 0.0 }
 0x72d   : > { %5204 = vxpose.xlu2.b32.cont [14/16] (narrow) %v5172_v54, 88  ;;  %5237 = vxpose.xlu0.b32.cont [15/16] (narrow) %v5189_v41, 88 }
 0x72e   : > { %v4930_v30 = vpop.f32.mrf.mxu3 }
 0x72f   : > { %v4931_v53 = vadd.f32 %v4930_v30, %v4818_v27 }
 0x731   : > { %v4964_v61 = vmax.f32 %v4931_v53, 0.0 }
 0x733   : > { %v5157_v34 = vsel %vm5125_vm9, %v4964_v61, %v5092_v18 }
 0x734   : > { %v5190_v49 = vsel %vm5158_vm10, %v5157_v34, 0.0 }
 0x735   : > { %5205 = vxpose.xlu2.b32.cont [15/16] (narrow) %v5173_v23, 88  ;;  %5238 = vxpose.xlu0.b32.end [16/16] (narrow) %v5190_v49, 88 }
 0x73d   : > { %5206 = vxpose.xlu2.b32.end [16/16] (narrow) %v5174_v0, 88 }
 0x75e   : > { %v5207_v24 = vpop.trf.xlu2 }
 0x75f   : > { %5255 = vst [vmem:[%s9857_s14] sm:$0xff] %v5207_v24 }
 0x761   : > { %v5239_v20 = vpop.trf.xlu0 }
 0x762   : > { %5256 = vst [vmem:[%s9857_s14 + $0x8] sm:$0xff] %v5239_v20 }
 0x766   : > { %v5208_v37 = vpop.trf.xlu2 }
 0x767   : > { %5257 = vst [vmem:[%s9857_s14 + $0x10] sm:$0xff] %v5208_v37 }
 0x769   : > { %v5240_v25 = vpop.trf.xlu0 }
 0x76a   : > { %5258 = vst [vmem:[%s9857_s14 + $0x18] sm:$0xff] %v5240_v25 }
 0x76e   : > { %v5209_v42 = vpop.trf.xlu2 }
 0x76f   : > { %5259 = vst [vmem:[%s9857_s14 + $0x20] sm:$0xff] %v5209_v42 }
 0x771   : > { %v5241_v43 = vpop.trf.xlu0 }
 0x772   : > { %5260 = vst [vmem:[%s9857_s14 + $0x28] sm:$0xff] %v5241_v43 }
 0x776   : > { %v5210_v57 = vpop.trf.xlu2 }
 0x777   : > { %5261 = vst [vmem:[%s9857_s14 + $0x30] sm:$0xff] %v5210_v57 }
 0x779   : > { %v5242_v39 = vpop.trf.xlu0 }
 0x77a   : > { %5262 = vst [vmem:[%s9857_s14 + $0x38] sm:$0xff] %v5242_v39 }
 0x77e   : > { %v5211_v46 = vpop.trf.xlu2 }
 0x77f   : > { %5263 = vst [vmem:[%s9857_s14 + $0x40] sm:$0xff] %v5211_v46 }
 0x781   : > { %v5243_v3 = vpop.trf.xlu0 }
 0x782   : > { %5264 = vst [vmem:[%s9857_s14 + $0x48] sm:$0xff] %v5243_v3 }
 0x786   : > { %v5212_v58 = vpop.trf.xlu2 }
 0x787   : > { %5265 = vst [vmem:[%s9857_s14 + $0x50] sm:$0xff] %v5212_v58 }
 0x789   : > { %v5244_v59 = vpop.trf.xlu0 }
 0x78a   : > { %5266 = vst [vmem:[%s9857_s14 + $0x58] sm:$0xff] %v5244_v59 }
 0x78e   : > { %v5213_v19 = vpop.trf.xlu2 }
 0x78f   : > { %5267 = vst [vmem:[%s9857_s14 + $0x60] sm:$0xff] %v5213_v19 }
 0x791   : > { %v5245_v13 = vpop.trf.xlu0 }
 0x792   : > { %5268 = vst [vmem:[%s9857_s14 + $0x68] sm:$0xff] %v5245_v13 }
 0x796   : > { %v5214_v45 = vpop.trf.xlu2 }
 0x797   : > { %5269 = vst [vmem:[%s9857_s14 + $0x70] sm:$0xff] %v5214_v45 }
 0x799   : > { %v5246_v32 = vpop.trf.xlu0 }
 0x79a   : > { %5270 = vst [vmem:[%s9857_s14 + $0x78] sm:$0xff] %v5246_v32 }
 0x79e   : > { %v5215_v4 = vpop.trf.xlu2 }
 0x79f   : > { %5271 = vst [vmem:[%s9857_s14 + $0x80] sm:$0xff] %v5215_v4 }
 0x7a1   : > { %v5247_v1 = vpop.trf.xlu0 }
 0x7a2   : > { %5272 = vst [vmem:[%s9857_s14 + $0x88] sm:$0xff] %v5247_v1 }
 0x7a6   : > { %v5216_v56 = vpop.trf.xlu2 }
 0x7a7   : > { %5273 = vst [vmem:[%s9857_s14 + $0x90] sm:$0xff] %v5216_v56 }
 0x7a9   : > { %v5248_v52 = vpop.trf.xlu0 }
 0x7aa   : > { %5274 = vst [vmem:[%s9857_s14 + $0x98] sm:$0xff] %v5248_v52 }
 0x7ae   : > { %v5217_v62 = vpop.trf.xlu2 }
 0x7af   : > { %5275 = vst [vmem:[%s9857_s14 + $0xa0] sm:$0x3] %v5217_v62 }
 0x7b1   : > { %v5249_v60 = vpop.trf.xlu0 }
 0x7b2   : > { %5276 = vst [vmem:[%s9857_s14 + $0xa8] sm:$0x3] %v5249_v60 }
 0x7b3 PF: > { %s21_s17 = sadd.s32 1, %s5753_s17  }
 0x7b4   : > { %p18_p4 = scmp.ge.s32.totalorder %s21_s17, 4  }
 0x7b6   :  { %20 = sbr.rel (!%p18_p4) target bundleno = 1 (0x1), region = 100 }

</bundles_post_ra>
